<compile_context>
chip_gen: v5e
topology: v5e:2x2
jax: 0.10.0
libtpu: 0.0.40
codegen_flags: <defaults>
</compile_context>

<pallas_src>
import jax
import jax.numpy as jnp
from jax.experimental import pallas as pl
from jax.experimental.pallas import tpu as pltpu

# Logical (PyTorch) dimensions.
IN_CHANNELS = 28 * 28            # 784
OUT_CHANNELS = 2 * 28 * 28       # 1568 (so the final complex view works)
H1 = IN_CHANNELS // 2            # 392
H2 = IN_CHANNELS // 4            # 196
H3 = OUT_CHANNELS // 8           # 196
NEG_SLOPE = 0.01                 # nn.LeakyReLU default

# Lane-aligned (padded) hidden widths used inside the kernel.
H1_P = 512                       # 392 -> 4*128
H2_P = 256                       # 196 -> 2*128
H3_P = 256                       # 196 -> 2*128
PLANE = IN_CHANNELS              # 784 real cols + 784 imag cols (planar fc4 outputs)


def _round_up(n, m):
    return (n + m - 1) // m * m


def _ceil_div(a, b):
    return -(-a // b)


def _leaky_relu(v):
    # slope < 1 => max(v, slope*v) == LeakyReLU(v); mul+max instead of cmp+select+mul.
    return jnp.maximum(v, NEG_SLOPE * v)


def fc_phase_retrival_kernel(x_ref,
                             w1_ref, b1_ref,
                             w2_ref, b2_ref,
                             w3_ref, b3_ref,
                             w4r_ref, b4r_ref,
                             w4i_ref, b4i_ref,
                             out_r_ref, out_i_ref):
    """Whole 4-layer MLP for one batch tile, fully in VMEM.

    Weights are bf16 (MXU operands); accumulation, bias add and LeakyReLU are f32
    (v5e has no bf16 VPU).  fc4 is evaluated as two planar dots (real / imag halves).
    """
    h = x_ref[...].astype(jnp.bfloat16)

    h = jnp.dot(h, w1_ref[...], preferred_element_type=jnp.float32) + b1_ref[...]
    h = _leaky_relu(h).astype(jnp.bfloat16)

    h = jnp.dot(h, w2_ref[...], preferred_element_type=jnp.float32) + b2_ref[...]
    h = _leaky_relu(h).astype(jnp.bfloat16)

    h = jnp.dot(h, w3_ref[...], preferred_element_type=jnp.float32) + b3_ref[...]
    h = _leaky_relu(h).astype(jnp.bfloat16)

    hr = jnp.dot(h, w4r_ref[...], preferred_element_type=jnp.float32) + b4r_ref[...]
    hi = jnp.dot(h, w4i_ref[...], preferred_element_type=jnp.float32) + b4i_ref[...]
    out_r_ref[...] = _leaky_relu(hr)
    out_i_ref[...] = _leaky_relu(hi)


def _choose_tiling(B, batch_tile):
    """Pick (tile_rows, num_steps) so padding waste is <8 rows/step and >=2 steps when possible."""
    B8 = _round_up(max(B, 1), 8)
    cap = _round_up(max(8, min(batch_tile, B8)), 8)
    n_steps = _ceil_div(B8, cap)
    if n_steps == 1 and B8 >= 16:
        n_steps = 2                      # let v7x shard the parallel batch axis over 2 TCs
    tb = _round_up(_ceil_div(B8, n_steps), 8)
    return tb, n_steps


def _vmem_limit_bytes(tb):
    """Per-tile VMEM footprint (+headroom); sized so the default tile also fits v7x (64 MiB)."""
    f32, bf16 = 4, 2
    in_blk = tb * IN_CHANNELS * f32                       # input block
    out_blk = tb * PLANE * f32                            # one planar output block
    w_elems = (IN_CHANNELS * H1_P + H1_P * H2_P + H2_P * H3_P + 2 * H3_P * PLANE)
    w_bytes = w_elems * bf16
    b_bytes = 8 * (H1_P + H2_P + H3_P + 2 * PLANE) * f32  # (1,w) blocks pad to 8 sublanes
    interm = tb * (H1_P + H2_P + H3_P) * (f32 + bf16)     # f32 acts + bf16 copies
    total = (2 * in_blk                 # double-buffered input
             + 2 * 2 * out_blk          # two double-buffered planar outputs
             + 2 * (w_bytes + b_bytes)  # budget weights at 2 bufs (fallback path)
             + interm
             + 8 * 1024 * 1024)         # headroom for Mosaic internal scratch
    return max(32 * 1024 * 1024, int(total))


def fc_phase_retrival_forward(x, kernel_params, *, batch_tile=1024, return_planar=False):
    """x: (B, 1, 28, 28) or anything reshapeable to (-1, 784), float32.

    kernel_params: output of pack_params() (padded / split / bf16 weights).
    Returns complex64 (B, 1, 28, 28) matching `torch.view_as_complex(x.view(-1,1,28,28,2))`,
    or the two planar f32 (B, 784) planes if return_planar=True (lets the consumer skip
    the complex-interleave epilogue entirely).
    """
    x2d = x.reshape(-1, IN_CHANNELS).astype(jnp.float32)
    B = x2d.shape[0]

    tb, n_steps = _choose_tiling(B, batch_tile)
    Bp = tb * n_steps
    if Bp != B:
        x2d = jnp.pad(x2d, ((0, Bp - B), (0, 0)))

    (w1, b1), (w2, b2), (w3, b3), (w4r, b4r), (w4i, b4i) = kernel_params

    def _run(single_buffer_weights):
        # Weights/biases: full-array blocks, constant index_map -> fetched once and kept
        # resident across all batch tiles.  Single-buffered when supported (saves ~2 MiB).
        if single_buffer_weights:
            rep_kwargs = dict(pipeline_mode=pl.Buffered(1))
        else:
            rep_kwargs = {}

        def rep(arr):
            return pl.BlockSpec(arr.shape, lambda i: (0, 0), **rep_kwargs)

        grid_spec = pltpu.PrefetchScalarGridSpec(
            num_scalar_prefetch=0,
            grid=(n_steps,),
            in_specs=[
                pl.BlockSpec((tb, IN_CHANNELS), lambda i: (i, 0)),
                rep(w1), rep(b1),
                rep(w2), rep(b2),
                rep(w3), rep(b3),
                rep(w4r), rep(b4r),
                rep(w4i), rep(b4i),
            ],
            out_specs=(
                pl.BlockSpec((tb, PLANE), lambda i: (i, 0)),
                pl.BlockSpec((tb, PLANE), lambda i: (i, 0)),
            ),
        )
        return pl.pallas_call(
            fc_phase_retrival_kernel,
            out_shape=(jax.ShapeDtypeStruct((Bp, PLANE), jnp.float32),
                       jax.ShapeDtypeStruct((Bp, PLANE), jnp.float32)),
            grid_spec=grid_spec,
            compiler_params=pltpu.CompilerParams(
                dimension_semantics=("parallel",),
                vmem_limit_bytes=_vmem_limit_bytes(tb),
            ),
        )(x2d, w1, b1, w2, b2, w3, b3, w4r, b4r, w4i, b4i)

    try:
        yr, yi = _run(single_buffer_weights=True)
    except Exception:
        # pipeline_mode=pl.Buffered(1) not supported by this JAX build -> default buffering.
        yr, yi = _run(single_buffer_weights=False)

    if return_planar:
        return yr[:B], yi[:B]

    real = yr[:B].reshape(B, 1, 28, 28)
    imag = yi[:B].reshape(B, 1, 28, 28)
    return jax.lax.complex(real, imag)


def init_params(key):
    """Logical (unpadded) f32 params, stored as (in, out) = W.T (PyTorch-style init scale)."""
    dims = [(IN_CHANNELS, H1), (H1, H2), (H2, H3), (H3, OUT_CHANNELS)]
    params = []
    for fan_in, fan_out in dims:
        key, kw, kb = jax.random.split(key, 3)
        bound = 1.0 / jnp.sqrt(fan_in)
        w = jax.random.uniform(kw, (fan_in, fan_out), jnp.float32, -bound, bound)
        b = jax.random.uniform(kb, (fan_out,), jnp.float32, -bound, bound)
        params.append((w, b))
    return params


def pack_params(params):
    """Pad to lane-aligned widths, split fc4 into planar real/imag halves, cast W -> bf16.

    Padding rows/columns get zero weights AND zero biases so padded activations stay
    exactly 0 through LeakyReLU and the subsequent (zero) weight rows.
    """
    (w1, b1), (w2, b2), (w3, b3), (w4, b4) = params

    def pad_to(w, b, rows, cols):
        wp = jnp.zeros((rows, cols), jnp.float32).at[:w.shape[0], :w.shape[1]].set(w)
        bp = jnp.zeros((1, cols), jnp.float32).at[0, :b.shape[0]].set(b)
        return wp.astype(jnp.bfloat16), bp

    w1p, b1p = pad_to(w1, b1, IN_CHANNELS, H1_P)
    w2p, b2p = pad_to(w2, b2, H1_P, H2_P)
    w3p, b3p = pad_to(w3, b3, H2_P, H3_P)
    # fc4 output columns are interleaved [re0, im0, re1, im1, ...]; split into planar halves.
    w4r, b4r = pad_to(w4[:, 0::2], b4[0::2], H3_P, PLANE)
    w4i, b4i = pad_to(w4[:, 1::2], b4[1::2], H3_P, PLANE)

    return [(w1p, b1p), (w2p, b2p), (w3p, b3p), (w4r, b4r), (w4i, b4i)]


def reference_forward(x, params):
    """Pure-JAX reference (same bf16-operand / f32-accumulate numerics as the kernel)."""
    h = x.reshape(-1, IN_CHANNELS).astype(jnp.float32)
    for w, b in params:
        h = jnp.dot(h.astype(jnp.bfloat16), w.astype(jnp.bfloat16),
                    preferred_element_type=jnp.float32) + b
        h = _leaky_relu(h)
    h5 = h.reshape(-1, 1, 28, 28, 2)
    return jax.lax.complex(h5[..., 0], h5[..., 1])


def _check(B, key):
    kx, kp = jax.random.split(key)
    x = jax.random.normal(kx, (B, 1, 28, 28), jnp.float32)
    params = init_params(kp)          # logical params (for the reference)
    kparams = pack_params(params)     # padded / split / bf16 params (for the kernel)

    out = jax.block_until_ready(fc_phase_retrival_forward(x, kparams))
    ref = reference_forward(x, params)

    assert out.shape == (B, 1, 28, 28) and out.dtype == jnp.complex64
    assert jnp.allclose(out, ref, atol=5e-3, rtol=5e-3), \
        float(jnp.max(jnp.abs(out - ref)))


if __name__ == "__main__":
    key = jax.random.PRNGKey(0)
    k1, k2 = jax.random.split(key)

    _check(B=2, key=k1)    # single-tile path
    _check(B=20, key=k2)   # multi-step grid + batch-tail padding path

    print("KERNEL_OK")
</pallas_src>

<mosaic_0001>
module attributes {stable_mosaic.version = 11 : i64} {
  func.func @fc_phase_retrival_kernel(%arg0: i32, %arg1: memref<8x784xf32, #tpu.memory_space<vmem>>, %arg2: memref<784x512xbf16, #tpu.memory_space<vmem>>, %arg3: memref<1x512xf32, #tpu.memory_space<vmem>>, %arg4: memref<512x256xbf16, #tpu.memory_space<vmem>>, %arg5: memref<1x256xf32, #tpu.memory_space<vmem>>, %arg6: memref<256x256xbf16, #tpu.memory_space<vmem>>, %arg7: memref<1x256xf32, #tpu.memory_space<vmem>>, %arg8: memref<256x784xbf16, #tpu.memory_space<vmem>>, %arg9: memref<1x784xf32, #tpu.memory_space<vmem>>, %arg10: memref<256x784xbf16, #tpu.memory_space<vmem>>, %arg11: memref<1x784xf32, #tpu.memory_space<vmem>>, %arg12: memref<8x784xf32, #tpu.memory_space<vmem>>, %arg13: memref<8x784xf32, #tpu.memory_space<vmem>>) attributes {dimension_semantics = [#tpu.dimension_semantics<parallel>], iteration_bounds = array<i64: 1>, scalar_prefetch = 0 : i64, scratch_operands = 0 : i64, tpu.core_type = #tpu.core_type<tc>, window_params = [{transform_indices = @transform_0, window_bounds = array<i64: 8, 784>}, {pipeline_mode = #tpu.pipeline_mode<synchronous>, transform_indices = @transform_1, window_bounds = array<i64: 784, 512>}, {pipeline_mode = #tpu.pipeline_mode<synchronous>, transform_indices = @transform_2, window_bounds = array<i64: 1, 512>}, {pipeline_mode = #tpu.pipeline_mode<synchronous>, transform_indices = @transform_3, window_bounds = array<i64: 512, 256>}, {pipeline_mode = #tpu.pipeline_mode<synchronous>, transform_indices = @transform_4, window_bounds = array<i64: 1, 256>}, {pipeline_mode = #tpu.pipeline_mode<synchronous>, transform_indices = @transform_5, window_bounds = array<i64: 256, 256>}, {pipeline_mode = #tpu.pipeline_mode<synchronous>, transform_indices = @transform_6, window_bounds = array<i64: 1, 256>}, {pipeline_mode = #tpu.pipeline_mode<synchronous>, transform_indices = @transform_7, window_bounds = array<i64: 256, 784>}, {pipeline_mode = #tpu.pipeline_mode<synchronous>, transform_indices = @transform_8, window_bounds = array<i64: 1, 784>}, {pipeline_mode = #tpu.pipeline_mode<synchronous>, transform_indices = @transform_9, window_bounds = array<i64: 256, 784>}, {pipeline_mode = #tpu.pipeline_mode<synchronous>, transform_indices = @transform_10, window_bounds = array<i64: 1, 784>}, {transform_indices = @transform_11, window_bounds = array<i64: 8, 784>}, {transform_indices = @transform_12, window_bounds = array<i64: 8, 784>}]} {
    %c0 = arith.constant 0 : index
    %c0_0 = arith.constant 0 : index
    %0 = vector.load %arg1[%c0, %c0_0] : memref<8x784xf32, #tpu.memory_space<vmem>>, vector<8x784xf32>
    %1 = arith.truncf %0 : vector<8x784xf32> to vector<8x784xbf16>
    %c0_1 = arith.constant 0 : index
    %c0_2 = arith.constant 0 : index
    %2 = vector.load %arg2[%c0_1, %c0_2] : memref<784x512xbf16, #tpu.memory_space<vmem>>, vector<784x512xbf16>
    %cst = arith.constant dense<0.000000e+00> : vector<8x512xf32>
    %3 = tpu.matmul %1, %2, %cst {dimension_numbers = #tpu.dot_dimension_numbers<[1], [0], [0], [1], [0, 0, 1, 1], [], []>} : vector<8x784xbf16>, vector<784x512xbf16>, vector<8x512xf32> -> vector<8x512xf32>
    %c0_3 = arith.constant 0 : index
    %c0_4 = arith.constant 0 : index
    %4 = vector.load %arg3[%c0_3, %c0_4] : memref<1x512xf32, #tpu.memory_space<vmem>>, vector<1x512xf32>
    %5 = vector.broadcast %4 : vector<1x512xf32> to vector<8x512xf32>
    %6 = arith.addf %3, %5 : vector<8x512xf32>
    %cst_5 = arith.constant 0.00999999977 : f32
    %7 = vector.broadcast %cst_5 : f32 to vector<8x512xf32>
    %8 = arith.mulf %7, %6 : vector<8x512xf32>
    %9 = arith.maximumf %6, %8 : vector<8x512xf32>
    %10 = arith.truncf %9 : vector<8x512xf32> to vector<8x512xbf16>
    %c0_6 = arith.constant 0 : index
    %c0_7 = arith.constant 0 : index
    %11 = vector.load %arg4[%c0_6, %c0_7] : memref<512x256xbf16, #tpu.memory_space<vmem>>, vector<512x256xbf16>
    %cst_8 = arith.constant dense<0.000000e+00> : vector<8x256xf32>
    %12 = tpu.matmul %10, %11, %cst_8 {dimension_numbers = #tpu.dot_dimension_numbers<[1], [0], [0], [1], [0, 0, 1, 1], [], []>} : vector<8x512xbf16>, vector<512x256xbf16>, vector<8x256xf32> -> vector<8x256xf32>
    %c0_9 = arith.constant 0 : index
    %c0_10 = arith.constant 0 : index
    %13 = vector.load %arg5[%c0_9, %c0_10] : memref<1x256xf32, #tpu.memory_space<vmem>>, vector<1x256xf32>
    %14 = vector.broadcast %13 : vector<1x256xf32> to vector<8x256xf32>
    %15 = arith.addf %12, %14 : vector<8x256xf32>
    %cst_11 = arith.constant 0.00999999977 : f32
    %16 = vector.broadcast %cst_11 : f32 to vector<8x256xf32>
    %17 = arith.mulf %16, %15 : vector<8x256xf32>
    %18 = arith.maximumf %15, %17 : vector<8x256xf32>
    %19 = arith.truncf %18 : vector<8x256xf32> to vector<8x256xbf16>
    %c0_12 = arith.constant 0 : index
    %c0_13 = arith.constant 0 : index
    %20 = vector.load %arg6[%c0_12, %c0_13] : memref<256x256xbf16, #tpu.memory_space<vmem>>, vector<256x256xbf16>
    %cst_14 = arith.constant dense<0.000000e+00> : vector<8x256xf32>
    %21 = tpu.matmul %19, %20, %cst_14 {dimension_numbers = #tpu.dot_dimension_numbers<[1], [0], [0], [1], [0, 0, 1, 1], [], []>} : vector<8x256xbf16>, vector<256x256xbf16>, vector<8x256xf32> -> vector<8x256xf32>
    %c0_15 = arith.constant 0 : index
    %c0_16 = arith.constant 0 : index
    %22 = vector.load %arg7[%c0_15, %c0_16] : memref<1x256xf32, #tpu.memory_space<vmem>>, vector<1x256xf32>
    %23 = vector.broadcast %22 : vector<1x256xf32> to vector<8x256xf32>
    %24 = arith.addf %21, %23 : vector<8x256xf32>
    %cst_17 = arith.constant 0.00999999977 : f32
    %25 = vector.broadcast %cst_17 : f32 to vector<8x256xf32>
    %26 = arith.mulf %25, %24 : vector<8x256xf32>
    %27 = arith.maximumf %24, %26 : vector<8x256xf32>
    %28 = arith.truncf %27 : vector<8x256xf32> to vector<8x256xbf16>
    %c0_18 = arith.constant 0 : index
    %c0_19 = arith.constant 0 : index
    %29 = vector.load %arg8[%c0_18, %c0_19] : memref<256x784xbf16, #tpu.memory_space<vmem>>, vector<256x784xbf16>
    %cst_20 = arith.constant dense<0.000000e+00> : vector<8x784xf32>
    %30 = tpu.matmul %28, %29, %cst_20 {dimension_numbers = #tpu.dot_dimension_numbers<[1], [0], [0], [1], [0, 0, 1, 1], [], []>} : vector<8x256xbf16>, vector<256x784xbf16>, vector<8x784xf32> -> vector<8x784xf32>
    %c0_21 = arith.constant 0 : index
    %c0_22 = arith.constant 0 : index
    %31 = vector.load %arg9[%c0_21, %c0_22] : memref<1x784xf32, #tpu.memory_space<vmem>>, vector<1x784xf32>
    %32 = vector.broadcast %31 : vector<1x784xf32> to vector<8x784xf32>
    %33 = arith.addf %30, %32 : vector<8x784xf32>
    %c0_23 = arith.constant 0 : index
    %c0_24 = arith.constant 0 : index
    %34 = vector.load %arg10[%c0_23, %c0_24] : memref<256x784xbf16, #tpu.memory_space<vmem>>, vector<256x784xbf16>
    %cst_25 = arith.constant dense<0.000000e+00> : vector<8x784xf32>
    %35 = tpu.matmul %28, %34, %cst_25 {dimension_numbers = #tpu.dot_dimension_numbers<[1], [0], [0], [1], [0, 0, 1, 1], [], []>} : vector<8x256xbf16>, vector<256x784xbf16>, vector<8x784xf32> -> vector<8x784xf32>
    %c0_26 = arith.constant 0 : index
    %c0_27 = arith.constant 0 : index
    %36 = vector.load %arg11[%c0_26, %c0_27] : memref<1x784xf32, #tpu.memory_space<vmem>>, vector<1x784xf32>
    %37 = vector.broadcast %36 : vector<1x784xf32> to vector<8x784xf32>
    %38 = arith.addf %35, %37 : vector<8x784xf32>
    %cst_28 = arith.constant 0.00999999977 : f32
    %39 = vector.broadcast %cst_28 : f32 to vector<8x784xf32>
    %40 = arith.mulf %39, %33 : vector<8x784xf32>
    %41 = arith.maximumf %33, %40 : vector<8x784xf32>
    %c0_29 = arith.constant 0 : index
    %c0_30 = arith.constant 0 : index
    %42 = vector.load %arg12[%c0_29, %c0_30] : memref<8x784xf32, #tpu.memory_space<vmem>>, vector<8x784xf32>
    tpu.vector_store %arg12[%c0_29, %c0_30], %41 {strides = array<i32>} : memref<8x784xf32, #tpu.memory_space<vmem>>, vector<8x784xf32>,
    %cst_31 = arith.constant 0.00999999977 : f32
    %43 = vector.broadcast %cst_31 : f32 to vector<8x784xf32>
    %44 = arith.mulf %43, %38 : vector<8x784xf32>
    %45 = arith.maximumf %38, %44 : vector<8x784xf32>
    %c0_32 = arith.constant 0 : index
    %c0_33 = arith.constant 0 : index
    %46 = vector.load %arg13[%c0_32, %c0_33] : memref<8x784xf32, #tpu.memory_space<vmem>>, vector<8x784xf32>
    tpu.vector_store %arg13[%c0_32, %c0_33], %45 {strides = array<i32>} : memref<8x784xf32, #tpu.memory_space<vmem>>, vector<8x784xf32>,
    return
  }
  func.func @transform_0(%arg0: i32) -> (i32, i32) {
    %c0_i32 = arith.constant 0 : i32
    %c0_i32_0 = arith.constant 0 : i32
    return %arg0, %c0_i32 : i32, i32
  }
  func.func @transform_1(%arg0: i32) -> (i32, i32) {
    %c0_i32 = arith.constant 0 : i32
    %c0_i32_0 = arith.constant 0 : i32
    %c0_i32_1 = arith.constant 0 : i32
    return %c0_i32, %c0_i32_0 : i32, i32
  }
  func.func @transform_2(%arg0: i32) -> (i32, i32) {
    %c0_i32 = arith.constant 0 : i32
    %c0_i32_0 = arith.constant 0 : i32
    %c0_i32_1 = arith.constant 0 : i32
    return %c0_i32, %c0_i32_0 : i32, i32
  }
  func.func @transform_3(%arg0: i32) -> (i32, i32) {
    %c0_i32 = arith.constant 0 : i32
    %c0_i32_0 = arith.constant 0 : i32
    %c0_i32_1 = arith.constant 0 : i32
    return %c0_i32, %c0_i32_0 : i32, i32
  }
  func.func @transform_4(%arg0: i32) -> (i32, i32) {
    %c0_i32 = arith.constant 0 : i32
    %c0_i32_0 = arith.constant 0 : i32
    %c0_i32_1 = arith.constant 0 : i32
    return %c0_i32, %c0_i32_0 : i32, i32
  }
  func.func @transform_5(%arg0: i32) -> (i32, i32) {
    %c0_i32 = arith.constant 0 : i32
    %c0_i32_0 = arith.constant 0 : i32
    %c0_i32_1 = arith.constant 0 : i32
    return %c0_i32, %c0_i32_0 : i32, i32
  }
  func.func @transform_6(%arg0: i32) -> (i32, i32) {
    %c0_i32 = arith.constant 0 : i32
    %c0_i32_0 = arith.constant 0 : i32
    %c0_i32_1 = arith.constant 0 : i32
    return %c0_i32, %c0_i32_0 : i32, i32
  }
  func.func @transform_7(%arg0: i32) -> (i32, i32) {
    %c0_i32 = arith.constant 0 : i32
    %c0_i32_0 = arith.constant 0 : i32
    %c0_i32_1 = arith.constant 0 : i32
    return %c0_i32, %c0_i32_0 : i32, i32
  }
  func.func @transform_8(%arg0: i32) -> (i32, i32) {
    %c0_i32 = arith.constant 0 : i32
    %c0_i32_0 = arith.constant 0 : i32
    %c0_i32_1 = arith.constant 0 : i32
    return %c0_i32, %c0_i32_0 : i32, i32
  }
  func.func @transform_9(%arg0: i32) -> (i32, i32) {
    %c0_i32 = arith.constant 0 : i32
    %c0_i32_0 = arith.constant 0 : i32
    %c0_i32_1 = arith.constant 0 : i32
    return %c0_i32, %c0_i32_0 : i32, i32
  }
  func.func @transform_10(%arg0: i32) -> (i32, i32) {
    %c0_i32 = arith.constant 0 : i32
    %c0_i32_0 = arith.constant 0 : i32
    %c0_i32_1 = arith.constant 0 : i32
    return %c0_i32, %c0_i32_0 : i32, i32
  }
  func.func @transform_11(%arg0: i32) -> (i32, i32) {
    %c0_i32 = arith.constant 0 : i32
    %c0_i32_0 = arith.constant 0 : i32
    return %arg0, %c0_i32 : i32, i32
  }
  func.func @transform_12(%arg0: i32) -> (i32, i32) {
    %c0_i32 = arith.constant 0 : i32
    %c0_i32_0 = arith.constant 0 : i32
    return %arg0, %c0_i32 : i32, i32
  }
}

module attributes {stable_mosaic.version = 11 : i64} {
  func.func @fc_phase_retrival_kernel(%arg0: i32, %arg1: memref<8x784xf32, #tpu.memory_space<vmem>>, %arg2: memref<784x512xbf16, #tpu.memory_space<vmem>>, %arg3: memref<1x512xf32, #tpu.memory_space<vmem>>, %arg4: memref<512x256xbf16, #tpu.memory_space<vmem>>, %arg5: memref<1x256xf32, #tpu.memory_space<vmem>>, %arg6: memref<256x256xbf16, #tpu.memory_space<vmem>>, %arg7: memref<1x256xf32, #tpu.memory_space<vmem>>, %arg8: memref<256x784xbf16, #tpu.memory_space<vmem>>, %arg9: memref<1x784xf32, #tpu.memory_space<vmem>>, %arg10: memref<256x784xbf16, #tpu.memory_space<vmem>>, %arg11: memref<1x784xf32, #tpu.memory_space<vmem>>, %arg12: memref<8x784xf32, #tpu.memory_space<vmem>>, %arg13: memref<8x784xf32, #tpu.memory_space<vmem>>) attributes {dimension_semantics = [#tpu.dimension_semantics<parallel>], iteration_bounds = array<i64: 1>, scalar_prefetch = 0 : i64, scratch_operands = 0 : i64, tpu.core_type = #tpu.core_type<tc>, window_params = [{transform_indices = @transform_0, window_bounds = array<i64: 8, 784>}, {pipeline_mode = #tpu.pipeline_mode<synchronous>, transform_indices = @transform_1, window_bounds = array<i64: 784, 512>}, {pipeline_mode = #tpu.pipeline_mode<synchronous>, transform_indices = @transform_2, window_bounds = array<i64: 1, 512>}, {pipeline_mode = #tpu.pipeline_mode<synchronous>, transform_indices = @transform_3, window_bounds = array<i64: 512, 256>}, {pipeline_mode = #tpu.pipeline_mode<synchronous>, transform_indices = @transform_4, window_bounds = array<i64: 1, 256>}, {pipeline_mode = #tpu.pipeline_mode<synchronous>, transform_indices = @transform_5, window_bounds = array<i64: 256, 256>}, {pipeline_mode = #tpu.pipeline_mode<synchronous>, transform_indices = @transform_6, window_bounds = array<i64: 1, 256>}, {pipeline_mode = #tpu.pipeline_mode<synchronous>, transform_indices = @transform_7, window_bounds = array<i64: 256, 784>}, {pipeline_mode = #tpu.pipeline_mode<synchronous>, transform_indices = @transform_8, window_bounds = array<i64: 1, 784>}, {pipeline_mode = #tpu.pipeline_mode<synchronous>, transform_indices = @transform_9, window_bounds = array<i64: 256, 784>}, {pipeline_mode = #tpu.pipeline_mode<synchronous>, transform_indices = @transform_10, window_bounds = array<i64: 1, 784>}, {transform_indices = @transform_11, window_bounds = array<i64: 8, 784>}, {transform_indices = @transform_12, window_bounds = array<i64: 8, 784>}]} {
    %c0 = arith.constant 0 : index
    %c0_0 = arith.constant 0 : index
    %0 = vector.load %arg1[%c0, %c0_0] : memref<8x784xf32, #tpu.memory_space<vmem>>, vector<8x784xf32>
    %1 = arith.truncf %0 : vector<8x784xf32> to vector<8x784xbf16>
    %c0_1 = arith.constant 0 : index
    %c0_2 = arith.constant 0 : index
    %2 = vector.load %arg2[%c0_1, %c0_2] : memref<784x512xbf16, #tpu.memory_space<vmem>>, vector<784x512xbf16>
    %cst = arith.constant dense<0.000000e+00> : vector<8x512xf32>
    %3 = tpu.matmul %1, %2, %cst {dimension_numbers = #tpu.dot_dimension_numbers<[1], [0], [0], [1], [0, 0, 1, 1], [], []>} : vector<8x784xbf16>, vector<784x512xbf16>, vector<8x512xf32> -> vector<8x512xf32>
    %c0_3 = arith.constant 0 : index
    %c0_4 = arith.constant 0 : index
    %4 = vector.load %arg3[%c0_3, %c0_4] : memref<1x512xf32, #tpu.memory_space<vmem>>, vector<1x512xf32>
    %5 = vector.broadcast %4 : vector<1x512xf32> to vector<8x512xf32>
    %6 = arith.addf %3, %5 : vector<8x512xf32>
    %cst_5 = arith.constant 0.00999999977 : f32
    %7 = vector.broadcast %cst_5 : f32 to vector<8x512xf32>
    %8 = arith.mulf %7, %6 : vector<8x512xf32>
    %9 = arith.maximumf %6, %8 : vector<8x512xf32>
    %10 = arith.truncf %9 : vector<8x512xf32> to vector<8x512xbf16>
    %c0_6 = arith.constant 0 : index
    %c0_7 = arith.constant 0 : index
    %11 = vector.load %arg4[%c0_6, %c0_7] : memref<512x256xbf16, #tpu.memory_space<vmem>>, vector<512x256xbf16>
    %cst_8 = arith.constant dense<0.000000e+00> : vector<8x256xf32>
    %12 = tpu.matmul %10, %11, %cst_8 {dimension_numbers = #tpu.dot_dimension_numbers<[1], [0], [0], [1], [0, 0, 1, 1], [], []>} : vector<8x512xbf16>, vector<512x256xbf16>, vector<8x256xf32> -> vector<8x256xf32>
    %c0_9 = arith.constant 0 : index
    %c0_10 = arith.constant 0 : index
    %13 = vector.load %arg5[%c0_9, %c0_10] : memref<1x256xf32, #tpu.memory_space<vmem>>, vector<1x256xf32>
    %14 = vector.broadcast %13 : vector<1x256xf32> to vector<8x256xf32>
    %15 = arith.addf %12, %14 : vector<8x256xf32>
    %cst_11 = arith.constant 0.00999999977 : f32
    %16 = vector.broadcast %cst_11 : f32 to vector<8x256xf32>
    %17 = arith.mulf %16, %15 : vector<8x256xf32>
    %18 = arith.maximumf %15, %17 : vector<8x256xf32>
    %19 = arith.truncf %18 : vector<8x256xf32> to vector<8x256xbf16>
    %c0_12 = arith.constant 0 : index
    %c0_13 = arith.constant 0 : index
    %20 = vector.load %arg6[%c0_12, %c0_13] : memref<256x256xbf16, #tpu.memory_space<vmem>>, vector<256x256xbf16>
    %cst_14 = arith.constant dense<0.000000e+00> : vector<8x256xf32>
    %21 = tpu.matmul %19, %20, %cst_14 {dimension_numbers = #tpu.dot_dimension_numbers<[1], [0], [0], [1], [0, 0, 1, 1], [], []>} : vector<8x256xbf16>, vector<256x256xbf16>, vector<8x256xf32> -> vector<8x256xf32>
    %c0_15 = arith.constant 0 : index
    %c0_16 = arith.constant 0 : index
    %22 = vector.load %arg7[%c0_15, %c0_16] : memref<1x256xf32, #tpu.memory_space<vmem>>, vector<1x256xf32>
    %23 = vector.broadcast %22 : vector<1x256xf32> to vector<8x256xf32>
    %24 = arith.addf %21, %23 : vector<8x256xf32>
    %cst_17 = arith.constant 0.00999999977 : f32
    %25 = vector.broadcast %cst_17 : f32 to vector<8x256xf32>
    %26 = arith.mulf %25, %24 : vector<8x256xf32>
    %27 = arith.maximumf %24, %26 : vector<8x256xf32>
    %28 = arith.truncf %27 : vector<8x256xf32> to vector<8x256xbf16>
    %c0_18 = arith.constant 0 : index
    %c0_19 = arith.constant 0 : index
    %29 = vector.load %arg8[%c0_18, %c0_19] : memref<256x784xbf16, #tpu.memory_space<vmem>>, vector<256x784xbf16>
    %cst_20 = arith.constant dense<0.000000e+00> : vector<8x784xf32>
    %30 = tpu.matmul %28, %29, %cst_20 {dimension_numbers = #tpu.dot_dimension_numbers<[1], [0], [0], [1], [0, 0, 1, 1], [], []>} : vector<8x256xbf16>, vector<256x784xbf16>, vector<8x784xf32> -> vector<8x784xf32>
    %c0_21 = arith.constant 0 : index
    %c0_22 = arith.constant 0 : index
    %31 = vector.load %arg9[%c0_21, %c0_22] : memref<1x784xf32, #tpu.memory_space<vmem>>, vector<1x784xf32>
    %32 = vector.broadcast %31 : vector<1x784xf32> to vector<8x784xf32>
    %33 = arith.addf %30, %32 : vector<8x784xf32>
    %c0_23 = arith.constant 0 : index
    %c0_24 = arith.constant 0 : index
    %34 = vector.load %arg10[%c0_23, %c0_24] : memref<256x784xbf16, #tpu.memory_space<vmem>>, vector<256x784xbf16>
    %cst_25 = arith.constant dense<0.000000e+00> : vector<8x784xf32>
    %35 = tpu.matmul %28, %34, %cst_25 {dimension_numbers = #tpu.dot_dimension_numbers<[1], [0], [0], [1], [0, 0, 1, 1], [], []>} : vector<8x256xbf16>, vector<256x784xbf16>, vector<8x784xf32> -> vector<8x784xf32>
    %c0_26 = arith.constant 0 : index
    %c0_27 = arith.constant 0 : index
    %36 = vector.load %arg11[%c0_26, %c0_27] : memref<1x784xf32, #tpu.memory_space<vmem>>, vector<1x784xf32>
    %37 = vector.broadcast %36 : vector<1x784xf32> to vector<8x784xf32>
    %38 = arith.addf %35, %37 : vector<8x784xf32>
    %cst_28 = arith.constant 0.00999999977 : f32
    %39 = vector.broadcast %cst_28 : f32 to vector<8x784xf32>
    %40 = arith.mulf %39, %33 : vector<8x784xf32>
    %41 = arith.maximumf %33, %40 : vector<8x784xf32>
    %c0_29 = arith.constant 0 : index
    %c0_30 = arith.constant 0 : index
    %42 = vector.load %arg12[%c0_29, %c0_30] : memref<8x784xf32, #tpu.memory_space<vmem>>, vector<8x784xf32>
    tpu.vector_store %arg12[%c0_29, %c0_30], %41 {strides = array<i32>} : memref<8x784xf32, #tpu.memory_space<vmem>>, vector<8x784xf32>,
    %cst_31 = arith.constant 0.00999999977 : f32
    %43 = vector.broadcast %cst_31 : f32 to vector<8x784xf32>
    %44 = arith.mulf %43, %38 : vector<8x784xf32>
    %45 = arith.maximumf %38, %44 : vector<8x784xf32>
    %c0_32 = arith.constant 0 : index
    %c0_33 = arith.constant 0 : index
    %46 = vector.load %arg13[%c0_32, %c0_33] : memref<8x784xf32, #tpu.memory_space<vmem>>, vector<8x784xf32>
    tpu.vector_store %arg13[%c0_32, %c0_33], %45 {strides = array<i32>} : memref<8x784xf32, #tpu.memory_space<vmem>>, vector<8x784xf32>,
    return
  }
  func.func @transform_0(%arg0: i32) -> (i32, i32) {
    %c0_i32 = arith.constant 0 : i32
    %c0_i32_0 = arith.constant 0 : i32
    return %arg0, %c0_i32 : i32, i32
  }
  func.func @transform_1(%arg0: i32) -> (i32, i32) {
    %c0_i32 = arith.constant 0 : i32
    %c0_i32_0 = arith.constant 0 : i32
    %c0_i32_1 = arith.constant 0 : i32
    return %c0_i32, %c0_i32_0 : i32, i32
  }
  func.func @transform_2(%arg0: i32) -> (i32, i32) {
    %c0_i32 = arith.constant 0 : i32
    %c0_i32_0 = arith.constant 0 : i32
    %c0_i32_1 = arith.constant 0 : i32
    return %c0_i32, %c0_i32_0 : i32, i32
  }
  func.func @transform_3(%arg0: i32) -> (i32, i32) {
    %c0_i32 = arith.constant 0 : i32
    %c0_i32_0 = arith.constant 0 : i32
    %c0_i32_1 = arith.constant 0 : i32
    return %c0_i32, %c0_i32_0 : i32, i32
  }
  func.func @transform_4(%arg0: i32) -> (i32, i32) {
    %c0_i32 = arith.constant 0 : i32
    %c0_i32_0 = arith.constant 0 : i32
    %c0_i32_1 = arith.constant 0 : i32
    return %c0_i32, %c0_i32_0 : i32, i32
  }
  func.func @transform_5(%arg0: i32) -> (i32, i32) {
    %c0_i32 = arith.constant 0 : i32
    %c0_i32_0 = arith.constant 0 : i32
    %c0_i32_1 = arith.constant 0 : i32
    return %c0_i32, %c0_i32_0 : i32, i32
  }
  func.func @transform_6(%arg0: i32) -> (i32, i32) {
    %c0_i32 = arith.constant 0 : i32
    %c0_i32_0 = arith.constant 0 : i32
    %c0_i32_1 = arith.constant 0 : i32
    return %c0_i32, %c0_i32_0 : i32, i32
  }
  func.func @transform_7(%arg0: i32) -> (i32, i32) {
    %c0_i32 = arith.constant 0 : i32
    %c0_i32_0 = arith.constant 0 : i32
    %c0_i32_1 = arith.constant 0 : i32
    return %c0_i32, %c0_i32_0 : i32, i32
  }
  func.func @transform_8(%arg0: i32) -> (i32, i32) {
    %c0_i32 = arith.constant 0 : i32
    %c0_i32_0 = arith.constant 0 : i32
    %c0_i32_1 = arith.constant 0 : i32
    return %c0_i32, %c0_i32_0 : i32, i32
  }
  func.func @transform_9(%arg0: i32) -> (i32, i32) {
    %c0_i32 = arith.constant 0 : i32
    %c0_i32_0 = arith.constant 0 : i32
    %c0_i32_1 = arith.constant 0 : i32
    return %c0_i32, %c0_i32_0 : i32, i32
  }
  func.func @transform_10(%arg0: i32) -> (i32, i32) {
    %c0_i32 = arith.constant 0 : i32
    %c0_i32_0 = arith.constant 0 : i32
    %c0_i32_1 = arith.constant 0 : i32
    return %c0_i32, %c0_i32_0 : i32, i32
  }
  func.func @transform_11(%arg0: i32) -> (i32, i32) {
    %c0_i32 = arith.constant 0 : i32
    %c0_i32_0 = arith.constant 0 : i32
    return %arg0, %c0_i32 : i32, i32
  }
  func.func @transform_12(%arg0: i32) -> (i32, i32) {
    %c0_i32 = arith.constant 0 : i32
    %c0_i32_0 = arith.constant 0 : i32
    return %arg0, %c0_i32 : i32, i32
  }
}

</mosaic_0001>

<bundles_post_ra>
// kernel: tpu_custom_call.1
= control target key start
LH: loop header
LB: loop body
LE: loop exit
PB: predicated region body
PF: predicated region fallthrough
CT: control target
= control target key end

     0   :  { %18 = vsyncpa [#allocation3], 0  ;;  %vm1243_vm0 = vcmask 130048   ;;  %s10241_s0 = inlined_call_operand.vmem [shape: f32[8,784], index: 0, kind: input, shape index: {}]   ;;  %s10242_s1 = inlined_call_operand.vmem [shape: bf16[784,512], index: 1, kind: input, shape index: {}]   ;;  %s10243_s2 = inlined_call_operand.vmem [shape: f32[1,512], index: 2, kind: input, shape index: {}]   ;;  %s10244_s3 = inlined_call_operand.vmem [shape: bf16[512,256], index: 3, kind: input, shape index: {}]   ;;  %s10245_s4 = inlined_call_operand.vmem [shape: f32[1,256], index: 4, kind: input, shape index: {}]   ;;  %s10246_s5 = inlined_call_operand.vmem [shape: bf16[256,256], index: 5, kind: input, shape index: {}]   ;;  %s10247_s6 = inlined_call_operand.vmem [shape: f32[1,256], index: 6, kind: input, shape index: {}]   ;;  %s10248_s7 = inlined_call_operand.vmem [shape: bf16[256,784], index: 7, kind: input, shape index: {}]   ;;  %s10249_s8 = inlined_call_operand.vmem [shape: f32[1,784], index: 8, kind: input, shape index: {}]   ;;  %s10250_s9 = inlined_call_operand.vmem [shape: bf16[256,784], index: 9, kind: input, shape index: {}]   ;;  %s10251_s10 = inlined_call_operand.vmem [shape: f32[1,784], index: 10, kind: input, shape index: {}]   ;;  %s10252_s11 = inlined_call_operand.hbm [shape: f32[8,784], index: 11, kind: output, shape index: {0}]   ;;  %s10253_s12 = inlined_call_operand.hbm [shape: f32[8,784], index: 12, kind: output, shape index: {1}]  }
   0x1   :  { %v4371_v0 = vld [vmem:[%s10242_s1 + $0xe0] sm:$0xf]  ;;  %v6355_v1 = vld [vmem:[%s10242_s1 + $0xec] sm:$0xf0] }
   0x2   :  { %v4499_v2 = vld [vmem:[%s10242_s1 + $0x1e0] sm:$0xf]  ;;  %v4372_v3 = vor.u32 %v6355_v1, %v4371_v0  ;;  %v6387_v4 = vld [vmem:[%s10242_s1 + $0x1ec] sm:$0xf0] }
   0x3   :  { %v4627_v5 = vld [vmem:[%s10242_s1 + $0x2e0] sm:$0xf]  ;;  %v6419_v6 = vld [vmem:[%s10242_s1 + $0x2ec] sm:$0xf0]  ;;  %v4500_v7 = vor.u32 %v6387_v4, %v4499_v2 }
   0x4   :  { %v4628_v8 = vor.u32 %v6419_v6, %v4627_v5  ;;  %v4755_v9 = vld [vmem:[%s10242_s1 + $0x3e0] sm:$0xf]  ;;  %v6451_v10 = vld [vmem:[%s10242_s1 + $0x3ec] sm:$0xf0]  ;;  %1247 = vmatpush.bf16.msra.mxu0 %v4372_v3 }
   0x5   :  { %v4355_v11 = vld [vmem:[%s10242_s1 + $0xc0] sm:$0xf]  ;;  %v4756_v12 = vor.u32 %v6451_v10, %v4755_v9  ;;  %v6351_v13 = vld [vmem:[%s10242_s1 + $0xcc] sm:$0xf0]  ;;  %1260 = vmatpush.bf16.msra.mxu1 %v4500_v7 }
   0x6   :  { %v4483_v14 = vld [vmem:[%s10242_s1 + $0x1c0] sm:$0xf]  ;;  %v6383_v15 = vld [vmem:[%s10242_s1 + $0x1cc] sm:$0xf0]  ;;  %1273 = vmatpush.bf16.msra.mxu2 %v4628_v8  ;;  %v4356_v16 = vor.u32 %v6351_v13, %v4355_v11 }
   0x7   :  { %v4484_v17 = vor.u32 %v6383_v15, %v4483_v14  ;;  %v4611_v18 = vld [vmem:[%s10242_s1 + $0x2c0] sm:$0xf]  ;;  %v6415_v19 = vld [vmem:[%s10242_s1 + $0x2cc] sm:$0xf0]  ;;  %1286 = vmatpush.bf16.msra.mxu3 %v4756_v12 }
   0x8   :  { %v4739_v20 = vld [vmem:[%s10242_s1 + $0x3c0] sm:$0xf]  ;;  %v4612_v21 = vor.u32 %v6415_v19, %v4611_v18  ;;  %v6447_v22 = vld [vmem:[%s10242_s1 + $0x3cc] sm:$0xf0]  ;;  %1248 = vmatpush.bf16.msra.mxu0 %v4356_v16 }
   0x9   :  { %v4339_v23 = vld [vmem:[%s10242_s1 + $0xa0] sm:$0xf]  ;;  %v6347_v24 = vld [vmem:[%s10242_s1 + $0xac] sm:$0xf0]  ;;  %v4740_v25 = vor.u32 %v6447_v22, %v4739_v20  ;;  %1261 = vmatpush.bf16.msra.mxu1 %v4484_v17 }
   0xa   :  { %v4467_v26 = vld [vmem:[%s10242_s1 + $0x1a0] sm:$0xf]  ;;  %v6379_v27 = vld [vmem:[%s10242_s1 + $0x1ac] sm:$0xf0]  ;;  %v4340_v29 = vor.u32 %v6347_v24, %v4339_v23  ;;  %1274 = vmatpush.bf16.msra.mxu2 %v4612_v21 }
   0xb   :  { %v4595_v28 = vld [vmem:[%s10242_s1 + $0x2a0] sm:$0xf]  ;;  %v6411_v30 = vld [vmem:[%s10242_s1 + $0x2ac] sm:$0xf0]  ;;  %v4468_v33 = vor.u32 %v6379_v27, %v4467_v26  ;;  %1287 = vmatpush.bf16.msra.mxu3 %v4740_v25 }
   0xc   :  { %v4723_v31 = vld [vmem:[%s10242_s1 + $0x3a0] sm:$0xf]  ;;  %v6443_v32 = vld [vmem:[%s10242_s1 + $0x3ac] sm:$0xf0]  ;;  %v4596_v34 = vor.u32 %v6411_v30, %v4595_v28  ;;  %1249 = vmatpush.bf16.msra.mxu0 %v4340_v29 }
   0xd   :  { %v4323_v35 = vld [vmem:[%s10242_s1 + $0x80] sm:$0xf]  ;;  %v6343_v36 = vld [vmem:[%s10242_s1 + $0x8c] sm:$0xf0]  ;;  %v4724_v38 = vor.u32 %v6443_v32, %v4723_v31  ;;  %1262 = vmatpush.bf16.msra.mxu1 %v4468_v33  ;;  %v6353_v33 = vld [vmem:[%s10242_s1 + $0xe4] sm:$0xf] }
   0xe   :  { %v4451_v37 = vld [vmem:[%s10242_s1 + $0x180] sm:$0xf]  ;;  %v6375_v39 = vld [vmem:[%s10242_s1 + $0x18c] sm:$0xf0]  ;;  %v4324_v44 = vor.u32 %v6343_v36, %v4323_v35  ;;  %1275 = vmatpush.bf16.msra.mxu2 %v4596_v34  ;;  %v4373_v34 = vld [vmem:[%s10242_s1 + $0xf0] sm:$0xf0] }
   0xf   :  { %v4579_v40 = vld [vmem:[%s10242_s1 + $0x280] sm:$0xf]  ;;  %v6407_v41 = vld [vmem:[%s10242_s1 + $0x28c] sm:$0xf0]  ;;  %v4452_v45 = vor.u32 %v6375_v39, %v4451_v37  ;;  %1288 = vmatpush.bf16.msra.mxu3 %v4724_v38 }
  0x10   :  { %v4707_v42 = vld [vmem:[%s10242_s1 + $0x380] sm:$0xf]  ;;  %v6439_v43 = vld [vmem:[%s10242_s1 + $0x38c] sm:$0xf0]  ;;  %v4580_v46 = vor.u32 %v6407_v41, %v4579_v40  ;;  %1250 = vmatpush.bf16.msra.mxu0 %v4324_v44  ;;  %v4501_v44 = vld [vmem:[%s10242_s1 + $0x1f0] sm:$0xf0] }
  0x11   :  { %v4307_v47 = vld [vmem:[%s10242_s1 + $0x60] sm:$0xf]  ;;  %v6339_v48 = vld [vmem:[%s10242_s1 + $0x6c] sm:$0xf0]  ;;  %v4708_v50 = vor.u32 %v6439_v43, %v4707_v42  ;;  %1263 = vmatpush.bf16.msra.mxu1 %v4452_v45  ;;  %v6385_v43 = vld [vmem:[%s10242_s1 + $0x1e4] sm:$0xf] }
  0x12   :  { %v4435_v49 = vld [vmem:[%s10242_s1 + $0x160] sm:$0xf]  ;;  %v6371_v51 = vld [vmem:[%s10242_s1 + $0x16c] sm:$0xf0]  ;;  %v4308_v56 = vor.u32 %v6339_v48, %v4307_v47  ;;  %1276 = vmatpush.bf16.msra.mxu2 %v4580_v46  ;;  %v46_v45 = vld [vmem:[%s10241_s0 + $0x18] sm:$0xff]  ;;  %v4376_v47 = vor.u32 %v6353_v33, %v4373_v34 }
  0x13   :  { %v4563_v52 = vld [vmem:[%s10242_s1 + $0x260] sm:$0xf]  ;;  %v6403_v53 = vld [vmem:[%s10242_s1 + $0x26c] sm:$0xf0]  ;;  %v4436_v57 = vor.u32 %v6371_v51, %v4435_v49  ;;  %1289 = vmatpush.bf16.msra.mxu3 %v4708_v50 }
  0x14   :  { %v4691_v54 = vld [vmem:[%s10242_s1 + $0x360] sm:$0xf]  ;;  %v6435_v55 = vld [vmem:[%s10242_s1 + $0x36c] sm:$0xf0]  ;;  %v4564_v58 = vor.u32 %v6403_v53, %v4563_v52  ;;  %1251 = vmatpush.bf16.msra.mxu0 %v4308_v56  ;;  %v6349_v53 = vld [vmem:[%s10242_s1 + $0xc4] sm:$0xf] }
  0x15   :  { %v4291_v59 = vld [vmem:[%s10242_s1 + $0x40] sm:$0xf]  ;;  %v6335_v60 = vld [vmem:[%s10242_s1 + $0x4c] sm:$0xf0]  ;;  %v4692_v62 = vor.u32 %v6435_v55, %v4691_v54  ;;  %1264 = vmatpush.bf16.msra.mxu1 %v4436_v57  ;;  %v4357_v54 = vld [vmem:[%s10242_s1 + $0xd0] sm:$0xf0]  ;;  %v7215_v57 = vpack.c.bf16 %v46_v45, %v46_v45 }
  0x16   :  { %v4419_v61 = vld [vmem:[%s10242_s1 + $0x140] sm:$0xf]  ;;  %v6367_v63 = vld [vmem:[%s10242_s1 + $0x14c] sm:$0xf0]  ;;  %v4292_v4 = vor.u32 %v6335_v60, %v4291_v59  ;;  %1277 = vmatpush.bf16.msra.mxu2 %v4564_v58  ;;  %v44_v58 = vld [vmem:[%s10241_s0 + $0x8] sm:$0xff]  ;;  %v4504_v59 = vor.u32 %v6385_v43, %v4501_v44 }
  0x17   :  { %v4547_v0 = vld [vmem:[%s10242_s1 + $0x240] sm:$0xf]  ;;  %v6399_v1 = vld [vmem:[%s10242_s1 + $0x24c] sm:$0xf0]  ;;  %v4420_v5 = vor.u32 %v6367_v63, %v4419_v61  ;;  %1290 = vmatpush.bf16.msra.mxu3 %v4692_v62  ;;  %v6381_v61 = vld [vmem:[%s10242_s1 + $0x1c4] sm:$0xf] }
  0x18   :  { %v4675_v2 = vld [vmem:[%s10242_s1 + $0x340] sm:$0xf]  ;;  %v6431_v3 = vld [vmem:[%s10242_s1 + $0x34c] sm:$0xf0]  ;;  %v4548_v6 = vor.u32 %v6399_v1, %v4547_v0  ;;  %1252 = vmatpush.bf16.msra.mxu0 %v4292_v4  ;;  %v4485_v62 = vld [vmem:[%s10242_s1 + $0x1d0] sm:$0xf0]  ;;  %v4360_v0 = vor.u32 %v6349_v53, %v4357_v54 }
  0x19   :  { %v4275_v7 = vld [vmem:[%s10242_s1 + $0x20] sm:$0xf]  ;;  %v6331_v8 = vld [vmem:[%s10242_s1 + $0x2c] sm:$0xf0]  ;;  %v4676_v10 = vor.u32 %v6431_v3, %v4675_v2  ;;  %1265 = vmatpush.bf16.msra.mxu1 %v4420_v5  ;;  %v6345_v5 = vld [vmem:[%s10242_s1 + $0xa4] sm:$0xf] }
  0x1a   :  { %v4403_v9 = vld [vmem:[%s10242_s1 + $0x120] sm:$0xf]  ;;  %v6363_v11 = vld [vmem:[%s10242_s1 + $0x12c] sm:$0xf0]  ;;  %v4276_v16 = vor.u32 %v6331_v8, %v4275_v7  ;;  %1278 = vmatpush.bf16.msra.mxu2 %v4548_v6  ;;  %v4341_v6 = vld [vmem:[%s10242_s1 + $0xb0] sm:$0xf0]  ;;  %v7246_v7 = vpack.c.bf16 %v44_v58, %v44_v58  ;;  %v4488_v8 = vor.u32 %v6381_v61, %v4485_v62 }
  0x1b   :  { %v4531_v12 = vld [vmem:[%s10242_s1 + $0x220] sm:$0xf]  ;;  %v6395_v13 = vld [vmem:[%s10242_s1 + $0x22c] sm:$0xf0]  ;;  %v4404_v20 = vor.u32 %v6363_v11, %v4403_v9  ;;  %1291 = vmatpush.bf16.msra.mxu3 %v4676_v10  ;;  %v6377_v10 = vld [vmem:[%s10242_s1 + $0x1a4] sm:$0xf] }
  0x1c   :  { %v4659_v14 = vld [vmem:[%s10242_s1 + $0x320] sm:$0xf]  ;;  %v6427_v15 = vld [vmem:[%s10242_s1 + $0x32c] sm:$0xf0]  ;;  %v4532_v21 = vor.u32 %v6395_v13, %v4531_v12  ;;  %1253 = vmatpush.bf16.msra.mxu0 %v4276_v16  ;;  %v4469_v11 = vld [vmem:[%s10242_s1 + $0x1b0] sm:$0xf0]  ;;  %v4344_v13 = vor.u32 %v6345_v5, %v4341_v6 }
  0x1d   :  { %v4259_v17 = vld [vmem:[%s10242_s1] sm:$0xf]  ;;  %v6327_v18 = vld [vmem:[%s10242_s1 + $0xc] sm:$0xf0]  ;;  %v4660_v25 = vor.u32 %v6427_v15, %v4659_v14  ;;  %1266 = vmatpush.bf16.msra.mxu1 %v4404_v20  ;;  %v4472_v20 = vor.u32 %v6377_v10, %v4469_v11  ;;  %v6333_v43 = vld [vmem:[%s10242_s1 + $0x44] sm:$0xf] }
  0x1e   :  { %v4387_v19 = vld [vmem:[%s10242_s1 + $0x100] sm:$0xf]  ;;  %v6359_v22 = vld [vmem:[%s10242_s1 + $0x10c] sm:$0xf0]  ;;  %v4260_v32 = vor.u32 %v6327_v18, %v4259_v17  ;;  %1279 = vmatpush.bf16.msra.mxu2 %v4532_v21  ;;  %v6341_v18 = vld [vmem:[%s10242_s1 + $0x84] sm:$0xf] }
  0x1f   :  { %v4515_v23 = vld [vmem:[%s10242_s1 + $0x200] sm:$0xf]  ;;  %v6391_v24 = vld [vmem:[%s10242_s1 + $0x20c] sm:$0xf0]  ;;  %v4388_v36 = vor.u32 %v6359_v22, %v4387_v19  ;;  %1292 = vmatpush.bf16.msra.mxu3 %v4660_v25  ;;  %v4325_v19 = vld [vmem:[%s10242_s1 + $0x90] sm:$0xf0] }
  0x20   :  { %v4643_v26 = vld [vmem:[%s10242_s1 + $0x300] sm:$0xf]  ;;  %v6423_v27 = vld [vmem:[%s10242_s1 + $0x30c] sm:$0xf0]  ;;  %v4516_v37 = vor.u32 %v6391_v24, %v4515_v23  ;;  %1254 = vmatpush.bf16.msra.mxu0 %v4260_v32  ;;  %v6373_v22 = vld [vmem:[%s10242_s1 + $0x184] sm:$0xf]  ;;  %v4328_v25 = vor.u32 %v6341_v18, %v4325_v19 }
  0x21   :  { %v4883_v28 = vld [vmem:[%s10242_s1 + $0x4e0] sm:$0xf]  ;;  %v6483_v29 = vld [vmem:[%s10242_s1 + $0x4ec] sm:$0xf0]  ;;  %v4644_v41 = vor.u32 %v6423_v27, %v4643_v26  ;;  %1267 = vmatpush.bf16.msra.mxu1 %v4388_v36  ;;  %v4453_v23 = vld [vmem:[%s10242_s1 + $0x190] sm:$0xf0] }
  0x22   :  { %v5011_v30 = vld [vmem:[%s10242_s1 + $0x5e0] sm:$0xf]  ;;  %v6515_v31 = vld [vmem:[%s10242_s1 + $0x5ec] sm:$0xf0]  ;;  %v4884_v42 = vor.u32 %v6483_v29, %v4883_v28  ;;  %1280 = vmatpush.bf16.msra.mxu2 %v4516_v37  ;;  %v4456_v33 = vor.u32 %v6373_v22, %v4453_v23  ;;  %v4437_v36 = vld [vmem:[%s10242_s1 + $0x170] sm:$0xf0] }
  0x23   :  { %v45_v35 = vld [vmem:[%s10241_s0 + $0x10] sm:$0xff]  ;;  %v5027_v38 = vld [vmem:[%s10242_s1 + $0x600] sm:$0xf]  ;;  %v5012_v46 = vor.u32 %v6515_v31, %v5011_v30  ;;  %1293 = vmatpush.bf16.msra.mxu3 %v4644_v41  ;;  %v6337_v30 = vld [vmem:[%s10242_s1 + $0x64] sm:$0xf] }
  0x24   :  { %v6519_v39 = vld [vmem:[%s10242_s1 + $0x60c] sm:$0xf0]  ;;  %v43_v40 = vld [vmem:[%s10241_s0] sm:$0xff]  ;;  %v7202_v51 = vpack.c.bf16 %v45_v35, %v45_v35  ;;  %1299 = vmatpush.bf16.msrb.mxu0 %v4884_v42  ;;  %1268 = vmatmul.bf16.vlgmr.msra.gmra.mxu1 %v7246_v7  ;;  %v4309_v31 = vld [vmem:[%s10242_s1 + $0x70] sm:$0xf0] }
  0x25   :  { %v4867_v48 = vld [vmem:[%s10242_s1 + $0x4c0] sm:$0xf]  ;;  %v6479_v49 = vld [vmem:[%s10242_s1 + $0x4cc] sm:$0xf0]  ;;  %v7213_v55 = vpack.c.bf16 %v43_v40, %v43_v40  ;;  %v5028_v56 = vor.u32 %v6519_v39, %v5027_v38  ;;  %1312 = vmatpush.bf16.msrb.mxu1 %v5012_v46  ;;  %v6369_v35 = vld [vmem:[%s10242_s1 + $0x164] sm:$0xf]  ;;  %v4312_v38 = vor.u32 %v6337_v30, %v4309_v31 }
  0x26   :  { %v4995_v50 = vld [vmem:[%s10242_s1 + $0x5c0] sm:$0xf]  ;;  %v6511_v52 = vld [vmem:[%s10242_s1 + $0x5cc] sm:$0xf0]  ;;  %v4868_v60 = vor.u32 %v6479_v49, %v4867_v48  ;;  %1281 = vmatmul.bf16.vlgmr.msra.gmra.mxu2 %v7202_v51  ;;  %1294 = vmatmul.bf16.vlgmr.msra.gmra.mxu3 %v7215_v57  ;;  %v4293_v44 = vld [vmem:[%s10242_s1 + $0x50] sm:$0xf0]  ;;  %v4440_v46 = vor.u32 %v6369_v35, %v4437_v36 }
  0x27   :  { %1338 = vmatpush.bf16.msrb.mxu3 %v4376_v47  ;;  %v4996_v63 = vor.u32 %v6511_v52, %v4995_v50  ;;  %v4851_v1 = vld [vmem:[%s10242_s1 + $0x4a0] sm:$0xf]  ;;  %v6475_v2 = vld [vmem:[%s10242_s1 + $0x4ac] sm:$0xf0]  ;;  %1255 = vmatmul.bf16.vlgmr.msra.gmra.mxu0 %v7213_v55  ;;  %v6365_v48 = vld [vmem:[%s10242_s1 + $0x144] sm:$0xf]  ;;  %v4296_v52 = vor.u32 %v6333_v43, %v4293_v44 }
  0x28   :  { %v4979_v3 = vld [vmem:[%s10242_s1 + $0x5a0] sm:$0xf]  ;;  %v6507_v4 = vld [vmem:[%s10242_s1 + $0x5ac] sm:$0xf0]  ;;  %1332 = vmatpush.bf16.msrb.mxu2 %v5028_v56  ;;  %1300 = vmatpush.bf16.msrb.mxu0 %v4868_v60  ;;  %v4852_v9 = vor.u32 %v6475_v2, %v4851_v1  ;;  %v4421_v49 = vld [vmem:[%s10242_s1 + $0x150] sm:$0xf0] }
  0x29   :  { %1313 = vmatpush.bf16.msrb.mxu1 %v4996_v63  ;;  %v4980_v12 = vor.u32 %v6507_v4, %v4979_v3  ;;  %v4835_v14 = vld [vmem:[%s10242_s1 + $0x480] sm:$0xf]  ;;  %v6471_v15 = vld [vmem:[%s10242_s1 + $0x48c] sm:$0xf0]  ;;  %v4277_v60 = vld [vmem:[%s10242_s1 + $0x30] sm:$0xf0]  ;;  %v4424_v61 = vor.u32 %v6365_v48, %v4421_v49 }
  0x2a   :  { %v4963_v16 = vld [vmem:[%s10242_s1 + $0x580] sm:$0xf]  ;;  %v6503_v17 = vld [vmem:[%s10242_s1 + $0x58c] sm:$0xf0]  ;;  %v4836_v21 = vor.u32 %v6471_v15, %v4835_v14  ;;  %v6361_v63 = vld [vmem:[%s10242_s1 + $0x124] sm:$0xf] }
  0x2b   :  { %1339 = vmatpush.bf16.msrb.mxu3 %v4360_v0  ;;  %v4964_v24 = vor.u32 %v6503_v17, %v4963_v16  ;;  %v4819_v26 = vld [vmem:[%s10242_s1 + $0x460] sm:$0xf]  ;;  %v6467_v27 = vld [vmem:[%s10242_s1 + $0x46c] sm:$0xf0]  ;;  %v4405_v0 = vld [vmem:[%s10242_s1 + $0x130] sm:$0xf0] }
  0x2c   :  { %1351 = vmatpush.bf16.msra.mxu2 %v4504_v59  ;;  %1301 = vmatpush.bf16.msrb.mxu0 %v4852_v9  ;;  %v4947_v28 = vld [vmem:[%s10242_s1 + $0x560] sm:$0xf]  ;;  %v6499_v29 = vld [vmem:[%s10242_s1 + $0x56c] sm:$0xf0]  ;;  %v4820_v34 = vor.u32 %v6467_v27, %v4819_v26  ;;  %v6329_v59 = vld [vmem:[%s10242_s1 + $0x24] sm:$0xf]  ;;  %v4408_v14 = vor.u32 %v6361_v63, %v4405_v0 }
  0x2d   :  { %1314 = vmatpush.bf16.msrb.mxu1 %v4980_v12  ;;  %v49_v32 = vld [vmem:[%s10241_s0 + $0x30] sm:$0xff]  ;;  %v4948_v37 = vor.u32 %v6499_v29, %v4947_v28  ;;  %v4803_v39 = vld [vmem:[%s10242_s1 + $0x440] sm:$0xf]  ;;  %v4280_v3 = vor.u32 %v6329_v59, %v4277_v60  ;;  %v6417_v10 = vld [vmem:[%s10242_s1 + $0x2e4] sm:$0xf] }
  0x2e   :  { %v6463_v40 = vld [vmem:[%s10242_s1 + $0x44c] sm:$0xf0]  ;;  %v4931_v41 = vld [vmem:[%s10242_s1 + $0x540] sm:$0xf]  ;;  %v7325_v45 = vpack.c.bf16 %v49_v32, %v49_v32  ;;  %v4261_v9 = vld [vmem:[%s10242_s1 + $0x10] sm:$0xf0] }
  0x2f   :  { %1340 = vmatpush.bf16.msrb.mxu3 %v4344_v13  ;;  %v6495_v42 = vld [vmem:[%s10242_s1 + $0x54c] sm:$0xf0]  ;;  %v4804_v47 = vor.u32 %v6463_v40, %v4803_v39  ;;  %v4787_v53 = vld [vmem:[%s10242_s1 + $0x420] sm:$0xf]  ;;  %v4629_v11 = vld [vmem:[%s10242_s1 + $0x2f0] sm:$0xf0] }
  0x30   :  { %1352 = vmatpush.bf16.msra.mxu2 %v4488_v8  ;;  %1302 = vmatpush.bf16.msrb.mxu0 %v4836_v21  ;;  %v4932_v50 = vor.u32 %v6495_v42, %v4931_v41  ;;  %v6459_v54 = vld [vmem:[%s10242_s1 + $0x42c] sm:$0xf0]  ;;  %v4915_v56 = vld [vmem:[%s10242_s1 + $0x520] sm:$0xf]  ;;  %v6325_v8 = vld [vmem:[%s10242_s1 + $0x4] sm:$0xf] }
  0x31   :  { %1315 = vmatpush.bf16.msrb.mxu1 %v4964_v24  ;;  %v6491_v58 = vld [vmem:[%s10242_s1 + $0x52c] sm:$0xf0]  ;;  %v4788_v62 = vor.u32 %v6459_v54, %v4787_v53  ;;  %v4771_v1 = vld [vmem:[%s10242_s1 + $0x400] sm:$0xf]  ;;  %v6449_v12 = vld [vmem:[%s10242_s1 + $0x3e4] sm:$0xf]  ;;  %v4632_v24 = vor.u32 %v6417_v10, %v4629_v11 }
  0x32   :  { %v4916_v2 = vor.u32 %v6491_v58, %v4915_v56  ;;  %v6455_v4 = vld [vmem:[%s10242_s1 + $0x40c] sm:$0xf0]  ;;  %v4899_v5 = vld [vmem:[%s10242_s1 + $0x500] sm:$0xf]  ;;  %v4757_v13 = vld [vmem:[%s10242_s1 + $0x3f0] sm:$0xf0] }
  0x33   :  { %1341 = vmatpush.bf16.msrb.mxu3 %v4328_v25  ;;  %v6487_v6 = vld [vmem:[%s10242_s1 + $0x50c] sm:$0xf0]  ;;  %v4772_v15 = vor.u32 %v6455_v4, %v4771_v1  ;;  %v6481_v16 = vld [vmem:[%s10242_s1 + $0x4e4] sm:$0xf]  ;;  %v4885_v17 = vld [vmem:[%s10242_s1 + $0x4f0] sm:$0xf0]  ;;  %v4760_v25 = vor.u32 %v6449_v12, %v4757_v13 }
  0x34   :  { %1353 = vmatpush.bf16.msra.mxu2 %v4472_v20  ;;  %1303 = vmatpush.bf16.msrb.mxu0 %v4820_v34  ;;  %v47_v18 = vld [vmem:[%s10241_s0 + $0x20] sm:$0xff]  ;;  %v4900_v19 = vor.u32 %v6487_v6, %v4899_v5  ;;  %v4264_v20 = vor.u32 %v6325_v8, %v4261_v9  ;;  %v4389_v22 = vld [vmem:[%s10242_s1 + $0x110] sm:$0xf0]  ;;  %v48_v23 = vld [vmem:[%s10241_s0 + $0x28] sm:$0xff]  ;;  %v4888_v29 = vor.u32 %v6481_v16, %v4885_v17 }
  0x35   :  { %1316 = vmatpush.bf16.msrb.mxu1 %v4948_v37  ;;  %v6357_v21 = vld [vmem:[%s10242_s1 + $0x104] sm:$0xf]  ;;  %v5013_v27 = vld [vmem:[%s10242_s1 + $0x5f0] sm:$0xf0]  ;;  %v7416_v30 = vpack.c.bf16 %v47_v18, %v47_v18  ;;  %v7427_v35 = vpack.c.bf16 %v48_v23, %v48_v23 }
  0x36   :  { %5041 = vmatmul.msk.bf16.vlgmr.msrb.gmra.mxu2 %vm1243_vm0, %v7325_v45  ;;  %v6513_v26 = vld [vmem:[%s10242_s1 + $0x5e4] sm:$0xf]  ;;  %v4613_v31 = vld [vmem:[%s10242_s1 + $0x2d0] sm:$0xf0]  ;;  %v4392_v34 = vor.u32 %v6357_v21, %v4389_v22 }
  0x37   :  { %1342 = vmatpush.bf16.msrb.mxu3 %v4312_v38  ;;  %v6413_v28 = vld [vmem:[%s10242_s1 + $0x2c4] sm:$0xf]  ;;  %v4869_v37 = vld [vmem:[%s10242_s1 + $0x4d0] sm:$0xf0]  ;;  %v5016_v38 = vor.u32 %v6513_v26, %v5013_v27 }
  0x38   :  { %1354 = vmatpush.bf16.msra.mxu2 %v4456_v33  ;;  %1304 = vmatpush.bf16.msrb.mxu0 %v4804_v47  ;;  %v6445_v32 = vld [vmem:[%s10242_s1 + $0x3c4] sm:$0xf]  ;;  %v4741_v33 = vld [vmem:[%s10242_s1 + $0x3d0] sm:$0xf0]  ;;  %v4616_v39 = vor.u32 %v6413_v28, %v4613_v31 }
  0x39   :  { %1317 = vmatpush.bf16.msrb.mxu1 %v4932_v50  ;;  %v6477_v36 = vld [vmem:[%s10242_s1 + $0x4c4] sm:$0xf]  ;;  %v4744_v40 = vor.u32 %v6445_v32, %v4741_v33  ;;  %v4997_v42 = vld [vmem:[%s10242_s1 + $0x5d0] sm:$0xf0] }
  0x3a   :  { %v6509_v41 = vld [vmem:[%s10242_s1 + $0x5c4] sm:$0xf]  ;;  %v4872_v44 = vor.u32 %v6477_v36, %v4869_v37  ;;  %v4725_v48 = vld [vmem:[%s10242_s1 + $0x3b0] sm:$0xf0] }
  0x3b   :  { %1343 = vmatpush.bf16.msrb.mxu3 %v4296_v52  ;;  %v6409_v43 = vld [vmem:[%s10242_s1 + $0x2a4] sm:$0xf]  ;;  %v4853_v50 = vld [vmem:[%s10242_s1 + $0x4b0] sm:$0xf0]  ;;  %v5000_v52 = vor.u32 %v6509_v41, %v4997_v42 }
  0x3c   :  { %1355 = vmatpush.bf16.msra.mxu2 %v4440_v46  ;;  %1305 = vmatpush.bf16.msrb.mxu0 %v4788_v62  ;;  %v4597_v46 = vld [vmem:[%s10242_s1 + $0x2b0] sm:$0xf0]  ;;  %v6441_v47 = vld [vmem:[%s10242_s1 + $0x3a4] sm:$0xf] }
  0x3d   :  { %1318 = vmatpush.bf16.msrb.mxu1 %v4916_v2  ;;  %v6473_v49 = vld [vmem:[%s10242_s1 + $0x4a4] sm:$0xf]  ;;  %v4600_v53 = vor.u32 %v6409_v43, %v4597_v46  ;;  %v4728_v54 = vor.u32 %v6441_v47, %v4725_v48  ;;  %v4981_v58 = vld [vmem:[%s10242_s1 + $0x5b0] sm:$0xf0] }
  0x3e   :  { %v6505_v56 = vld [vmem:[%s10242_s1 + $0x5a4] sm:$0xf]  ;;  %v4856_v60 = vor.u32 %v6473_v49, %v4853_v50  ;;  %v4709_v63 = vld [vmem:[%s10242_s1 + $0x390] sm:$0xf0] }
  0x3f   :  { %1344 = vmatpush.bf16.msrb.mxu3 %v4280_v3  ;;  %v6405_v59 = vld [vmem:[%s10242_s1 + $0x284] sm:$0xf]  ;;  %v4837_v1 = vld [vmem:[%s10242_s1 + $0x490] sm:$0xf0]  ;;  %v4984_v2 = vor.u32 %v6505_v56, %v4981_v58 }
  0x40   :  { %1356 = vmatpush.bf16.msra.mxu2 %v4424_v61  ;;  %1306 = vmatpush.bf16.msrb.mxu0 %v4772_v15  ;;  %v4581_v61 = vld [vmem:[%s10242_s1 + $0x290] sm:$0xf0]  ;;  %v6437_v62 = vld [vmem:[%s10242_s1 + $0x384] sm:$0xf] }
  0x41   :  { %1319 = vmatpush.bf16.msrb.mxu1 %v4900_v19  ;;  %v6469_v0 = vld [vmem:[%s10242_s1 + $0x484] sm:$0xf]  ;;  %v4584_v3 = vor.u32 %v6405_v59, %v4581_v61  ;;  %v4712_v4 = vor.u32 %v6437_v62, %v4709_v63  ;;  %v4965_v6 = vld [vmem:[%s10242_s1 + $0x590] sm:$0xf0] }
  0x42   :  { %v6501_v5 = vld [vmem:[%s10242_s1 + $0x584] sm:$0xf]  ;;  %v4840_v9 = vor.u32 %v6469_v0, %v4837_v1  ;;  %v4565_v10 = vld [vmem:[%s10242_s1 + $0x270] sm:$0xf0] }
  0x43   :  { %1345 = vmatpush.bf16.msrb.mxu3 %v4264_v20  ;;  %1307 = vmatmul.bf16.vlgmr.msrb.gmra.mxu0 %v7416_v30  ;;  %v6401_v8 = vld [vmem:[%s10242_s1 + $0x264] sm:$0xf]  ;;  %v4693_v12 = vld [vmem:[%s10242_s1 + $0x370] sm:$0xf0]  ;;  %v4968_v15 = vor.u32 %v6501_v5, %v4965_v6 }
  0x44   :  { %1357 = vmatpush.bf16.msra.mxu2 %v4408_v14  ;;  %1364 = vmatpush.bf16.msra.mxu0 %v4632_v24  ;;  %v6433_v11 = vld [vmem:[%s10242_s1 + $0x364] sm:$0xf]  ;;  %v4821_v14 = vld [vmem:[%s10242_s1 + $0x470] sm:$0xf0]  ;;  %v4568_v16 = vor.u32 %v6401_v8, %v4565_v10 }
  0x45   :  { %1377 = vmatpush.bf16.msra.mxu1 %v4760_v25  ;;  %v6465_v13 = vld [vmem:[%s10242_s1 + $0x464] sm:$0xf]  ;;  %v4696_v17 = vor.u32 %v6433_v11, %v4693_v12  ;;  %v4949_v19 = vld [vmem:[%s10242_s1 + $0x570] sm:$0xf0] }
  0x46   :  { %1320 = vmatmul.bf16.vlgmr.msrb.gmra.mxu1 %v7427_v35  ;;  %1346 = vmatmul.bf16.vlgmr.msrb.gmra.mxu3 %v7213_v55  ;;  %v6497_v18 = vld [vmem:[%s10242_s1 + $0x564] sm:$0xf]  ;;  %v4824_v21 = vor.u32 %v6465_v13, %v4821_v14  ;;  %v4549_v22 = vld [vmem:[%s10242_s1 + $0x250] sm:$0xf0] }
  0x47   :  { %1390 = vmatpush.bf16.msra.mxu3 %v4888_v29  ;;  %v6397_v20 = vld [vmem:[%s10242_s1 + $0x244] sm:$0xf]  ;;  %v4677_v24 = vld [vmem:[%s10242_s1 + $0x350] sm:$0xf0]  ;;  %v4952_v27 = vor.u32 %v6497_v18, %v4949_v19 }
  0x48   :  { %1358 = vmatpush.bf16.msra.mxu2 %v4392_v34  ;;  %1365 = vmatpush.bf16.msra.mxu0 %v4616_v39  ;;  %v6429_v23 = vld [vmem:[%s10242_s1 + $0x344] sm:$0xf]  ;;  %v4805_v26 = vld [vmem:[%s10242_s1 + $0x450] sm:$0xf0]  ;;  %v4552_v28 = vor.u32 %v6397_v20, %v4549_v22 }
  0x49   :  { %1378 = vmatpush.bf16.msra.mxu1 %v4744_v40  ;;  %v6461_v25 = vld [vmem:[%s10242_s1 + $0x444] sm:$0xf]  ;;  %v4680_v29 = vor.u32 %v6429_v23, %v4677_v24  ;;  %v4933_v32 = vld [vmem:[%s10242_s1 + $0x550] sm:$0xf0] }
  0x4a   :  { %v6493_v31 = vld [vmem:[%s10242_s1 + $0x544] sm:$0xf]  ;;  %v4808_v34 = vor.u32 %v6461_v25, %v4805_v26  ;;  %v4533_v36 = vld [vmem:[%s10242_s1 + $0x230] sm:$0xf0] }
  0x4b   :  { %1391 = vmatpush.bf16.msra.mxu3 %v4872_v44  ;;  %1359 = vmatmul.bf16.vlgmr.msra.gmra.mxu2 %v7246_v7  ;;  %v6393_v33 = vld [vmem:[%s10242_s1 + $0x224] sm:$0xf]  ;;  %v4789_v40 = vld [vmem:[%s10242_s1 + $0x430] sm:$0xf0]  ;;  %v4936_v41 = vor.u32 %v6493_v31, %v4933_v32 }
  0x4c   :  { %1403 = vmatpush.bf16.msrb.mxu2 %v5016_v38  ;;  %1366 = vmatpush.bf16.msra.mxu0 %v4600_v53  ;;  %v6425_v37 = vld [vmem:[%s10242_s1 + $0x324] sm:$0xf]  ;;  %v4661_v38 = vld [vmem:[%s10242_s1 + $0x330] sm:$0xf0]  ;;  %v4536_v46 = vor.u32 %v6393_v33, %v4533_v36 }
  0x4d   :  { %1379 = vmatpush.bf16.msra.mxu1 %v4728_v54  ;;  %v6457_v39 = vld [vmem:[%s10242_s1 + $0x424] sm:$0xf]  ;;  %v4917_v43 = vld [vmem:[%s10242_s1 + $0x530] sm:$0xf0]  ;;  %v4664_v47 = vor.u32 %v6425_v37, %v4661_v38 }
  0x4e   :  { %v6489_v42 = vld [vmem:[%s10242_s1 + $0x524] sm:$0xf]  ;;  %v4517_v48 = vld [vmem:[%s10242_s1 + $0x210] sm:$0xf0] }
  0x4f   :  { %1392 = vmatpush.bf16.msra.mxu3 %v4856_v60  ;;  %v6389_v44 = vld [vmem:[%s10242_s1 + $0x204] sm:$0xf]  ;;  %v4645_v50 = vld [vmem:[%s10242_s1 + $0x310] sm:$0xf0] }
  0x50   :  { %1404 = vmatpush.bf16.msrb.mxu2 %v5000_v52  ;;  %1367 = vmatpush.bf16.msra.mxu0 %v4584_v3  ;;  %v6421_v49 = vld [vmem:[%s10242_s1 + $0x304] sm:$0xf]  ;;  %v4792_v52 = vor.u32 %v6457_v39, %v4789_v40  ;;  %v4773_v54 = vld [vmem:[%s10242_s1 + $0x410] sm:$0xf0] }
  0x51   :  { %1380 = vmatpush.bf16.msra.mxu1 %v4712_v4  ;;  %v6453_v53 = vld [vmem:[%s10242_s1 + $0x404] sm:$0xf] }
  0x53   :  { %1393 = vmatpush.bf16.msra.mxu3 %v4840_v9 }
  0x54   :  { %1405 = vmatpush.bf16.msrb.mxu2 %v4984_v2  ;;  %1368 = vmatpush.bf16.msra.mxu0 %v4568_v16 }
  0x55   :  { %1381 = vmatpush.bf16.msra.mxu1 %v4696_v17 }
  0x57   :  { %1394 = vmatpush.bf16.msra.mxu3 %v4824_v21 }
  0x58   :  { %1406 = vmatpush.bf16.msrb.mxu2 %v4968_v15  ;;  %1369 = vmatpush.bf16.msra.mxu0 %v4552_v28 }
  0x59   :  { %1382 = vmatpush.bf16.msra.mxu1 %v4680_v29 }
  0x5b   :  { %1395 = vmatpush.bf16.msra.mxu3 %v4808_v34 }
  0x5c   :  { %1407 = vmatpush.bf16.msrb.mxu2 %v4952_v27 }
  0x5d   :  { %19 = vsyncpa [#allocation5], 0  ;;  %v4379_v56 = vld [vmem:[%s10242_s1 + $0xe8] sm:$0xf]  ;;  %v6356_v58 = vld [vmem:[%s10242_s1 + $0xf4] sm:$0xf0]  ;;  %v4920_v60 = vor.u32 %v6489_v42, %v4917_v43  ;;  %1370 = vmatpush.bf16.msra.mxu0 %v4536_v46  ;;  %1383 = vmatpush.bf16.msra.mxu1 %v4664_v47  ;;  %v4520_v0 = vor.u32 %v6389_v44, %v4517_v48  ;;  %v4648_v1 = vor.u32 %v6421_v49, %v4645_v50 }
  0x5e   :  { %v6517_v59 = vld [vmem:[%s10242_s1 + $0x604] sm:$0xf]  ;;  %v5029_v61 = vld [vmem:[%s10242_s1 + $0x610] sm:$0xf0]  ;;  %v4635_v62 = vld [vmem:[%s10242_s1 + $0x2e8] sm:$0xf]  ;;  %v4776_v4 = vor.u32 %v6453_v53, %v4773_v54  ;;  %v4380_v5 = vor.u32 %v6356_v58, %v4379_v56 }
  0x5f   :  { %v6420_v63 = vld [vmem:[%s10242_s1 + $0x2f4] sm:$0xf0]  ;;  %v6485_v2 = vld [vmem:[%s10242_s1 + $0x504] sm:$0xf]  ;;  %v4901_v3 = vld [vmem:[%s10242_s1 + $0x510] sm:$0xf0]  ;;  %1396 = vmatpush.bf16.msra.mxu3 %v4792_v52  ;;  %v5032_v9 = vor.u32 %v6517_v59, %v5029_v61 }
  0x60   :  { %1408 = vmatpush.bf16.msrb.mxu2 %v4936_v41  ;;  %v4763_v6 = vld [vmem:[%s10242_s1 + $0x3e8] sm:$0xf]  ;;  %v6452_v8 = vld [vmem:[%s10242_s1 + $0x3f4] sm:$0xf0]  ;;  %v4636_v12 = vor.u32 %v6420_v63, %v4635_v62  ;;  %v4904_v13 = vor.u32 %v6485_v2, %v4901_v3  ;;  %s6895_s27 = smov [#allocation2]  }
  0x61   :  { %v4507_v10 = vld [vmem:[%s10242_s1 + $0x1e8] sm:$0xf]  ;;  %v6388_v11 = vld [vmem:[%s10242_s1 + $0x1f4] sm:$0xf0]  ;;  %1371 = vmatpush.bf16.msra.mxu0 %v4520_v0  ;;  %1384 = vmatpush.bf16.msra.mxu1 %v4648_v1  ;;  %v4764_v16 = vor.u32 %v6452_v8, %v4763_v6  ;;  %s4230_s28 = sshll.u32 %s6895_s27, 4  ;;  %s4231_s28 = int_to_ptr.vmem [resolvable:$true] %s4230_s28 }
  0x62   :  { %v4363_v14 = vld [vmem:[%s10242_s1 + $0xc8] sm:$0xf]  ;;  %v6352_v15 = vld [vmem:[%s10242_s1 + $0xd4] sm:$0xf0]  ;;  %v4508_v19 = vor.u32 %v6388_v11, %v4507_v10 }
  0x63   :  { %v4619_v17 = vld [vmem:[%s10242_s1 + $0x2c8] sm:$0xf]  ;;  %v6416_v18 = vld [vmem:[%s10242_s1 + $0x2d4] sm:$0xf0]  ;;  %1397 = vmatpush.bf16.msra.mxu3 %v4776_v4  ;;  %v4364_v22 = vor.u32 %v6352_v15, %v4363_v14 }
  0x64   :  { %1409 = vmatpush.bf16.msrb.mxu2 %v4920_v60  ;;  %v4747_v20 = vld [vmem:[%s10242_s1 + $0x3c8] sm:$0xf]  ;;  %v6448_v21 = vld [vmem:[%s10242_s1 + $0x3d4] sm:$0xf0]  ;;  %1372 = vmatmul.bf16.vlgmr.msra.gmra.mxu0 %v7202_v51  ;;  %v4620_v25 = vor.u32 %v6416_v18, %v4619_v17 }
  0x65   :  { %1429 = vmatpush.bf16.msrb.mxu1 %v4380_v5  ;;  %1455 = vmatpush.bf16.msrb.mxu0 %v4636_v12  ;;  %v4491_v23 = vld [vmem:[%s10242_s1 + $0x1c8] sm:$0xf]  ;;  %v6384_v24 = vld [vmem:[%s10242_s1 + $0x1d4] sm:$0xf0]  ;;  %v4748_v28 = vor.u32 %v6448_v21, %v4747_v20 }
  0x66   :  { %v4347_v26 = vld [vmem:[%s10242_s1 + $0xa8] sm:$0xf]  ;;  %v6348_v27 = vld [vmem:[%s10242_s1 + $0xb4] sm:$0xf0]  ;;  %1398 = vmatmul.bf16.vlgmr.msra.gmra.mxu3 %v7416_v30  ;;  %1385 = vmatmul.bf16.vlgmr.msra.gmra.mxu1 %v7215_v57  ;;  %v4492_v32 = vor.u32 %v6384_v24, %v4491_v23 }
  0x67   :  { %1423 = vmatpush.bf16.msrb.mxu3 %v5032_v9  ;;  %v4603_v29 = vld [vmem:[%s10242_s1 + $0x2a8] sm:$0xf]  ;;  %v6412_v31 = vld [vmem:[%s10242_s1 + $0x2b4] sm:$0xf0]  ;;  %v4348_v36 = vor.u32 %v6348_v27, %v4347_v26 }
  0x68   :  { %1410 = vmatpush.bf16.msrb.mxu2 %v4904_v13  ;;  %v4731_v33 = vld [vmem:[%s10242_s1 + $0x3a8] sm:$0xf]  ;;  %v6444_v34 = vld [vmem:[%s10242_s1 + $0x3b4] sm:$0xf0]  ;;  %v4604_v39 = vor.u32 %v6412_v31, %v4603_v29 }
  0x69   :  { %1430 = vmatpush.bf16.msrb.mxu1 %v4364_v22  ;;  %v4475_v37 = vld [vmem:[%s10242_s1 + $0x1a8] sm:$0xf]  ;;  %v6380_v38 = vld [vmem:[%s10242_s1 + $0x1b4] sm:$0xf0]  ;;  %1456 = vmatpush.bf16.msrb.mxu0 %v4620_v25  ;;  %v4732_v42 = vor.u32 %v6444_v34, %v4731_v33 }
  0x6a   :  { %v4331_v40 = vld [vmem:[%s10242_s1 + $0x88] sm:$0xf]  ;;  %v6344_v41 = vld [vmem:[%s10242_s1 + $0x94] sm:$0xf0]  ;;  %v4476_v46 = vor.u32 %v6380_v38, %v4475_v37 }
  0x6b   :  { %1442 = vmatpush.bf16.msra.mxu3 %v4508_v19  ;;  %1411 = vmatmul.bf16.vlgmr.msrb.gmra.mxu2 %v7427_v35  ;;  %v4587_v43 = vld [vmem:[%s10242_s1 + $0x288] sm:$0xf]  ;;  %v6408_v44 = vld [vmem:[%s10242_s1 + $0x294] sm:$0xf0]  ;;  %v4332_v49 = vor.u32 %v6344_v41, %v4331_v40 }
  0x6c   :  { %1468 = vmatpush.bf16.msra.mxu2 %v4764_v16  ;;  %v4715_v47 = vld [vmem:[%s10242_s1 + $0x388] sm:$0xf]  ;;  %v6440_v48 = vld [vmem:[%s10242_s1 + $0x394] sm:$0xf0]  ;;  %v4588_v53 = vor.u32 %v6408_v44, %v4587_v43 }
  0x6d   :  { %1431 = vmatpush.bf16.msrb.mxu1 %v4348_v36  ;;  %v4459_v50 = vld [vmem:[%s10242_s1 + $0x188] sm:$0xf]  ;;  %v6376_v52 = vld [vmem:[%s10242_s1 + $0x194] sm:$0xf0]  ;;  %1457 = vmatpush.bf16.msrb.mxu0 %v4604_v39  ;;  %v4716_v58 = vor.u32 %v6440_v48, %v4715_v47  ;;  %v6354_v47 = vld [vmem:[%s10242_s1 + $0xec] sm:$0xf] }
  0x6e   :  { %v4315_v54 = vld [vmem:[%s10242_s1 + $0x68] sm:$0xf]  ;;  %v6340_v56 = vld [vmem:[%s10242_s1 + $0x74] sm:$0xf0]  ;;  %v4460_v61 = vor.u32 %v6376_v52, %v4459_v50  ;;  %v4381_v48 = vld [vmem:[%s10242_s1 + $0xf8] sm:$0xf0] }
  0x6f   :  { %1443 = vmatpush.bf16.msra.mxu3 %v4492_v32  ;;  %v4571_v59 = vld [vmem:[%s10242_s1 + $0x268] sm:$0xf]  ;;  %v6404_v60 = vld [vmem:[%s10242_s1 + $0x274] sm:$0xf0]  ;;  %v4316_v0 = vor.u32 %v6340_v56, %v4315_v54 }
  0x70   :  { %1469 = vmatpush.bf16.msra.mxu2 %v4748_v28  ;;  %v4699_v62 = vld [vmem:[%s10242_s1 + $0x368] sm:$0xf]  ;;  %v6436_v63 = vld [vmem:[%s10242_s1 + $0x374] sm:$0xf0]  ;;  %v4572_v3 = vor.u32 %v6404_v60, %v4571_v59  ;;  %v6386_v60 = vld [vmem:[%s10242_s1 + $0x1ec] sm:$0xf] }
  0x71   :  { %1432 = vmatpush.bf16.msrb.mxu1 %v4332_v49  ;;  %v4443_v1 = vld [vmem:[%s10242_s1 + $0x168] sm:$0xf]  ;;  %v6372_v2 = vld [vmem:[%s10242_s1 + $0x174] sm:$0xf0]  ;;  %1458 = vmatpush.bf16.msrb.mxu0 %v4588_v53  ;;  %v4700_v6 = vor.u32 %v6436_v63, %v4699_v62  ;;  %v4384_v63 = vor.u32 %v6354_v47, %v4381_v48 }
  0x72   :  { %v4299_v4 = vld [vmem:[%s10242_s1 + $0x48] sm:$0xf]  ;;  %v6336_v5 = vld [vmem:[%s10242_s1 + $0x54] sm:$0xf0]  ;;  %v4444_v10 = vor.u32 %v6372_v2, %v4443_v1  ;;  %v6350_v1 = vld [vmem:[%s10242_s1 + $0xcc] sm:$0xf] }
  0x73   :  { %1444 = vmatpush.bf16.msra.mxu3 %v4476_v46  ;;  %v4555_v8 = vld [vmem:[%s10242_s1 + $0x248] sm:$0xf]  ;;  %v6400_v9 = vld [vmem:[%s10242_s1 + $0x254] sm:$0xf0]  ;;  %v4300_v13 = vor.u32 %v6336_v5, %v4299_v4  ;;  %v4365_v2 = vld [vmem:[%s10242_s1 + $0xd8] sm:$0xf0] }
  0x74   :  { %1470 = vmatpush.bf16.msra.mxu2 %v4732_v42  ;;  %v4683_v11 = vld [vmem:[%s10242_s1 + $0x348] sm:$0xf]  ;;  %v6432_v12 = vld [vmem:[%s10242_s1 + $0x354] sm:$0xf0]  ;;  %v4556_v16 = vor.u32 %v6400_v9, %v4555_v8 }
  0x75   :  { %1433 = vmatpush.bf16.msrb.mxu1 %v4316_v0  ;;  %v4427_v14 = vld [vmem:[%s10242_s1 + $0x148] sm:$0xf]  ;;  %v6368_v15 = vld [vmem:[%s10242_s1 + $0x154] sm:$0xf0]  ;;  %1459 = vmatpush.bf16.msrb.mxu0 %v4572_v3  ;;  %v4684_v19 = vor.u32 %v6432_v12, %v4683_v11  ;;  %v4493_v11 = vld [vmem:[%s10242_s1 + $0x1d8] sm:$0xf0]  ;;  %v4368_v12 = vor.u32 %v6350_v1, %v4365_v2 }
  0x76   :  { %v4283_v17 = vld [vmem:[%s10242_s1 + $0x28] sm:$0xf]  ;;  %v6332_v18 = vld [vmem:[%s10242_s1 + $0x34] sm:$0xf0]  ;;  %5042 = vmatmul.msk.bf16.vlgmr.msrb.gmra.mxu3 %vm1243_vm0, %v7325_v45  ;;  %v4428_v22 = vor.u32 %v6368_v15, %v4427_v14  ;;  %v6346_v14 = vld [vmem:[%s10242_s1 + $0xac] sm:$0xf] }
  0x77   :  { %1445 = vmatpush.bf16.msra.mxu3 %v4460_v61  ;;  %v4539_v20 = vld [vmem:[%s10242_s1 + $0x228] sm:$0xf]  ;;  %v6396_v21 = vld [vmem:[%s10242_s1 + $0x234] sm:$0xf0]  ;;  %v4284_v25 = vor.u32 %v6332_v18, %v4283_v17  ;;  %v4509_v61 = vld [vmem:[%s10242_s1 + $0x1f8] sm:$0xf0] }
  0x78   :  { %1471 = vmatpush.bf16.msra.mxu2 %v4716_v58  ;;  %v4667_v23 = vld [vmem:[%s10242_s1 + $0x328] sm:$0xf]  ;;  %v6428_v24 = vld [vmem:[%s10242_s1 + $0x334] sm:$0xf0]  ;;  %v4540_v29 = vor.u32 %v6396_v21, %v4539_v20  ;;  %v4512_v4 = vor.u32 %v6386_v60, %v4509_v61  ;;  %v4349_v15 = vld [vmem:[%s10242_s1 + $0xb8] sm:$0xf0] }
  0x79   :  { %1434 = vmatpush.bf16.msrb.mxu1 %v4300_v13  ;;  %v4411_v26 = vld [vmem:[%s10242_s1 + $0x128] sm:$0xf]  ;;  %v6364_v27 = vld [vmem:[%s10242_s1 + $0x134] sm:$0xf0]  ;;  %1460 = vmatpush.bf16.msrb.mxu0 %v4556_v16  ;;  %v4668_v34 = vor.u32 %v6428_v24, %v4667_v23  ;;  %v4477_v23 = vld [vmem:[%s10242_s1 + $0x1b8] sm:$0xf0]  ;;  %v4352_v24 = vor.u32 %v6346_v14, %v4349_v15 }
  0x7a   :  { %v4267_v28 = vld [vmem:[%s10242_s1 + $0x8] sm:$0xf]  ;;  %v6328_v31 = vld [vmem:[%s10242_s1 + $0x14] sm:$0xf0]  ;;  %v4412_v40 = vor.u32 %v6364_v27, %v4411_v26  ;;  %v6342_v26 = vld [vmem:[%s10242_s1 + $0x8c] sm:$0xf] }
  0x7b   :  { %1446 = vmatpush.bf16.msra.mxu3 %v4444_v10  ;;  %v4891_v32 = vld [vmem:[%s10242_s1 + $0x4e8] sm:$0xf]  ;;  %v6484_v33 = vld [vmem:[%s10242_s1 + $0x4f4] sm:$0xf0]  ;;  %v4268_v44 = vor.u32 %v6328_v31, %v4267_v28  ;;  %v6382_v10 = vld [vmem:[%s10242_s1 + $0x1cc] sm:$0xf] }
  0x7c   :  { %1472 = vmatpush.bf16.msra.mxu2 %v4700_v6  ;;  %v4395_v36 = vld [vmem:[%s10242_s1 + $0x108] sm:$0xf]  ;;  %v6392_v38 = vld [vmem:[%s10242_s1 + $0x214] sm:$0xf0]  ;;  %v4892_v49 = vor.u32 %v6484_v33, %v4891_v32  ;;  %v4496_v17 = vor.u32 %v6382_v10, %v4493_v11  ;;  %v4333_v27 = vld [vmem:[%s10242_s1 + $0x98] sm:$0xf0] }
  0x7d   :  { %v4523_v37 = vld [vmem:[%s10242_s1 + $0x208] sm:$0xf]  ;;  %v6424_v41 = vld [vmem:[%s10242_s1 + $0x314] sm:$0xf0]  ;;  %1435 = vmatpush.bf16.msrb.mxu1 %v4284_v25  ;;  %1461 = vmatpush.bf16.msrb.mxu0 %v4540_v29  ;;  %v4429_v1 = vld [vmem:[%s10242_s1 + $0x158] sm:$0xf0] }
  0x7e   :  { %v4651_v39 = vld [vmem:[%s10242_s1 + $0x308] sm:$0xf]  ;;  %v6520_v43 = vld [vmem:[%s10242_s1 + $0x614] sm:$0xf0]  ;;  %v4524_v50 = vor.u32 %v6392_v38, %v4523_v37  ;;  %v4461_v37 = vld [vmem:[%s10242_s1 + $0x198] sm:$0xf0]  ;;  %v4336_v38 = vor.u32 %v6342_v26, %v4333_v27 }
  0x7f   :  { %1447 = vmatpush.bf16.msra.mxu3 %v4428_v22  ;;  %v5035_v42 = vld [vmem:[%s10242_s1 + $0x608] sm:$0xf]  ;;  %v6360_v46 = vld [vmem:[%s10242_s1 + $0x114] sm:$0xf0]  ;;  %v4652_v56 = vor.u32 %v6424_v41, %v4651_v39  ;;  %v6378_v22 = vld [vmem:[%s10242_s1 + $0x1ac] sm:$0xf] }
  0x80   :  { %1473 = vmatpush.bf16.msra.mxu2 %v4684_v19  ;;  %v5019_v52 = vld [vmem:[%s10242_s1 + $0x5e8] sm:$0xf]  ;;  %v6516_v53 = vld [vmem:[%s10242_s1 + $0x5f4] sm:$0xf0]  ;;  %v5036_v59 = vor.u32 %v6520_v43, %v5035_v42  ;;  %v4396_v62 = vor.u32 %v6360_v46, %v4395_v36  ;;  %v4480_v29 = vor.u32 %v6378_v22, %v4477_v23  ;;  %v6374_v36 = vld [vmem:[%s10242_s1 + $0x18c] sm:$0xf] }
  0x81   :  { %v4875_v54 = vld [vmem:[%s10242_s1 + $0x4c8] sm:$0xf]  ;;  %v6480_v58 = vld [vmem:[%s10242_s1 + $0x4d4] sm:$0xf0]  ;;  %1436 = vmatpush.bf16.msrb.mxu1 %v4268_v44  ;;  %v5020_v0 = vor.u32 %v6516_v53, %v5019_v52  ;;  %1462 = vmatpush.bf16.msrb.mxu0 %v4524_v50  ;;  %v4317_v41 = vld [vmem:[%s10242_s1 + $0x78] sm:$0xf0]  ;;  %v4464_v43 = vor.u32 %v6374_v36, %v4461_v37 }
  0x82   :  { %v4876_v3 = vor.u32 %v6480_v58, %v4875_v54  ;;  %v5003_v5 = vld [vmem:[%s10242_s1 + $0x5c8] sm:$0xf]  ;;  %v6512_v6 = vld [vmem:[%s10242_s1 + $0x5d4] sm:$0xf0]  ;;  %v4445_v50 = vld [vmem:[%s10242_s1 + $0x178] sm:$0xf0] }
  0x83   :  { %1448 = vmatpush.bf16.msra.mxu3 %v4412_v40  ;;  %v4859_v8 = vld [vmem:[%s10242_s1 + $0x4a8] sm:$0xf]  ;;  %v6476_v9 = vld [vmem:[%s10242_s1 + $0x4b4] sm:$0xf0]  ;;  %v5004_v13 = vor.u32 %v6512_v6, %v5003_v5  ;;  %v6338_v40 = vld [vmem:[%s10242_s1 + $0x6c] sm:$0xf] }
  0x84   :  { %1474 = vmatpush.bf16.msra.mxu2 %v4668_v34  ;;  %1463 = vmatmul.bf16.vlgmr.msrb.gmra.mxu0 %v7202_v51  ;;  %v4860_v16 = vor.u32 %v6476_v9, %v4859_v8  ;;  %v4987_v18 = vld [vmem:[%s10242_s1 + $0x5a8] sm:$0xf]  ;;  %v6508_v19 = vld [vmem:[%s10242_s1 + $0x5b4] sm:$0xf0]  ;;  %v4320_v52 = vor.u32 %v6338_v40, %v4317_v41  ;;  %v6334_v54 = vld [vmem:[%s10242_s1 + $0x4c] sm:$0xf] }
  0x85   :  { %1481 = vmatpush.bf16.msra.mxu1 %v4892_v49  ;;  %1514 = vmatpush.bf16.msra.mxu0 %v5036_v59  ;;  %v4843_v20 = vld [vmem:[%s10242_s1 + $0x488] sm:$0xf]  ;;  %v6472_v21 = vld [vmem:[%s10242_s1 + $0x494] sm:$0xf0]  ;;  %v4988_v25 = vor.u32 %v6508_v19, %v4987_v18  ;;  %v6370_v49 = vld [vmem:[%s10242_s1 + $0x16c] sm:$0xf] }
  0x86   :  { %1437 = vmatmul.bf16.vlgmr.msrb.gmra.mxu1 %v7213_v55  ;;  %v4844_v28 = vor.u32 %v6472_v21, %v4843_v20  ;;  %v4971_v31 = vld [vmem:[%s10242_s1 + $0x588] sm:$0xf]  ;;  %v6504_v32 = vld [vmem:[%s10242_s1 + $0x594] sm:$0xf0]  ;;  %v4448_v59 = vor.u32 %v6370_v49, %v4445_v50  ;;  %v4285_v5 = vld [vmem:[%s10242_s1 + $0x38] sm:$0xf0] }
  0x87   :  { %1449 = vmatpush.bf16.msra.mxu3 %v4396_v62  ;;  %v4827_v33 = vld [vmem:[%s10242_s1 + $0x468] sm:$0xf]  ;;  %v6468_v34 = vld [vmem:[%s10242_s1 + $0x474] sm:$0xf0]  ;;  %v4972_v39 = vor.u32 %v6504_v32, %v4971_v31  ;;  %v4413_v14 = vld [vmem:[%s10242_s1 + $0x138] sm:$0xf0] }
  0x88   :  { %1475 = vmatpush.bf16.msra.mxu2 %v4652_v56  ;;  %v4828_v42 = vor.u32 %v6468_v34, %v4827_v33  ;;  %v4955_v44 = vld [vmem:[%s10242_s1 + $0x568] sm:$0xf]  ;;  %v6500_v46 = vld [vmem:[%s10242_s1 + $0x574] sm:$0xf0]  ;;  %v4301_v56 = vld [vmem:[%s10242_s1 + $0x58] sm:$0xf0] }
  0x89   :  { %1482 = vmatpush.bf16.msra.mxu1 %v4876_v3  ;;  %1533 = vmatpush.bf16.msrb.mxu0 %v4512_v4  ;;  %v4811_v47 = vld [vmem:[%s10242_s1 + $0x448] sm:$0xf]  ;;  %v6464_v48 = vld [vmem:[%s10242_s1 + $0x454] sm:$0xf0]  ;;  %v4956_v53 = vor.u32 %v6500_v46, %v4955_v44  ;;  %v4304_v2 = vor.u32 %v6334_v54, %v4301_v56  ;;  %v6330_v4 = vld [vmem:[%s10242_s1 + $0x2c] sm:$0xf] }
  0x8a   :  { %1450 = vmatmul.bf16.vlgmr.msra.gmra.mxu3 %v7246_v7  ;;  %v4812_v58 = vor.u32 %v6464_v48, %v4811_v47  ;;  %v4939_v60 = vld [vmem:[%s10242_s1 + $0x548] sm:$0xf]  ;;  %v6496_v61 = vld [vmem:[%s10242_s1 + $0x554] sm:$0xf0]  ;;  %v4288_v15 = vor.u32 %v6330_v4, %v4285_v5  ;;  %v6326_v20 = vld [vmem:[%s10242_s1 + $0xc] sm:$0xf] }
  0x8b   :  { %1494 = vmatpush.bf16.msrb.mxu3 %v5020_v0  ;;  %1476 = vmatmul.bf16.vlgmr.msra.gmra.mxu2 %v7215_v57  ;;  %v4795_v62 = vld [vmem:[%s10242_s1 + $0x428] sm:$0xf]  ;;  %v6366_v0 = vld [vmem:[%s10242_s1 + $0x14c] sm:$0xf]  ;;  %v4940_v3 = vor.u32 %v6496_v61, %v4939_v60  ;;  %v6492_v10 = vld [vmem:[%s10242_s1 + $0x534] sm:$0xf0] }
  0x8c   :  { %1520 = vmatpush.bf16.msrb.mxu2 %v4384_v63  ;;  %v6460_v63 = vld [vmem:[%s10242_s1 + $0x434] sm:$0xf0]  ;;  %v4432_v8 = vor.u32 %v6366_v0, %v4429_v1  ;;  %v4923_v9 = vld [vmem:[%s10242_s1 + $0x528] sm:$0xf]  ;;  %v4269_v21 = vld [vmem:[%s10242_s1 + $0x18] sm:$0xf0] }
  0x8d   :  { %1483 = vmatpush.bf16.msra.mxu1 %v4860_v16  ;;  %1534 = vmatpush.bf16.msrb.mxu0 %v4496_v17  ;;  %v4796_v6 = vor.u32 %v6460_v63, %v4795_v62  ;;  %v4779_v11 = vld [vmem:[%s10242_s1 + $0x408] sm:$0xf]  ;;  %v6418_v16 = vld [vmem:[%s10242_s1 + $0x2ec] sm:$0xf]  ;;  %v4637_v17 = vld [vmem:[%s10242_s1 + $0x2f8] sm:$0xf0]  ;;  %v4924_v18 = vor.u32 %v6492_v10, %v4923_v9  ;;  %v4272_v32 = vor.u32 %v6326_v20, %v4269_v21 }
  0x8e   :  { %v4907_v19 = vld [vmem:[%s10242_s1 + $0x508] sm:$0xf]  ;;  %v4765_v26 = vld [vmem:[%s10242_s1 + $0x3f8] sm:$0xf0]  ;;  %v4640_v27 = vor.u32 %v6418_v16, %v4637_v17  ;;  %v6414_v31 = vld [vmem:[%s10242_s1 + $0x2cc] sm:$0xf] }
  0x8f   :  { %1495 = vmatpush.bf16.msrb.mxu3 %v5004_v13  ;;  %v6362_v13 = vld [vmem:[%s10242_s1 + $0x12c] sm:$0xf]  ;;  %v4621_v33 = vld [vmem:[%s10242_s1 + $0x2d8] sm:$0xf0] }
  0x90   :  { %1521 = vmatpush.bf16.msrb.mxu2 %v4368_v12  ;;  %v6456_v12 = vld [vmem:[%s10242_s1 + $0x414] sm:$0xf0]  ;;  %v4416_v23 = vor.u32 %v6362_v13, %v4413_v14  ;;  %v6358_v34 = vld [vmem:[%s10242_s1 + $0x10c] sm:$0xf]  ;;  %v4397_v36 = vld [vmem:[%s10242_s1 + $0x118] sm:$0xf0] }
  0x91   :  { %1484 = vmatpush.bf16.msra.mxu1 %v4844_v28  ;;  %1535 = vmatpush.bf16.msrb.mxu0 %v4480_v29  ;;  %v4780_v22 = vor.u32 %v6456_v12, %v4779_v11  ;;  %v6482_v28 = vld [vmem:[%s10242_s1 + $0x4ec] sm:$0xf]  ;;  %v4893_v29 = vld [vmem:[%s10242_s1 + $0x4f8] sm:$0xf0]  ;;  %v4400_v44 = vor.u32 %v6358_v34, %v4397_v36 }
  0x92   :  { %v4896_v41 = vor.u32 %v6482_v28, %v4893_v29  ;;  %v4749_v46 = vld [vmem:[%s10242_s1 + $0x3d8] sm:$0xf0]  ;;  %v6478_v47 = vld [vmem:[%s10242_s1 + $0x4cc] sm:$0xf] }
  0x93   :  { %1496 = vmatpush.bf16.msrb.mxu3 %v4988_v25  ;;  %v6450_v25 = vld [vmem:[%s10242_s1 + $0x3ec] sm:$0xf]  ;;  %v4877_v48 = vld [vmem:[%s10242_s1 + $0x4d8] sm:$0xf0] }
  0x94   :  { %1522 = vmatpush.bf16.msrb.mxu2 %v4352_v24  ;;  %5043 = vmatmul.msk.bf16.vlgmr.msra.gmra.mxu0 %vm1243_vm0, %v7325_v45  ;;  %v6488_v24 = vld [vmem:[%s10242_s1 + $0x514] sm:$0xf0]  ;;  %v4768_v40 = vor.u32 %v6450_v25, %v4765_v26  ;;  %v6410_v50 = vld [vmem:[%s10242_s1 + $0x2ac] sm:$0xf]  ;;  %v5005_v54 = vld [vmem:[%s10242_s1 + $0x5d8] sm:$0xf0] }
  0x95   :  { %1485 = vmatpush.bf16.msra.mxu1 %v4828_v42  ;;  %1536 = vmatpush.bf16.msrb.mxu0 %v4464_v43  ;;  %v4908_v37 = vor.u32 %v6488_v24, %v4907_v19  ;;  %v6446_v42 = vld [vmem:[%s10242_s1 + $0x3cc] sm:$0xf]  ;;  %v4624_v43 = vor.u32 %v6414_v31, %v4621_v33  ;;  %v4733_v61 = vld [vmem:[%s10242_s1 + $0x3b8] sm:$0xf0] }
  0x96   :  { %v4752_v56 = vor.u32 %v6446_v42, %v4749_v46  ;;  %v6474_v62 = vld [vmem:[%s10242_s1 + $0x4ac] sm:$0xf]  ;;  %v4861_v63 = vld [vmem:[%s10242_s1 + $0x4b8] sm:$0xf0] }
  0x97   :  { %1497 = vmatpush.bf16.msrb.mxu3 %v4972_v39  ;;  %v5021_v39 = vld [vmem:[%s10242_s1 + $0x5f8] sm:$0xf0]  ;;  %v6406_v1 = vld [vmem:[%s10242_s1 + $0x28c] sm:$0xf] }
  0x98   :  { %1523 = vmatpush.bf16.msrb.mxu2 %v4336_v38  ;;  %v6514_v38 = vld [vmem:[%s10242_s1 + $0x5ec] sm:$0xf]  ;;  %v4989_v4 = vld [vmem:[%s10242_s1 + $0x5b8] sm:$0xf0] }
  0x99   :  { %1486 = vmatpush.bf16.msra.mxu1 %v4812_v58  ;;  %1537 = vmatpush.bf16.msrb.mxu0 %v4448_v59  ;;  %v5024_v49 = vor.u32 %v6514_v38, %v5021_v39  ;;  %v4880_v58 = vor.u32 %v6478_v47, %v4877_v48  ;;  %v6442_v59 = vld [vmem:[%s10242_s1 + $0x3ac] sm:$0xf]  ;;  %v4845_v11 = vld [vmem:[%s10242_s1 + $0x498] sm:$0xf0]  ;;  %v8162_v48 = vld [vmem:[%s10243_s2] sm:$0xf] }
  0x9a   :  { %v4736_v5 = vor.u32 %v6442_v59, %v4733_v61  ;;  %v6470_v10 = vld [vmem:[%s10242_s1 + $0x48c] sm:$0xf]  ;;  %v4573_v14 = vld [vmem:[%s10242_s1 + $0x278] sm:$0xf0] }
  0x9b   :  { %1498 = vmatpush.bf16.msrb.mxu3 %v4956_v53  ;;  %v6510_v53 = vld [vmem:[%s10242_s1 + $0x5cc] sm:$0xf]  ;;  %v4701_v21 = vld [vmem:[%s10242_s1 + $0x378] sm:$0xf0] }
  0x9c   :  { %1524 = vmatpush.bf16.msrb.mxu2 %v4320_v52  ;;  %v4605_v52 = vld [vmem:[%s10242_s1 + $0x2b8] sm:$0xf0]  ;;  %v5008_v0 = vor.u32 %v6510_v53, %v5005_v54  ;;  %v6402_v13 = vld [vmem:[%s10242_s1 + $0x26c] sm:$0xf] }
  0x9d   :  { %1487 = vmatpush.bf16.msra.mxu1 %v4796_v6  ;;  %1538 = vmatpush.bf16.msrb.mxu0 %v4432_v8  ;;  %v4608_v60 = vor.u32 %v6410_v50, %v4605_v52  ;;  %v4864_v6 = vor.u32 %v6474_v62, %v4861_v63  ;;  %v6438_v8 = vld [vmem:[%s10242_s1 + $0x38c] sm:$0xf]  ;;  %v4576_v20 = vor.u32 %v6402_v13, %v4573_v14  ;;  %v4957_v29 = vld [vmem:[%s10242_s1 + $0x578] sm:$0xf0]  ;;  %v5103_v14 = vld [vmem:[%s10244_s3 + $0x70] sm:$0xf] }
  0x9e   :  { %v6502_v16 = vld [vmem:[%s10242_s1 + $0x58c] sm:$0xf]  ;;  %v4685_v38 = vld [vmem:[%s10242_s1 + $0x358] sm:$0xf0] }
  0x9f   :  { %1499 = vmatpush.bf16.msrb.mxu3 %v4940_v3  ;;  %v6506_v3 = vld [vmem:[%s10242_s1 + $0x5ac] sm:$0xf]  ;;  %v4941_v47 = vld [vmem:[%s10242_s1 + $0x558] sm:$0xf0] }
  0xa0   :  { %1525 = vmatpush.bf16.msrb.mxu2 %v4304_v2  ;;  %v4589_v2 = vld [vmem:[%s10242_s1 + $0x298] sm:$0xf0]  ;;  %v4992_v12 = vor.u32 %v6506_v3, %v4989_v4  ;;  %v6434_v19 = vld [vmem:[%s10242_s1 + $0x36c] sm:$0xf]  ;;  %v255_v3 = vperm.slane %v8162_v48, 0 }
  0xa1   :  { %1488 = vmatpush.bf16.msra.mxu1 %v4780_v22  ;;  %1539 = vmatpush.bf16.msrb.mxu0 %v4416_v23  ;;  %v4592_v9 = vor.u32 %v6406_v1, %v4589_v2  ;;  %v6466_v22 = vld [vmem:[%s10242_s1 + $0x46c] sm:$0xf]  ;;  %v4829_v23 = vld [vmem:[%s10242_s1 + $0x478] sm:$0xf0]  ;;  %v8117_v25 = vpop.f32.mrf.mxu1 }
  0xa2   :  { %v6398_v26 = vld [vmem:[%s10242_s1 + $0x24c] sm:$0xf]  ;;  %v4832_v33 = vor.u32 %v6466_v22, %v4829_v23  ;;  %v4669_v54 = vld [vmem:[%s10242_s1 + $0x338] sm:$0xf0] }
  0xa3   :  { %1500 = vmatpush.bf16.msrb.mxu3 %v4924_v18  ;;  %v4848_v18 = vor.u32 %v6470_v10, %v4845_v11  ;;  %v6498_v28 = vld [vmem:[%s10242_s1 + $0x56c] sm:$0xf]  ;;  %v4525_v61 = vld [vmem:[%s10242_s1 + $0x218] sm:$0xf0] }
  0xa4   :  { %1526 = vmatpush.bf16.msrb.mxu2 %v4288_v15  ;;  %1489 = vmatmul.bf16.vlgmr.msra.gmra.mxu1 %v7416_v30  ;;  %v8097_v15 = vpop.f32.mrf.mxu0  ;;  %v6430_v34 = vld [vmem:[%s10242_s1 + $0x34c] sm:$0xf]  ;;  %v5037_v2 = vld [vmem:[%s10242_s1 + $0x618] sm:$0xf0] }
  0xa5   :  { %1546 = vmatpush.bf16.msrb.mxu1 %v4640_v27  ;;  %1540 = vmatpush.bf16.msrb.mxu0 %v4400_v44  ;;  %v4557_v27 = vld [vmem:[%s10242_s1 + $0x258] sm:$0xf0]  ;;  %v6462_v39 = vld [vmem:[%s10242_s1 + $0x44c] sm:$0xf] }
  0xa6   :  { %v4560_v36 = vor.u32 %v6398_v26, %v4557_v27  ;;  %v6394_v42 = vld [vmem:[%s10242_s1 + $0x22c] sm:$0xf]  ;;  %v4781_v11 = vld [vmem:[%s10242_s1 + $0x418] sm:$0xf0]  ;;  %v5095_v27 = vld [vmem:[%s10244_s3 + $0x60] sm:$0xf] }
  0xa7   :  { %1501 = vmatpush.bf16.msrb.mxu3 %v4908_v37  ;;  %v6494_v46 = vld [vmem:[%s10242_s1 + $0x54c] sm:$0xf] }
  0xa8   :  { %1527 = vmatpush.bf16.msrb.mxu2 %v4272_v32  ;;  %1541 = vmatmul.bf16.vlgmr.msrb.gmra.mxu0 %v7246_v7  ;;  %v4973_v7 = vld [vmem:[%s10242_s1 + $0x598] sm:$0xf0]  ;;  %v4704_v32 = vor.u32 %v6434_v19, %v4701_v21  ;;  %v6426_v52 = vld [vmem:[%s10242_s1 + $0x32c] sm:$0xf]  ;;  %v4944_v59 = vor.u32 %v6494_v46, %v4941_v47  ;;  %v5167_v19 = vld [vmem:[%s10244_s3 + $0xf0] sm:$0xf]  ;;  %v1257_v21 = vadd.f32 %v8097_v15, %v255_v3 }
  0xa9   :  { %1547 = vmatpush.bf16.msrb.mxu1 %v4624_v43  ;;  %1585 = vmatpush.bf16.msra.mxu0 %v5024_v49  ;;  %v4976_v24 = vor.u32 %v6502_v16, %v4973_v7  ;;  %v8131_v31 = vpop.f32.mrf.mxu2  ;;  %v8136_v37 = vpop.f32.mrf.mxu3  ;;  %v4541_v43 = vld [vmem:[%s10242_s1 + $0x238] sm:$0xf0]  ;;  %v4688_v49 = vor.u32 %v6430_v34, %v4685_v38  ;;  %v6490_v62 = vld [vmem:[%s10242_s1 + $0x52c] sm:$0xf]  ;;  %v6536_v16 = vld [vmem:[%s10244_s3 + $0x74] sm:$0xf0] }
  0xaa   :  { %1502 = vmatmul.bf16.vlgmr.msrb.gmra.mxu3 %v7427_v35  ;;  %v4544_v53 = vor.u32 %v6394_v42, %v4541_v43  ;;  %v1271_v63 = vpop.f32.mrf.mxu1  ;;  %v6518_v1 = vld [vmem:[%s10242_s1 + $0x60c] sm:$0xf]  ;;  %v5159_v15 = vld [vmem:[%s10244_s3 + $0xe0] sm:$0xf]  ;;  %v5087_v38 = vld [vmem:[%s10244_s3 + $0x50] sm:$0xf] }
  0xab   :  { %1559 = vmatpush.bf16.msra.mxu3 %v4768_v40  ;;  %1528 = vmatmul.bf16.vlgmr.msrb.gmra.mxu2 %v7213_v55  ;;  %v4717_v55 = vld [vmem:[%s10242_s1 + $0x398] sm:$0xf0]  ;;  %v6454_v10 = vld [vmem:[%s10242_s1 + $0x40c] sm:$0xf]  ;;  %v6530_v43 = vld [vmem:[%s10244_s3 + $0x44] sm:$0xf0] }
  0xac   :  { %1572 = vmatpush.bf16.msra.mxu2 %v4896_v41  ;;  %v4720_v17 = vor.u32 %v6438_v8, %v4717_v55  ;;  %v4813_v40 = vld [vmem:[%s10242_s1 + $0x458] sm:$0xf0]  ;;  %v4960_v41 = vor.u32 %v6498_v28, %v4957_v29  ;;  %v1258_v44 = vpop.f32.mrf.mxu0  ;;  %v6422_v8 = vld [vmem:[%s10242_s1 + $0x30c] sm:$0xf]  ;;  %v4784_v23 = vor.u32 %v6454_v10, %v4781_v11  ;;  %v6534_v28 = vld [vmem:[%s10244_s3 + $0x64] sm:$0xf0] }
  0xad   :  { %1548 = vmatpush.bf16.msrb.mxu1 %v4608_v60  ;;  %1586 = vmatpush.bf16.msra.mxu0 %v5008_v0  ;;  %v4816_v50 = vor.u32 %v6462_v39, %v4813_v40  ;;  %v6390_v60 = vld [vmem:[%s10242_s1 + $0x20c] sm:$0xf]  ;;  %v4925_v0 = vld [vmem:[%s10242_s1 + $0x538] sm:$0xf0]  ;;  %v6532_v39 = vld [vmem:[%s10244_s3 + $0x54] sm:$0xf0] }
  0xae   :  { %v4653_v55 = vld [vmem:[%s10242_s1 + $0x318] sm:$0xf0]  ;;  %v4928_v13 = vor.u32 %v6490_v62, %v4925_v0  ;;  %v6486_v7 = vld [vmem:[%s10242_s1 + $0x50c] sm:$0xf]  ;;  %v5088_v42 = vor.u32 %v6532_v39, %v5087_v38  ;;  %v6526_v62 = vld [vmem:[%s10244_s3 + $0x24] sm:$0xf0] }
  0xaf   :  { %1560 = vmatpush.bf16.msra.mxu3 %v4752_v56  ;;  %v6458_v56 = vld [vmem:[%s10242_s1 + $0x42c] sm:$0xf]  ;;  %v4656_v22 = vor.u32 %v6422_v8, %v4653_v55  ;;  %v6542_v3 = vld [vmem:[%s10244_s3 + $0xa4] sm:$0xf0]  ;;  %v6524_v55 = vld [vmem:[%s10244_s3 + $0x14] sm:$0xf0] }
  0xb0   :  { %1573 = vmatpush.bf16.msra.mxu2 %v4880_v58  ;;  %v4797_v58 = vld [vmem:[%s10242_s1 + $0x438] sm:$0xf0]  ;;  %v6540_v11 = vld [vmem:[%s10244_s3 + $0x94] sm:$0xf0] }
  0xb1   :  { %1549 = vmatpush.bf16.msrb.mxu1 %v4592_v9  ;;  %1587 = vmatpush.bf16.msra.mxu0 %v4992_v12  ;;  %v1284_v4 = vpop.f32.mrf.mxu2  ;;  %v4528_v9 = vor.u32 %v6390_v60, %v4525_v61  ;;  %v1297_v12 = vpop.f32.mrf.mxu3  ;;  %v5063_v61 = vld [vmem:[%s10244_s3 + $0x20] sm:$0xf] }
  0xb3   :  { %1561 = vmatpush.bf16.msra.mxu3 %v4736_v5  ;;  %v4672_v5 = vor.u32 %v6426_v52, %v4669_v54  ;;  %v6528_v54 = vld [vmem:[%s10244_s3 + $0x34] sm:$0xf0] }
  0xb4   :  { %1574 = vmatpush.bf16.msra.mxu2 %v4864_v6  ;;  %v4800_v6 = vor.u32 %v6458_v56, %v4797_v58  ;;  %v5135_v58 = vld [vmem:[%s10244_s3 + $0xb0] sm:$0xf] }
  0xb5   :  { %1550 = vmatpush.bf16.msrb.mxu1 %v4576_v20  ;;  %1588 = vmatpush.bf16.msra.mxu0 %v4976_v24  ;;  %v6552_v20 = vld [vmem:[%s10244_s3 + $0xf4] sm:$0xf0]  ;;  %v5104_v24 = vor.u32 %v6536_v16, %v5103_v14  ;;  %v6522_v16 = vld [vmem:[%s10244_s3 + $0x4] sm:$0xf0] }
  0xb6   :  { %v5168_v29 = vor.u32 %v6552_v20, %v5167_v19  ;;  %v5105_v19 = vld [vmem:[%s10244_s3 + $0x78] sm:$0xf0]  ;;  %v5111_v20 = vld [vmem:[%s10244_s3 + $0x80] sm:$0xf] }
  0xb7   :  { %1562 = vmatpush.bf16.msra.mxu3 %v4720_v17  ;;  %v5040_v17 = vor.u32 %v6518_v1, %v5037_v2  ;;  %v5127_v2 = vld [vmem:[%s10244_s3 + $0xa0] sm:$0xf] }
  0xb8   :  { %1575 = vmatpush.bf16.msra.mxu2 %v4848_v18  ;;  %v4909_v18 = vld [vmem:[%s10242_s1 + $0x518] sm:$0xf0]  ;;  %v5128_v10 = vor.u32 %v6542_v3, %v5127_v2  ;;  %v6525_v3 = vld [vmem:[%s10244_s3 + $0x24] sm:$0xf] }
  0xb9   :  { %1551 = vmatpush.bf16.msrb.mxu1 %v4560_v36  ;;  %1589 = vmatpush.bf16.msra.mxu0 %v4960_v41  ;;  %v4912_v26 = vor.u32 %v6486_v7, %v4909_v18  ;;  %v1334_v34 = vpop.f32.mrf.mxu2  ;;  %v5096_v36 = vor.u32 %v6534_v28, %v5095_v27  ;;  %v6535_v7 = vld [vmem:[%s10244_s3 + $0x74] sm:$0xf] }
  0xba   :  { %v5108_v28 = vor.u32 %v6535_v7, %v5105_v19  ;;  %v5057_v7 = vld [vmem:[%s10244_s3 + $0x18] sm:$0xf0]  ;;  %v6539_v19 = vld [vmem:[%s10244_s3 + $0x94] sm:$0xf] }
  0xbb   :  { %1563 = vmatpush.bf16.msra.mxu3 %v4704_v32  ;;  %v6550_v32 = vld [vmem:[%s10244_s3 + $0xe4] sm:$0xf0] }
  0xbc   :  { %1576 = vmatpush.bf16.msra.mxu2 %v4832_v33  ;;  %v1270_v33 = vadd.f32 %v8117_v25, %v1257_v21  ;;  %v5160_v40 = vor.u32 %v6550_v32, %v5159_v15  ;;  %v6548_v25 = vld [vmem:[%s10244_s3 + $0xd4] sm:$0xf0]  ;;  %v6538_v21 = vld [vmem:[%s10244_s3 + $0x84] sm:$0xf0]  ;;  %v6533_v15 = vld [vmem:[%s10244_s3 + $0x64] sm:$0xf] }
  0xbd   :  { %1552 = vmatpush.bf16.msrb.mxu1 %v4544_v53  ;;  %1590 = vmatpush.bf16.msra.mxu0 %v4944_v59  ;;  %v5071_v53 = vld [vmem:[%s10244_s3 + $0x30] sm:$0xf]  ;;  %v5097_v32 = vld [vmem:[%s10244_s3 + $0x68] sm:$0xf0] }
  0xbe   :  { %v1283_v41 = vadd.f32 %v8131_v31, %v1270_v33  ;;  %v5143_v31 = vld [vmem:[%s10244_s3 + $0xc0] sm:$0xf]  ;;  %v5072_v59 = vor.u32 %v6528_v54, %v5071_v53  ;;  %v5100_v39 = vor.u32 %v6533_v15, %v5097_v32  ;;  %v6527_v53 = vld [vmem:[%s10244_s3 + $0x34] sm:$0xf]  ;;  %v6537_v15 = vld [vmem:[%s10244_s3 + $0x84] sm:$0xf] }
  0xbf   :  { %1564 = vmatpush.bf16.msra.mxu3 %v4688_v49  ;;  %v5113_v32 = vld [vmem:[%s10244_s3 + $0x88] sm:$0xf0] }
  0xc0   :  { %1577 = vmatpush.bf16.msra.mxu2 %v4816_v50  ;;  %v1308_v46 = vpop.f32.mrf.mxu0 }
  0xc1   :  { %1553 = vmatpush.bf16.msrb.mxu1 %v4528_v9  ;;  %1591 = vmatpush.bf16.msra.mxu0 %v4928_v13  ;;  %v1336_v49 = vpop.f32.mrf.mxu2  ;;  %v5055_v9 = vld [vmem:[%s10244_s3 + $0x10] sm:$0xf]  ;;  %v5047_v13 = vld [vmem:[%s10244_s3] sm:$0xf] }
  0xc2   :  { %v5056_v12 = vor.u32 %v6524_v55, %v5055_v9  ;;  %v6568_v49 = vld [vmem:[%s10244_s3 + $0x174] sm:$0xf0]  ;;  %v6541_v9 = vld [vmem:[%s10244_s3 + $0xa4] sm:$0xf]  ;;  %v5129_v55 = vld [vmem:[%s10244_s3 + $0xa8] sm:$0xf0] }
  0xc3   :  { %1565 = vmatpush.bf16.msra.mxu3 %v4672_v5  ;;  %v1321_v47 = vpop.f32.mrf.mxu1  ;;  %v5064_v5 = vor.u32 %v6526_v62, %v5063_v61  ;;  %v6543_v61 = vld [vmem:[%s10244_s3 + $0xb4] sm:$0xf]  ;;  %v5137_v62 = vld [vmem:[%s10244_s3 + $0xb8] sm:$0xf0] }
  0xc4   :  { %1578 = vmatpush.bf16.msra.mxu2 %v4800_v6  ;;  %1554 = vmatmul.bf16.vlgmr.msrb.gmra.mxu1 %v7202_v51  ;;  %v5151_v51 = vld [vmem:[%s10244_s3 + $0xd0] sm:$0xf] }
  0xc5   :  { %1605 = vmatpush.bf16.msra.mxu1 %v5040_v17  ;;  %1592 = vmatpush.bf16.msra.mxu0 %v4912_v26  ;;  %v5152_v44 = vor.u32 %v6548_v25, %v5151_v51  ;;  %v5089_v51 = vld [vmem:[%s10244_s3 + $0x58] sm:$0xf0] }
  0xc7   :  { %1566 = vmatpush.bf16.msra.mxu3 %v4656_v22  ;;  %v6551_v22 = vld [vmem:[%s10244_s3 + $0xf4] sm:$0xf] }
  0xc8   :  { %1579 = vmatpush.bf16.msra.mxu2 %v4784_v23  ;;  %1593 = vmatmul.bf16.vlgmr.msra.gmra.mxu0 %v7427_v35  ;;  %v1296_v35 = vadd.f32 %v8136_v37, %v1283_v41  ;;  %v6544_v37 = vld [vmem:[%s10244_s3 + $0xb4] sm:$0xf0]  ;;  %v1310_v1 = vpop.f32.mrf.mxu0  ;;  %v5169_v23 = vld [vmem:[%s10244_s3 + $0xf8] sm:$0xf0]  ;;  %v6547_v41 = vld [vmem:[%s10244_s3 + $0xd4] sm:$0xf] }
  0xc9   :  { %2026 = vmatpush.bf16.msrb.mxu1 %v5168_v29  ;;  %v5136_v63 = vor.u32 %v6544_v37, %v5135_v58  ;;  %v8287_v0 = vpop.f32.mrf.mxu3  ;;  %v5112_v29 = vor.u32 %v6538_v21, %v5111_v20  ;;  %v5172_v33 = vor.u32 %v6551_v22, %v5169_v23  ;;  %v5073_v58 = vld [vmem:[%s10244_s3 + $0x38] sm:$0xf0]  ;;  %v5207_v21 = vld [vmem:[%s10244_s3 + $0x140] sm:$0xf]  ;;  %v6562_v22 = vld [vmem:[%s10244_s3 + $0x144] sm:$0xf0] }
  0xca   :  { %1567 = vmatmul.bf16.vlgmr.msra.gmra.mxu3 %v7215_v57  ;;  %v5079_v57 = vld [vmem:[%s10244_s3 + $0x40] sm:$0xf]  ;;  %v1309_v52 = vadd.f32 %v1308_v46, %v1296_v35  ;;  %v5076_v1 = vor.u32 %v6527_v53, %v5073_v58  ;;  %v5121_v20 = vld [vmem:[%s10244_s3 + $0x98] sm:$0xf0]  ;;  %v6567_v53 = vld [vmem:[%s10244_s3 + $0x174] sm:$0xf] }
  0xcb   :  { %2013 = vmatpush.bf16.msrb.mxu3 %v5104_v24  ;;  %1580 = vmatmul.bf16.vlgmr.msra.gmra.mxu2 %v7416_v30  ;;  %v6546_v30 = vld [vmem:[%s10244_s3 + $0xc4] sm:$0xf0]  ;;  %v5080_v50 = vor.u32 %v6530_v43, %v5079_v57  ;;  %v1323_v4 = vpop.f32.mrf.mxu1  ;;  %v5048_v24 = vor.u32 %v6522_v16, %v5047_v13  ;;  %v6529_v43 = vld [vmem:[%s10244_s3 + $0x44] sm:$0xf]  ;;  %v6523_v16 = vld [vmem:[%s10244_s3 + $0x14] sm:$0xf] }
  0xcc   :  { %v5144_v56 = vor.u32 %v6546_v30, %v5143_v31  ;;  %v1322_v60 = vadd.f32 %v1321_v47, %v1309_v52  ;;  %v6545_v31 = vld [vmem:[%s10244_s3 + $0xc4] sm:$0xf]  ;;  %v5145_v30 = vld [vmem:[%s10244_s3 + $0xc8] sm:$0xf0]  ;;  %v5231_v47 = vld [vmem:[%s10244_s3 + $0x170] sm:$0xf]  ;;  %v5060_v23 = vor.u32 %v6523_v16, %v5057_v7 }
  0xcd   :  { %2027 = vmatpush.bf16.msrb.mxu1 %v5160_v40  ;;  %v6531_v40 = vld [vmem:[%s10244_s3 + $0x54] sm:$0xf]  ;;  %v5232_v54 = vor.u32 %v6568_v49, %v5231_v47  ;;  %v5148_v37 = vor.u32 %v6545_v31, %v5145_v30  ;;  %v5065_v4 = vld [vmem:[%s10244_s3 + $0x28] sm:$0xf0]  ;;  %v5183_v30 = vld [vmem:[%s10244_s3 + $0x110] sm:$0xf] }
  0xce   :  { %v8297_v6 = vpop.f32.mrf.mxu2  ;;  %v1335_v8 = vadd.f32 %v1334_v34, %v1322_v60  ;;  %v6549_v34 = vld [vmem:[%s10244_s3 + $0xe4] sm:$0xf]  ;;  %v5092_v57 = vor.u32 %v6531_v40, %v5089_v51  ;;  %v6566_v60 = vld [vmem:[%s10244_s3 + $0x164] sm:$0xf0]  ;;  %v5209_v16 = vld [vmem:[%s10244_s3 + $0x148] sm:$0xf0] }
  0xcf   :  { %2014 = vmatpush.bf16.msrb.mxu3 %v5096_v36  ;;  %v5161_v36 = vld [vmem:[%s10244_s3 + $0xe8] sm:$0xf0]  ;;  %2039 = vmatpush.bf16.msrb.mxu2 %v5232_v54 }
  0xd0   :  { %v1611_v14 = vmul.f32 0.01, %v1335_v8  ;;  %v5164_v25 = vor.u32 %v6549_v34, %v5161_v36  ;;  %v5199_v34 = vld [vmem:[%s10244_s3 + $0x130] sm:$0xf]  ;;  %v6560_v36 = vld [vmem:[%s10244_s3 + $0x134] sm:$0xf0] }
  0xd1   :  { %2028 = vmatpush.bf16.msrb.mxu1 %v5152_v44  ;;  %v1349_v18 = vpop.f32.mrf.mxu3  ;;  %v5081_v44 = vld [vmem:[%s10244_s3 + $0x48] sm:$0xf0] }
  0xd2   :  { %v1615_v27 = vmax.f32 %v1335_v8, %v1611_v14  ;;  %v5084_v52 = vor.u32 %v6529_v43, %v5081_v44  ;;  %v5132_v18 = vor.u32 %v6541_v9, %v5129_v55 }
  0xd3   :  { %2015 = vmatpush.bf16.msrb.mxu3 %v5088_v42  ;;  %v5153_v42 = vld [vmem:[%s10244_s3 + $0xd8] sm:$0xf0] }
  0xd4   :  { %5044 = vmatmul.msk.bf16.vlgmr.msra.gmra.mxu1 %vm1243_vm0, %v7325_v45  ;;  %v5119_v45 = vld [vmem:[%s10244_s3 + $0x90] sm:$0xf]  ;;  %v8347_v38 = vpack.c.bf16 %v1615_v27, %v1615_v27  ;;  %v5156_v46 = vor.u32 %v6547_v41, %v5153_v42  ;;  %v5049_v27 = vld [vmem:[%s10244_s3 + $0x8] sm:$0xf0]  ;;  %v6558_v41 = vld [vmem:[%s10244_s3 + $0x124] sm:$0xf0] }
  0xd5   :  { %2029 = vmatpush.bf16.msrb.mxu1 %v5144_v56  ;;  %v5120_v17 = vor.u32 %v6540_v11, %v5119_v45  ;;  %v6564_v45 = vld [vmem:[%s10244_s3 + $0x154] sm:$0xf0] }
  0xd6   :  { %v1362_v26 = vpop.f32.mrf.mxu2 }
  0xd7   :  { %2016 = vmatpush.bf16.msrb.mxu3 %v5080_v50  ;;  %v256_v50 = vperm.slane %v8162_v48, 1  ;;  %v6521_v26 = vld [vmem:[%s10244_s3 + $0x4] sm:$0xf] }
  0xd8   :  { %v5052_v40 = vor.u32 %v6521_v26, %v5049_v27  ;;  %v6578_v26 = vld [vmem:[%s10244_s3 + $0x1c4] sm:$0xf0]  ;;  %v6557_v27 = vld [vmem:[%s10244_s3 + $0x124] sm:$0xf] }
  0xd9   :  { %2030 = vmatpush.bf16.msrb.mxu1 %v5136_v63  ;;  %v1348_v2 = vadd.f32 %v8287_v0, %v256_v50 }
  0xdb   :  { %2017 = vmatpush.bf16.msrb.mxu3 %v5072_v59  ;;  %v5223_v59 = vld [vmem:[%s10244_s3 + $0x160] sm:$0xf]  ;;  %v1361_v14 = vadd.f32 %v8297_v6, %v1348_v2  ;;  %v5295_v2 = vld [vmem:[%s10244_s3 + $0x1f0] sm:$0xf] }
  0xdc   :  { %v5224_v63 = vor.u32 %v6566_v60, %v5223_v59 }
  0xdd   :  { %2031 = vmatpush.bf16.msrb.mxu1 %v5128_v10  ;;  %v5215_v10 = vld [vmem:[%s10244_s3 + $0x150] sm:$0xf] }
  0xde   :  { %2040 = vmatpush.bf16.msrb.mxu2 %v5224_v63  ;;  %v5216_v13 = vor.u32 %v6564_v45, %v5215_v10  ;;  %v5225_v63 = vld [vmem:[%s10244_s3 + $0x168] sm:$0xf0]  ;;  %v5287_v10 = vld [vmem:[%s10244_s3 + $0x1e0] sm:$0xf]  ;;  %v6582_v45 = vld [vmem:[%s10244_s3 + $0x1e4] sm:$0xf0] }
  0xdf   :  { %2018 = vmatpush.bf16.msrb.mxu3 %v5064_v5  ;;  %v5140_v5 = vor.u32 %v6543_v61, %v5137_v62  ;;  %v6565_v62 = vld [vmem:[%s10244_s3 + $0x164] sm:$0xf] }
  0xe1   :  { %2032 = vmatpush.bf16.msrb.mxu1 %v5120_v17  ;;  %v1373_v35 = vpop.f32.mrf.mxu0 }
  0xe2   :  { %2041 = vmatpush.bf16.msrb.mxu2 %v5216_v13  ;;  %v1374_v6 = vadd.f32 %v1373_v35, %v1361_v14  ;;  %v6556_v35 = vld [vmem:[%s10244_s3 + $0x114] sm:$0xf0]  ;;  %v6561_v14 = vld [vmem:[%s10244_s3 + $0x144] sm:$0xf] }
  0xe3   :  { %2019 = vmatpush.bf16.msrb.mxu3 %v5056_v12  ;;  %v1386_v56 = vpop.f32.mrf.mxu1  ;;  %v5068_v12 = vor.u32 %v6525_v3, %v5065_v4  ;;  %v5184_v49 = vor.u32 %v6556_v35, %v5183_v30  ;;  %v6584_v3 = vld [vmem:[%s10244_s3 + $0x1f4] sm:$0xf0]  ;;  %v5212_v7 = vor.u32 %v6561_v14, %v5209_v16  ;;  %v5177_v30 = vld [vmem:[%s10244_s3 + $0x108] sm:$0xf0]  ;;  %v5247_v35 = vld [vmem:[%s10244_s3 + $0x190] sm:$0xf] }
  0xe4   :  { %v5296_v4 = vor.u32 %v6584_v3, %v5295_v2  ;;  %v6581_v2 = vld [vmem:[%s10244_s3 + $0x1e4] sm:$0xf]  ;;  %v5289_v3 = vld [vmem:[%s10244_s3 + $0x1e8] sm:$0xf0] }
  0xe5   :  { %2033 = vmatpush.bf16.msrb.mxu1 %v5112_v29  ;;  %v6577_v14 = vld [vmem:[%s10244_s3 + $0x1c4] sm:$0xf]  ;;  %v5273_v16 = vld [vmem:[%s10244_s3 + $0x1c8] sm:$0xf0] }
  0xe6   :  { %2052 = vmatpush.bf16.msrb.mxu0 %v5296_v4 }
  0xe7   :  { %2020 = vmatpush.bf16.msrb.mxu3 %v5048_v24  ;;  %v5208_v24 = vor.u32 %v6562_v22, %v5207_v21 }
  0xe9   :  { %2078 = vmatpush.bf16.msra.mxu1 %v5172_v33  ;;  %v1399_v8 = vpop.f32.mrf.mxu3  ;;  %v1375_v0 = vpop.f32.mrf.mxu0  ;;  %2042 = vmatpush.bf16.msrb.mxu2 %v5208_v24  ;;  %v1387_v33 = vadd.f32 %v1386_v56, %v1374_v6  ;;  %v5233_v56 = vld [vmem:[%s10244_s3 + $0x178] sm:$0xf0]  ;;  %v5271_v24 = vld [vmem:[%s10244_s3 + $0x1c0] sm:$0xf] }
  0xea   :  { %2021 = vmatmul.bf16.vlgmr.msrb.gmra.mxu3 %v8347_v38  ;;  %v5201_v6 = vld [vmem:[%s10244_s3 + $0x138] sm:$0xf0] }
  0xeb   :  { %2065 = vmatpush.bf16.msra.mxu3 %v5108_v28  ;;  %v1388_v17 = vpop.f32.mrf.mxu1  ;;  %v5124_v28 = vor.u32 %v6539_v19, %v5121_v20  ;;  %v1400_v42 = vadd.f32 %v1399_v8, %v1387_v33  ;;  %v5217_v8 = vld [vmem:[%s10244_s3 + $0x158] sm:$0xf0]  ;;  %v6559_v20 = vld [vmem:[%s10244_s3 + $0x134] sm:$0xf]  ;;  %v257_v33 = vperm.slane %v8162_v48, 2 }
  0xec   :  { %v5279_v17 = vld [vmem:[%s10244_s3 + $0x1d0] sm:$0xf] }
  0xed   :  { %2079 = vmatpush.bf16.msra.mxu1 %v5164_v25  ;;  %v5200_v25 = vor.u32 %v6560_v36, %v5199_v34 }
  0xee   :  { %v1412_v11 = vpop.f32.mrf.mxu2 }
  0xef   :  { %2066 = vmatpush.bf16.msra.mxu3 %v5100_v39  ;;  %v5191_v39 = vld [vmem:[%s10244_s3 + $0x120] sm:$0xf]  ;;  %2043 = vmatpush.bf16.msrb.mxu2 %v5200_v25  ;;  %v1413_v44 = vadd.f32 %v1412_v11, %v1400_v42  ;;  %v5288_v11 = vor.u32 %v6582_v45, %v5287_v10  ;;  %v5185_v25 = vld [vmem:[%s10244_s3 + $0x118] sm:$0xf0] }
  0xf0   :  { %v5192_v43 = vor.u32 %v6558_v41, %v5191_v39 }
  0xf1   :  { %2080 = vmatpush.bf16.msra.mxu1 %v5156_v46  ;;  %v1401_v29 = vpop.f32.mrf.mxu3  ;;  %2053 = vmatpush.bf16.msrb.mxu0 %v5288_v11 }
  0xf2   :  { %v5193_v29 = vld [vmem:[%s10244_s3 + $0x128] sm:$0xf0] }
  0xf3   :  { %2067 = vmatpush.bf16.msra.mxu3 %v5092_v57  ;;  %v5116_v57 = vor.u32 %v6537_v15, %v5113_v32  ;;  %2044 = vmatpush.bf16.msrb.mxu2 %v5192_v43  ;;  %v5263_v15 = vld [vmem:[%s10244_s3 + $0x1b0] sm:$0xf]  ;;  %v6576_v32 = vld [vmem:[%s10244_s3 + $0x1b4] sm:$0xf0]  ;;  %v5196_v36 = vor.u32 %v6557_v27, %v5193_v29  ;;  %v6574_v43 = vld [vmem:[%s10244_s3 + $0x1a4] sm:$0xf0] }
  0xf4   :  { %v5264_v39 = vor.u32 %v6576_v32, %v5263_v15  ;;  %v5249_v27 = vld [vmem:[%s10244_s3 + $0x198] sm:$0xf0] }
  0xf5   :  { %2081 = vmatpush.bf16.msra.mxu1 %v5148_v37  ;;  %v5236_v37 = vor.u32 %v6567_v53, %v5233_v56  ;;  %v5239_v53 = vld [vmem:[%s10244_s3 + $0x180] sm:$0xf] }
  0xf6   :  { %v1414_v51 = vpop.f32.mrf.mxu2 }
  0xf7   :  { %2068 = vmatpush.bf16.msra.mxu3 %v5084_v52  ;;  %2045 = vmatpush.bf16.msrb.mxu2 %v5184_v49  ;;  %v5175_v52 = vld [vmem:[%s10244_s3 + $0x100] sm:$0xf]  ;;  %v6555_v51 = vld [vmem:[%s10244_s3 + $0x114] sm:$0xf]  ;;  %v6572_v49 = vld [vmem:[%s10244_s3 + $0x194] sm:$0xf0] }
  0xf8   :  { %v5188_v42 = vor.u32 %v6555_v51, %v5185_v25 }
  0xf9   :  { %2082 = vmatpush.bf16.msra.mxu1 %v5140_v5  ;;  %v1425_v46 = vpop.f32.mrf.mxu3  ;;  %v6563_v5 = vld [vmem:[%s10244_s3 + $0x154] sm:$0xf] }
  0xfa   :  { %v1426_v31 = vadd.f32 %v1425_v46, %v1413_v44  ;;  %v5220_v0 = vor.u32 %v6563_v5, %v5217_v8  ;;  %v5292_v8 = vor.u32 %v6581_v2, %v5289_v3  ;;  %v5359_v3 = vld [vmem:[%s10246_s5 + $0x70] sm:$0xf] }
  0xfb   :  { %2069 = vmatpush.bf16.msra.mxu3 %v5076_v1  ;;  %v5228_v1 = vor.u32 %v6565_v62, %v5225_v63 }
  0xfc   :  { %v1612_v47 = vmul.f32 0.01, %v1426_v31 }
  0xfd   :  { %2083 = vmatpush.bf16.msra.mxu1 %v5132_v18  ;;  %v6580_v18 = vld [vmem:[%s10244_s3 + $0x1d4] sm:$0xf0] }
  0xfe   :  { %v1616_v50 = vmax.f32 %v1426_v31, %v1612_v47  ;;  %v5280_v19 = vor.u32 %v6580_v18, %v5279_v17  ;;  %v6553_v31 = vld [vmem:[%s10244_s3 + $0x104] sm:$0xf]  ;;  %v5276_v18 = vor.u32 %v6577_v14, %v5273_v16  ;;  %v5343_v14 = vld [vmem:[%s10246_s5 + $0x50] sm:$0xf]  ;;  %v6596_v16 = vld [vmem:[%s10246_s5 + $0x54] sm:$0xf0] }
  0xff   :  { %2070 = vmatpush.bf16.msra.mxu3 %v5068_v12  ;;  %v5180_v47 = vor.u32 %v6553_v31, %v5177_v30 }
 0x100   :  { %v1620_v58 = vpack.c.bf16 %v1616_v50, %v1616_v50  ;;  %2054 = vmatpush.bf16.msrb.mxu0 %v5280_v19  ;;  %v6575_v19 = vld [vmem:[%s10244_s3 + $0x1b4] sm:$0xf] }
 0x101   :  { %2084 = vmatpush.bf16.msra.mxu1 %v5124_v28  ;;  %v1427_v59 = vpop.f32.mrf.mxu3  ;;  %v8480_v60 = vpop.f32.mrf.mxu0  ;;  %v5272_v28 = vor.u32 %v6578_v26, %v5271_v24  ;;  %v258_v24 = vperm.slane %v8162_v48, 3  ;;  %v6571_v26 = vld [vmem:[%s10244_s3 + $0x194] sm:$0xf]  ;;  %v5241_v48 = vld [vmem:[%s10244_s3 + $0x188] sm:$0xf0] }
 0x102   :  { %2034 = vmatmul.bf16.vlgmr.msrb.gmra.mxu1 %v1620_v58 }
 0x103   :  { %2071 = vmatpush.bf16.msra.mxu3 %v5060_v23  ;;  %v1438_v61 = vpop.f32.mrf.mxu1  ;;  %v5204_v23 = vor.u32 %v6559_v20, %v5201_v6  ;;  %v5265_v20 = vld [vmem:[%s10244_s3 + $0x1b8] sm:$0xf0] }
 0x104   :  { %2055 = vmatpush.bf16.msrb.mxu0 %v5272_v28  ;;  %v5268_v6 = vor.u32 %v6575_v19, %v5265_v20  ;;  %v5252_v28 = vor.u32 %v6571_v26, %v5249_v27  ;;  %v5344_v19 = vor.u32 %v6596_v16, %v5343_v14  ;;  %v5327_v26 = vld [vmem:[%s10246_s5 + $0x30] sm:$0xf]  ;;  %v6592_v27 = vld [vmem:[%s10246_s5 + $0x34] sm:$0xf0] }
 0x105   :  { %2085 = vmatpush.bf16.msra.mxu1 %v5116_v57  ;;  %v5255_v57 = vld [vmem:[%s10244_s3 + $0x1a0] sm:$0xf]  ;;  %v5391_v14 = vld [vmem:[%s10246_s5 + $0xb0] sm:$0xf]  ;;  %v6608_v16 = vld [vmem:[%s10246_s5 + $0xb4] sm:$0xf0] }
 0x106   :  { %v5256_v44 = vor.u32 %v6574_v43, %v5255_v57 }
 0x107   :  { %2072 = vmatpush.bf16.msra.mxu3 %v5052_v40  ;;  %v1439_v40 = vadd.f32 %v1438_v61, %v257_v33  ;;  %v6569_v33 = vld [vmem:[%s10244_s3 + $0x184] sm:$0xf] }
 0x108   :  { %2056 = vmatpush.bf16.msrb.mxu0 %v5264_v39 }
 0x109   :  { %v1466_v55 = vpop.f32.mrf.mxu0 }
 0x10a   :  { %2073 = vmatmul.bf16.vlgmr.msra.gmra.mxu3 %v8347_v38  ;;  %v6554_v38 = vld [vmem:[%s10244_s3 + $0x104] sm:$0xf0]  ;;  %v6579_v55 = vld [vmem:[%s10244_s3 + $0x1d4] sm:$0xf] }
 0x10b   :  { %v5176_v54 = vor.u32 %v6554_v38, %v5175_v52  ;;  %v1440_v13 = vpop.f32.mrf.mxu1  ;;  %v5248_v52 = vor.u32 %v6572_v49, %v5247_v35 }
 0x10c   :  { %2057 = vmatpush.bf16.msrb.mxu0 %v5256_v44 }
 0x10d   :  { %2046 = vmatpush.bf16.msrb.mxu2 %v5176_v54  ;;  %v1451_v9 = vpop.f32.mrf.mxu3  ;;  %v6570_v54 = vld [vmem:[%s10244_s3 + $0x184] sm:$0xf0] }
 0x10e   :  { %v1477_v12 = vpop.f32.mrf.mxu2  ;;  %v1452_v46 = vadd.f32 %v1451_v9, %v1439_v40  ;;  %v5240_v56 = vor.u32 %v6570_v54, %v5239_v53  ;;  %v1687_v53 = vld [vmem:[%s10245_s4] sm:$0x3] }
 0x10f   :  { %v1689_v54 = vperm.slane %v1687_v53, 0 }
 0x110   :  { %v1465_v38 = vadd.f32 %v8480_v60, %v1452_v46  ;;  %2058 = vmatpush.bf16.msrb.mxu0 %v5248_v52 }
 0x111   :  { %2091 = vmatpush.bf16.msra.mxu2 %v5236_v37  ;;  %v1516_v22 = vpop.f32.mrf.mxu0  ;;  %v5297_v37 = vld [vmem:[%s10244_s3 + $0x1f8] sm:$0xf0] }
 0x112   :  { %2086 = vmatmul.bf16.vlgmr.msra.gmra.mxu1 %v1620_v58  ;;  %v6583_v58 = vld [vmem:[%s10244_s3 + $0x1f4] sm:$0xf]  ;;  %v1478_v59 = vadd.f32 %v1477_v12, %v1465_v38 }
 0x113   :  { %v5300_v61 = vor.u32 %v6583_v58, %v5297_v37 }
 0x114   :  { %2059 = vmatpush.bf16.msrb.mxu0 %v5240_v56 }
 0x115   :  { %2092 = vmatpush.bf16.msra.mxu2 %v5228_v1  ;;  %v1453_v21 = vpop.f32.mrf.mxu3 }
 0x116   :  { %v1479_v34 = vpop.f32.mrf.mxu2  ;;  %v6573_v21 = vld [vmem:[%s10244_s3 + $0x1a4] sm:$0xf] }
 0x118   :  { %2104 = vmatpush.bf16.msra.mxu0 %v5300_v61 }
 0x119   :  { %2093 = vmatpush.bf16.msra.mxu2 %v5220_v0  ;;  %v1518_v41 = vpop.f32.mrf.mxu0  ;;  %v5281_v0 = vld [vmem:[%s10244_s3 + $0x1d8] sm:$0xf0] }
 0x11a   :  { %v5284_v11 = vor.u32 %v6579_v55, %v5281_v0 }
 0x11c   :  { %2105 = vmatpush.bf16.msra.mxu0 %v5292_v8 }
 0x11d   :  { %2094 = vmatpush.bf16.msra.mxu2 %v5212_v7 }
 0x120   :  { %2106 = vmatpush.bf16.msra.mxu0 %v5284_v11  ;;  %v6597_v11 = vld [vmem:[%s10246_s5 + $0x64] sm:$0xf] }
 0x121   :  { %2095 = vmatpush.bf16.msra.mxu2 %v5204_v23  ;;  %v1490_v50 = vpop.f32.mrf.mxu1 }
 0x122   :  { %v1491_v62 = vadd.f32 %v1490_v50, %v1478_v59 }
 0x124   :  { %2107 = vmatpush.bf16.msra.mxu0 %v5276_v18  ;;  %v5345_v18 = vld [vmem:[%s10246_s5 + $0x58] sm:$0xf0] }
 0x125   :  { %2096 = vmatpush.bf16.msra.mxu2 %v5196_v36  ;;  %v1542_v60 = vpop.f32.mrf.mxu0  ;;  %v5244_v36 = vor.u32 %v6569_v33, %v5241_v48  ;;  %v5328_v33 = vor.u32 %v6592_v27, %v5327_v26  ;;  %v5375_v27 = vld [vmem:[%s10246_s5 + $0x90] sm:$0xf] }
 0x128   :  { %2108 = vmatpush.bf16.msra.mxu0 %v5268_v6  ;;  %v5335_v6 = vld [vmem:[%s10246_s5 + $0x40] sm:$0xf] }
 0x129   :  { %2097 = vmatpush.bf16.msra.mxu2 %v5188_v42  ;;  %v1492_v63 = vpop.f32.mrf.mxu1 }
 0x12d   :  { %2098 = vmatpush.bf16.msra.mxu2 %v5180_v47  ;;  %v1503_v1 = vpop.f32.mrf.mxu3  ;;  %v1544_v45 = vpop.f32.mrf.mxu0 }
 0x12e   :  { %v1504_v4 = vadd.f32 %v1503_v1, %v1491_v62  ;;  %v1529_v5 = vpop.f32.mrf.mxu2  ;;  %v1690_v62 = vperm.slane %v1687_v53, 1  ;;  %v6598_v45 = vld [vmem:[%s10246_s5 + $0x64] sm:$0xf0] }
 0x12f   :  { %v1530_v29 = vadd.f32 %v1529_v5, %v258_v24  ;;  %v6599_v5 = vld [vmem:[%s10246_s5 + $0x74] sm:$0xf]  ;;  %v5337_v24 = vld [vmem:[%s10246_s5 + $0x48] sm:$0xf0] }
 0x130   :  { %v1517_v9 = vadd.f32 %v1516_v22, %v1504_v4  ;;  %v5257_v22 = vld [vmem:[%s10244_s3 + $0x1a8] sm:$0xf0]  ;;  %v6600_v4 = vld [vmem:[%s10246_s5 + $0x74] sm:$0xf0] }
 0x131   :  { %v5260_v23 = vor.u32 %v6573_v21, %v5257_v22  ;;  %v1543_v32 = vadd.f32 %v1542_v60, %v1530_v29  ;;  %v5360_v8 = vor.u32 %v6600_v4, %v5359_v3  ;;  %v6594_v21 = vld [vmem:[%s10246_s5 + $0x44] sm:$0xf0]  ;;  %v6593_v22 = vld [vmem:[%s10246_s5 + $0x44] sm:$0xf]  ;;  %v5423_v29 = vld [vmem:[%s10246_s5 + $0xf0] sm:$0xf] }
 0x132   :  { %v1613_v10 = vmul.f32 0.01, %v1517_v9  ;;  %v5303_v3 = vld [vmem:[%s10246_s5] sm:$0xf]  ;;  %v6586_v4 = vld [vmem:[%s10246_s5 + $0x4] sm:$0xf0] }
 0x133   :  { %2109 = vmatpush.bf16.msra.mxu0 %v5260_v23  ;;  %2321 = vmatpush.bf16.msrb.mxu3 %v5360_v8  ;;  %v5336_v23 = vor.u32 %v6594_v21, %v5335_v6  ;;  %v5304_v8 = vor.u32 %v6586_v4, %v5303_v3  ;;  %v6605_v21 = vld [vmem:[%s10246_s5 + $0xa4] sm:$0xf]  ;;  %v5825_v3 = vld [vmem:[%s10248_s7 + $0x32c] sm:$0xf0]  ;;  %v5571_v4 = vld [vmem:[%s10248_s7 + $0x118] sm:$0xf] }
 0x134   :  { %v1617_v12 = vmax.f32 %v1517_v9, %v1613_v10  ;;  %v5361_v9 = vld [vmem:[%s10246_s5 + $0x78] sm:$0xf0]  ;;  %v5351_v10 = vld [vmem:[%s10246_s5 + $0x60] sm:$0xf] }
 0x135   :  { %v1505_v13 = vpop.f32.mrf.mxu3  ;;  %v5364_v0 = vor.u32 %v6599_v5, %v5361_v9  ;;  %v5399_v5 = vld [vmem:[%s10246_s5 + $0xc0] sm:$0xf]  ;;  %v6610_v9 = vld [vmem:[%s10246_s5 + $0xc4] sm:$0xf0] }
 0x136   :  { %v1621_v7 = vpack.c.bf16 %v1617_v12, %v1617_v12  ;;  %v1531_v17 = vpop.f32.mrf.mxu2  ;;  %v5352_v12 = vor.u32 %v6598_v45, %v5351_v10  ;;  %v5353_v13 = vld [vmem:[%s10246_s5 + $0x68] sm:$0xf0]  ;;  %v5400_v10 = vor.u32 %v6610_v9, %v5399_v5  ;;  %v6655_v5 = vld [vmem:[%s10248_s7 + $0x130] sm:$0xf0] }
 0x137   :  { %2110 = vmatpush.bf16.msra.mxu0 %v5252_v28  ;;  %v6595_v17 = vld [vmem:[%s10246_s5 + $0x54] sm:$0xf]  ;;  %v5340_v28 = vor.u32 %v6593_v22, %v5337_v24  ;;  %v5385_v22 = vld [vmem:[%s10246_s5 + $0xa8] sm:$0xf0] }
 0x138   :  { %2047 = vmatmul.bf16.vlgmr.msrb.gmra.mxu2 %v1621_v7  ;;  %2322 = vmatpush.bf16.msrb.mxu3 %v5352_v12  ;;  %v5348_v20 = vor.u32 %v6595_v17, %v5345_v18  ;;  %v5401_v12 = vld [vmem:[%s10246_s5 + $0xc8] sm:$0xf0]  ;;  %v5392_v17 = vor.u32 %v6608_v16, %v5391_v14  ;;  %v5393_v18 = vld [vmem:[%s10246_s5 + $0xb8] sm:$0xf0]  ;;  %v5388_v26 = vor.u32 %v6605_v21, %v5385_v22  ;;  %v6645_v21 = vld [vmem:[%s10248_s7 + $0xe4] sm:$0xf] }
 0x139   :  { %2347 = vmatpush.bf16.msrb.mxu2 %v5364_v0  ;;  %v5305_v0 = vld [vmem:[%s10246_s5 + $0x8] sm:$0xf0]  ;;  %v5545_v22 = vld [vmem:[%s10248_s7 + $0xfc] sm:$0xf0] }
 0x13b   :  { %2111 = vmatpush.bf16.msra.mxu0 %v5244_v36  ;;  %v6615_v36 = vld [vmem:[%s10246_s5 + $0xf4] sm:$0xf] }
 0x13c   :  { %2323 = vmatpush.bf16.msrb.mxu3 %v5344_v19  ;;  %v5383_v19 = vld [vmem:[%s10246_s5 + $0xa0] sm:$0xf] }
 0x140   :  { %2324 = vmatpush.bf16.msrb.mxu3 %v5336_v23 }
 0x141   :  { %v1555_v15 = vpop.f32.mrf.mxu1 }
 0x142   :  { %v1556_v39 = vadd.f32 %v1555_v15, %v1543_v32  ;;  %v6616_v15 = vld [vmem:[%s10246_s5 + $0xf4] sm:$0xf0]  ;;  %v6591_v32 = vld [vmem:[%s10246_s5 + $0x34] sm:$0xf] }
 0x143   :  { %v5424_v48 = vor.u32 %v6616_v15, %v5423_v29  ;;  %v6603_v29 = vld [vmem:[%s10246_s5 + $0x94] sm:$0xf] }
 0x144   :  { %2325 = vmatpush.bf16.msrb.mxu3 %v5328_v33 }
 0x145   :  { %v1594_v34 = vpop.f32.mrf.mxu0  ;;  %2334 = vmatpush.bf16.msrb.mxu1 %v5424_v48 }
 0x148   :  { %2099 = vmatmul.bf16.vlgmr.msra.gmra.mxu2 %v1621_v7  ;;  %v5356_v7 = vor.u32 %v6597_v11, %v5353_v13  ;;  %v6609_v11 = vld [vmem:[%s10246_s5 + $0xc4] sm:$0xf] }
 0x149   :  { %v1557_v40 = vpop.f32.mrf.mxu1  ;;  %v5404_v13 = vor.u32 %v6609_v11, %v5401_v12  ;;  %v5572_v11 = vor.u32 %v6655_v5, %v5571_v4  ;;  %v5797_v12 = vld [vmem:[%s10248_s7 + $0x2f4] sm:$0xf0] }
 0x14a   :  { %2348 = vmatpush.bf16.msrb.mxu2 %v5356_v7  ;;  %v6607_v7 = vld [vmem:[%s10246_s5 + $0xb4] sm:$0xf]  ;;  %v5461_v4 = vld [vmem:[%s10248_s7 + $0x54] sm:$0xf0] }
 0x14b   :  { %v5396_v6 = vor.u32 %v6607_v7, %v5393_v18  ;;  %v5543_v7 = vld [vmem:[%s10248_s7 + $0xe0] sm:$0xf] }
 0x14d   :  { %v1568_v51 = vpop.f32.mrf.mxu3  ;;  %v1596_v57 = vpop.f32.mrf.mxu0 }
 0x14e   :  { %v1569_v25 = vadd.f32 %v1568_v51, %v1556_v39  ;;  %v1581_v41 = vpop.f32.mrf.mxu2  ;;  %2349 = vmatpush.bf16.msrb.mxu2 %v5348_v20  ;;  %v5425_v39 = vld [vmem:[%s10246_s5 + $0xf8] sm:$0xf0]  ;;  %v6606_v20 = vld [vmem:[%s10246_s5 + $0xa4] sm:$0xf0] }
 0x14f   :  { %v5428_v51 = vor.u32 %v6615_v36, %v5425_v39  ;;  %v5384_v24 = vor.u32 %v6606_v20, %v5383_v19  ;;  %v6602_v36 = vld [vmem:[%s10246_s5 + $0x84] sm:$0xf0]  ;;  %v6601_v39 = vld [vmem:[%s10246_s5 + $0x84] sm:$0xf]  ;;  %v5767_v19 = vld [vmem:[%s10248_s7 + $0x2a0] sm:$0xf] }
 0x150   :  { %v1582_v42 = vadd.f32 %v1581_v41, %v1569_v25  ;;  %v5319_v25 = vld [vmem:[%s10246_s5 + $0x20] sm:$0xf]  ;;  %v6590_v41 = vld [vmem:[%s10246_s5 + $0x24] sm:$0xf0]  ;;  %v6704_v20 = vld [vmem:[%s10248_s7 + $0x2b8] sm:$0xf0] }
 0x151   :  { %v1607_v44 = vpop.f32.mrf.mxu1  ;;  %v5320_v57 = vor.u32 %v6590_v41, %v5319_v25  ;;  %v5627_v41 = vld [vmem:[%s10248_s7 + $0x188] sm:$0xf] }
 0x152   :  { %v1595_v43 = vadd.f32 %v1594_v34, %v1582_v42  ;;  %v5329_v34 = vld [vmem:[%s10246_s5 + $0x38] sm:$0xf0]  ;;  %2350 = vmatpush.bf16.msrb.mxu2 %v5340_v28  ;;  %v5415_v42 = vld [vmem:[%s10246_s5 + $0xe0] sm:$0xf]  ;;  %v6604_v28 = vld [vmem:[%s10246_s5 + $0x94] sm:$0xf0] }
 0x153   :  { %v5332_v40 = vor.u32 %v6591_v32, %v5329_v34  ;;  %2326 = vmatpush.bf16.msrb.mxu3 %v5320_v57  ;;  %v5376_v15 = vor.u32 %v6604_v28, %v5375_v27  ;;  %v5377_v32 = vld [vmem:[%s10246_s5 + $0x98] sm:$0xf0]  ;;  %v5367_v34 = vld [vmem:[%s10246_s5 + $0x80] sm:$0xf]  ;;  %v5851_v57 = vld [vmem:[%s10248_s7 + $0x348] sm:$0xf] }
 0x154   :  { %v1608_v46 = vadd.f32 %v1607_v44, %v1595_v43  ;;  %v6614_v43 = vld [vmem:[%s10246_s5 + $0xe4] sm:$0xf0]  ;;  %v6589_v44 = vld [vmem:[%s10246_s5 + $0x24] sm:$0xf]  ;;  %v5380_v33 = vor.u32 %v6603_v29, %v5377_v32  ;;  %v5548_v32 = vor.u32 %v6645_v21, %v5545_v22  ;;  %v6726_v21 = vld [vmem:[%s10248_s7 + $0x368] sm:$0xf0] }
 0x155   :  { %v1570_v31 = vpop.f32.mrf.mxu3  ;;  %v5515_v28 = vld [vmem:[%s10248_s7 + $0xa8] sm:$0xf]  ;;  %v6641_v29 = vld [vmem:[%s10248_s7 + $0xc0] sm:$0xf0]  ;;  %v6667_v22 = vld [vmem:[%s10248_s7 + $0x194] sm:$0xf] }
 0x156   :  { %v1583_v30 = vpop.f32.mrf.mxu2  ;;  %v1614_v35 = vmul.f32 0.01, %v1608_v46  ;;  %2351 = vmatpush.bf16.msrb.mxu2 %v5332_v40  ;;  %v5416_v31 = vor.u32 %v6614_v43, %v5415_v42  ;;  %v5368_v40 = vor.u32 %v6602_v36, %v5367_v34  ;;  %v6669_v42 = vld [vmem:[%s10248_s7 + $0x1a0] sm:$0xf0] }
 0x157   :  { %v5628_v43 = vor.u32 %v6669_v42, %v5627_v41  ;;  %v5516_v41 = vor.u32 %v6641_v29, %v5515_v28  ;;  %v6694_v42 = vld [vmem:[%s10248_s7 + $0x26c] sm:$0xf]  ;;  %v5861_v28 = vld [vmem:[%s10248_s7 + $0x36c] sm:$0xf0] }
 0x158   :  { %v1618_v47 = vmax.f32 %v1608_v46, %v1614_v35  ;;  %v5321_v46 = vld [vmem:[%s10246_s5 + $0x28] sm:$0xf0]  ;;  %v6613_v35 = vld [vmem:[%s10246_s5 + $0xe4] sm:$0xf]  ;;  %2335 = vmatpush.bf16.msrb.mxu1 %v5416_v31  ;;  %v5629_v31 = vld [vmem:[%s10248_s7 + $0x1a4] sm:$0xf0] }
 0x159   :  { %v1609_v50 = vpop.f32.mrf.mxu1  ;;  %v5324_v30 = vor.u32 %v6589_v44, %v5321_v46  ;;  %v6725_v44 = vld [vmem:[%s10248_s7 + $0x360] sm:$0xf0]  ;;  %v6666_v46 = vld [vmem:[%s10248_s7 + $0x18c] sm:$0xf] }
 0x15a   :  { %v1622_v49 = vpack.c.bf16 %v1618_v47, %v1618_v47  ;;  %v5417_v47 = vld [vmem:[%s10246_s5 + $0xe8] sm:$0xf0]  ;;  %v5311_v50 = vld [vmem:[%s10246_s5 + $0x10] sm:$0xf] }
 0x15b   :  { %2352 = vmatpush.bf16.msrb.mxu2 %v5324_v30  ;;  %v5852_v30 = vor.u32 %v6725_v44, %v5851_v57  ;;  %v5741_v57 = vld [vmem:[%s10248_s7 + $0x284] sm:$0xf0]  ;;  %v6634_v44 = vld [vmem:[%s10248_s7 + $0x88] sm:$0xf0] }
 0x15c   :  { %2060 = vmatmul.bf16.vlgmr.msrb.gmra.mxu0 %v1622_v49 }
 0x15d   :  { %2360 = vmatpush.bf16.msrb.mxu0 %v5428_v51  ;;  %v5369_v51 = vld [vmem:[%s10246_s5 + $0x88] sm:$0xf0] }
 0x15e   :  { %v5372_v25 = vor.u32 %v6601_v39, %v5369_v51  ;;  %v6697_v39 = vld [vmem:[%s10248_s7 + $0x280] sm:$0xf0]  ;;  %v5517_v51 = vld [vmem:[%s10248_s7 + $0xc4] sm:$0xf0] }
 0x16c   :  { %2112 = vmatmul.bf16.vlgmr.msra.gmra.mxu0 %v1622_v49  ;;  %v5420_v49 = vor.u32 %v6613_v35, %v5417_v47  ;;  %v5632_v35 = vor.u32 %v6666_v46, %v5629_v31  ;;  %v6722_v47 = vld [vmem:[%s10248_s7 + $0x34c] sm:$0xf] }
 0x16d   :  { %v2022_v52 = vpop.f32.mrf.mxu3 }
 0x16e   :  { %v2023_v58 = vadd.f32 %v2022_v52, %v1689_v54  ;;  %v6588_v52 = vld [vmem:[%s10246_s5 + $0x14] sm:$0xf0]  ;;  %2361 = vmatpush.bf16.msrb.mxu0 %v5420_v49  ;;  %v5853_v49 = vld [vmem:[%s10248_s7 + $0x364] sm:$0xf0] }
 0x16f   :  { %v5312_v53 = vor.u32 %v6588_v52, %v5311_v50  ;;  %v6612_v54 = vld [vmem:[%s10246_s5 + $0xd4] sm:$0xf0]  ;;  %v5599_v50 = vld [vmem:[%s10248_s7 + $0x150] sm:$0xf] }
 0x171   :  { %2327 = vmatpush.bf16.msrb.mxu3 %v5312_v53  ;;  %v6662_v53 = vld [vmem:[%s10248_s7 + $0x168] sm:$0xf0] }
 0x175   :  { %v2024_v38 = vpop.f32.mrf.mxu3  ;;  %2328 = vmatpush.bf16.msrb.mxu3 %v5304_v8 }
 0x176   :  { %v5407_v38 = vld [vmem:[%s10246_s5 + $0xd0] sm:$0xf] }
 0x179   :  { %3099 = vmatpush.bf16.msra.mxu3 %v5628_v43  ;;  %v5487_v43 = vld [vmem:[%s10248_s7 + $0x70] sm:$0xf] }
 0x17f   :  { %v2035_v37 = vpop.f32.mrf.mxu1 }
 0x180   :  { %v8626_v59 = vadd.f32 %v2035_v37, %v2023_v58  ;;  %v5313_v58 = vld [vmem:[%s10246_s5 + $0x18] sm:$0xf0]  ;;  %v5408_v37 = vor.u32 %v6612_v54, %v5407_v38  ;;  %v5856_v38 = vor.u32 %v6722_v47, %v5853_v49  ;;  %v5823_v54 = vld [vmem:[%s10248_s7 + $0x310] sm:$0xf]  ;;  %v6690_v47 = vld [vmem:[%s10248_s7 + $0x248] sm:$0xf0] }
 0x181   :  { %v6631_v49 = vld [vmem:[%s10248_s7 + $0x74] sm:$0xf] }
 0x182   :  { %2336 = vmatpush.bf16.msrb.mxu1 %v5408_v37 }
 0x186   :  { %2337 = vmatpush.bf16.msrb.mxu1 %v5400_v10  ;;  %v6652_v10 = vld [vmem:[%s10248_s7 + $0x11c] sm:$0xf] }
 0x187   :  { %v2037_v61 = vpop.f32.mrf.mxu1 }
 0x188   :  { %v6611_v61 = vld [vmem:[%s10246_s5 + $0xd4] sm:$0xf] }
 0x18a   :  { %2338 = vmatpush.bf16.msrb.mxu1 %v5392_v17  ;;  %v6648_v17 = vld [vmem:[%s10248_s7 + $0xf8] sm:$0xf0] }
 0x18d   :  { %v2074_v56 = vpop.f32.mrf.mxu3 }
 0x18e   :  { %v2075_v63 = vadd.f32 %v2074_v56, %v1690_v62  ;;  %v6587_v56 = vld [vmem:[%s10246_s5 + $0x14] sm:$0xf]  ;;  %v5409_v62 = vld [vmem:[%s10246_s5 + $0xd8] sm:$0xf0]  ;;  %2339 = vmatpush.bf16.msrb.mxu1 %v5384_v24  ;;  %v6701_v24 = vld [vmem:[%s10248_s7 + $0x2a4] sm:$0xf] }
 0x18f   :  { %v2087_v1 = vpop.f32.mrf.mxu1 }
 0x190   :  { %v8628_v2 = vadd.f32 %v2087_v1, %v2075_v63  ;;  %v5412_v63 = vor.u32 %v6611_v61, %v5409_v62  ;;  %v5601_v61 = vld [vmem:[%s10248_s7 + $0x16c] sm:$0xf0]  ;;  %v6715_v62 = vld [vmem:[%s10248_s7 + $0x314] sm:$0xf] }
 0x191   :  { %v5828_v9 = vor.u32 %v6715_v62, %v5825_v3  ;;  %v6624_v3 = vld [vmem:[%s10248_s7 + $0x3c] sm:$0xf] }
 0x192   :  { %2362 = vmatpush.bf16.msrb.mxu0 %v5412_v63  ;;  %2340 = vmatpush.bf16.msrb.mxu1 %v5376_v15  ;;  %v5768_v15 = vor.u32 %v6704_v20, %v5767_v19  ;;  %v6670_v19 = vld [vmem:[%s10248_s7 + $0x1a8] sm:$0xf0]  ;;  %v5859_v20 = vld [vmem:[%s10248_s7 + $0x350] sm:$0xf] }
 0x195   :  { %v2076_v60 = vpop.f32.mrf.mxu3 }
 0x196   :  { %v5316_v60 = vor.u32 %v6587_v56, %v5313_v58  ;;  %2363 = vmatpush.bf16.msrb.mxu0 %v5404_v13  ;;  %2341 = vmatpush.bf16.msrb.mxu1 %v5368_v40  ;;  %v6718_v56 = vld [vmem:[%s10248_s7 + $0x328] sm:$0xf0]  ;;  %v5600_v58 = vor.u32 %v6662_v53, %v5599_v50  ;;  %v5489_v50 = vld [vmem:[%s10248_s7 + $0x8c] sm:$0xf0] }
 0x197   :  { %v2089_v55 = vpop.f32.mrf.mxu1  ;;  %v5824_v37 = vor.u32 %v6718_v56, %v5823_v54  ;;  %v6638_v40 = vld [vmem:[%s10248_s7 + $0xac] sm:$0xf]  ;;  %v5713_v53 = vld [vmem:[%s10248_s7 + $0x24c] sm:$0xf0]  ;;  %v5459_v54 = vld [vmem:[%s10248_s7 + $0x38] sm:$0xf] }
 0x198   :  { %2353 = vmatpush.bf16.msrb.mxu2 %v5316_v60  ;;  %v6585_v55 = vld [vmem:[%s10246_s5 + $0x4] sm:$0xf]  ;;  %v6659_v60 = vld [vmem:[%s10248_s7 + $0x154] sm:$0xf]  ;;  %3100 = vmatpush.bf16.msra.mxu3 %v5600_v58  ;;  %v5520_v31 = vor.u32 %v6638_v40, %v5517_v51  ;;  %v5831_v51 = vld [vmem:[%s10248_s7 + $0x318] sm:$0xf] }
 0x199   :  { %v5308_v45 = vor.u32 %v6585_v55, %v5305_v0  ;;  %v5604_v63 = vor.u32 %v6659_v60, %v5601_v61  ;;  %v5795_v55 = vld [vmem:[%s10248_s7 + $0x2d8] sm:$0xf]  ;;  %v6711_v0 = vld [vmem:[%s10248_s7 + $0x2f0] sm:$0xf0] }
 0x19a   :  { %2364 = vmatpush.bf16.msrb.mxu0 %v5396_v6  ;;  %3112 = vmatpush.bf16.msra.mxu1 %v5852_v30  ;;  %v5796_v14 = vor.u32 %v6711_v0, %v5795_v55  ;;  %v5711_v30 = vld [vmem:[%s10248_s7 + $0x230] sm:$0xf]  ;;  %v6627_v56 = vld [vmem:[%s10248_s7 + $0x50] sm:$0xf0]  ;;  %v5683_v60 = vld [vmem:[%s10248_s7 + $0x1f8] sm:$0xf] }
 0x19b   :  { %v5712_v58 = vor.u32 %v6690_v47, %v5711_v30  ;;  %v5431_v55 = vld [vmem:[%s10248_s7] sm:$0xf]  ;;  %v6620_v0 = vld [vmem:[%s10248_s7 + $0x18] sm:$0xf0]  ;;  %v6663_v40 = vld [vmem:[%s10248_s7 + $0x170] sm:$0xf0] }
 0x19c   :  { %2354 = vmatpush.bf16.msrb.mxu2 %v5308_v45  ;;  %3101 = vmatpush.bf16.msra.mxu3 %v5572_v11  ;;  %v5464_v11 = vor.u32 %v6624_v3, %v5461_v4  ;;  %v6656_v47 = vld [vmem:[%s10248_s7 + $0x138] sm:$0xf0]  ;;  %v5775_v4 = vld [vmem:[%s10248_s7 + $0x2a8] sm:$0xf] }
 0x19e   :  { %2365 = vmatpush.bf16.msrb.mxu0 %v5388_v26  ;;  %3113 = vmatpush.bf16.msra.mxu1 %v5824_v37  ;;  %v5769_v26 = vld [vmem:[%s10248_s7 + $0x2bc] sm:$0xf0]  ;;  %v5492_v37 = vor.u32 %v6631_v49, %v5489_v50 }
 0x19f   :  { %v5772_v36 = vor.u32 %v6701_v24, %v5769_v26  ;;  %v5803_v49 = vld [vmem:[%s10248_s7 + $0x2e0] sm:$0xf] }
 0x1a0   :  { %3125 = vmatpush.bf16.msra.mxu2 %v5632_v35  ;;  %v5744_v35 = vor.u32 %v6694_v42, %v5741_v57  ;;  %v6660_v42 = vld [vmem:[%s10248_s7 + $0x15c] sm:$0xf]  ;;  %v5609_v57 = vld [vmem:[%s10248_s7 + $0x174] sm:$0xf0] }
 0x1a1   :  { %v5612_v30 = vor.u32 %v6660_v42, %v5609_v57  ;;  %v6681_v57 = vld [vmem:[%s10248_s7 + $0x204] sm:$0xf] }
 0x1a2   :  { %2366 = vmatpush.bf16.msrb.mxu0 %v5380_v33  ;;  %3114 = vmatpush.bf16.msra.mxu1 %v5796_v14  ;;  %v5739_v33 = vld [vmem:[%s10248_s7 + $0x268] sm:$0xf] }
 0x1a3   :  { %v5740_v46 = vor.u32 %v6697_v39, %v5739_v33  ;;  %v5607_v39 = vld [vmem:[%s10248_s7 + $0x158] sm:$0xf] }
 0x1a4   :  { %3126 = vmatpush.bf16.msra.mxu2 %v5604_v63  ;;  %v6683_v63 = vld [vmem:[%s10248_s7 + $0x210] sm:$0xf0] }
 0x1a6   :  { %2367 = vmatpush.bf16.msrb.mxu0 %v5372_v25  ;;  %3115 = vmatpush.bf16.msra.mxu1 %v5768_v15 }
 0x1aa   :  { %3138 = vmatpush.bf16.msra.mxu0 %v5856_v38  ;;  %v6687_v38 = vld [vmem:[%s10248_s7 + $0x234] sm:$0xf]  ;;  %3116 = vmatpush.bf16.msra.mxu1 %v5740_v46  ;;  %v5608_v46 = vor.u32 %v6663_v40, %v5607_v39  ;;  %v6684_v40 = vld [vmem:[%s10248_s7 + $0x218] sm:$0xf0] }
 0x1ab   :  { %v5716_v62 = vor.u32 %v6687_v38, %v5713_v53  ;;  %v6653_v38 = vld [vmem:[%s10248_s7 + $0x124] sm:$0xf]  ;;  %v5581_v53 = vld [vmem:[%s10248_s7 + $0x13c] sm:$0xf0] }
 0x1ae   :  { %3139 = vmatpush.bf16.msra.mxu0 %v5828_v9  ;;  %3117 = vmatpush.bf16.msra.mxu1 %v5712_v58 }
 0x1bb   :  { %v8750_v1 = vpop.f32.mrf.mxu2 }
 0x1bc   :  { %v2049_v8 = vadd.f32 %v8750_v1, %v8626_v59  ;;  %v5573_v59 = vld [vmem:[%s10248_s7 + $0x134] sm:$0xf0]  ;;  %v6708_v1 = vld [vmem:[%s10248_s7 + $0x2dc] sm:$0xf] }
 0x1bd   :  { %v5576_v16 = vor.u32 %v6652_v10, %v5573_v59  ;;  %v5800_v18 = vor.u32 %v6708_v1, %v5797_v12  ;;  %v5655_v10 = vld [vmem:[%s10248_s7 + $0x1c0] sm:$0xf]  ;;  %v6676_v59 = vld [vmem:[%s10248_s7 + $0x1d8] sm:$0xf0]  ;;  %v6617_v1 = vld [vmem:[%s10248_s7 + $0x4] sm:$0xf] }
 0x1be   :  { %v5433_v12 = vld [vmem:[%s10248_s7 + $0x1c] sm:$0xf0]  ;;  %v5656_v24 = vor.u32 %v6676_v59, %v5655_v10  ;;  %v5747_v59 = vld [vmem:[%s10248_s7 + $0x270] sm:$0xf] }
 0x1bf   :  { %3127 = vmatpush.bf16.msra.mxu2 %v5576_v16  ;;  %3140 = vmatpush.bf16.msra.mxu0 %v5800_v18  ;;  %v6673_v16 = vld [vmem:[%s10248_s7 + $0x1c4] sm:$0xf]  ;;  %v5635_v18 = vld [vmem:[%s10248_s7 + $0x190] sm:$0xf]  ;;  %v5436_v26 = vor.u32 %v6617_v1, %v5433_v12  ;;  %v6698_v12 = vld [vmem:[%s10248_s7 + $0x288] sm:$0xf0] }
 0x1c3   :  { %v2050_v23 = vpop.f32.mrf.mxu2  ;;  %3128 = vmatpush.bf16.msra.mxu2 %v5548_v32  ;;  %3141 = vmatpush.bf16.msra.mxu0 %v5772_v36  ;;  %v5636_v32 = vor.u32 %v6670_v19, %v5635_v18  ;;  %v5749_v18 = vld [vmem:[%s10248_s7 + $0x28c] sm:$0xf0] }
 0x1c4   :  { %v5544_v23 = vor.u32 %v6648_v17, %v5543_v7  ;;  %v5657_v7 = vld [vmem:[%s10248_s7 + $0x1dc] sm:$0xf0]  ;;  %v5432_v17 = vor.u32 %v6620_v0, %v5431_v55  ;;  %v5777_v55 = vld [vmem:[%s10248_s7 + $0x2c4] sm:$0xf0] }
 0x1c5   :  { %v5660_v15 = vor.u32 %v6673_v16, %v5657_v7  ;;  %v5748_v16 = vor.u32 %v6698_v12, %v5747_v59  ;;  %v6727_v59 = vld [vmem:[%s10248_s7 + $0x370] sm:$0xf0] }
 0x1c6   :  { %3102 = vmatpush.bf16.msra.mxu3 %v5544_v23  ;;  %v5637_v23 = vld [vmem:[%s10248_s7 + $0x1ac] sm:$0xf0] }
 0x1c7   :  { %3129 = vmatpush.bf16.msra.mxu2 %v5520_v31  ;;  %3142 = vmatpush.bf16.msra.mxu0 %v5744_v35  ;;  %v5640_v36 = vor.u32 %v6667_v22, %v5637_v23  ;;  %v5579_v35 = vld [vmem:[%s10248_s7 + $0x120] sm:$0xf]  ;;  %v6691_v23 = vld [vmem:[%s10248_s7 + $0x250] sm:$0xf0] }
 0x1c8   :  { %v5580_v58 = vor.u32 %v6656_v47, %v5579_v35  ;;  %v6677_v47 = vld [vmem:[%s10248_s7 + $0x1e0] sm:$0xf0] }
 0x1ca   :  { %3103 = vmatpush.bf16.msra.mxu3 %v5516_v41  ;;  %v6719_v41 = vld [vmem:[%s10248_s7 + $0x330] sm:$0xf0] }
 0x1cb   :  { %v8812_v48 = vpop.f32.mrf.mxu2  ;;  %3130 = vmatpush.bf16.msra.mxu2 %v5492_v37  ;;  %3143 = vmatpush.bf16.msra.mxu0 %v5716_v62  ;;  %v5832_v31 = vor.u32 %v6719_v41, %v5831_v51  ;;  %v5551_v62 = vld [vmem:[%s10248_s7 + $0xe8] sm:$0xf]  ;;  %v6625_v51 = vld [vmem:[%s10248_s7 + $0x44] sm:$0xf] }
 0x1cc   :  { %v2101_v61 = vadd.f32 %v8812_v48, %v8628_v2  ;;  %v6680_v2 = vld [vmem:[%s10248_s7 + $0x1fc] sm:$0xf]  ;;  %v5685_v48 = vld [vmem:[%s10248_s7 + $0x214] sm:$0xf0] }
 0x1cd   :  { %v5688_v14 = vor.u32 %v6680_v2, %v5685_v48  ;;  %v5553_v48 = vld [vmem:[%s10248_s7 + $0x104] sm:$0xf0] }
 0x1cf   :  { %3131 = vmatpush.bf16.msra.mxu2 %v5464_v11  ;;  %3144 = vmatpush.bf16.msra.mxu0 %v5688_v14  ;;  %v6642_v11 = vld [vmem:[%s10248_s7 + $0xc8] sm:$0xf0]  ;;  %v5525_v14 = vld [vmem:[%s10248_s7 + $0xcc] sm:$0xf0] }
 0x1d3   :  { %v2102_v52 = vpop.f32.mrf.mxu2  ;;  %3132 = vmatpush.bf16.msra.mxu2 %v5436_v26  ;;  %3145 = vmatpush.bf16.msra.mxu0 %v5660_v15  ;;  %v5497_v26 = vld [vmem:[%s10248_s7 + $0x94] sm:$0xf0] }
 0x1d4   :  { %v5488_v52 = vor.u32 %v6634_v44, %v5487_v43  ;;  %v6716_v43 = vld [vmem:[%s10248_s7 + $0x31c] sm:$0xf]  ;;  %v5833_v44 = vld [vmem:[%s10248_s7 + $0x334] sm:$0xf0] }
 0x1d5   :  { %v5836_v50 = vor.u32 %v6716_v43, %v5833_v44  ;;  %v5721_v15 = vld [vmem:[%s10248_s7 + $0x254] sm:$0xf0]  ;;  %v5693_v43 = vld [vmem:[%s10248_s7 + $0x21c] sm:$0xf0] }
 0x1d6   :  { %3104 = vmatpush.bf16.msra.mxu3 %v5488_v52  ;;  %v6712_v52 = vld [vmem:[%s10248_s7 + $0x2f8] sm:$0xf0]  ;;  %v5696_v44 = vor.u32 %v6681_v57, %v5693_v43  ;;  %v6654_v57 = vld [vmem:[%s10248_s7 + $0x12c] sm:$0xf]  ;;  %v5589_v43 = vld [vmem:[%s10248_s7 + $0x144] sm:$0xf0] }
 0x1d7   :  { %v5804_v37 = vor.u32 %v6712_v52, %v5803_v49  ;;  %v6618_v49 = vld [vmem:[%s10248_s7 + $0xc] sm:$0xf] }
 0x1d9   :  { %v2061_v45 = vpop.f32.mrf.mxu0 }
 0x1da   :  { %v2062_v13 = vadd.f32 %v2061_v45, %v2049_v8  ;;  %v5460_v8 = vor.u32 %v6627_v56, %v5459_v54  ;;  %v5684_v45 = vor.u32 %v6683_v63, %v5683_v60  ;;  %v6709_v54 = vld [vmem:[%s10248_s7 + $0x2e4] sm:$0xf]  ;;  %v5805_v56 = vld [vmem:[%s10248_s7 + $0x2fc] sm:$0xf0]  ;;  %v5584_v60 = vor.u32 %v6653_v38, %v5581_v53  ;;  %v6674_v53 = vld [vmem:[%s10248_s7 + $0x1cc] sm:$0xf] }
 0x1db   :  { %v6649_v63 = vld [vmem:[%s10248_s7 + $0x100] sm:$0xf0] }
 0x1dc   :  { %v2117_v6 = vmul.f32 0.01, %v2062_v13  ;;  %3105 = vmatpush.bf16.msra.mxu3 %v5460_v8  ;;  %3118 = vmatpush.bf16.msra.mxu1 %v5684_v45  ;;  %v5552_v3 = vor.u32 %v6649_v63, %v5551_v62  ;;  %v6646_v8 = vld [vmem:[%s10248_s7 + $0xec] sm:$0xf]  ;;  %v5523_v45 = vld [vmem:[%s10248_s7 + $0xb0] sm:$0xf] }
 0x1dd   :  { %v5556_v0 = vor.u32 %v6646_v8, %v5553_v48  ;;  %v5524_v1 = vor.u32 %v6642_v11, %v5523_v45  ;;  %v6671_v45 = vld [vmem:[%s10248_s7 + $0x1b0] sm:$0xf0]  ;;  %v5867_v11 = vld [vmem:[%s10248_s7 + $0x358] sm:$0xf] }
 0x1de   :  { %v2119_v27 = vmax.f32 %v2062_v13, %v2117_v6 }
 0x1e0   :  { %v2121_v34 = vpack.c.bf16 %v2119_v27, %v2119_v27  ;;  %v6723_v27 = vld [vmem:[%s10248_s7 + $0x354] sm:$0xf]  ;;  %3106 = vmatpush.bf16.msra.mxu3 %v5432_v17  ;;  %3119 = vmatpush.bf16.msra.mxu1 %v5656_v24  ;;  %v6632_v24 = vld [vmem:[%s10248_s7 + $0x7c] sm:$0xf] }
 0x1e1   :  { %v2063_v25 = vpop.f32.mrf.mxu0  ;;  %v6695_v17 = vld [vmem:[%s10248_s7 + $0x274] sm:$0xf] }
 0x1e2   :  { %2329 = vmatmul.bf16.vlgmr.msrb.gmra.mxu3 %v2121_v34  ;;  %2355 = vmatmul.bf16.vlgmr.msrb.gmra.mxu2 %v2121_v34  ;;  %v5860_v34 = vor.u32 %v6726_v21, %v5859_v20  ;;  %v5864_v25 = vor.u32 %v6723_v27, %v5861_v28  ;;  %v5752_v19 = vor.u32 %v6695_v17, %v5749_v18  ;;  %v5495_v20 = vld [vmem:[%s10248_s7 + $0x78] sm:$0xf] }
 0x1e3   :  { %3177 = vmatpush.bf16.msrb.mxu2 %v5640_v36  ;;  %v5719_v21 = vld [vmem:[%s10248_s7 + $0x238] sm:$0xf]  ;;  %v5500_v28 = vor.u32 %v6632_v24, %v5497_v26  ;;  %v5691_v36 = vld [vmem:[%s10248_s7 + $0x200] sm:$0xf] }
 0x1e4   :  { %3151 = vmatpush.bf16.msrb.mxu3 %v5636_v32  ;;  %v5720_v27 = vor.u32 %v6691_v23, %v5719_v21  ;;  %v5692_v41 = vor.u32 %v6684_v40, %v5691_v36  ;;  %v6664_v21 = vld [vmem:[%s10248_s7 + $0x178] sm:$0xf0]  ;;  %v6657_v40 = vld [vmem:[%s10248_s7 + $0x140] sm:$0xf0] }
 0x1e7   :  { %3178 = vmatpush.bf16.msrb.mxu2 %v5612_v30  ;;  %v5663_v30 = vld [vmem:[%s10248_s7 + $0x1c8] sm:$0xf] }
 0x1e8   :  { %3152 = vmatpush.bf16.msrb.mxu3 %v5608_v46  ;;  %v5439_v46 = vld [vmem:[%s10248_s7 + $0x8] sm:$0xf]  ;;  %v5664_v52 = vor.u32 %v6677_v47, %v5663_v30  ;;  %v6650_v47 = vld [vmem:[%s10248_s7 + $0x108] sm:$0xf0] }
 0x1e9   :  { %v2113_v5 = vpop.f32.mrf.mxu0 }
 0x1ea   :  { %v2114_v9 = vadd.f32 %v2113_v5, %v2101_v61  ;;  %v5808_v61 = vor.u32 %v6709_v54, %v5805_v56  ;;  %v6705_v5 = vld [vmem:[%s10248_s7 + $0x2c0] sm:$0xf0]  ;;  %v5665_v54 = vld [vmem:[%s10248_s7 + $0x1e4] sm:$0xf0] }
 0x1eb   :  { %3179 = vmatpush.bf16.msrb.mxu2 %v5584_v60  ;;  %v5776_v2 = vor.u32 %v6705_v5, %v5775_v4  ;;  %v5668_v56 = vor.u32 %v6674_v53, %v5665_v54  ;;  %v2155_v60 = vld [vmem:[%s10247_s6] sm:$0x3]  ;;  %v6647_v53 = vld [vmem:[%s10248_s7 + $0xf4] sm:$0xf]  ;;  %v5561_v54 = vld [vmem:[%s10248_s7 + $0x10c] sm:$0xf0] }
 0x1ec   :  { %v2118_v13 = vmul.f32 0.01, %v2114_v9  ;;  %3153 = vmatpush.bf16.msrb.mxu3 %v5580_v58  ;;  %v2158_v62 = vperm.slane %v2155_v60, 1  ;;  %s4232_s6 = sshll.u32 %s10252_s11, 4  ;;  %s4233_s6 = int_to_ptr.hbm [resolvable:$true] %s4232_s6 }
 0x1ee   :  { %v2120_v6 = vmax.f32 %v2114_v9, %v2118_v13  ;;  %v6702_v9 = vld [vmem:[%s10248_s7 + $0x2ac] sm:$0xf]  ;;  %v6639_v13 = vld [vmem:[%s10248_s7 + $0xb4] sm:$0xf] }
 0x1ef   :  { %v5780_v10 = vor.u32 %v6702_v9, %v5777_v55  ;;  %3180 = vmatpush.bf16.msrb.mxu2 %v5556_v0  ;;  %v5528_v7 = vor.u32 %v6639_v13, %v5525_v14  ;;  %v5643_v55 = vld [vmem:[%s10248_s7 + $0x198] sm:$0xf] }
 0x1f0   :  { %v2122_v29 = vpack.c.bf16 %v2120_v6, %v2120_v6  ;;  %3154 = vmatpush.bf16.msrb.mxu3 %v5552_v3  ;;  %v6635_v6 = vld [vmem:[%s10248_s7 + $0x90] sm:$0xf0]  ;;  %v5645_v14 = vld [vmem:[%s10248_s7 + $0x1b4] sm:$0xf0] }
 0x1f1   :  { %v2115_v33 = vpop.f32.mrf.mxu0  ;;  %v5496_v22 = vor.u32 %v6635_v6, %v5495_v20  ;;  %v5868_v20 = vor.u32 %v6727_v59, %v5867_v11  ;;  %v5615_v6 = vld [vmem:[%s10248_s7 + $0x160] sm:$0xf] }
 0x1f2   :  { %2342 = vmatmul.bf16.vlgmr.msrb.gmra.mxu1 %v2122_v29  ;;  %2368 = vmatmul.bf16.vlgmr.msrb.gmra.mxu0 %v2122_v29  ;;  %v6688_v29 = vld [vmem:[%s10248_s7 + $0x23c] sm:$0xf]  ;;  %v5467_v33 = vld [vmem:[%s10248_s7 + $0x40] sm:$0xf] }
 0x1f3   :  { %3164 = vmatpush.bf16.msrb.mxu1 %v5860_v34  ;;  %3190 = vmatpush.bf16.msrb.mxu0 %v5864_v25  ;;  %v5724_v32 = vor.u32 %v6688_v29, %v5721_v15  ;;  %v6628_v34 = vld [vmem:[%s10248_s7 + $0x58] sm:$0xf0]  ;;  %v5469_v25 = vld [vmem:[%s10248_s7 + $0x5c] sm:$0xf0]  ;;  %v6661_v29 = vld [vmem:[%s10248_s7 + $0x164] sm:$0xf] }
 0x1f4   :  { %3155 = vmatpush.bf16.msrb.mxu3 %v5524_v1  ;;  %3181 = vmatpush.bf16.msrb.mxu2 %v5528_v7  ;;  %v5468_v39 = vor.u32 %v6628_v34, %v5467_v33  ;;  %v5472_v42 = vor.u32 %v6625_v51, %v5469_v25  ;;  %v6668_v1 = vld [vmem:[%s10248_s7 + $0x19c] sm:$0xf]  ;;  %v5869_v7 = vld [vmem:[%s10248_s7 + $0x374] sm:$0xf0]  ;;  %v5617_v15 = vld [vmem:[%s10248_s7 + $0x17c] sm:$0xf0]  ;;  %v5616_v34 = vor.u32 %v6664_v21, %v5615_v6 }
 0x1f5   :  { %v5648_v24 = vor.u32 %v6668_v1, %v5645_v14  ;;  %v5841_v33 = vld [vmem:[%s10248_s7 + $0x33c] sm:$0xf0]  ;;  %v5620_v51 = vor.u32 %v6661_v29, %v5617_v15  ;;  %v5475_v6 = vld [vmem:[%s10248_s7 + $0x48] sm:$0xf]  ;;  %v6629_v21 = vld [vmem:[%s10248_s7 + $0x60] sm:$0xf0] }
 0x1f6   :  { %v5727_v1 = vld [vmem:[%s10248_s7 + $0x240] sm:$0xf]  ;;  %v6682_v29 = vld [vmem:[%s10248_s7 + $0x20c] sm:$0xf]  ;;  %v5701_v15 = vld [vmem:[%s10248_s7 + $0x224] sm:$0xf0] }
 0x1f7   :  { %3165 = vmatpush.bf16.msrb.mxu1 %v5832_v31  ;;  %3191 = vmatpush.bf16.msrb.mxu0 %v5836_v50  ;;  %v6621_v31 = vld [vmem:[%s10248_s7 + $0x20] sm:$0xf0]  ;;  %v5441_v50 = vld [vmem:[%s10248_s7 + $0x24] sm:$0xf0]  ;;  %v5505_v14 = vld [vmem:[%s10248_s7 + $0x9c] sm:$0xf0] }
 0x1f8   :  { %3156 = vmatpush.bf16.msrb.mxu3 %v5496_v22  ;;  %3182 = vmatpush.bf16.msrb.mxu2 %v5500_v28  ;;  %v5440_v35 = vor.u32 %v6621_v31, %v5439_v46  ;;  %v5444_v38 = vor.u32 %v6618_v49, %v5441_v50  ;;  %v6720_v28 = vld [vmem:[%s10248_s7 + $0x338] sm:$0xf0]  ;;  %v5813_v46 = vld [vmem:[%s10248_s7 + $0x304] sm:$0xf0]  ;;  %v5592_v49 = vor.u32 %v6654_v57, %v5589_v43  ;;  %v6675_v57 = vld [vmem:[%s10248_s7 + $0x1d4] sm:$0xf] }
 0x1f9   :  { %v5673_v43 = vld [vmem:[%s10248_s7 + $0x1ec] sm:$0xf0] }
 0x1fb   :  { %3166 = vmatpush.bf16.msrb.mxu1 %v5804_v37  ;;  %3192 = vmatpush.bf16.msrb.mxu0 %v5808_v61  ;;  %v2157_v61 = vperm.slane %v2155_v60, 0 }
 0x1fc   :  { %3157 = vmatpush.bf16.msrb.mxu3 %v5468_v39  ;;  %3183 = vmatpush.bf16.msrb.mxu2 %v5472_v42  ;;  %v5587_v39 = vld [vmem:[%s10248_s7 + $0x128] sm:$0xf]  ;;  %v6713_v42 = vld [vmem:[%s10248_s7 + $0x300] sm:$0xf0] }
 0x1fd   :  { %v5588_v31 = vor.u32 %v6657_v40, %v5587_v39  ;;  %v5671_v39 = vld [vmem:[%s10248_s7 + $0x1d0] sm:$0xf]  ;;  %v6678_v40 = vld [vmem:[%s10248_s7 + $0x1e8] sm:$0xf0] }
 0x1ff   :  { %3167 = vmatpush.bf16.msrb.mxu1 %v5776_v2  ;;  %3193 = vmatpush.bf16.msrb.mxu0 %v5780_v10 }
 0x200   :  { %3158 = vmatpush.bf16.msrb.mxu3 %v5440_v35  ;;  %3184 = vmatpush.bf16.msrb.mxu2 %v5444_v38  ;;  %v5559_v35 = vld [vmem:[%s10248_s7 + $0xf0] sm:$0xf]  ;;  %v6706_v38 = vld [vmem:[%s10248_s7 + $0x2c8] sm:$0xf0] }
 0x203   :  { %3168 = vmatpush.bf16.msrb.mxu1 %v5748_v16  ;;  %3194 = vmatpush.bf16.msrb.mxu0 %v5752_v19  ;;  %v6724_v16 = vld [vmem:[%s10248_s7 + $0x35c] sm:$0xf]  ;;  %v5644_v19 = vor.u32 %v6671_v45, %v5643_v55 }
 0x204   :  { %v5872_v26 = vor.u32 %v6724_v16, %v5869_v7  ;;  %v6636_v45 = vld [vmem:[%s10248_s7 + $0x98] sm:$0xf0]  ;;  %v6689_v16 = vld [vmem:[%s10248_s7 + $0x244] sm:$0xf]  ;;  %v5729_v7 = vld [vmem:[%s10248_s7 + $0x25c] sm:$0xf0] }
 0x207   :  { %3169 = vmatpush.bf16.msrb.mxu1 %v5720_v27  ;;  %3195 = vmatpush.bf16.msrb.mxu0 %v5724_v32  ;;  %v5839_v27 = vld [vmem:[%s10248_s7 + $0x320] sm:$0xf]  ;;  %v6717_v32 = vld [vmem:[%s10248_s7 + $0x324] sm:$0xf] }
 0x208   :  { %v5840_v36 = vor.u32 %v6720_v28, %v5839_v27  ;;  %v5844_v25 = vor.u32 %v6717_v32, %v5841_v33  ;;  %v6626_v27 = vld [vmem:[%s10248_s7 + $0x4c] sm:$0xf]  ;;  %v5477_v28 = vld [vmem:[%s10248_s7 + $0x64] sm:$0xf0]  ;;  %v5447_v32 = vld [vmem:[%s10248_s7 + $0x10] sm:$0xf]  ;;  %v5476_v33 = vor.u32 %v6629_v21, %v5475_v6 }
 0x20b   :  { %3170 = vmatpush.bf16.msrb.mxu1 %v5692_v41  ;;  %3196 = vmatpush.bf16.msrb.mxu0 %v5696_v44  ;;  %v5811_v41 = vld [vmem:[%s10248_s7 + $0x2e8] sm:$0xf]  ;;  %v6710_v44 = vld [vmem:[%s10248_s7 + $0x2ec] sm:$0xf] }
 0x20c   :  { %v5812_v30 = vor.u32 %v6713_v42, %v5811_v41  ;;  %v5816_v50 = vor.u32 %v6710_v44, %v5813_v46  ;;  %v6619_v41 = vld [vmem:[%s10248_s7 + $0x14] sm:$0xf]  ;;  %v5449_v42 = vld [vmem:[%s10248_s7 + $0x2c] sm:$0xf0]  ;;  %v5651_v44 = vld [vmem:[%s10248_s7 + $0x1a0] sm:$0xf] }
 0x20d   :  { %v6672_v46 = vld [vmem:[%s10248_s7 + $0x1b8] sm:$0xf0] }
 0x20f   :  { %3171 = vmatpush.bf16.msrb.mxu1 %v5664_v52  ;;  %3197 = vmatpush.bf16.msrb.mxu0 %v5668_v56  ;;  %v5783_v52 = vld [vmem:[%s10248_s7 + $0x2b0] sm:$0xf]  ;;  %v6703_v56 = vld [vmem:[%s10248_s7 + $0x2b4] sm:$0xf] }
 0x210   :  { %v5784_v60 = vor.u32 %v6706_v38, %v5783_v52  ;;  %v6299_v52 = vld [vmem:[%s10250_s9 + $0x348] sm:$0xf]  ;;  %v6837_v38 = vld [vmem:[%s10250_s9 + $0x360] sm:$0xf0] }
 0x265   :  { %v2330_v58 = vpop.f32.mrf.mxu3  ;;  %v2356_v37 = vpop.f32.mrf.mxu2 }
 0x266   :  { %v2331_v4 = vadd.f32 %v2330_v58, %v2157_v61  ;;  %v2357_v5 = vadd.f32 %v2356_v37, %v2158_v62  ;;  %v5785_v58 = vld [vmem:[%s10248_s7 + $0x2cc] sm:$0xf0]  ;;  %v5560_v37 = vor.u32 %v6650_v47, %v5559_v35  ;;  %v5531_v61 = vld [vmem:[%s10248_s7 + $0xb8] sm:$0xf]  ;;  %v6643_v62 = vld [vmem:[%s10248_s7 + $0xd0] sm:$0xf0] }
 0x267   :  { %v5532_v55 = vor.u32 %v6643_v62, %v5531_v61  ;;  %v6075_v35 = vld [vmem:[%s10250_s9 + $0x188] sm:$0xf]  ;;  %v6300_v62 = vor.u32 %v6837_v38, %v6299_v52  ;;  %v6159_v52 = vld [vmem:[%s10250_s9 + $0x230] sm:$0xf]  ;;  %v6802_v38 = vld [vmem:[%s10250_s9 + $0x248] sm:$0xf0] }
 0x26d   :  { %v2332_v63 = vpop.f32.mrf.mxu3  ;;  %v2358_v3 = vpop.f32.mrf.mxu2 }
 0x26e   :  { %v5564_v63 = vor.u32 %v6647_v53, %v5561_v54  ;;  %v5788_v3 = vor.u32 %v6703_v56, %v5785_v58  ;;  %v5452_v53 = vor.u32 %v6619_v41, %v5449_v42  ;;  %v5676_v54 = vor.u32 %v6675_v57, %v5673_v43  ;;  %v6187_v41 = vld [vmem:[%s10250_s9 + $0x268] sm:$0xf]  ;;  %v6809_v42 = vld [vmem:[%s10250_s9 + $0x280] sm:$0xf0] }
 0x26f   :  { %v2343_v8 = vpop.f32.mrf.mxu1  ;;  %v2369_v2 = vpop.f32.mrf.mxu0  ;;  %v5652_v56 = vor.u32 %v6672_v46, %v5651_v44  ;;  %v5511_v44 = vld [vmem:[%s10248_s7 + $0x88] sm:$0xf]  ;;  %v6637_v46 = vld [vmem:[%s10248_s7 + $0xa0] sm:$0xf0] }
 0x270   :  { %v2344_v48 = vadd.f32 %v2343_v8, %v2331_v4  ;;  %v2370_v9 = vadd.f32 %v2369_v2, %v2357_v5  ;;  %v5755_v4 = vld [vmem:[%s10248_s7 + $0x278] sm:$0xf]  ;;  %v6699_v5 = vld [vmem:[%s10248_s7 + $0x290] sm:$0xf0]  ;;  %v6640_v8 = vld [vmem:[%s10248_s7 + $0xbc] sm:$0xf] }
 0x271   :  { %v5533_v2 = vld [vmem:[%s10248_s7 + $0xd4] sm:$0xf0] }
 0x272   :  { %v2373_v0 = vmul.f32 0.01, %v2344_v48  ;;  %v2374_v10 = vmul.f32 0.01, %v2370_v9  ;;  %v5536_v11 = vor.u32 %v6640_v8, %v5533_v2  ;;  %v6271_v8 = vld [vmem:[%s10250_s9 + $0x310] sm:$0xf] }
 0x273   :  { %v6830_v2 = vld [vmem:[%s10250_s9 + $0x328] sm:$0xf0] }
 0x274   :  { %v2375_v12 = vmax.f32 %v2344_v48, %v2373_v0  ;;  %v2376_v13 = vmax.f32 %v2370_v9, %v2374_v10  ;;  %v6696_v48 = vld [vmem:[%s10248_s7 + $0x27c] sm:$0xf]  ;;  %v5757_v9 = vld [vmem:[%s10248_s7 + $0x294] sm:$0xf0]  ;;  %v5756_v0 = vor.u32 %v6699_v5, %v5755_v4  ;;  %v5503_v10 = vld [vmem:[%s10248_s7 + $0x80] sm:$0xf] }
 0x275   :  { %v5760_v59 = vor.u32 %v6696_v48, %v5757_v9  ;;  %v6047_v4 = vld [vmem:[%s10250_s9 + $0x150] sm:$0xf]  ;;  %v6774_v5 = vld [vmem:[%s10250_s9 + $0x168] sm:$0xf0] }
 0x276   :  { %v9241_v17 = vpack.c.bf16 %v2375_v12, %v2375_v12  ;;  %v9243_v18 = vpack.c.bf16 %v2376_v13, %v2376_v13  ;;  %v6692_v12 = vld [vmem:[%s10248_s7 + $0x258] sm:$0xf0]  ;;  %v6633_v13 = vld [vmem:[%s10248_s7 + $0x84] sm:$0xf] }
 0x277   :  { %v2345_v22 = vpop.f32.mrf.mxu1  ;;  %v2371_v23 = vpop.f32.mrf.mxu0 }
 0x278   :  { %3107 = vmatmul.bf16.vlgmr.msra.gmra.mxu3 %v9241_v17  ;;  %3120 = vmatmul.bf16.vlgmr.msra.gmra.mxu1 %v9243_v18  ;;  %v5508_v22 = vor.u32 %v6633_v13, %v5505_v14  ;;  %v5732_v23 = vor.u32 %v6689_v16, %v5729_v7  ;;  %v6243_v13 = vld [vmem:[%s10250_s9 + $0x2d8] sm:$0xf]  ;;  %v6823_v14 = vld [vmem:[%s10250_s9 + $0x2f0] sm:$0xf0] }
 0x279   :  { %3133 = vmatmul.bf16.vlgmr.msra.gmra.mxu2 %v9241_v17  ;;  %3146 = vmatmul.bf16.vlgmr.msra.gmra.mxu0 %v9243_v18  ;;  %v6244_v21 = vor.u32 %v6823_v14, %v6243_v13  ;;  %v6778_v13 = vld [vmem:[%s10250_s9 + $0x18c] sm:$0xf]  ;;  %v6077_v14 = vld [vmem:[%s10250_s9 + $0x1a4] sm:$0xf0] }
 0x27a   :  { %3203 = vmatpush.bf16.msra.mxu3 %v5644_v19  ;;  %3216 = vmatpush.bf16.msra.mxu1 %v5868_v20  ;;  %v5504_v19 = vor.u32 %v6636_v45, %v5503_v10  ;;  %v5728_v20 = vor.u32 %v6692_v12, %v5727_v1  ;;  %v6048_v10 = vor.u32 %v6774_v5, %v6047_v4  ;;  %v6019_v1 = vld [vmem:[%s10250_s9 + $0x118] sm:$0xf]  ;;  %v6767_v12 = vld [vmem:[%s10250_s9 + $0x130] sm:$0xf0] }
 0x27b   :  { %3229 = vmatpush.bf16.msra.mxu2 %v5648_v24  ;;  %3242 = vmatpush.bf16.msra.mxu0 %v5872_v26  ;;  %v5699_v24 = vld [vmem:[%s10248_s7 + $0x208] sm:$0xf]  ;;  %v6685_v26 = vld [vmem:[%s10248_s7 + $0x220] sm:$0xf0]  ;;  %v6272_v45 = vor.u32 %v6830_v2, %v6271_v8  ;;  %v6020_v6 = vor.u32 %v6767_v12, %v6019_v1  ;;  %v6131_v4 = vld [vmem:[%s10250_s9 + $0x1f8] sm:$0xf] }
 0x27c   :  { %v6795_v5 = vld [vmem:[%s10250_s9 + $0x210] sm:$0xf0]  ;;  %v5455_v8 = vld [vmem:[%s10248_s7 + $0x18] sm:$0xf]  ;;  %v6103_v1 = vld [vmem:[%s10250_s9 + $0x1c0] sm:$0xf] }
 0x27d   :  { %v6788_v12 = vld [vmem:[%s10250_s9 + $0x1d8] sm:$0xf0] }
 0x27e   :  { %3204 = vmatpush.bf16.msra.mxu3 %v5616_v34  ;;  %3217 = vmatpush.bf16.msra.mxu1 %v5840_v36  ;;  %v5700_v34 = vor.u32 %v6685_v26, %v5699_v24  ;;  %v6622_v36 = vld [vmem:[%s10248_s7 + $0x28] sm:$0xf0]  ;;  %v5991_v24 = vld [vmem:[%s10250_s9 + $0xe0] sm:$0xf]  ;;  %v6760_v26 = vld [vmem:[%s10250_s9 + $0xf8] sm:$0xf0] }
 0x27f   :  { %3230 = vmatpush.bf16.msra.mxu2 %v5620_v51  ;;  %3243 = vmatpush.bf16.msra.mxu0 %v5844_v25  ;;  %v5480_v51 = vor.u32 %v6626_v27, %v5477_v28  ;;  %v5704_v25 = vor.u32 %v6682_v29, %v5701_v15  ;;  %v5448_v47 = vor.u32 %v6622_v36, %v5447_v32  ;;  %v6215_v27 = vld [vmem:[%s10250_s9 + $0x2a0] sm:$0xf]  ;;  %v6816_v28 = vld [vmem:[%s10250_s9 + $0x2b8] sm:$0xf0] }
 0x280   :  { %v5539_v32 = vld [vmem:[%s10248_s7 + $0xc0] sm:$0xf]  ;;  %v6216_v36 = vor.u32 %v6816_v28, %v6215_v27  ;;  %v6080_v27 = vor.u32 %v6778_v13, %v6077_v14  ;;  %v6743_v13 = vld [vmem:[%s10250_s9 + $0x74] sm:$0xf]  ;;  %v5937_v14 = vld [vmem:[%s10250_s9 + $0x8c] sm:$0xf0] }
 0x282   :  { %3205 = vmatpush.bf16.msra.mxu3 %v5588_v31  ;;  %3218 = vmatpush.bf16.msra.mxu1 %v5812_v30  ;;  %v5875_v31 = vld [vmem:[%s10248_s7 + $0x360] sm:$0xf]  ;;  %v6728_v30 = vld [vmem:[%s10248_s7 + $0x378] sm:$0xf0] }
 0x283   :  { %3231 = vmatpush.bf16.msra.mxu2 %v5592_v49  ;;  %3244 = vmatpush.bf16.msra.mxu0 %v5816_v50  ;;  %v5672_v49 = vor.u32 %v6678_v40, %v5671_v39  ;;  %v6781_v50 = vld [vmem:[%s10250_s9 + $0x1a0] sm:$0xf0]  ;;  %v5876_v58 = vor.u32 %v6728_v30, %v5875_v31  ;;  %v5763_v39 = vld [vmem:[%s10248_s7 + $0x280] sm:$0xf]  ;;  %v6700_v40 = vld [vmem:[%s10248_s7 + $0x298] sm:$0xf0]  ;;  %v6188_v30 = vor.u32 %v6809_v42, %v6187_v41 }
 0x284   :  { %v6076_v61 = vor.u32 %v6781_v50, %v6075_v35  ;;  %v5764_v43 = vor.u32 %v6700_v40, %v5763_v39  ;;  %v5735_v35 = vld [vmem:[%s10248_s7 + $0x248] sm:$0xf]  ;;  %v6746_v50 = vld [vmem:[%s10250_s9 + $0x88] sm:$0xf0]  ;;  %v6055_v39 = vld [vmem:[%s10250_s9 + $0x158] sm:$0xf] }
 0x285   :  { %v6775_v40 = vld [vmem:[%s10250_s9 + $0x170] sm:$0xf0] }
 0x286   :  { %3206 = vmatpush.bf16.msra.mxu3 %v5560_v37  ;;  %3219 = vmatpush.bf16.msra.mxu1 %v5784_v60  ;;  %v5623_v37 = vld [vmem:[%s10248_s7 + $0x168] sm:$0xf]  ;;  %v6665_v60 = vld [vmem:[%s10248_s7 + $0x180] sm:$0xf0] }
 0x287   :  { %3232 = vmatpush.bf16.msra.mxu2 %v5564_v63  ;;  %3245 = vmatpush.bf16.msra.mxu0 %v5788_v3  ;;  %v5847_v63 = vld [vmem:[%s10248_s7 + $0x328] sm:$0xf]  ;;  %v6721_v3 = vld [vmem:[%s10248_s7 + $0x340] sm:$0xf0]  ;;  %v5624_v48 = vor.u32 %v6665_v60, %v5623_v37  ;;  %v6160_v60 = vor.u32 %v6802_v38, %v6159_v52 }
 0x288   :  { %3159 = vmatmul.bf16.vlgmr.msrb.gmra.mxu3 %v9241_v17  ;;  %3172 = vmatmul.bf16.vlgmr.msrb.gmra.mxu1 %v9243_v18  ;;  %v5848_v9 = vor.u32 %v6721_v3, %v5847_v63  ;;  %v5907_v63 = vld [vmem:[%s10250_s9 + $0x38] sm:$0xf]  ;;  %v6739_v3 = vld [vmem:[%s10250_s9 + $0x50] sm:$0xf0] }
 0x289   :  { %3185 = vmatmul.bf16.vlgmr.msrb.gmra.mxu2 %v9241_v17  ;;  %3198 = vmatmul.bf16.vlgmr.msrb.gmra.mxu0 %v9243_v18 }
 0x28a   :  { %3207 = vmatpush.bf16.msra.mxu3 %v5532_v55  ;;  %3220 = vmatpush.bf16.msra.mxu1 %v5756_v0  ;;  %v5595_v55 = vld [vmem:[%s10248_s7 + $0x130] sm:$0xf]  ;;  %v6658_v0 = vld [vmem:[%s10248_s7 + $0x148] sm:$0xf0] }
 0x28b   :  { %3233 = vmatpush.bf16.msra.mxu2 %v5536_v11  ;;  %3246 = vmatpush.bf16.msra.mxu0 %v5760_v59  ;;  %v5819_v11 = vld [vmem:[%s10248_s7 + $0x2f0] sm:$0xf]  ;;  %v6714_v59 = vld [vmem:[%s10248_s7 + $0x308] sm:$0xf0]  ;;  %v5596_v16 = vor.u32 %v6658_v0, %v5595_v55  ;;  %v5679_v55 = vld [vmem:[%s10248_s7 + $0x1d8] sm:$0xf] }
 0x28c   :  { %v5820_v7 = vor.u32 %v6714_v59, %v5819_v11  ;;  %v6679_v0 = vld [vmem:[%s10248_s7 + $0x1f0] sm:$0xf0]  ;;  %v5879_v11 = vld [vmem:[%s10250_s9] sm:$0xf]  ;;  %v6732_v59 = vld [vmem:[%s10250_s9 + $0x18] sm:$0xf0] }
 0x28e   :  { %3208 = vmatpush.bf16.msra.mxu3 %v5504_v19  ;;  %3221 = vmatpush.bf16.msra.mxu1 %v5728_v20  ;;  %v5567_v19 = vld [vmem:[%s10248_s7 + $0xf8] sm:$0xf]  ;;  %v6651_v20 = vld [vmem:[%s10248_s7 + $0x110] sm:$0xf0] }
 0x28f   :  { %3234 = vmatpush.bf16.msra.mxu2 %v5508_v22  ;;  %3247 = vmatpush.bf16.msra.mxu0 %v5732_v23  ;;  %v5791_v22 = vld [vmem:[%s10248_s7 + $0x2b8] sm:$0xf]  ;;  %v6707_v23 = vld [vmem:[%s10248_s7 + $0x2d0] sm:$0xf0]  ;;  %v5568_v29 = vor.u32 %v6651_v20, %v5567_v19  ;;  %v6083_v19 = vld [vmem:[%s10250_s9 + $0x190] sm:$0xf] }
 0x290   :  { %v5792_v15 = vor.u32 %v6707_v23, %v5791_v22  ;;  %v6307_v22 = vld [vmem:[%s10250_s9 + $0x350] sm:$0xf]  ;;  %v6838_v23 = vld [vmem:[%s10250_s9 + $0x368] sm:$0xf0] }
 0x292   :  { %3209 = vmatpush.bf16.msra.mxu3 %v5476_v33  ;;  %3222 = vmatpush.bf16.msra.mxu1 %v5700_v34  ;;  %v6644_v33 = vld [vmem:[%s10248_s7 + $0xd8] sm:$0xf0]  ;;  %v5992_v34 = vor.u32 %v6760_v26, %v5991_v24  ;;  %v5880_v24 = vor.u32 %v6732_v59, %v5879_v11  ;;  %v6104_v26 = vor.u32 %v6788_v12, %v6103_v1  ;;  %v6195_v11 = vld [vmem:[%s10250_s9 + $0x270] sm:$0xf]  ;;  %v6810_v59 = vld [vmem:[%s10250_s9 + $0x288] sm:$0xf0] }
 0x293   :  { %3235 = vmatpush.bf16.msra.mxu2 %v5480_v51  ;;  %3248 = vmatpush.bf16.msra.mxu0 %v5704_v25  ;;  %v5963_v51 = vld [vmem:[%s10250_s9 + $0xa8] sm:$0xf]  ;;  %v6753_v25 = vld [vmem:[%s10250_s9 + $0xc0] sm:$0xf0]  ;;  %v5540_v57 = vor.u32 %v6644_v33, %v5539_v32  ;;  %v6308_v33 = vor.u32 %v6838_v23, %v6307_v22  ;;  %v6167_v22 = vld [vmem:[%s10250_s9 + $0x238] sm:$0xf] }
 0x294   :  { %v5964_v31 = vor.u32 %v6753_v25, %v5963_v51  ;;  %v6279_v51 = vld [vmem:[%s10250_s9 + $0x318] sm:$0xf]  ;;  %v6831_v25 = vld [vmem:[%s10250_s9 + $0x330] sm:$0xf0] }
 0x295   :  { %v6803_v23 = vld [vmem:[%s10250_s9 + $0x250] sm:$0xf0] }
 0x296   :  { %3210 = vmatpush.bf16.msra.mxu3 %v5448_v47  ;;  %3223 = vmatpush.bf16.msra.mxu1 %v5672_v49  ;;  %v6693_v47 = vld [vmem:[%s10248_s7 + $0x260] sm:$0xf0]  ;;  %v5935_v49 = vld [vmem:[%s10250_s9 + $0x70] sm:$0xf] }
 0x297   :  { %3236 = vmatpush.bf16.msra.mxu2 %v5452_v53  ;;  %3249 = vmatpush.bf16.msra.mxu0 %v5676_v54  ;;  %v5512_v53 = vor.u32 %v6637_v46, %v5511_v44  ;;  %v5736_v54 = vor.u32 %v6693_v47, %v5735_v35  ;;  %v5936_v37 = vor.u32 %v6746_v50, %v5935_v49  ;;  %v6027_v35 = vld [vmem:[%s10250_s9 + $0x120] sm:$0xf]  ;;  %v6768_v47 = vld [vmem:[%s10250_s9 + $0x138] sm:$0xf0] }
 0x298   :  { %v6056_v44 = vor.u32 %v6775_v40, %v6055_v39  ;;  %v6280_v46 = vor.u32 %v6831_v25, %v6279_v51  ;;  %v6251_v49 = vld [vmem:[%s10250_s9 + $0x2e0] sm:$0xf]  ;;  %v6824_v50 = vld [vmem:[%s10250_s9 + $0x2f8] sm:$0xf0]  ;;  %v6729_v51 = vld [vmem:[%s10250_s9 + $0x4] sm:$0xf] }
 0x299   :  { %3211 = vmatmul.bf16.vlgmr.msra.gmra.mxu3 %v9241_v17  ;;  %3224 = vmatmul.bf16.vlgmr.msra.gmra.mxu1 %v9243_v18  ;;  %v6139_v39 = vld [vmem:[%s10250_s9 + $0x200] sm:$0xf]  ;;  %v6796_v40 = vld [vmem:[%s10250_s9 + $0x218] sm:$0xf0] }
 0x29a   :  { %3255 = vmatpush.bf16.msrb.mxu3 %v5652_v56  ;;  %3268 = vmatpush.bf16.msrb.mxu1 %v5876_v58  ;;  %v5483_v56 = vld [vmem:[%s10248_s7 + $0x50] sm:$0xf]  ;;  %v6630_v58 = vld [vmem:[%s10248_s7 + $0x68] sm:$0xf0] }
 0x29b   :  { %4001 = vmatpush.bf16.msrb.mxu2 %v6076_v61  ;;  %4014 = vmatpush.bf16.msrb.mxu0 %v6300_v62  ;;  %v5707_v61 = vld [vmem:[%s10248_s7 + $0x210] sm:$0xf]  ;;  %v6686_v62 = vld [vmem:[%s10248_s7 + $0x228] sm:$0xf0]  ;;  %v5484_v2 = vor.u32 %v6630_v58, %v5483_v56  ;;  %v6028_v56 = vor.u32 %v6768_v47, %v6027_v35  ;;  %v6252_v58 = vor.u32 %v6824_v50, %v6251_v49  ;;  %v6111_v35 = vld [vmem:[%s10250_s9 + $0x1c8] sm:$0xf] }
 0x29c   :  { %3237 = vmatmul.bf16.vlgmr.msra.gmra.mxu2 %v9241_v17  ;;  %3250 = vmatmul.bf16.vlgmr.msra.gmra.mxu0 %v9243_v18  ;;  %v6789_v47 = vld [vmem:[%s10250_s9 + $0x1e0] sm:$0xf0]  ;;  %v6779_v49 = vld [vmem:[%s10250_s9 + $0x194] sm:$0xf]  ;;  %v6085_v50 = vld [vmem:[%s10250_s9 + $0x1ac] sm:$0xf0] }
 0x29e   :  { %3256 = vmatpush.bf16.msrb.mxu3 %v5624_v48  ;;  %3269 = vmatpush.bf16.msrb.mxu1 %v5848_v9  ;;  %v5708_v48 = vor.u32 %v6686_v62, %v5707_v61  ;;  %v6623_v9 = vld [vmem:[%s10248_s7 + $0x30] sm:$0xf0]  ;;  %v5999_v61 = vld [vmem:[%s10250_s9 + $0xe8] sm:$0xf]  ;;  %v6761_v62 = vld [vmem:[%s10250_s9 + $0x100] sm:$0xf0] }
 0x29f   :  { %4002 = vmatpush.bf16.msrb.mxu2 %v6048_v10  ;;  %4015 = vmatpush.bf16.msrb.mxu0 %v6272_v45  ;;  %v5908_v10 = vor.u32 %v6739_v3, %v5907_v63  ;;  %v6132_v45 = vor.u32 %v6795_v5, %v6131_v4  ;;  %v5456_v20 = vor.u32 %v6623_v9, %v5455_v8  ;;  %v6223_v63 = vld [vmem:[%s10250_s9 + $0x2a8] sm:$0xf]  ;;  %v6817_v3 = vld [vmem:[%s10250_s9 + $0x2c0] sm:$0xf0]  ;;  %v6750_v8 = vld [vmem:[%s10250_s9 + $0xac] sm:$0xf] }
 0x2a0   :  { %v6224_v9 = vor.u32 %v6817_v3, %v6223_v63  ;;  %v6088_v63 = vor.u32 %v6779_v49, %v6085_v50  ;;  %v6744_v49 = vld [vmem:[%s10250_s9 + $0x7c] sm:$0xf]  ;;  %v5945_v50 = vld [vmem:[%s10250_s9 + $0x94] sm:$0xf0]  ;;  %s4243_s7 = sshll.u32 %s10253_s12, 4  ;;  %s4244_s7 = int_to_ptr.hbm [resolvable:$true] %s4243_s7 }
 0x2a2   :  { %3257 = vmatpush.bf16.msrb.mxu3 %v5596_v16  ;;  %3270 = vmatpush.bf16.msrb.mxu1 %v5820_v7  ;;  %v6834_v16 = vld [vmem:[%s10250_s9 + $0x34c] sm:$0xf]  ;;  %v6301_v7 = vld [vmem:[%s10250_s9 + $0x364] sm:$0xf0] }
 0x2a3   :  { %4003 = vmatpush.bf16.msrb.mxu2 %v6020_v6  ;;  %4016 = vmatpush.bf16.msrb.mxu0 %v6244_v21  ;;  %v5680_v6 = vor.u32 %v6679_v0, %v5679_v55  ;;  %v6782_v21 = vld [vmem:[%s10250_s9 + $0x1a8] sm:$0xf0]  ;;  %v6304_v28 = vor.u32 %v6834_v16, %v6301_v7  ;;  %v6189_v0 = vld [vmem:[%s10250_s9 + $0x284] sm:$0xf0]  ;;  %v6196_v7 = vor.u32 %v6810_v59, %v6195_v11 }
 0x2a4   :  { %v6084_v32 = vor.u32 %v6782_v21, %v6083_v19  ;;  %v6806_v55 = vld [vmem:[%s10250_s9 + $0x26c] sm:$0xf]  ;;  %v6799_v19 = vld [vmem:[%s10250_s9 + $0x234] sm:$0xf] }
 0x2a5   :  { %v6192_v12 = vor.u32 %v6806_v55, %v6189_v0  ;;  %v6747_v21 = vld [vmem:[%s10250_s9 + $0x90] sm:$0xf0]  ;;  %v6063_v55 = vld [vmem:[%s10250_s9 + $0x160] sm:$0xf]  ;;  %v6776_v0 = vld [vmem:[%s10250_s9 + $0x178] sm:$0xf0] }
 0x2a6   :  { %3258 = vmatpush.bf16.msrb.mxu3 %v5568_v29  ;;  %3271 = vmatpush.bf16.msrb.mxu1 %v5792_v15  ;;  %v6771_v29 = vld [vmem:[%s10250_s9 + $0x154] sm:$0xf]  ;;  %v6049_v15 = vld [vmem:[%s10250_s9 + $0x16c] sm:$0xf0] }
 0x2a7   :  { %4004 = vmatpush.bf16.msrb.mxu2 %v5992_v34  ;;  %4017 = vmatpush.bf16.msrb.mxu0 %v6216_v36  ;;  %v6827_v34 = vld [vmem:[%s10250_s9 + $0x314] sm:$0xf]  ;;  %v6273_v36 = vld [vmem:[%s10250_s9 + $0x32c] sm:$0xf0]  ;;  %v6052_v41 = vor.u32 %v6771_v29, %v6049_v15  ;;  %v6168_v15 = vor.u32 %v6803_v23, %v6167_v22 }
 0x2a8   :  { %v6276_v42 = vor.u32 %v6827_v34, %v6273_v36  ;;  %v5915_v34 = vld [vmem:[%s10250_s9 + $0x40] sm:$0xf]  ;;  %v6740_v36 = vld [vmem:[%s10250_s9 + $0x58] sm:$0xf0] }
 0x2aa   :  { %3259 = vmatpush.bf16.msrb.mxu3 %v5540_v57  ;;  %3272 = vmatpush.bf16.msrb.mxu1 %v5764_v43  ;;  %v6764_v57 = vld [vmem:[%s10250_s9 + $0x11c] sm:$0xf]  ;;  %v6021_v43 = vld [vmem:[%s10250_s9 + $0x134] sm:$0xf0] }
 0x2ab   :  { %4005 = vmatpush.bf16.msrb.mxu2 %v5964_v31  ;;  %4018 = vmatpush.bf16.msrb.mxu0 %v6188_v30  ;;  %v6820_v31 = vld [vmem:[%s10250_s9 + $0x2dc] sm:$0xf]  ;;  %v6245_v30 = vld [vmem:[%s10250_s9 + $0x2f4] sm:$0xf0]  ;;  %v6024_v52 = vor.u32 %v6764_v57, %v6021_v43  ;;  %v6785_v57 = vld [vmem:[%s10250_s9 + $0x1c4] sm:$0xf] }
 0x2ac   :  { %v6248_v38 = vor.u32 %v6820_v31, %v6245_v30  ;;  %v6105_v43 = vld [vmem:[%s10250_s9 + $0x1dc] sm:$0xf0]  ;;  %v5887_v31 = vld [vmem:[%s10250_s9 + $0x8] sm:$0xf]  ;;  %v6733_v30 = vld [vmem:[%s10250_s9 + $0x20] sm:$0xf0] }
 0x2ae   :  { %3260 = vmatpush.bf16.msrb.mxu3 %v5512_v53  ;;  %3273 = vmatpush.bf16.msrb.mxu1 %v5736_v54  ;;  %v6757_v53 = vld [vmem:[%s10250_s9 + $0xe4] sm:$0xf]  ;;  %v5993_v54 = vld [vmem:[%s10250_s9 + $0xfc] sm:$0xf0] }
 0x2af   :  { %4006 = vmatpush.bf16.msrb.mxu2 %v5936_v37  ;;  %4019 = vmatpush.bf16.msrb.mxu0 %v6160_v60  ;;  %v6813_v37 = vld [vmem:[%s10250_s9 + $0x2a4] sm:$0xf]  ;;  %v6217_v60 = vld [vmem:[%s10250_s9 + $0x2bc] sm:$0xf0]  ;;  %v5996_v4 = vor.u32 %v6757_v53, %v5993_v54  ;;  %v6091_v53 = vld [vmem:[%s10250_s9 + $0x198] sm:$0xf] }
 0x2b0   :  { %v6220_v5 = vor.u32 %v6813_v37, %v6217_v60  ;;  %v6315_v37 = vld [vmem:[%s10250_s9 + $0x358] sm:$0xf]  ;;  %v6839_v60 = vld [vmem:[%s10250_s9 + $0x370] sm:$0xf0] }
 0x2b2   :  { %3261 = vmatpush.bf16.msrb.mxu3 %v5484_v2  ;;  %3274 = vmatpush.bf16.msrb.mxu1 %v5708_v48  ;;  %v5965_v2 = vld [vmem:[%s10250_s9 + $0xc4] sm:$0xf0]  ;;  %v6000_v48 = vor.u32 %v6761_v62, %v5999_v61  ;;  %v5888_v61 = vor.u32 %v6733_v30, %v5887_v31  ;;  %v6112_v62 = vor.u32 %v6789_v47, %v6111_v35  ;;  %v6203_v31 = vld [vmem:[%s10250_s9 + $0x278] sm:$0xf]  ;;  %v6811_v30 = vld [vmem:[%s10250_s9 + $0x290] sm:$0xf0] }
 0x2b3   :  { %4007 = vmatpush.bf16.msrb.mxu2 %v5908_v10  ;;  %4020 = vmatpush.bf16.msrb.mxu0 %v6132_v45  ;;  %v5971_v10 = vld [vmem:[%s10250_s9 + $0xb0] sm:$0xf]  ;;  %v6754_v45 = vld [vmem:[%s10250_s9 + $0xc8] sm:$0xf0]  ;;  %v5968_v1 = vor.u32 %v6750_v8, %v5965_v2  ;;  %v6316_v2 = vor.u32 %v6839_v60, %v6315_v37  ;;  %v6175_v37 = vld [vmem:[%s10250_s9 + $0x240] sm:$0xf] }
 0x2b4   :  { %v5972_v16 = vor.u32 %v6754_v45, %v5971_v10  ;;  %v6287_v10 = vld [vmem:[%s10250_s9 + $0x320] sm:$0xf]  ;;  %v6832_v45 = vld [vmem:[%s10250_s9 + $0x338] sm:$0xf0] }
 0x2b5   :  { %v6804_v60 = vld [vmem:[%s10250_s9 + $0x258] sm:$0xf0] }
 0x2b6   :  { %3262 = vmatpush.bf16.msrb.mxu3 %v5456_v20  ;;  %3275 = vmatpush.bf16.msrb.mxu1 %v5680_v6  ;;  %v6161_v20 = vld [vmem:[%s10250_s9 + $0x24c] sm:$0xf0]  ;;  %v5943_v6 = vld [vmem:[%s10250_s9 + $0x78] sm:$0xf] }
 0x2b7   :  { %4008 = vmatpush.bf16.msrb.mxu2 %v5880_v24  ;;  %4021 = vmatpush.bf16.msrb.mxu0 %v6104_v26  ;;  %v5940_v24 = vor.u32 %v6743_v13, %v5937_v14  ;;  %v6164_v26 = vor.u32 %v6799_v19, %v6161_v20  ;;  %v5944_v29 = vor.u32 %v6747_v21, %v5943_v6  ;;  %v6035_v19 = vld [vmem:[%s10250_s9 + $0x128] sm:$0xf]  ;;  %v6769_v20 = vld [vmem:[%s10250_s9 + $0x140] sm:$0xf0] }
 0x2b8   :  { %v6064_v13 = vor.u32 %v6776_v0, %v6063_v55  ;;  %v6288_v14 = vor.u32 %v6832_v45, %v6287_v10  ;;  %v6259_v6 = vld [vmem:[%s10250_s9 + $0x2e8] sm:$0xf]  ;;  %v6825_v21 = vld [vmem:[%s10250_s9 + $0x300] sm:$0xf0]  ;;  %v6730_v10 = vld [vmem:[%s10250_s9 + $0xc] sm:$0xf] }
 0x2b9   :  { %3263 = vmatmul.bf16.vlgmr.msrb.gmra.mxu3 %v9241_v17  ;;  %3276 = vmatmul.bf16.vlgmr.msrb.gmra.mxu1 %v9243_v18  ;;  %v6147_v55 = vld [vmem:[%s10250_s9 + $0x208] sm:$0xf]  ;;  %v6797_v0 = vld [vmem:[%s10250_s9 + $0x220] sm:$0xf0] }
 0x2ba   :  { %4027 = vmatpush.bf16.msra.mxu3 %v6080_v27  ;;  %4040 = vmatpush.bf16.msra.mxu1 %v6304_v28  ;;  %v6736_v27 = vld [vmem:[%s10250_s9 + $0x3c] sm:$0xf]  ;;  %v5909_v28 = vld [vmem:[%s10250_s9 + $0x54] sm:$0xf0] }
 0x2bb   :  { %4053 = vmatpush.bf16.msra.mxu2 %v6084_v32  ;;  %4066 = vmatpush.bf16.msra.mxu0 %v6308_v33  ;;  %v6792_v32 = vld [vmem:[%s10250_s9 + $0x1fc] sm:$0xf]  ;;  %v6133_v33 = vld [vmem:[%s10250_s9 + $0x214] sm:$0xf0]  ;;  %v5912_v25 = vor.u32 %v6736_v27, %v5909_v28  ;;  %v6036_v27 = vor.u32 %v6769_v20, %v6035_v19  ;;  %v6260_v28 = vor.u32 %v6825_v21, %v6259_v6  ;;  %v6119_v19 = vld [vmem:[%s10250_s9 + $0x1d0] sm:$0xf] }
 0x2bc   :  { %4009 = vmatmul.bf16.vlgmr.msrb.gmra.mxu2 %v9241_v17  ;;  %4022 = vmatmul.bf16.vlgmr.msrb.gmra.mxu0 %v9243_v18  ;;  %v6790_v20 = vld [vmem:[%s10250_s9 + $0x1e8] sm:$0xf0]  ;;  %v6780_v6 = vld [vmem:[%s10250_s9 + $0x19c] sm:$0xf]  ;;  %v6093_v21 = vld [vmem:[%s10250_s9 + $0x1b4] sm:$0xf0] }
 0x2be   :  { %4028 = vmatpush.bf16.msra.mxu3 %v6052_v41  ;;  %4041 = vmatpush.bf16.msra.mxu1 %v6276_v42  ;;  %v6136_v41 = vor.u32 %v6792_v32, %v6133_v33  ;;  %v5881_v42 = vld [vmem:[%s10250_s9 + $0x1c] sm:$0xf0]  ;;  %v6007_v32 = vld [vmem:[%s10250_s9 + $0xf0] sm:$0xf]  ;;  %v6762_v33 = vld [vmem:[%s10250_s9 + $0x108] sm:$0xf0] }
 0x2bf   :  { %4054 = vmatpush.bf16.msra.mxu2 %v6056_v44  ;;  %4067 = vmatpush.bf16.msra.mxu0 %v6280_v46  ;;  %v5916_v44 = vor.u32 %v6740_v36, %v5915_v34  ;;  %v6140_v46 = vor.u32 %v6796_v40, %v6139_v39  ;;  %v5884_v54 = vor.u32 %v6729_v51, %v5881_v42  ;;  %v6231_v34 = vld [vmem:[%s10250_s9 + $0x2b0] sm:$0xf]  ;;  %v6818_v36 = vld [vmem:[%s10250_s9 + $0x2c8] sm:$0xf0]  ;;  %v6751_v51 = vld [vmem:[%s10250_s9 + $0xb4] sm:$0xf] }
 0x2c0   :  { %v6232_v42 = vor.u32 %v6818_v36, %v6231_v34  ;;  %v6096_v34 = vor.u32 %v6780_v6, %v6093_v21  ;;  %v5987_v6 = vld [vmem:[%s10250_s9 + $0xc0] sm:$0xf] }
 0x2c2   :  { %4029 = vmatpush.bf16.msra.mxu3 %v6024_v52  ;;  %4042 = vmatpush.bf16.msra.mxu1 %v6248_v38  ;;  %v6835_v52 = vld [vmem:[%s10250_s9 + $0x354] sm:$0xf]  ;;  %v6309_v38 = vld [vmem:[%s10250_s9 + $0x36c] sm:$0xf0] }
 0x2c3   :  { %4055 = vmatpush.bf16.msra.mxu2 %v6028_v56  ;;  %4068 = vmatpush.bf16.msra.mxu0 %v6252_v58  ;;  %v6108_v56 = vor.u32 %v6785_v57, %v6105_v43  ;;  %v6783_v58 = vld [vmem:[%s10250_s9 + $0x1b0] sm:$0xf0]  ;;  %v6312_v3 = vor.u32 %v6835_v52, %v6309_v38  ;;  %v6197_v43 = vld [vmem:[%s10250_s9 + $0x28c] sm:$0xf0]  ;;  %v6204_v38 = vor.u32 %v6811_v30, %v6203_v31 }
 0x2c4   :  { %v6092_v8 = vor.u32 %v6783_v58, %v6091_v53  ;;  %v6807_v57 = vld [vmem:[%s10250_s9 + $0x274] sm:$0xf]  ;;  %v6800_v53 = vld [vmem:[%s10250_s9 + $0x23c] sm:$0xf] }
 0x2c5   :  { %v6200_v47 = vor.u32 %v6807_v57, %v6197_v43  ;;  %v6748_v58 = vld [vmem:[%s10250_s9 + $0x98] sm:$0xf0]  ;;  %v6071_v57 = vld [vmem:[%s10250_s9 + $0x168] sm:$0xf]  ;;  %v6777_v43 = vld [vmem:[%s10250_s9 + $0x180] sm:$0xf0] }
 0x2c6   :  { %4030 = vmatpush.bf16.msra.mxu3 %v5996_v4  ;;  %4043 = vmatpush.bf16.msra.mxu1 %v6220_v5  ;;  %v6772_v4 = vld [vmem:[%s10250_s9 + $0x15c] sm:$0xf]  ;;  %v6057_v5 = vld [vmem:[%s10250_s9 + $0x174] sm:$0xf0] }
 0x2c7   :  { %4056 = vmatpush.bf16.msra.mxu2 %v6000_v48  ;;  %4069 = vmatpush.bf16.msra.mxu0 %v6224_v9  ;;  %v6828_v48 = vld [vmem:[%s10250_s9 + $0x31c] sm:$0xf]  ;;  %v6281_v9 = vld [vmem:[%s10250_s9 + $0x334] sm:$0xf0]  ;;  %v6060_v11 = vor.u32 %v6772_v4, %v6057_v5  ;;  %v6176_v5 = vor.u32 %v6804_v60, %v6175_v37  ;;  %v10088_v60 = vld [vmem:[%s10249_s8] sm:$0x7f] }
 0x2c8   :  { %v6284_v59 = vor.u32 %v6828_v48, %v6281_v9  ;;  %v5923_v48 = vld [vmem:[%s10250_s9 + $0x48] sm:$0xf]  ;;  %v6741_v9 = vld [vmem:[%s10250_s9 + $0x60] sm:$0xf0] }
 0x2ca   :  { %4031 = vmatpush.bf16.msra.mxu3 %v5968_v1  ;;  %4044 = vmatpush.bf16.msra.mxu1 %v6192_v12  ;;  %v6765_v1 = vld [vmem:[%s10250_s9 + $0x124] sm:$0xf]  ;;  %v6029_v12 = vld [vmem:[%s10250_s9 + $0x13c] sm:$0xf0] }
 0x2cb   :  { %4057 = vmatpush.bf16.msra.mxu2 %v5972_v16  ;;  %4070 = vmatpush.bf16.msra.mxu0 %v6196_v7  ;;  %v6821_v16 = vld [vmem:[%s10250_s9 + $0x2e4] sm:$0xf]  ;;  %v6253_v7 = vld [vmem:[%s10250_s9 + $0x2fc] sm:$0xf0]  ;;  %v6032_v22 = vor.u32 %v6765_v1, %v6029_v12  ;;  %v6786_v1 = vld [vmem:[%s10250_s9 + $0x1cc] sm:$0xf] }
 0x2cc   :  { %v6256_v23 = vor.u32 %v6821_v16, %v6253_v7  ;;  %v6113_v12 = vld [vmem:[%s10250_s9 + $0x1e4] sm:$0xf0]  ;;  %v5895_v16 = vld [vmem:[%s10250_s9 + $0x10] sm:$0xf]  ;;  %v6734_v7 = vld [vmem:[%s10250_s9 + $0x28] sm:$0xf0] }
 0x2ce   :  { %4032 = vmatpush.bf16.msra.mxu3 %v5940_v24  ;;  %4045 = vmatpush.bf16.msra.mxu1 %v6164_v26  ;;  %v6758_v24 = vld [vmem:[%s10250_s9 + $0xec] sm:$0xf]  ;;  %v6001_v26 = vld [vmem:[%s10250_s9 + $0x104] sm:$0xf0] }
 0x2cf   :  { %4058 = vmatpush.bf16.msra.mxu2 %v5944_v29  ;;  %4071 = vmatpush.bf16.msra.mxu0 %v6168_v15  ;;  %v6814_v29 = vld [vmem:[%s10250_s9 + $0x2ac] sm:$0xf]  ;;  %v6225_v15 = vld [vmem:[%s10250_s9 + $0x2c4] sm:$0xf0]  ;;  %v6004_v39 = vor.u32 %v6758_v24, %v6001_v26  ;;  %v6099_v24 = vld [vmem:[%s10250_s9 + $0x1a0] sm:$0xf] }
 0x2d0   :  { %v6228_v40 = vor.u32 %v6814_v29, %v6225_v15  ;;  %v6323_v29 = vld [vmem:[%s10250_s9 + $0x360] sm:$0xf]  ;;  %v6840_v15 = vld [vmem:[%s10250_s9 + $0x378] sm:$0xf0] }
 0x2d2   :  { %4033 = vmatpush.bf16.msra.mxu3 %v5912_v25  ;;  %4046 = vmatpush.bf16.msra.mxu1 %v6136_v41  ;;  %v5973_v25 = vld [vmem:[%s10250_s9 + $0xcc] sm:$0xf0]  ;;  %v6008_v41 = vor.u32 %v6762_v33, %v6007_v32  ;;  %v5896_v32 = vor.u32 %v6734_v7, %v5895_v16  ;;  %v6120_v33 = vor.u32 %v6790_v20, %v6119_v19  ;;  %v6808_v19 = vld [vmem:[%s10250_s9 + $0x27c] sm:$0xf]  ;;  %v6205_v20 = vld [vmem:[%s10250_s9 + $0x294] sm:$0xf0] }
 0x2d3   :  { %4059 = vmatpush.bf16.msra.mxu2 %v5916_v44  ;;  %4072 = vmatpush.bf16.msra.mxu0 %v6140_v46  ;;  %v5979_v44 = vld [vmem:[%s10250_s9 + $0xb8] sm:$0xf]  ;;  %v6755_v46 = vld [vmem:[%s10250_s9 + $0xd0] sm:$0xf0]  ;;  %v5976_v35 = vor.u32 %v6751_v51, %v5973_v25  ;;  %v6324_v25 = vor.u32 %v6840_v15, %v6323_v29 }
 0x2d4   :  { %v5980_v52 = vor.u32 %v6755_v46, %v5979_v44  ;;  %v6295_v44 = vld [vmem:[%s10250_s9 + $0x328] sm:$0xf]  ;;  %v6833_v46 = vld [vmem:[%s10250_s9 + $0x340] sm:$0xf0] }
 0x2d6   :  { %4034 = vmatpush.bf16.msra.mxu3 %v5884_v54  ;;  %4047 = vmatpush.bf16.msra.mxu1 %v6108_v56  ;;  %v6169_v54 = vld [vmem:[%s10250_s9 + $0x254] sm:$0xf0]  ;;  %v5951_v56 = vld [vmem:[%s10250_s9 + $0x80] sm:$0xf] }
 0x2d7   :  { %4060 = vmatpush.bf16.msra.mxu2 %v5888_v61  ;;  %4073 = vmatpush.bf16.msra.mxu0 %v6112_v62  ;;  %v5948_v61 = vor.u32 %v6744_v49, %v5945_v50  ;;  %v6172_v62 = vor.u32 %v6800_v53, %v6169_v54  ;;  %v5952_v4 = vor.u32 %v6748_v58, %v5951_v56  ;;  %v6043_v53 = vld [vmem:[%s10250_s9 + $0x130] sm:$0xf]  ;;  %v6770_v54 = vld [vmem:[%s10250_s9 + $0x148] sm:$0xf0] }
 0x2d8   :  { %v6072_v49 = vor.u32 %v6777_v43, %v6071_v57  ;;  %v6296_v50 = vor.u32 %v6833_v46, %v6295_v44  ;;  %v6267_v56 = vld [vmem:[%s10250_s9 + $0x2f0] sm:$0xf]  ;;  %v6826_v58 = vld [vmem:[%s10250_s9 + $0x308] sm:$0xf0]  ;;  %v6749_v57 = vld [vmem:[%s10250_s9 + $0xa0] sm:$0xf0] }
 0x2d9   :  { %4035 = vmatmul.bf16.vlgmr.msra.gmra.mxu3 %v9241_v17  ;;  %4048 = vmatmul.bf16.vlgmr.msra.gmra.mxu1 %v9243_v18  ;;  %v6183_v44 = vld [vmem:[%s10250_s9 + $0x248] sm:$0xf]  ;;  %v6805_v46 = vld [vmem:[%s10250_s9 + $0x260] sm:$0xf0] }
 0x2da   :  { %4079 = vmatpush.bf16.msrb.mxu3 %v6088_v63  ;;  %4092 = vmatpush.bf16.msrb.mxu1 %v6312_v3  ;;  %v6737_v63 = vld [vmem:[%s10250_s9 + $0x44] sm:$0xf]  ;;  %v5917_v3 = vld [vmem:[%s10250_s9 + $0x5c] sm:$0xf0] }
 0x2db   :  { %4105 = vmatpush.bf16.msrb.mxu2 %v6092_v8  ;;  %4118 = vmatpush.bf16.msrb.mxu0 %v6316_v2  ;;  %v6793_v8 = vld [vmem:[%s10250_s9 + $0x204] sm:$0xf]  ;;  %v6141_v2 = vld [vmem:[%s10250_s9 + $0x21c] sm:$0xf0]  ;;  %v5920_v45 = vor.u32 %v6737_v63, %v5917_v3  ;;  %v6759_v3 = vld [vmem:[%s10250_s9 + $0xf4] sm:$0xf] }
 0x2dc   :  { %4061 = vmatmul.bf16.vlgmr.msra.gmra.mxu2 %v9241_v17  ;;  %4074 = vmatmul.bf16.vlgmr.msra.gmra.mxu0 %v9243_v18 }
 0x2de   :  { %4080 = vmatpush.bf16.msrb.mxu3 %v6060_v11  ;;  %4093 = vmatpush.bf16.msrb.mxu1 %v6284_v59  ;;  %v6144_v11 = vor.u32 %v6793_v8, %v6141_v2  ;;  %v5889_v59 = vld [vmem:[%s10250_s9 + $0x24] sm:$0xf0]  ;;  %v6044_v8 = vor.u32 %v6770_v54, %v6043_v53  ;;  %v6268_v2 = vor.u32 %v6826_v58, %v6267_v56 }
 0x2df   :  { %4106 = vmatpush.bf16.msrb.mxu2 %v6064_v13  ;;  %4119 = vmatpush.bf16.msrb.mxu0 %v6288_v14  ;;  %v5924_v13 = vor.u32 %v6741_v9, %v5923_v48  ;;  %v6148_v14 = vor.u32 %v6797_v0, %v6147_v55  ;;  %v5892_v26 = vor.u32 %v6730_v10, %v5889_v59  ;;  %v6233_v48 = vld [vmem:[%s10250_s9 + $0x2cc] sm:$0xf0]  ;;  %v6015_v9 = vld [vmem:[%s10250_s9 + $0xf8] sm:$0xf]  ;;  %v6763_v55 = vld [vmem:[%s10250_s9 + $0x110] sm:$0xf0] }
 0x2e0   :  { %v6239_v0 = vld [vmem:[%s10250_s9 + $0x2b8] sm:$0xf]  ;;  %v6819_v10 = vld [vmem:[%s10250_s9 + $0x2d0] sm:$0xf0]  ;;  %v6184_v54 = vor.u32 %v6805_v46, %v6183_v44  ;;  %v6149_v58 = vld [vmem:[%s10250_s9 + $0x224] sm:$0xf0] }
 0x2e1   :  { %v6240_v16 = vor.u32 %v6819_v10, %v6239_v0 }
 0x2e2   :  { %4081 = vmatpush.bf16.msrb.mxu3 %v6032_v22  ;;  %4094 = vmatpush.bf16.msrb.mxu1 %v6256_v23  ;;  %v6836_v22 = vld [vmem:[%s10250_s9 + $0x35c] sm:$0xf]  ;;  %v6317_v23 = vld [vmem:[%s10250_s9 + $0x374] sm:$0xf0] }
 0x2e3   :  { %4107 = vmatpush.bf16.msrb.mxu2 %v6036_v27  ;;  %4120 = vmatpush.bf16.msrb.mxu0 %v6260_v28  ;;  %v6116_v27 = vor.u32 %v6786_v1, %v6113_v12  ;;  %v6784_v28 = vld [vmem:[%s10250_s9 + $0x1b8] sm:$0xf0]  ;;  %v6320_v36 = vor.u32 %v6836_v22, %v6317_v23 }
 0x2e4   :  { %v6100_v51 = vor.u32 %v6784_v28, %v6099_v24  ;;  %v6752_v12 = vld [vmem:[%s10250_s9 + $0xbc] sm:$0xf]  ;;  %v6211_v24 = vld [vmem:[%s10250_s9 + $0x280] sm:$0xf] }
 0x2e5   :  { %v6756_v23 = vld [vmem:[%s10250_s9 + $0xd8] sm:$0xf0] }
 0x2e6   :  { %4082 = vmatpush.bf16.msrb.mxu3 %v6004_v39  ;;  %4095 = vmatpush.bf16.msrb.mxu1 %v6228_v40  ;;  %v6773_v39 = vld [vmem:[%s10250_s9 + $0x164] sm:$0xf]  ;;  %v6065_v40 = vld [vmem:[%s10250_s9 + $0x17c] sm:$0xf0] }
 0x2e7   :  { %4108 = vmatpush.bf16.msrb.mxu2 %v6008_v41  ;;  %4121 = vmatpush.bf16.msrb.mxu0 %v6232_v42  ;;  %v6829_v41 = vld [vmem:[%s10250_s9 + $0x324] sm:$0xf]  ;;  %v6289_v42 = vld [vmem:[%s10250_s9 + $0x33c] sm:$0xf0]  ;;  %v6068_v31 = vor.u32 %v6773_v39, %v6065_v40 }
 0x2e8   :  { %v6292_v30 = vor.u32 %v6829_v41, %v6289_v42  ;;  %v6801_v39 = vld [vmem:[%s10250_s9 + $0x244] sm:$0xf]  ;;  %v6177_v41 = vld [vmem:[%s10250_s9 + $0x25c] sm:$0xf0]  ;;  %v5959_v42 = vld [vmem:[%s10250_s9 + $0x88] sm:$0xf] }
 0x2e9   :  { %v5960_v53 = vor.u32 %v6749_v57, %v5959_v42 }
 0x2ea   :  { %4083 = vmatpush.bf16.msrb.mxu3 %v5976_v35  ;;  %4096 = vmatpush.bf16.msrb.mxu1 %v6200_v47  ;;  %v6766_v35 = vld [vmem:[%s10250_s9 + $0x12c] sm:$0xf]  ;;  %v6037_v47 = vld [vmem:[%s10250_s9 + $0x144] sm:$0xf0] }
 0x2eb   :  { %4109 = vmatpush.bf16.msrb.mxu2 %v5980_v52  ;;  %4122 = vmatpush.bf16.msrb.mxu0 %v6204_v38  ;;  %v6822_v52 = vld [vmem:[%s10250_s9 + $0x2ec] sm:$0xf]  ;;  %v6261_v38 = vld [vmem:[%s10250_s9 + $0x304] sm:$0xf0] }
 0x2ee   :  { %4084 = vmatpush.bf16.msrb.mxu3 %v5948_v61  ;;  %4097 = vmatpush.bf16.msrb.mxu1 %v6172_v62  ;;  %v6040_v61 = vor.u32 %v6766_v35, %v6037_v47  ;;  %v6264_v62 = vor.u32 %v6822_v52, %v6261_v38  ;;  %v6180_v47 = vor.u32 %v6801_v39, %v6177_v41  ;;  %v6794_v52 = vld [vmem:[%s10250_s9 + $0x20c] sm:$0xf] }
 0x2ef   :  { %4110 = vmatpush.bf16.msrb.mxu2 %v5952_v4  ;;  %4123 = vmatpush.bf16.msrb.mxu0 %v6176_v5  ;;  %v6009_v4 = vld [vmem:[%s10250_s9 + $0x10c] sm:$0xf0]  ;;  %v6815_v5 = vld [vmem:[%s10250_s9 + $0x2b4] sm:$0xf] }
 0x2f0   :  { %v6012_v59 = vor.u32 %v6759_v3, %v6009_v4  ;;  %v6236_v1 = vor.u32 %v6815_v5, %v6233_v48  ;;  %v6798_v3 = vld [vmem:[%s10250_s9 + $0x228] sm:$0xf0]  ;;  %v6731_v48 = vld [vmem:[%s10250_s9 + $0x14] sm:$0xf] }
 0x2f2   :  { %4085 = vmatpush.bf16.msrb.mxu3 %v5920_v45  ;;  %4098 = vmatpush.bf16.msrb.mxu1 %v6144_v11  ;;  %v2509_v45 = vperm.slane %v10088_v60, 0  ;;  %v2510_v11 = vperm.slane %v10088_v60, 1 }
 0x2f3   :  { %4111 = vmatpush.bf16.msrb.mxu2 %v5924_v13  ;;  %4124 = vmatpush.bf16.msrb.mxu0 %v6148_v14  ;;  %v5981_v13 = vld [vmem:[%s10250_s9 + $0xd4] sm:$0xf0]  ;;  %v6016_v14 = vor.u32 %v6763_v55, %v6015_v9  ;;  %v5897_v9 = vld [vmem:[%s10250_s9 + $0x2c] sm:$0xf0]  ;;  %v6787_v55 = vld [vmem:[%s10250_s9 + $0x1d4] sm:$0xf] }
 0x2f4   :  { %v5984_v15 = vor.u32 %v6752_v12, %v5981_v13  ;;  %v6791_v12 = vld [vmem:[%s10250_s9 + $0x1f0] sm:$0xf0]  ;;  %v2511_v13 = vperm.slane %v10088_v60, 2 }
 0x2f5   :  { %v3121_v37 = vpop.f32.mrf.mxu1 }
 0x2f6   :  { %4086 = vmatpush.bf16.msrb.mxu3 %v5892_v26  ;;  %4099 = vmatpush.bf16.msrb.mxu1 %v6116_v27  ;;  %v3147_v63 = vpop.f32.mrf.mxu0  ;;  %v6812_v26 = vld [vmem:[%s10250_s9 + $0x298] sm:$0xf0] }
 0x2f7   :  { %4112 = vmatpush.bf16.msrb.mxu2 %v5896_v32  ;;  %4125 = vmatpush.bf16.msrb.mxu0 %v6120_v33  ;;  %v6208_v32 = vor.u32 %v6808_v19, %v6205_v20 }
 0x2f9   :  { %4087 = vmatmul.bf16.vlgmr.msrb.gmra.mxu3 %v9241_v17  ;;  %4100 = vmatmul.bf16.vlgmr.msrb.gmra.mxu1 %v9243_v18 }
 0x2fa   :  { %4131 = vmatpush.bf16.msra.mxu3 %v6096_v34  ;;  %4144 = vmatpush.bf16.msra.mxu1 %v6320_v36  ;;  %v6745_v34 = vld [vmem:[%s10250_s9 + $0x84] sm:$0xf]  ;;  %v5953_v36 = vld [vmem:[%s10250_s9 + $0x9c] sm:$0xf0] }
 0x2fb   :  { %4157 = vmatpush.bf16.msra.mxu2 %v6100_v51  ;;  %4170 = vmatpush.bf16.msra.mxu0 %v6324_v25  ;;  %v3108_v7 = vpop.f32.mrf.mxu3  ;;  %v5988_v51 = vor.u32 %v6756_v23, %v5987_v6  ;;  %v6212_v25 = vor.u32 %v6812_v26, %v6211_v24  ;;  %v5956_v35 = vor.u32 %v6745_v34, %v5953_v36 }
 0x2fc   :  { %4113 = vmatmul.bf16.vlgmr.msrb.gmra.mxu2 %v9241_v17  ;;  %4126 = vmatmul.bf16.vlgmr.msrb.gmra.mxu0 %v9243_v18  ;;  %v3109_v21 = vadd.f32 %v3108_v7, %v2509_v45  ;;  %v3134_v22 = vpop.f32.mrf.mxu2  ;;  %v6121_v45 = vld [vmem:[%s10250_s9 + $0x1ec] sm:$0xf0] }
 0x2fd   :  { %v3135_v27 = vadd.f32 %v3134_v22, %v2510_v11  ;;  %v3123_v28 = vpop.f32.mrf.mxu1  ;;  %v5903_v11 = vld [vmem:[%s10250_s9 + $0x18] sm:$0xf]  ;;  %v6124_v7 = vor.u32 %v6787_v55, %v6121_v45 }
 0x2fe   :  { %4132 = vmatpush.bf16.msra.mxu3 %v6068_v31  ;;  %4145 = vmatpush.bf16.msra.mxu1 %v6292_v30  ;;  %v3122_v29 = vadd.f32 %v3121_v37, %v3109_v21  ;;  %v3149_v33 = vpop.f32.mrf.mxu0  ;;  %v5931_v37 = vld [vmem:[%s10250_s9 + $0x50] sm:$0xf] }
 0x2ff   :  { %4158 = vmatpush.bf16.msra.mxu2 %v6072_v49  ;;  %4171 = vmatpush.bf16.msra.mxu0 %v6296_v50  ;;  %v3148_v40 = vadd.f32 %v3147_v63, %v3135_v27  ;;  %v6738_v49 = vld [vmem:[%s10250_s9 + $0x4c] sm:$0xf]  ;;  %v5925_v50 = vld [vmem:[%s10250_s9 + $0x64] sm:$0xf0]  ;;  %v6155_v63 = vld [vmem:[%s10250_s9 + $0x210] sm:$0xf] }
 0x300   :  { %v4183_v43 = vmul.f32 0.01, %v3122_v29  ;;  %v5928_v5 = vor.u32 %v6738_v49, %v5925_v50  ;;  %v6156_v10 = vor.u32 %v6798_v3, %v6155_v63 }
 0x301   :  { %v4184_v31 = vmul.f32 0.01, %v3148_v40 }
 0x302   :  { %4133 = vmatpush.bf16.msra.mxu3 %v6040_v61  ;;  %4146 = vmatpush.bf16.msra.mxu1 %v6264_v62  ;;  %v4190_v30 = vmax.f32 %v3122_v29, %v4183_v43  ;;  %v6742_v61 = vld [vmem:[%s10250_s9 + $0x68] sm:$0xf0] }
 0x303   :  { %4159 = vmatpush.bf16.msra.mxu2 %v6044_v8  ;;  %4172 = vmatpush.bf16.msra.mxu0 %v6268_v2  ;;  %v4191_v38 = vmax.f32 %v3148_v40, %v4184_v31  ;;  %v3110_v56 = vpop.f32.mrf.mxu3  ;;  %v6152_v8 = vor.u32 %v6794_v52, %v6149_v58  ;;  %v5932_v0 = vor.u32 %v6742_v61, %v5931_v37 }
 0x304   :  { %4197 = vst [vmem:[#allocation2] sm:$0xff] %v4190_v30  ;;  %v3136_v62 = vpop.f32.mrf.mxu2 }
 0x305   :  { %4198 = vst [vmem:[#allocation2 + $0x8] sm:$0xff] %v4191_v38  ;;  %v3173_v4 = vpop.f32.mrf.mxu1 }
 0x306   :  { %4134 = vmatpush.bf16.msra.mxu3 %v6012_v59  ;;  %4147 = vmatpush.bf16.msra.mxu1 %v6236_v1  ;;  %v3199_v2 = vpop.f32.mrf.mxu0  ;;  %v6735_v59 = vld [vmem:[%s10250_s9 + $0x30] sm:$0xf0]  ;;  %v6127_v1 = vld [vmem:[%s10250_s9 + $0x1d8] sm:$0xf] }
 0x307   :  { %4160 = vmatpush.bf16.msra.mxu2 %v6016_v14  ;;  %4173 = vmatpush.bf16.msra.mxu0 %v6240_v16  ;;  %v2512_v14 = vperm.slane %v10088_v60, 3  ;;  %v5900_v16 = vor.u32 %v6731_v48, %v5897_v9  ;;  %v5904_v19 = vor.u32 %v6735_v59, %v5903_v11  ;;  %v6128_v20 = vor.u32 %v6791_v12, %v6127_v1 }
 0x30a   :  { %4135 = vmatpush.bf16.msra.mxu3 %v5984_v15  ;;  %4148 = vmatpush.bf16.msra.mxu1 %v6208_v32 }
 0x30b   :  { %4161 = vmatpush.bf16.msra.mxu2 %v5988_v51  ;;  %4174 = vmatpush.bf16.msra.mxu0 %v6212_v25  ;;  %v3160_v6 = vpop.f32.mrf.mxu3  ;;  %v2513_v51 = vperm.slane %v10088_v60, 4  ;;  %v2514_v25 = vperm.slane %v10088_v60, 5 }
 0x30c   :  { %v3161_v21 = vadd.f32 %v3160_v6, %v2511_v13  ;;  %v3186_v22 = vpop.f32.mrf.mxu2 }
 0x30d   :  { %v3187_v23 = vadd.f32 %v3186_v22, %v2512_v14  ;;  %v3175_v24 = vpop.f32.mrf.mxu1 }
 0x30e   :  { %4136 = vmatpush.bf16.msra.mxu3 %v5956_v35  ;;  %4149 = vmatpush.bf16.msra.mxu1 %v6180_v47  ;;  %v3174_v26 = vadd.f32 %v3173_v4, %v3161_v21  ;;  %v3201_v27 = vpop.f32.mrf.mxu0 }
 0x30f   :  { %4162 = vmatpush.bf16.msra.mxu2 %v5960_v53  ;;  %4175 = vmatpush.bf16.msra.mxu0 %v6184_v54  ;;  %v3200_v28 = vadd.f32 %v3199_v2, %v3187_v23  ;;  %v10223_v53 = vld [vmem:[%s10251_s10] sm:$0x7f]  ;;  %v2515_v54 = vperm.slane %v10088_v60, 6  ;;  %s6896_s10 = smov [#allocation4]  }
 0x310   :  { %v4185_v29 = vmul.f32 0.01, %v3174_v26  ;;  %v3411_v56 = vperm.slane %v10223_v53, 0  ;;  %v3412_v45 = vperm.slane %v10223_v53, 1  ;;  %v3413_v11 = vperm.slane %v10223_v53, 2  ;;  %s4241_s11 = sshll.u32 %s6896_s10, 4  ;;  %s4242_s11 = int_to_ptr.vmem [resolvable:$true] %s4241_s11 }
 0x311   :  { %v4186_v15 = vmul.f32 0.01, %v3200_v28 }
 0x312   :  { %4137 = vmatpush.bf16.msra.mxu3 %v5928_v5  ;;  %4150 = vmatpush.bf16.msra.mxu1 %v6152_v8  ;;  %v4192_v32 = vmax.f32 %v3174_v26, %v4185_v29  ;;  %v3415_v29 = vperm.slane %v10223_v53, 4 }
 0x313   :  { %4163 = vmatpush.bf16.msra.mxu2 %v5932_v0  ;;  %4176 = vmatpush.bf16.msra.mxu0 %v6156_v10  ;;  %v4193_v33 = vmax.f32 %v3200_v28, %v4186_v15  ;;  %v3162_v34 = vpop.f32.mrf.mxu3  ;;  %v3414_v28 = vperm.slane %v10223_v53, 3 }
 0x314   :  { %4199 = vst [vmem:[#allocation2 + $0x10] sm:$0xff] %v4192_v32  ;;  %v3188_v36 = vpop.f32.mrf.mxu2 }
 0x315   :  { %4200 = vst [vmem:[#allocation2 + $0x18] sm:$0xff] %v4193_v33 }
 0x316   :  { %4138 = vmatpush.bf16.msra.mxu3 %v5900_v16  ;;  %4151 = vmatpush.bf16.msra.mxu1 %v6124_v7  ;;  %v3225_v39 = vpop.f32.mrf.mxu1 }
 0x317   :  { %4164 = vmatpush.bf16.msra.mxu2 %v5904_v19  ;;  %4177 = vmatpush.bf16.msra.mxu0 %v6128_v20 }
 0x319   :  { %4139 = vmatmul.bf16.vlgmr.msra.gmra.mxu3 %v9241_v17  ;;  %4152 = vmatmul.bf16.vlgmr.msra.gmra.mxu1 %v9243_v18  ;;  %v3251_v40 = vpop.f32.mrf.mxu0 }
 0x31a   :  { %4165 = vmatmul.bf16.vlgmr.msra.gmra.mxu2 %v9241_v17  ;;  %4178 = vmatmul.bf16.vlgmr.msra.gmra.mxu0 %v9243_v18 }
 0x31c   :  { %v3212_v41 = vpop.f32.mrf.mxu3 }
 0x31d   :  { %v3213_v42 = vadd.f32 %v3212_v41, %v2513_v51 }
 0x31e   :  { %v3227_v44 = vpop.f32.mrf.mxu1 }
 0x31f   :  { %v3238_v57 = vpop.f32.mrf.mxu2  ;;  %v3226_v46 = vadd.f32 %v3225_v39, %v3213_v42 }
 0x320   :  { %v3239_v43 = vadd.f32 %v3238_v57, %v2514_v25 }
 0x321   :  { %v3253_v17 = vpop.f32.mrf.mxu0  ;;  %v4187_v18 = vmul.f32 0.01, %v3226_v46 }
 0x322   :  { %v3252_v31 = vadd.f32 %v3251_v40, %v3239_v43 }
 0x323   :  { %v4194_v35 = vmax.f32 %v3226_v46, %v4187_v18  ;;  %v3417_v18 = vperm.slane %v10223_v53, 6 }
 0x324   :  { %v4188_v30 = vmul.f32 0.01, %v3252_v31  ;;  %v3214_v49 = vpop.f32.mrf.mxu3 }
 0x325   :  { %4201 = vst [vmem:[#allocation2 + $0x20] sm:$0xff] %v4194_v35 }
 0x326   :  { %v4195_v47 = vmax.f32 %v3252_v31, %v4188_v30  ;;  %v3416_v31 = vperm.slane %v10223_v53, 5 }
 0x327   :  { %v3240_v50 = vpop.f32.mrf.mxu2 }
 0x328   :  { %4202 = vst [vmem:[#allocation2 + $0x28] sm:$0xff] %v4195_v47 }
 0x336   :  { %v3277_v52 = vpop.f32.mrf.mxu1 }
 0x339   :  { %v4023_v38 = vpop.f32.mrf.mxu0 }
 0x33c   :  { %v3264_v58 = vpop.f32.mrf.mxu3 }
 0x33d   :  { %v3265_v37 = vadd.f32 %v3264_v58, %v2515_v54 }
 0x33e   :  { %v3279_v63 = vpop.f32.mrf.mxu1 }
 0x33f   :  { %v4010_v61 = vpop.f32.mrf.mxu2  ;;  %v3278_v3 = vadd.f32 %v3277_v52, %v3265_v37 }
 0x340   :  { %v4011_v62 = vadd.f32 %v4010_v61, %v3411_v56 }
 0x341   :  { %v4025_v4 = vpop.f32.mrf.mxu0  ;;  %v4189_v8 = vmul.f32 0.01, %v3278_v3 }
 0x342   :  { %v4024_v5 = vadd.f32 %v4023_v38, %v4011_v62 }
 0x343   :  { %v4196_v48 = vmax.f32 %v3278_v3, %v4189_v8 }
 0x344   :  { %v4204_v2 = vmul.f32 0.01, %v4024_v5  ;;  %v3266_v9 = vpop.f32.mrf.mxu3 }
 0x345   :  { %4203 = vst.msk [vmem:[#allocation2 + $0x30] sm:$0xff] %vm1243_vm0, %v4196_v48 }
 0x346   :  { %v4211_v60 = vmax.f32 %v4024_v5, %v4204_v2  ;;  %4235 = dma.vmem_to_hbm [thread:$0]  %s4231_s28, 896, %s4233_s6, [#allocation3]  }
 0x347   :  { %v4012_v55 = vpop.f32.mrf.mxu2 }
 0x348   :  { %4218 = vst [vmem:[#allocation4] sm:$0xff] %v4211_v60 }
 0x356   :  { %v4049_v0 = vpop.f32.mrf.mxu1 }
 0x359   :  { %v4075_v10 = vpop.f32.mrf.mxu0 }
 0x35c   :  { %v4036_v59 = vpop.f32.mrf.mxu3 }
 0x35d   :  { %v4037_v1 = vadd.f32 %v4036_v59, %v3412_v45 }
 0x35e   :  { %v4051_v14 = vpop.f32.mrf.mxu1 }
 0x35f   :  { %v4062_v12 = vpop.f32.mrf.mxu2  ;;  %v4050_v16 = vadd.f32 %v4049_v0, %v4037_v1 }
 0x360   :  { %v4063_v13 = vadd.f32 %v4062_v12, %v3413_v11 }
 0x361   :  { %v4077_v7 = vpop.f32.mrf.mxu0  ;;  %v4205_v20 = vmul.f32 0.01, %v4050_v16 }
 0x362   :  { %v4076_v19 = vadd.f32 %v4075_v10, %v4063_v13 }
 0x363   :  { %v4212_v21 = vmax.f32 %v4050_v16, %v4205_v20 }
 0x364   :  { %v4206_v6 = vmul.f32 0.01, %v4076_v19  ;;  %v4038_v23 = vpop.f32.mrf.mxu3 }
 0x365   :  { %4219 = vst [vmem:[#allocation4 + $0x8] sm:$0xff] %v4212_v21 }
 0x366   :  { %v4213_v22 = vmax.f32 %v4076_v19, %v4206_v6 }
 0x367   :  { %v4064_v24 = vpop.f32.mrf.mxu2 }
 0x368   :  { %4220 = vst [vmem:[#allocation4 + $0x10] sm:$0xff] %v4213_v22 }
 0x376   :  { %v4101_v26 = vpop.f32.mrf.mxu1 }
 0x379   :  { %v4127_v27 = vpop.f32.mrf.mxu0 }
 0x37c   :  { %v4088_v15 = vpop.f32.mrf.mxu3 }
 0x37d   :  { %v4089_v32 = vadd.f32 %v4088_v15, %v3414_v28 }
 0x37e   :  { %v4103_v36 = vpop.f32.mrf.mxu1 }
 0x37f   :  { %v4114_v33 = vpop.f32.mrf.mxu2  ;;  %v4102_v39 = vadd.f32 %v4101_v26, %v4089_v32 }
 0x380   :  { %v4115_v34 = vadd.f32 %v4114_v33, %v3415_v29 }
 0x381   :  { %v4129_v40 = vpop.f32.mrf.mxu0  ;;  %v4207_v25 = vmul.f32 0.01, %v4102_v39 }
 0x382   :  { %v4128_v51 = vadd.f32 %v4127_v27, %v4115_v34 }
 0x383   :  { %v4214_v42 = vmax.f32 %v4102_v39, %v4207_v25 }
 0x384   :  { %v4208_v41 = vmul.f32 0.01, %v4128_v51  ;;  %v4090_v43 = vpop.f32.mrf.mxu3 }
 0x385   :  { %4221 = vst [vmem:[#allocation4 + $0x18] sm:$0xff] %v4214_v42 }
 0x386   :  { %v4215_v57 = vmax.f32 %v4128_v51, %v4208_v41 }
 0x387   :  { %v4116_v44 = vpop.f32.mrf.mxu2 }
 0x388   :  { %4222 = vst [vmem:[#allocation4 + $0x20] sm:$0xff] %v4215_v57 }
 0x396   :  { %v4153_v46 = vpop.f32.mrf.mxu1 }
 0x397   :  { %v4179_v17 = vpop.f32.mrf.mxu0 }
 0x39c   :  { %v4140_v30 = vpop.f32.mrf.mxu3 }
 0x39d   :  { %v4141_v35 = vadd.f32 %v4140_v30, %v3416_v31  ;;  %v4166_v47 = vpop.f32.mrf.mxu2 }
 0x39e   :  { %v4167_v49 = vadd.f32 %v4166_v47, %v3417_v18  ;;  %v4155_v50 = vpop.f32.mrf.mxu1 }
 0x39f   :  { %v4154_v52 = vadd.f32 %v4153_v46, %v4141_v35  ;;  %v4181_v38 = vpop.f32.mrf.mxu0 }
 0x3a0   :  { %v4180_v54 = vadd.f32 %v4179_v17, %v4167_v49 }
 0x3a1   :  { %v4209_v56 = vmul.f32 0.01, %v4154_v52 }
 0x3a2   :  { %v4210_v58 = vmul.f32 0.01, %v4180_v54 }
 0x3a3   :  { %v4216_v37 = vmax.f32 %v4154_v52, %v4209_v56 }
 0x3a4   :  { %v4217_v61 = vmax.f32 %v4180_v54, %v4210_v58  ;;  %v4142_v62 = vpop.f32.mrf.mxu3 }
 0x3a5   :  { %4223 = vst [vmem:[#allocation4 + $0x28] sm:$0xff] %v4216_v37  ;;  %v4168_v53 = vpop.f32.mrf.mxu2 }
 0x3a6   :  { %4224 = vst.msk [vmem:[#allocation4 + $0x30] sm:$0xff] %vm1243_vm0, %v4217_v61 }
 0x3a7   :  { %4246 = dma.vmem_to_hbm [thread:$0]  %s4242_s11, 896, %s4244_s7, [#allocation5]  }
 0x3a8   :  { %6891 = dma.done.wait [#allocation3], 896  }
 0x3a9   :  { %6892 = vsyncadd [#allocation3], 4294966400 }
 0x3aa   :  { %6893 = dma.done.wait [#allocation5], 896  }
 0x3ab   :  { %6894 = vsyncadd [#allocation5], 4294966400 }
 0x3ac   :  { %4255 = vsyncpa [#allocation3], 1 }
 0x3ad   :  { %4256 = vsyncpa [#allocation5], 1 }

// kernel: tpu_custom_call.1
= control target key start
LH: loop header
LB: loop body
LE: loop exit
PB: predicated region body
PF: predicated region fallthrough
CT: control target
= control target key end

     0   :  { %18 = vsyncpa [#allocation3], 0  ;;  %vm1243_vm0 = vcmask 130048   ;;  %s10241_s0 = inlined_call_operand.vmem [shape: f32[8,784], index: 0, kind: input, shape index: {}]   ;;  %s10242_s1 = inlined_call_operand.vmem [shape: bf16[784,512], index: 1, kind: input, shape index: {}]   ;;  %s10243_s2 = inlined_call_operand.vmem [shape: f32[1,512], index: 2, kind: input, shape index: {}]   ;;  %s10244_s3 = inlined_call_operand.vmem [shape: bf16[512,256], index: 3, kind: input, shape index: {}]   ;;  %s10245_s4 = inlined_call_operand.vmem [shape: f32[1,256], index: 4, kind: input, shape index: {}]   ;;  %s10246_s5 = inlined_call_operand.vmem [shape: bf16[256,256], index: 5, kind: input, shape index: {}]   ;;  %s10247_s6 = inlined_call_operand.vmem [shape: f32[1,256], index: 6, kind: input, shape index: {}]   ;;  %s10248_s7 = inlined_call_operand.vmem [shape: bf16[256,784], index: 7, kind: input, shape index: {}]   ;;  %s10249_s8 = inlined_call_operand.vmem [shape: f32[1,784], index: 8, kind: input, shape index: {}]   ;;  %s10250_s9 = inlined_call_operand.vmem [shape: bf16[256,784], index: 9, kind: input, shape index: {}]   ;;  %s10251_s10 = inlined_call_operand.vmem [shape: f32[1,784], index: 10, kind: input, shape index: {}]   ;;  %s10252_s11 = inlined_call_operand.hbm [shape: f32[8,784], index: 11, kind: output, shape index: {0}]   ;;  %s10253_s12 = inlined_call_operand.hbm [shape: f32[8,784], index: 12, kind: output, shape index: {1}]  }
   0x1   :  { %v4371_v0 = vld [vmem:[%s10242_s1 + $0xe0] sm:$0xf]  ;;  %v6355_v1 = vld [vmem:[%s10242_s1 + $0xec] sm:$0xf0] }
   0x2   :  { %v4499_v2 = vld [vmem:[%s10242_s1 + $0x1e0] sm:$0xf]  ;;  %v4372_v3 = vor.u32 %v6355_v1, %v4371_v0  ;;  %v6387_v4 = vld [vmem:[%s10242_s1 + $0x1ec] sm:$0xf0] }
   0x3   :  { %v4627_v5 = vld [vmem:[%s10242_s1 + $0x2e0] sm:$0xf]  ;;  %v6419_v6 = vld [vmem:[%s10242_s1 + $0x2ec] sm:$0xf0]  ;;  %v4500_v7 = vor.u32 %v6387_v4, %v4499_v2 }
   0x4   :  { %v4628_v8 = vor.u32 %v6419_v6, %v4627_v5  ;;  %v4755_v9 = vld [vmem:[%s10242_s1 + $0x3e0] sm:$0xf]  ;;  %v6451_v10 = vld [vmem:[%s10242_s1 + $0x3ec] sm:$0xf0]  ;;  %1247 = vmatpush.bf16.msra.mxu0 %v4372_v3 }
   0x5   :  { %v4355_v11 = vld [vmem:[%s10242_s1 + $0xc0] sm:$0xf]  ;;  %v4756_v12 = vor.u32 %v6451_v10, %v4755_v9  ;;  %v6351_v13 = vld [vmem:[%s10242_s1 + $0xcc] sm:$0xf0]  ;;  %1260 = vmatpush.bf16.msra.mxu1 %v4500_v7 }
   0x6   :  { %v4483_v14 = vld [vmem:[%s10242_s1 + $0x1c0] sm:$0xf]  ;;  %v6383_v15 = vld [vmem:[%s10242_s1 + $0x1cc] sm:$0xf0]  ;;  %1273 = vmatpush.bf16.msra.mxu2 %v4628_v8  ;;  %v4356_v16 = vor.u32 %v6351_v13, %v4355_v11 }
   0x7   :  { %v4484_v17 = vor.u32 %v6383_v15, %v4483_v14  ;;  %v4611_v18 = vld [vmem:[%s10242_s1 + $0x2c0] sm:$0xf]  ;;  %v6415_v19 = vld [vmem:[%s10242_s1 + $0x2cc] sm:$0xf0]  ;;  %1286 = vmatpush.bf16.msra.mxu3 %v4756_v12 }
   0x8   :  { %v4739_v20 = vld [vmem:[%s10242_s1 + $0x3c0] sm:$0xf]  ;;  %v4612_v21 = vor.u32 %v6415_v19, %v4611_v18  ;;  %v6447_v22 = vld [vmem:[%s10242_s1 + $0x3cc] sm:$0xf0]  ;;  %1248 = vmatpush.bf16.msra.mxu0 %v4356_v16 }
   0x9   :  { %v4339_v23 = vld [vmem:[%s10242_s1 + $0xa0] sm:$0xf]  ;;  %v6347_v24 = vld [vmem:[%s10242_s1 + $0xac] sm:$0xf0]  ;;  %v4740_v25 = vor.u32 %v6447_v22, %v4739_v20  ;;  %1261 = vmatpush.bf16.msra.mxu1 %v4484_v17 }
   0xa   :  { %v4467_v26 = vld [vmem:[%s10242_s1 + $0x1a0] sm:$0xf]  ;;  %v6379_v27 = vld [vmem:[%s10242_s1 + $0x1ac] sm:$0xf0]  ;;  %v4340_v29 = vor.u32 %v6347_v24, %v4339_v23  ;;  %1274 = vmatpush.bf16.msra.mxu2 %v4612_v21 }
   0xb   :  { %v4595_v28 = vld [vmem:[%s10242_s1 + $0x2a0] sm:$0xf]  ;;  %v6411_v30 = vld [vmem:[%s10242_s1 + $0x2ac] sm:$0xf0]  ;;  %v4468_v33 = vor.u32 %v6379_v27, %v4467_v26  ;;  %1287 = vmatpush.bf16.msra.mxu3 %v4740_v25 }
   0xc   :  { %v4723_v31 = vld [vmem:[%s10242_s1 + $0x3a0] sm:$0xf]  ;;  %v6443_v32 = vld [vmem:[%s10242_s1 + $0x3ac] sm:$0xf0]  ;;  %v4596_v34 = vor.u32 %v6411_v30, %v4595_v28  ;;  %1249 = vmatpush.bf16.msra.mxu0 %v4340_v29 }
   0xd   :  { %v4323_v35 = vld [vmem:[%s10242_s1 + $0x80] sm:$0xf]  ;;  %v6343_v36 = vld [vmem:[%s10242_s1 + $0x8c] sm:$0xf0]  ;;  %v4724_v38 = vor.u32 %v6443_v32, %v4723_v31  ;;  %1262 = vmatpush.bf16.msra.mxu1 %v4468_v33  ;;  %v6353_v33 = vld [vmem:[%s10242_s1 + $0xe4] sm:$0xf] }
   0xe   :  { %v4451_v37 = vld [vmem:[%s10242_s1 + $0x180] sm:$0xf]  ;;  %v6375_v39 = vld [vmem:[%s10242_s1 + $0x18c] sm:$0xf0]  ;;  %v4324_v44 = vor.u32 %v6343_v36, %v4323_v35  ;;  %1275 = vmatpush.bf16.msra.mxu2 %v4596_v34  ;;  %v4373_v34 = vld [vmem:[%s10242_s1 + $0xf0] sm:$0xf0] }
   0xf   :  { %v4579_v40 = vld [vmem:[%s10242_s1 + $0x280] sm:$0xf]  ;;  %v6407_v41 = vld [vmem:[%s10242_s1 + $0x28c] sm:$0xf0]  ;;  %v4452_v45 = vor.u32 %v6375_v39, %v4451_v37  ;;  %1288 = vmatpush.bf16.msra.mxu3 %v4724_v38 }
  0x10   :  { %v4707_v42 = vld [vmem:[%s10242_s1 + $0x380] sm:$0xf]  ;;  %v6439_v43 = vld [vmem:[%s10242_s1 + $0x38c] sm:$0xf0]  ;;  %v4580_v46 = vor.u32 %v6407_v41, %v4579_v40  ;;  %1250 = vmatpush.bf16.msra.mxu0 %v4324_v44  ;;  %v4501_v44 = vld [vmem:[%s10242_s1 + $0x1f0] sm:$0xf0] }
  0x11   :  { %v4307_v47 = vld [vmem:[%s10242_s1 + $0x60] sm:$0xf]  ;;  %v6339_v48 = vld [vmem:[%s10242_s1 + $0x6c] sm:$0xf0]  ;;  %v4708_v50 = vor.u32 %v6439_v43, %v4707_v42  ;;  %1263 = vmatpush.bf16.msra.mxu1 %v4452_v45  ;;  %v6385_v43 = vld [vmem:[%s10242_s1 + $0x1e4] sm:$0xf] }
  0x12   :  { %v4435_v49 = vld [vmem:[%s10242_s1 + $0x160] sm:$0xf]  ;;  %v6371_v51 = vld [vmem:[%s10242_s1 + $0x16c] sm:$0xf0]  ;;  %v4308_v56 = vor.u32 %v6339_v48, %v4307_v47  ;;  %1276 = vmatpush.bf16.msra.mxu2 %v4580_v46  ;;  %v46_v45 = vld [vmem:[%s10241_s0 + $0x18] sm:$0xff]  ;;  %v4376_v47 = vor.u32 %v6353_v33, %v4373_v34 }
  0x13   :  { %v4563_v52 = vld [vmem:[%s10242_s1 + $0x260] sm:$0xf]  ;;  %v6403_v53 = vld [vmem:[%s10242_s1 + $0x26c] sm:$0xf0]  ;;  %v4436_v57 = vor.u32 %v6371_v51, %v4435_v49  ;;  %1289 = vmatpush.bf16.msra.mxu3 %v4708_v50 }
  0x14   :  { %v4691_v54 = vld [vmem:[%s10242_s1 + $0x360] sm:$0xf]  ;;  %v6435_v55 = vld [vmem:[%s10242_s1 + $0x36c] sm:$0xf0]  ;;  %v4564_v58 = vor.u32 %v6403_v53, %v4563_v52  ;;  %1251 = vmatpush.bf16.msra.mxu0 %v4308_v56  ;;  %v6349_v53 = vld [vmem:[%s10242_s1 + $0xc4] sm:$0xf] }
  0x15   :  { %v4291_v59 = vld [vmem:[%s10242_s1 + $0x40] sm:$0xf]  ;;  %v6335_v60 = vld [vmem:[%s10242_s1 + $0x4c] sm:$0xf0]  ;;  %v4692_v62 = vor.u32 %v6435_v55, %v4691_v54  ;;  %1264 = vmatpush.bf16.msra.mxu1 %v4436_v57  ;;  %v4357_v54 = vld [vmem:[%s10242_s1 + $0xd0] sm:$0xf0]  ;;  %v7215_v57 = vpack.c.bf16 %v46_v45, %v46_v45 }
  0x16   :  { %v4419_v61 = vld [vmem:[%s10242_s1 + $0x140] sm:$0xf]  ;;  %v6367_v63 = vld [vmem:[%s10242_s1 + $0x14c] sm:$0xf0]  ;;  %v4292_v4 = vor.u32 %v6335_v60, %v4291_v59  ;;  %1277 = vmatpush.bf16.msra.mxu2 %v4564_v58  ;;  %v44_v58 = vld [vmem:[%s10241_s0 + $0x8] sm:$0xff]  ;;  %v4504_v59 = vor.u32 %v6385_v43, %v4501_v44 }
  0x17   :  { %v4547_v0 = vld [vmem:[%s10242_s1 + $0x240] sm:$0xf]  ;;  %v6399_v1 = vld [vmem:[%s10242_s1 + $0x24c] sm:$0xf0]  ;;  %v4420_v5 = vor.u32 %v6367_v63, %v4419_v61  ;;  %1290 = vmatpush.bf16.msra.mxu3 %v4692_v62  ;;  %v6381_v61 = vld [vmem:[%s10242_s1 + $0x1c4] sm:$0xf] }
  0x18   :  { %v4675_v2 = vld [vmem:[%s10242_s1 + $0x340] sm:$0xf]  ;;  %v6431_v3 = vld [vmem:[%s10242_s1 + $0x34c] sm:$0xf0]  ;;  %v4548_v6 = vor.u32 %v6399_v1, %v4547_v0  ;;  %1252 = vmatpush.bf16.msra.mxu0 %v4292_v4  ;;  %v4485_v62 = vld [vmem:[%s10242_s1 + $0x1d0] sm:$0xf0]  ;;  %v4360_v0 = vor.u32 %v6349_v53, %v4357_v54 }
  0x19   :  { %v4275_v7 = vld [vmem:[%s10242_s1 + $0x20] sm:$0xf]  ;;  %v6331_v8 = vld [vmem:[%s10242_s1 + $0x2c] sm:$0xf0]  ;;  %v4676_v10 = vor.u32 %v6431_v3, %v4675_v2  ;;  %1265 = vmatpush.bf16.msra.mxu1 %v4420_v5  ;;  %v6345_v5 = vld [vmem:[%s10242_s1 + $0xa4] sm:$0xf] }
  0x1a   :  { %v4403_v9 = vld [vmem:[%s10242_s1 + $0x120] sm:$0xf]  ;;  %v6363_v11 = vld [vmem:[%s10242_s1 + $0x12c] sm:$0xf0]  ;;  %v4276_v16 = vor.u32 %v6331_v8, %v4275_v7  ;;  %1278 = vmatpush.bf16.msra.mxu2 %v4548_v6  ;;  %v4341_v6 = vld [vmem:[%s10242_s1 + $0xb0] sm:$0xf0]  ;;  %v7246_v7 = vpack.c.bf16 %v44_v58, %v44_v58  ;;  %v4488_v8 = vor.u32 %v6381_v61, %v4485_v62 }
  0x1b   :  { %v4531_v12 = vld [vmem:[%s10242_s1 + $0x220] sm:$0xf]  ;;  %v6395_v13 = vld [vmem:[%s10242_s1 + $0x22c] sm:$0xf0]  ;;  %v4404_v20 = vor.u32 %v6363_v11, %v4403_v9  ;;  %1291 = vmatpush.bf16.msra.mxu3 %v4676_v10  ;;  %v6377_v10 = vld [vmem:[%s10242_s1 + $0x1a4] sm:$0xf] }
  0x1c   :  { %v4659_v14 = vld [vmem:[%s10242_s1 + $0x320] sm:$0xf]  ;;  %v6427_v15 = vld [vmem:[%s10242_s1 + $0x32c] sm:$0xf0]  ;;  %v4532_v21 = vor.u32 %v6395_v13, %v4531_v12  ;;  %1253 = vmatpush.bf16.msra.mxu0 %v4276_v16  ;;  %v4469_v11 = vld [vmem:[%s10242_s1 + $0x1b0] sm:$0xf0]  ;;  %v4344_v13 = vor.u32 %v6345_v5, %v4341_v6 }
  0x1d   :  { %v4259_v17 = vld [vmem:[%s10242_s1] sm:$0xf]  ;;  %v6327_v18 = vld [vmem:[%s10242_s1 + $0xc] sm:$0xf0]  ;;  %v4660_v25 = vor.u32 %v6427_v15, %v4659_v14  ;;  %1266 = vmatpush.bf16.msra.mxu1 %v4404_v20  ;;  %v4472_v20 = vor.u32 %v6377_v10, %v4469_v11  ;;  %v6333_v43 = vld [vmem:[%s10242_s1 + $0x44] sm:$0xf] }
  0x1e   :  { %v4387_v19 = vld [vmem:[%s10242_s1 + $0x100] sm:$0xf]  ;;  %v6359_v22 = vld [vmem:[%s10242_s1 + $0x10c] sm:$0xf0]  ;;  %v4260_v32 = vor.u32 %v6327_v18, %v4259_v17  ;;  %1279 = vmatpush.bf16.msra.mxu2 %v4532_v21  ;;  %v6341_v18 = vld [vmem:[%s10242_s1 + $0x84] sm:$0xf] }
  0x1f   :  { %v4515_v23 = vld [vmem:[%s10242_s1 + $0x200] sm:$0xf]  ;;  %v6391_v24 = vld [vmem:[%s10242_s1 + $0x20c] sm:$0xf0]  ;;  %v4388_v36 = vor.u32 %v6359_v22, %v4387_v19  ;;  %1292 = vmatpush.bf16.msra.mxu3 %v4660_v25  ;;  %v4325_v19 = vld [vmem:[%s10242_s1 + $0x90] sm:$0xf0] }
  0x20   :  { %v4643_v26 = vld [vmem:[%s10242_s1 + $0x300] sm:$0xf]  ;;  %v6423_v27 = vld [vmem:[%s10242_s1 + $0x30c] sm:$0xf0]  ;;  %v4516_v37 = vor.u32 %v6391_v24, %v4515_v23  ;;  %1254 = vmatpush.bf16.msra.mxu0 %v4260_v32  ;;  %v6373_v22 = vld [vmem:[%s10242_s1 + $0x184] sm:$0xf]  ;;  %v4328_v25 = vor.u32 %v6341_v18, %v4325_v19 }
  0x21   :  { %v4883_v28 = vld [vmem:[%s10242_s1 + $0x4e0] sm:$0xf]  ;;  %v6483_v29 = vld [vmem:[%s10242_s1 + $0x4ec] sm:$0xf0]  ;;  %v4644_v41 = vor.u32 %v6423_v27, %v4643_v26  ;;  %1267 = vmatpush.bf16.msra.mxu1 %v4388_v36  ;;  %v4453_v23 = vld [vmem:[%s10242_s1 + $0x190] sm:$0xf0] }
  0x22   :  { %v5011_v30 = vld [vmem:[%s10242_s1 + $0x5e0] sm:$0xf]  ;;  %v6515_v31 = vld [vmem:[%s10242_s1 + $0x5ec] sm:$0xf0]  ;;  %v4884_v42 = vor.u32 %v6483_v29, %v4883_v28  ;;  %1280 = vmatpush.bf16.msra.mxu2 %v4516_v37  ;;  %v4456_v33 = vor.u32 %v6373_v22, %v4453_v23  ;;  %v4437_v36 = vld [vmem:[%s10242_s1 + $0x170] sm:$0xf0] }
  0x23   :  { %v45_v35 = vld [vmem:[%s10241_s0 + $0x10] sm:$0xff]  ;;  %v5027_v38 = vld [vmem:[%s10242_s1 + $0x600] sm:$0xf]  ;;  %v5012_v46 = vor.u32 %v6515_v31, %v5011_v30  ;;  %1293 = vmatpush.bf16.msra.mxu3 %v4644_v41  ;;  %v6337_v30 = vld [vmem:[%s10242_s1 + $0x64] sm:$0xf] }
  0x24   :  { %v6519_v39 = vld [vmem:[%s10242_s1 + $0x60c] sm:$0xf0]  ;;  %v43_v40 = vld [vmem:[%s10241_s0] sm:$0xff]  ;;  %v7202_v51 = vpack.c.bf16 %v45_v35, %v45_v35  ;;  %1299 = vmatpush.bf16.msrb.mxu0 %v4884_v42  ;;  %1268 = vmatmul.bf16.vlgmr.msra.gmra.mxu1 %v7246_v7  ;;  %v4309_v31 = vld [vmem:[%s10242_s1 + $0x70] sm:$0xf0] }
  0x25   :  { %v4867_v48 = vld [vmem:[%s10242_s1 + $0x4c0] sm:$0xf]  ;;  %v6479_v49 = vld [vmem:[%s10242_s1 + $0x4cc] sm:$0xf0]  ;;  %v7213_v55 = vpack.c.bf16 %v43_v40, %v43_v40  ;;  %v5028_v56 = vor.u32 %v6519_v39, %v5027_v38  ;;  %1312 = vmatpush.bf16.msrb.mxu1 %v5012_v46  ;;  %v6369_v35 = vld [vmem:[%s10242_s1 + $0x164] sm:$0xf]  ;;  %v4312_v38 = vor.u32 %v6337_v30, %v4309_v31 }
  0x26   :  { %v4995_v50 = vld [vmem:[%s10242_s1 + $0x5c0] sm:$0xf]  ;;  %v6511_v52 = vld [vmem:[%s10242_s1 + $0x5cc] sm:$0xf0]  ;;  %v4868_v60 = vor.u32 %v6479_v49, %v4867_v48  ;;  %1281 = vmatmul.bf16.vlgmr.msra.gmra.mxu2 %v7202_v51  ;;  %1294 = vmatmul.bf16.vlgmr.msra.gmra.mxu3 %v7215_v57  ;;  %v4293_v44 = vld [vmem:[%s10242_s1 + $0x50] sm:$0xf0]  ;;  %v4440_v46 = vor.u32 %v6369_v35, %v4437_v36 }
  0x27   :  { %1338 = vmatpush.bf16.msrb.mxu3 %v4376_v47  ;;  %v4996_v63 = vor.u32 %v6511_v52, %v4995_v50  ;;  %v4851_v1 = vld [vmem:[%s10242_s1 + $0x4a0] sm:$0xf]  ;;  %v6475_v2 = vld [vmem:[%s10242_s1 + $0x4ac] sm:$0xf0]  ;;  %1255 = vmatmul.bf16.vlgmr.msra.gmra.mxu0 %v7213_v55  ;;  %v6365_v48 = vld [vmem:[%s10242_s1 + $0x144] sm:$0xf]  ;;  %v4296_v52 = vor.u32 %v6333_v43, %v4293_v44 }
  0x28   :  { %v4979_v3 = vld [vmem:[%s10242_s1 + $0x5a0] sm:$0xf]  ;;  %v6507_v4 = vld [vmem:[%s10242_s1 + $0x5ac] sm:$0xf0]  ;;  %1332 = vmatpush.bf16.msrb.mxu2 %v5028_v56  ;;  %1300 = vmatpush.bf16.msrb.mxu0 %v4868_v60  ;;  %v4852_v9 = vor.u32 %v6475_v2, %v4851_v1  ;;  %v4421_v49 = vld [vmem:[%s10242_s1 + $0x150] sm:$0xf0] }
  0x29   :  { %1313 = vmatpush.bf16.msrb.mxu1 %v4996_v63  ;;  %v4980_v12 = vor.u32 %v6507_v4, %v4979_v3  ;;  %v4835_v14 = vld [vmem:[%s10242_s1 + $0x480] sm:$0xf]  ;;  %v6471_v15 = vld [vmem:[%s10242_s1 + $0x48c] sm:$0xf0]  ;;  %v4277_v60 = vld [vmem:[%s10242_s1 + $0x30] sm:$0xf0]  ;;  %v4424_v61 = vor.u32 %v6365_v48, %v4421_v49 }
  0x2a   :  { %v4963_v16 = vld [vmem:[%s10242_s1 + $0x580] sm:$0xf]  ;;  %v6503_v17 = vld [vmem:[%s10242_s1 + $0x58c] sm:$0xf0]  ;;  %v4836_v21 = vor.u32 %v6471_v15, %v4835_v14  ;;  %v6361_v63 = vld [vmem:[%s10242_s1 + $0x124] sm:$0xf] }
  0x2b   :  { %1339 = vmatpush.bf16.msrb.mxu3 %v4360_v0  ;;  %v4964_v24 = vor.u32 %v6503_v17, %v4963_v16  ;;  %v4819_v26 = vld [vmem:[%s10242_s1 + $0x460] sm:$0xf]  ;;  %v6467_v27 = vld [vmem:[%s10242_s1 + $0x46c] sm:$0xf0]  ;;  %v4405_v0 = vld [vmem:[%s10242_s1 + $0x130] sm:$0xf0] }
  0x2c   :  { %1351 = vmatpush.bf16.msra.mxu2 %v4504_v59  ;;  %1301 = vmatpush.bf16.msrb.mxu0 %v4852_v9  ;;  %v4947_v28 = vld [vmem:[%s10242_s1 + $0x560] sm:$0xf]  ;;  %v6499_v29 = vld [vmem:[%s10242_s1 + $0x56c] sm:$0xf0]  ;;  %v4820_v34 = vor.u32 %v6467_v27, %v4819_v26  ;;  %v6329_v59 = vld [vmem:[%s10242_s1 + $0x24] sm:$0xf]  ;;  %v4408_v14 = vor.u32 %v6361_v63, %v4405_v0 }
  0x2d   :  { %1314 = vmatpush.bf16.msrb.mxu1 %v4980_v12  ;;  %v49_v32 = vld [vmem:[%s10241_s0 + $0x30] sm:$0xff]  ;;  %v4948_v37 = vor.u32 %v6499_v29, %v4947_v28  ;;  %v4803_v39 = vld [vmem:[%s10242_s1 + $0x440] sm:$0xf]  ;;  %v4280_v3 = vor.u32 %v6329_v59, %v4277_v60  ;;  %v6417_v10 = vld [vmem:[%s10242_s1 + $0x2e4] sm:$0xf] }
  0x2e   :  { %v6463_v40 = vld [vmem:[%s10242_s1 + $0x44c] sm:$0xf0]  ;;  %v4931_v41 = vld [vmem:[%s10242_s1 + $0x540] sm:$0xf]  ;;  %v7325_v45 = vpack.c.bf16 %v49_v32, %v49_v32  ;;  %v4261_v9 = vld [vmem:[%s10242_s1 + $0x10] sm:$0xf0] }
  0x2f   :  { %1340 = vmatpush.bf16.msrb.mxu3 %v4344_v13  ;;  %v6495_v42 = vld [vmem:[%s10242_s1 + $0x54c] sm:$0xf0]  ;;  %v4804_v47 = vor.u32 %v6463_v40, %v4803_v39  ;;  %v4787_v53 = vld [vmem:[%s10242_s1 + $0x420] sm:$0xf]  ;;  %v4629_v11 = vld [vmem:[%s10242_s1 + $0x2f0] sm:$0xf0] }
  0x30   :  { %1352 = vmatpush.bf16.msra.mxu2 %v4488_v8  ;;  %1302 = vmatpush.bf16.msrb.mxu0 %v4836_v21  ;;  %v4932_v50 = vor.u32 %v6495_v42, %v4931_v41  ;;  %v6459_v54 = vld [vmem:[%s10242_s1 + $0x42c] sm:$0xf0]  ;;  %v4915_v56 = vld [vmem:[%s10242_s1 + $0x520] sm:$0xf]  ;;  %v6325_v8 = vld [vmem:[%s10242_s1 + $0x4] sm:$0xf] }
  0x31   :  { %1315 = vmatpush.bf16.msrb.mxu1 %v4964_v24  ;;  %v6491_v58 = vld [vmem:[%s10242_s1 + $0x52c] sm:$0xf0]  ;;  %v4788_v62 = vor.u32 %v6459_v54, %v4787_v53  ;;  %v4771_v1 = vld [vmem:[%s10242_s1 + $0x400] sm:$0xf]  ;;  %v6449_v12 = vld [vmem:[%s10242_s1 + $0x3e4] sm:$0xf]  ;;  %v4632_v24 = vor.u32 %v6417_v10, %v4629_v11 }
  0x32   :  { %v4916_v2 = vor.u32 %v6491_v58, %v4915_v56  ;;  %v6455_v4 = vld [vmem:[%s10242_s1 + $0x40c] sm:$0xf0]  ;;  %v4899_v5 = vld [vmem:[%s10242_s1 + $0x500] sm:$0xf]  ;;  %v4757_v13 = vld [vmem:[%s10242_s1 + $0x3f0] sm:$0xf0] }
  0x33   :  { %1341 = vmatpush.bf16.msrb.mxu3 %v4328_v25  ;;  %v6487_v6 = vld [vmem:[%s10242_s1 + $0x50c] sm:$0xf0]  ;;  %v4772_v15 = vor.u32 %v6455_v4, %v4771_v1  ;;  %v6481_v16 = vld [vmem:[%s10242_s1 + $0x4e4] sm:$0xf]  ;;  %v4885_v17 = vld [vmem:[%s10242_s1 + $0x4f0] sm:$0xf0]  ;;  %v4760_v25 = vor.u32 %v6449_v12, %v4757_v13 }
  0x34   :  { %1353 = vmatpush.bf16.msra.mxu2 %v4472_v20  ;;  %1303 = vmatpush.bf16.msrb.mxu0 %v4820_v34  ;;  %v47_v18 = vld [vmem:[%s10241_s0 + $0x20] sm:$0xff]  ;;  %v4900_v19 = vor.u32 %v6487_v6, %v4899_v5  ;;  %v4264_v20 = vor.u32 %v6325_v8, %v4261_v9  ;;  %v4389_v22 = vld [vmem:[%s10242_s1 + $0x110] sm:$0xf0]  ;;  %v48_v23 = vld [vmem:[%s10241_s0 + $0x28] sm:$0xff]  ;;  %v4888_v29 = vor.u32 %v6481_v16, %v4885_v17 }
  0x35   :  { %1316 = vmatpush.bf16.msrb.mxu1 %v4948_v37  ;;  %v6357_v21 = vld [vmem:[%s10242_s1 + $0x104] sm:$0xf]  ;;  %v5013_v27 = vld [vmem:[%s10242_s1 + $0x5f0] sm:$0xf0]  ;;  %v7416_v30 = vpack.c.bf16 %v47_v18, %v47_v18  ;;  %v7427_v35 = vpack.c.bf16 %v48_v23, %v48_v23 }
  0x36   :  { %5041 = vmatmul.msk.bf16.vlgmr.msrb.gmra.mxu2 %vm1243_vm0, %v7325_v45  ;;  %v6513_v26 = vld [vmem:[%s10242_s1 + $0x5e4] sm:$0xf]  ;;  %v4613_v31 = vld [vmem:[%s10242_s1 + $0x2d0] sm:$0xf0]  ;;  %v4392_v34 = vor.u32 %v6357_v21, %v4389_v22 }
  0x37   :  { %1342 = vmatpush.bf16.msrb.mxu3 %v4312_v38  ;;  %v6413_v28 = vld [vmem:[%s10242_s1 + $0x2c4] sm:$0xf]  ;;  %v4869_v37 = vld [vmem:[%s10242_s1 + $0x4d0] sm:$0xf0]  ;;  %v5016_v38 = vor.u32 %v6513_v26, %v5013_v27 }
  0x38   :  { %1354 = vmatpush.bf16.msra.mxu2 %v4456_v33  ;;  %1304 = vmatpush.bf16.msrb.mxu0 %v4804_v47  ;;  %v6445_v32 = vld [vmem:[%s10242_s1 + $0x3c4] sm:$0xf]  ;;  %v4741_v33 = vld [vmem:[%s10242_s1 + $0x3d0] sm:$0xf0]  ;;  %v4616_v39 = vor.u32 %v6413_v28, %v4613_v31 }
  0x39   :  { %1317 = vmatpush.bf16.msrb.mxu1 %v4932_v50  ;;  %v6477_v36 = vld [vmem:[%s10242_s1 + $0x4c4] sm:$0xf]  ;;  %v4744_v40 = vor.u32 %v6445_v32, %v4741_v33  ;;  %v4997_v42 = vld [vmem:[%s10242_s1 + $0x5d0] sm:$0xf0] }
  0x3a   :  { %v6509_v41 = vld [vmem:[%s10242_s1 + $0x5c4] sm:$0xf]  ;;  %v4872_v44 = vor.u32 %v6477_v36, %v4869_v37  ;;  %v4725_v48 = vld [vmem:[%s10242_s1 + $0x3b0] sm:$0xf0] }
  0x3b   :  { %1343 = vmatpush.bf16.msrb.mxu3 %v4296_v52  ;;  %v6409_v43 = vld [vmem:[%s10242_s1 + $0x2a4] sm:$0xf]  ;;  %v4853_v50 = vld [vmem:[%s10242_s1 + $0x4b0] sm:$0xf0]  ;;  %v5000_v52 = vor.u32 %v6509_v41, %v4997_v42 }
  0x3c   :  { %1355 = vmatpush.bf16.msra.mxu2 %v4440_v46  ;;  %1305 = vmatpush.bf16.msrb.mxu0 %v4788_v62  ;;  %v4597_v46 = vld [vmem:[%s10242_s1 + $0x2b0] sm:$0xf0]  ;;  %v6441_v47 = vld [vmem:[%s10242_s1 + $0x3a4] sm:$0xf] }
  0x3d   :  { %1318 = vmatpush.bf16.msrb.mxu1 %v4916_v2  ;;  %v6473_v49 = vld [vmem:[%s10242_s1 + $0x4a4] sm:$0xf]  ;;  %v4600_v53 = vor.u32 %v6409_v43, %v4597_v46  ;;  %v4728_v54 = vor.u32 %v6441_v47, %v4725_v48  ;;  %v4981_v58 = vld [vmem:[%s10242_s1 + $0x5b0] sm:$0xf0] }
  0x3e   :  { %v6505_v56 = vld [vmem:[%s10242_s1 + $0x5a4] sm:$0xf]  ;;  %v4856_v60 = vor.u32 %v6473_v49, %v4853_v50  ;;  %v4709_v63 = vld [vmem:[%s10242_s1 + $0x390] sm:$0xf0] }
  0x3f   :  { %1344 = vmatpush.bf16.msrb.mxu3 %v4280_v3  ;;  %v6405_v59 = vld [vmem:[%s10242_s1 + $0x284] sm:$0xf]  ;;  %v4837_v1 = vld [vmem:[%s10242_s1 + $0x490] sm:$0xf0]  ;;  %v4984_v2 = vor.u32 %v6505_v56, %v4981_v58 }
  0x40   :  { %1356 = vmatpush.bf16.msra.mxu2 %v4424_v61  ;;  %1306 = vmatpush.bf16.msrb.mxu0 %v4772_v15  ;;  %v4581_v61 = vld [vmem:[%s10242_s1 + $0x290] sm:$0xf0]  ;;  %v6437_v62 = vld [vmem:[%s10242_s1 + $0x384] sm:$0xf] }
  0x41   :  { %1319 = vmatpush.bf16.msrb.mxu1 %v4900_v19  ;;  %v6469_v0 = vld [vmem:[%s10242_s1 + $0x484] sm:$0xf]  ;;  %v4584_v3 = vor.u32 %v6405_v59, %v4581_v61  ;;  %v4712_v4 = vor.u32 %v6437_v62, %v4709_v63  ;;  %v4965_v6 = vld [vmem:[%s10242_s1 + $0x590] sm:$0xf0] }
  0x42   :  { %v6501_v5 = vld [vmem:[%s10242_s1 + $0x584] sm:$0xf]  ;;  %v4840_v9 = vor.u32 %v6469_v0, %v4837_v1  ;;  %v4565_v10 = vld [vmem:[%s10242_s1 + $0x270] sm:$0xf0] }
  0x43   :  { %1345 = vmatpush.bf16.msrb.mxu3 %v4264_v20  ;;  %1307 = vmatmul.bf16.vlgmr.msrb.gmra.mxu0 %v7416_v30  ;;  %v6401_v8 = vld [vmem:[%s10242_s1 + $0x264] sm:$0xf]  ;;  %v4693_v12 = vld [vmem:[%s10242_s1 + $0x370] sm:$0xf0]  ;;  %v4968_v15 = vor.u32 %v6501_v5, %v4965_v6 }
  0x44   :  { %1357 = vmatpush.bf16.msra.mxu2 %v4408_v14  ;;  %1364 = vmatpush.bf16.msra.mxu0 %v4632_v24  ;;  %v6433_v11 = vld [vmem:[%s10242_s1 + $0x364] sm:$0xf]  ;;  %v4821_v14 = vld [vmem:[%s10242_s1 + $0x470] sm:$0xf0]  ;;  %v4568_v16 = vor.u32 %v6401_v8, %v4565_v10 }
  0x45   :  { %1377 = vmatpush.bf16.msra.mxu1 %v4760_v25  ;;  %v6465_v13 = vld [vmem:[%s10242_s1 + $0x464] sm:$0xf]  ;;  %v4696_v17 = vor.u32 %v6433_v11, %v4693_v12  ;;  %v4949_v19 = vld [vmem:[%s10242_s1 + $0x570] sm:$0xf0] }
  0x46   :  { %1320 = vmatmul.bf16.vlgmr.msrb.gmra.mxu1 %v7427_v35  ;;  %1346 = vmatmul.bf16.vlgmr.msrb.gmra.mxu3 %v7213_v55  ;;  %v6497_v18 = vld [vmem:[%s10242_s1 + $0x564] sm:$0xf]  ;;  %v4824_v21 = vor.u32 %v6465_v13, %v4821_v14  ;;  %v4549_v22 = vld [vmem:[%s10242_s1 + $0x250] sm:$0xf0] }
  0x47   :  { %1390 = vmatpush.bf16.msra.mxu3 %v4888_v29  ;;  %v6397_v20 = vld [vmem:[%s10242_s1 + $0x244] sm:$0xf]  ;;  %v4677_v24 = vld [vmem:[%s10242_s1 + $0x350] sm:$0xf0]  ;;  %v4952_v27 = vor.u32 %v6497_v18, %v4949_v19 }
  0x48   :  { %1358 = vmatpush.bf16.msra.mxu2 %v4392_v34  ;;  %1365 = vmatpush.bf16.msra.mxu0 %v4616_v39  ;;  %v6429_v23 = vld [vmem:[%s10242_s1 + $0x344] sm:$0xf]  ;;  %v4805_v26 = vld [vmem:[%s10242_s1 + $0x450] sm:$0xf0]  ;;  %v4552_v28 = vor.u32 %v6397_v20, %v4549_v22 }
  0x49   :  { %1378 = vmatpush.bf16.msra.mxu1 %v4744_v40  ;;  %v6461_v25 = vld [vmem:[%s10242_s1 + $0x444] sm:$0xf]  ;;  %v4680_v29 = vor.u32 %v6429_v23, %v4677_v24  ;;  %v4933_v32 = vld [vmem:[%s10242_s1 + $0x550] sm:$0xf0] }
  0x4a   :  { %v6493_v31 = vld [vmem:[%s10242_s1 + $0x544] sm:$0xf]  ;;  %v4808_v34 = vor.u32 %v6461_v25, %v4805_v26  ;;  %v4533_v36 = vld [vmem:[%s10242_s1 + $0x230] sm:$0xf0] }
  0x4b   :  { %1391 = vmatpush.bf16.msra.mxu3 %v4872_v44  ;;  %1359 = vmatmul.bf16.vlgmr.msra.gmra.mxu2 %v7246_v7  ;;  %v6393_v33 = vld [vmem:[%s10242_s1 + $0x224] sm:$0xf]  ;;  %v4789_v40 = vld [vmem:[%s10242_s1 + $0x430] sm:$0xf0]  ;;  %v4936_v41 = vor.u32 %v6493_v31, %v4933_v32 }
  0x4c   :  { %1403 = vmatpush.bf16.msrb.mxu2 %v5016_v38  ;;  %1366 = vmatpush.bf16.msra.mxu0 %v4600_v53  ;;  %v6425_v37 = vld [vmem:[%s10242_s1 + $0x324] sm:$0xf]  ;;  %v4661_v38 = vld [vmem:[%s10242_s1 + $0x330] sm:$0xf0]  ;;  %v4536_v46 = vor.u32 %v6393_v33, %v4533_v36 }
  0x4d   :  { %1379 = vmatpush.bf16.msra.mxu1 %v4728_v54  ;;  %v6457_v39 = vld [vmem:[%s10242_s1 + $0x424] sm:$0xf]  ;;  %v4917_v43 = vld [vmem:[%s10242_s1 + $0x530] sm:$0xf0]  ;;  %v4664_v47 = vor.u32 %v6425_v37, %v4661_v38 }
  0x4e   :  { %v6489_v42 = vld [vmem:[%s10242_s1 + $0x524] sm:$0xf]  ;;  %v4517_v48 = vld [vmem:[%s10242_s1 + $0x210] sm:$0xf0] }
  0x4f   :  { %1392 = vmatpush.bf16.msra.mxu3 %v4856_v60  ;;  %v6389_v44 = vld [vmem:[%s10242_s1 + $0x204] sm:$0xf]  ;;  %v4645_v50 = vld [vmem:[%s10242_s1 + $0x310] sm:$0xf0] }
  0x50   :  { %1404 = vmatpush.bf16.msrb.mxu2 %v5000_v52  ;;  %1367 = vmatpush.bf16.msra.mxu0 %v4584_v3  ;;  %v6421_v49 = vld [vmem:[%s10242_s1 + $0x304] sm:$0xf]  ;;  %v4792_v52 = vor.u32 %v6457_v39, %v4789_v40  ;;  %v4773_v54 = vld [vmem:[%s10242_s1 + $0x410] sm:$0xf0] }
  0x51   :  { %1380 = vmatpush.bf16.msra.mxu1 %v4712_v4  ;;  %v6453_v53 = vld [vmem:[%s10242_s1 + $0x404] sm:$0xf] }
  0x53   :  { %1393 = vmatpush.bf16.msra.mxu3 %v4840_v9 }
  0x54   :  { %1405 = vmatpush.bf16.msrb.mxu2 %v4984_v2  ;;  %1368 = vmatpush.bf16.msra.mxu0 %v4568_v16 }
  0x55   :  { %1381 = vmatpush.bf16.msra.mxu1 %v4696_v17 }
  0x57   :  { %1394 = vmatpush.bf16.msra.mxu3 %v4824_v21 }
  0x58   :  { %1406 = vmatpush.bf16.msrb.mxu2 %v4968_v15  ;;  %1369 = vmatpush.bf16.msra.mxu0 %v4552_v28 }
  0x59   :  { %1382 = vmatpush.bf16.msra.mxu1 %v4680_v29 }
  0x5b   :  { %1395 = vmatpush.bf16.msra.mxu3 %v4808_v34 }
  0x5c   :  { %1407 = vmatpush.bf16.msrb.mxu2 %v4952_v27 }
  0x5d   :  { %19 = vsyncpa [#allocation5], 0  ;;  %v4379_v56 = vld [vmem:[%s10242_s1 + $0xe8] sm:$0xf]  ;;  %v6356_v58 = vld [vmem:[%s10242_s1 + $0xf4] sm:$0xf0]  ;;  %v4920_v60 = vor.u32 %v6489_v42, %v4917_v43  ;;  %1370 = vmatpush.bf16.msra.mxu0 %v4536_v46  ;;  %1383 = vmatpush.bf16.msra.mxu1 %v4664_v47  ;;  %v4520_v0 = vor.u32 %v6389_v44, %v4517_v48  ;;  %v4648_v1 = vor.u32 %v6421_v49, %v4645_v50 }
  0x5e   :  { %v6517_v59 = vld [vmem:[%s10242_s1 + $0x604] sm:$0xf]  ;;  %v5029_v61 = vld [vmem:[%s10242_s1 + $0x610] sm:$0xf0]  ;;  %v4635_v62 = vld [vmem:[%s10242_s1 + $0x2e8] sm:$0xf]  ;;  %v4776_v4 = vor.u32 %v6453_v53, %v4773_v54  ;;  %v4380_v5 = vor.u32 %v6356_v58, %v4379_v56 }
  0x5f   :  { %v6420_v63 = vld [vmem:[%s10242_s1 + $0x2f4] sm:$0xf0]  ;;  %v6485_v2 = vld [vmem:[%s10242_s1 + $0x504] sm:$0xf]  ;;  %v4901_v3 = vld [vmem:[%s10242_s1 + $0x510] sm:$0xf0]  ;;  %1396 = vmatpush.bf16.msra.mxu3 %v4792_v52  ;;  %v5032_v9 = vor.u32 %v6517_v59, %v5029_v61 }
  0x60   :  { %1408 = vmatpush.bf16.msrb.mxu2 %v4936_v41  ;;  %v4763_v6 = vld [vmem:[%s10242_s1 + $0x3e8] sm:$0xf]  ;;  %v6452_v8 = vld [vmem:[%s10242_s1 + $0x3f4] sm:$0xf0]  ;;  %v4636_v12 = vor.u32 %v6420_v63, %v4635_v62  ;;  %v4904_v13 = vor.u32 %v6485_v2, %v4901_v3  ;;  %s6895_s27 = smov [#allocation2]  }
  0x61   :  { %v4507_v10 = vld [vmem:[%s10242_s1 + $0x1e8] sm:$0xf]  ;;  %v6388_v11 = vld [vmem:[%s10242_s1 + $0x1f4] sm:$0xf0]  ;;  %1371 = vmatpush.bf16.msra.mxu0 %v4520_v0  ;;  %1384 = vmatpush.bf16.msra.mxu1 %v4648_v1  ;;  %v4764_v16 = vor.u32 %v6452_v8, %v4763_v6  ;;  %s4230_s28 = sshll.u32 %s6895_s27, 4  ;;  %s4231_s28 = int_to_ptr.vmem [resolvable:$true] %s4230_s28 }
  0x62   :  { %v4363_v14 = vld [vmem:[%s10242_s1 + $0xc8] sm:$0xf]  ;;  %v6352_v15 = vld [vmem:[%s10242_s1 + $0xd4] sm:$0xf0]  ;;  %v4508_v19 = vor.u32 %v6388_v11, %v4507_v10 }
  0x63   :  { %v4619_v17 = vld [vmem:[%s10242_s1 + $0x2c8] sm:$0xf]  ;;  %v6416_v18 = vld [vmem:[%s10242_s1 + $0x2d4] sm:$0xf0]  ;;  %1397 = vmatpush.bf16.msra.mxu3 %v4776_v4  ;;  %v4364_v22 = vor.u32 %v6352_v15, %v4363_v14 }
  0x64   :  { %1409 = vmatpush.bf16.msrb.mxu2 %v4920_v60  ;;  %v4747_v20 = vld [vmem:[%s10242_s1 + $0x3c8] sm:$0xf]  ;;  %v6448_v21 = vld [vmem:[%s10242_s1 + $0x3d4] sm:$0xf0]  ;;  %1372 = vmatmul.bf16.vlgmr.msra.gmra.mxu0 %v7202_v51  ;;  %v4620_v25 = vor.u32 %v6416_v18, %v4619_v17 }
  0x65   :  { %1429 = vmatpush.bf16.msrb.mxu1 %v4380_v5  ;;  %1455 = vmatpush.bf16.msrb.mxu0 %v4636_v12  ;;  %v4491_v23 = vld [vmem:[%s10242_s1 + $0x1c8] sm:$0xf]  ;;  %v6384_v24 = vld [vmem:[%s10242_s1 + $0x1d4] sm:$0xf0]  ;;  %v4748_v28 = vor.u32 %v6448_v21, %v4747_v20 }
  0x66   :  { %v4347_v26 = vld [vmem:[%s10242_s1 + $0xa8] sm:$0xf]  ;;  %v6348_v27 = vld [vmem:[%s10242_s1 + $0xb4] sm:$0xf0]  ;;  %1398 = vmatmul.bf16.vlgmr.msra.gmra.mxu3 %v7416_v30  ;;  %1385 = vmatmul.bf16.vlgmr.msra.gmra.mxu1 %v7215_v57  ;;  %v4492_v32 = vor.u32 %v6384_v24, %v4491_v23 }
  0x67   :  { %1423 = vmatpush.bf16.msrb.mxu3 %v5032_v9  ;;  %v4603_v29 = vld [vmem:[%s10242_s1 + $0x2a8] sm:$0xf]  ;;  %v6412_v31 = vld [vmem:[%s10242_s1 + $0x2b4] sm:$0xf0]  ;;  %v4348_v36 = vor.u32 %v6348_v27, %v4347_v26 }
  0x68   :  { %1410 = vmatpush.bf16.msrb.mxu2 %v4904_v13  ;;  %v4731_v33 = vld [vmem:[%s10242_s1 + $0x3a8] sm:$0xf]  ;;  %v6444_v34 = vld [vmem:[%s10242_s1 + $0x3b4] sm:$0xf0]  ;;  %v4604_v39 = vor.u32 %v6412_v31, %v4603_v29 }
  0x69   :  { %1430 = vmatpush.bf16.msrb.mxu1 %v4364_v22  ;;  %v4475_v37 = vld [vmem:[%s10242_s1 + $0x1a8] sm:$0xf]  ;;  %v6380_v38 = vld [vmem:[%s10242_s1 + $0x1b4] sm:$0xf0]  ;;  %1456 = vmatpush.bf16.msrb.mxu0 %v4620_v25  ;;  %v4732_v42 = vor.u32 %v6444_v34, %v4731_v33 }
  0x6a   :  { %v4331_v40 = vld [vmem:[%s10242_s1 + $0x88] sm:$0xf]  ;;  %v6344_v41 = vld [vmem:[%s10242_s1 + $0x94] sm:$0xf0]  ;;  %v4476_v46 = vor.u32 %v6380_v38, %v4475_v37 }
  0x6b   :  { %1442 = vmatpush.bf16.msra.mxu3 %v4508_v19  ;;  %1411 = vmatmul.bf16.vlgmr.msrb.gmra.mxu2 %v7427_v35  ;;  %v4587_v43 = vld [vmem:[%s10242_s1 + $0x288] sm:$0xf]  ;;  %v6408_v44 = vld [vmem:[%s10242_s1 + $0x294] sm:$0xf0]  ;;  %v4332_v49 = vor.u32 %v6344_v41, %v4331_v40 }
  0x6c   :  { %1468 = vmatpush.bf16.msra.mxu2 %v4764_v16  ;;  %v4715_v47 = vld [vmem:[%s10242_s1 + $0x388] sm:$0xf]  ;;  %v6440_v48 = vld [vmem:[%s10242_s1 + $0x394] sm:$0xf0]  ;;  %v4588_v53 = vor.u32 %v6408_v44, %v4587_v43 }
  0x6d   :  { %1431 = vmatpush.bf16.msrb.mxu1 %v4348_v36  ;;  %v4459_v50 = vld [vmem:[%s10242_s1 + $0x188] sm:$0xf]  ;;  %v6376_v52 = vld [vmem:[%s10242_s1 + $0x194] sm:$0xf0]  ;;  %1457 = vmatpush.bf16.msrb.mxu0 %v4604_v39  ;;  %v4716_v58 = vor.u32 %v6440_v48, %v4715_v47  ;;  %v6354_v47 = vld [vmem:[%s10242_s1 + $0xec] sm:$0xf] }
  0x6e   :  { %v4315_v54 = vld [vmem:[%s10242_s1 + $0x68] sm:$0xf]  ;;  %v6340_v56 = vld [vmem:[%s10242_s1 + $0x74] sm:$0xf0]  ;;  %v4460_v61 = vor.u32 %v6376_v52, %v4459_v50  ;;  %v4381_v48 = vld [vmem:[%s10242_s1 + $0xf8] sm:$0xf0] }
  0x6f   :  { %1443 = vmatpush.bf16.msra.mxu3 %v4492_v32  ;;  %v4571_v59 = vld [vmem:[%s10242_s1 + $0x268] sm:$0xf]  ;;  %v6404_v60 = vld [vmem:[%s10242_s1 + $0x274] sm:$0xf0]  ;;  %v4316_v0 = vor.u32 %v6340_v56, %v4315_v54 }
  0x70   :  { %1469 = vmatpush.bf16.msra.mxu2 %v4748_v28  ;;  %v4699_v62 = vld [vmem:[%s10242_s1 + $0x368] sm:$0xf]  ;;  %v6436_v63 = vld [vmem:[%s10242_s1 + $0x374] sm:$0xf0]  ;;  %v4572_v3 = vor.u32 %v6404_v60, %v4571_v59  ;;  %v6386_v60 = vld [vmem:[%s10242_s1 + $0x1ec] sm:$0xf] }
  0x71   :  { %1432 = vmatpush.bf16.msrb.mxu1 %v4332_v49  ;;  %v4443_v1 = vld [vmem:[%s10242_s1 + $0x168] sm:$0xf]  ;;  %v6372_v2 = vld [vmem:[%s10242_s1 + $0x174] sm:$0xf0]  ;;  %1458 = vmatpush.bf16.msrb.mxu0 %v4588_v53  ;;  %v4700_v6 = vor.u32 %v6436_v63, %v4699_v62  ;;  %v4384_v63 = vor.u32 %v6354_v47, %v4381_v48 }
  0x72   :  { %v4299_v4 = vld [vmem:[%s10242_s1 + $0x48] sm:$0xf]  ;;  %v6336_v5 = vld [vmem:[%s10242_s1 + $0x54] sm:$0xf0]  ;;  %v4444_v10 = vor.u32 %v6372_v2, %v4443_v1  ;;  %v6350_v1 = vld [vmem:[%s10242_s1 + $0xcc] sm:$0xf] }
  0x73   :  { %1444 = vmatpush.bf16.msra.mxu3 %v4476_v46  ;;  %v4555_v8 = vld [vmem:[%s10242_s1 + $0x248] sm:$0xf]  ;;  %v6400_v9 = vld [vmem:[%s10242_s1 + $0x254] sm:$0xf0]  ;;  %v4300_v13 = vor.u32 %v6336_v5, %v4299_v4  ;;  %v4365_v2 = vld [vmem:[%s10242_s1 + $0xd8] sm:$0xf0] }
  0x74   :  { %1470 = vmatpush.bf16.msra.mxu2 %v4732_v42  ;;  %v4683_v11 = vld [vmem:[%s10242_s1 + $0x348] sm:$0xf]  ;;  %v6432_v12 = vld [vmem:[%s10242_s1 + $0x354] sm:$0xf0]  ;;  %v4556_v16 = vor.u32 %v6400_v9, %v4555_v8 }
  0x75   :  { %1433 = vmatpush.bf16.msrb.mxu1 %v4316_v0  ;;  %v4427_v14 = vld [vmem:[%s10242_s1 + $0x148] sm:$0xf]  ;;  %v6368_v15 = vld [vmem:[%s10242_s1 + $0x154] sm:$0xf0]  ;;  %1459 = vmatpush.bf16.msrb.mxu0 %v4572_v3  ;;  %v4684_v19 = vor.u32 %v6432_v12, %v4683_v11  ;;  %v4493_v11 = vld [vmem:[%s10242_s1 + $0x1d8] sm:$0xf0]  ;;  %v4368_v12 = vor.u32 %v6350_v1, %v4365_v2 }
  0x76   :  { %v4283_v17 = vld [vmem:[%s10242_s1 + $0x28] sm:$0xf]  ;;  %v6332_v18 = vld [vmem:[%s10242_s1 + $0x34] sm:$0xf0]  ;;  %5042 = vmatmul.msk.bf16.vlgmr.msrb.gmra.mxu3 %vm1243_vm0, %v7325_v45  ;;  %v4428_v22 = vor.u32 %v6368_v15, %v4427_v14  ;;  %v6346_v14 = vld [vmem:[%s10242_s1 + $0xac] sm:$0xf] }
  0x77   :  { %1445 = vmatpush.bf16.msra.mxu3 %v4460_v61  ;;  %v4539_v20 = vld [vmem:[%s10242_s1 + $0x228] sm:$0xf]  ;;  %v6396_v21 = vld [vmem:[%s10242_s1 + $0x234] sm:$0xf0]  ;;  %v4284_v25 = vor.u32 %v6332_v18, %v4283_v17  ;;  %v4509_v61 = vld [vmem:[%s10242_s1 + $0x1f8] sm:$0xf0] }
  0x78   :  { %1471 = vmatpush.bf16.msra.mxu2 %v4716_v58  ;;  %v4667_v23 = vld [vmem:[%s10242_s1 + $0x328] sm:$0xf]  ;;  %v6428_v24 = vld [vmem:[%s10242_s1 + $0x334] sm:$0xf0]  ;;  %v4540_v29 = vor.u32 %v6396_v21, %v4539_v20  ;;  %v4512_v4 = vor.u32 %v6386_v60, %v4509_v61  ;;  %v4349_v15 = vld [vmem:[%s10242_s1 + $0xb8] sm:$0xf0] }
  0x79   :  { %1434 = vmatpush.bf16.msrb.mxu1 %v4300_v13  ;;  %v4411_v26 = vld [vmem:[%s10242_s1 + $0x128] sm:$0xf]  ;;  %v6364_v27 = vld [vmem:[%s10242_s1 + $0x134] sm:$0xf0]  ;;  %1460 = vmatpush.bf16.msrb.mxu0 %v4556_v16  ;;  %v4668_v34 = vor.u32 %v6428_v24, %v4667_v23  ;;  %v4477_v23 = vld [vmem:[%s10242_s1 + $0x1b8] sm:$0xf0]  ;;  %v4352_v24 = vor.u32 %v6346_v14, %v4349_v15 }
  0x7a   :  { %v4267_v28 = vld [vmem:[%s10242_s1 + $0x8] sm:$0xf]  ;;  %v6328_v31 = vld [vmem:[%s10242_s1 + $0x14] sm:$0xf0]  ;;  %v4412_v40 = vor.u32 %v6364_v27, %v4411_v26  ;;  %v6342_v26 = vld [vmem:[%s10242_s1 + $0x8c] sm:$0xf] }
  0x7b   :  { %1446 = vmatpush.bf16.msra.mxu3 %v4444_v10  ;;  %v4891_v32 = vld [vmem:[%s10242_s1 + $0x4e8] sm:$0xf]  ;;  %v6484_v33 = vld [vmem:[%s10242_s1 + $0x4f4] sm:$0xf0]  ;;  %v4268_v44 = vor.u32 %v6328_v31, %v4267_v28  ;;  %v6382_v10 = vld [vmem:[%s10242_s1 + $0x1cc] sm:$0xf] }
  0x7c   :  { %1472 = vmatpush.bf16.msra.mxu2 %v4700_v6  ;;  %v4395_v36 = vld [vmem:[%s10242_s1 + $0x108] sm:$0xf]  ;;  %v6392_v38 = vld [vmem:[%s10242_s1 + $0x214] sm:$0xf0]  ;;  %v4892_v49 = vor.u32 %v6484_v33, %v4891_v32  ;;  %v4496_v17 = vor.u32 %v6382_v10, %v4493_v11  ;;  %v4333_v27 = vld [vmem:[%s10242_s1 + $0x98] sm:$0xf0] }
  0x7d   :  { %v4523_v37 = vld [vmem:[%s10242_s1 + $0x208] sm:$0xf]  ;;  %v6424_v41 = vld [vmem:[%s10242_s1 + $0x314] sm:$0xf0]  ;;  %1435 = vmatpush.bf16.msrb.mxu1 %v4284_v25  ;;  %1461 = vmatpush.bf16.msrb.mxu0 %v4540_v29  ;;  %v4429_v1 = vld [vmem:[%s10242_s1 + $0x158] sm:$0xf0] }
  0x7e   :  { %v4651_v39 = vld [vmem:[%s10242_s1 + $0x308] sm:$0xf]  ;;  %v6520_v43 = vld [vmem:[%s10242_s1 + $0x614] sm:$0xf0]  ;;  %v4524_v50 = vor.u32 %v6392_v38, %v4523_v37  ;;  %v4461_v37 = vld [vmem:[%s10242_s1 + $0x198] sm:$0xf0]  ;;  %v4336_v38 = vor.u32 %v6342_v26, %v4333_v27 }
  0x7f   :  { %1447 = vmatpush.bf16.msra.mxu3 %v4428_v22  ;;  %v5035_v42 = vld [vmem:[%s10242_s1 + $0x608] sm:$0xf]  ;;  %v6360_v46 = vld [vmem:[%s10242_s1 + $0x114] sm:$0xf0]  ;;  %v4652_v56 = vor.u32 %v6424_v41, %v4651_v39  ;;  %v6378_v22 = vld [vmem:[%s10242_s1 + $0x1ac] sm:$0xf] }
  0x80   :  { %1473 = vmatpush.bf16.msra.mxu2 %v4684_v19  ;;  %v5019_v52 = vld [vmem:[%s10242_s1 + $0x5e8] sm:$0xf]  ;;  %v6516_v53 = vld [vmem:[%s10242_s1 + $0x5f4] sm:$0xf0]  ;;  %v5036_v59 = vor.u32 %v6520_v43, %v5035_v42  ;;  %v4396_v62 = vor.u32 %v6360_v46, %v4395_v36  ;;  %v4480_v29 = vor.u32 %v6378_v22, %v4477_v23  ;;  %v6374_v36 = vld [vmem:[%s10242_s1 + $0x18c] sm:$0xf] }
  0x81   :  { %v4875_v54 = vld [vmem:[%s10242_s1 + $0x4c8] sm:$0xf]  ;;  %v6480_v58 = vld [vmem:[%s10242_s1 + $0x4d4] sm:$0xf0]  ;;  %1436 = vmatpush.bf16.msrb.mxu1 %v4268_v44  ;;  %v5020_v0 = vor.u32 %v6516_v53, %v5019_v52  ;;  %1462 = vmatpush.bf16.msrb.mxu0 %v4524_v50  ;;  %v4317_v41 = vld [vmem:[%s10242_s1 + $0x78] sm:$0xf0]  ;;  %v4464_v43 = vor.u32 %v6374_v36, %v4461_v37 }
  0x82   :  { %v4876_v3 = vor.u32 %v6480_v58, %v4875_v54  ;;  %v5003_v5 = vld [vmem:[%s10242_s1 + $0x5c8] sm:$0xf]  ;;  %v6512_v6 = vld [vmem:[%s10242_s1 + $0x5d4] sm:$0xf0]  ;;  %v4445_v50 = vld [vmem:[%s10242_s1 + $0x178] sm:$0xf0] }
  0x83   :  { %1448 = vmatpush.bf16.msra.mxu3 %v4412_v40  ;;  %v4859_v8 = vld [vmem:[%s10242_s1 + $0x4a8] sm:$0xf]  ;;  %v6476_v9 = vld [vmem:[%s10242_s1 + $0x4b4] sm:$0xf0]  ;;  %v5004_v13 = vor.u32 %v6512_v6, %v5003_v5  ;;  %v6338_v40 = vld [vmem:[%s10242_s1 + $0x6c] sm:$0xf] }
  0x84   :  { %1474 = vmatpush.bf16.msra.mxu2 %v4668_v34  ;;  %1463 = vmatmul.bf16.vlgmr.msrb.gmra.mxu0 %v7202_v51  ;;  %v4860_v16 = vor.u32 %v6476_v9, %v4859_v8  ;;  %v4987_v18 = vld [vmem:[%s10242_s1 + $0x5a8] sm:$0xf]  ;;  %v6508_v19 = vld [vmem:[%s10242_s1 + $0x5b4] sm:$0xf0]  ;;  %v4320_v52 = vor.u32 %v6338_v40, %v4317_v41  ;;  %v6334_v54 = vld [vmem:[%s10242_s1 + $0x4c] sm:$0xf] }
  0x85   :  { %1481 = vmatpush.bf16.msra.mxu1 %v4892_v49  ;;  %1514 = vmatpush.bf16.msra.mxu0 %v5036_v59  ;;  %v4843_v20 = vld [vmem:[%s10242_s1 + $0x488] sm:$0xf]  ;;  %v6472_v21 = vld [vmem:[%s10242_s1 + $0x494] sm:$0xf0]  ;;  %v4988_v25 = vor.u32 %v6508_v19, %v4987_v18  ;;  %v6370_v49 = vld [vmem:[%s10242_s1 + $0x16c] sm:$0xf] }
  0x86   :  { %1437 = vmatmul.bf16.vlgmr.msrb.gmra.mxu1 %v7213_v55  ;;  %v4844_v28 = vor.u32 %v6472_v21, %v4843_v20  ;;  %v4971_v31 = vld [vmem:[%s10242_s1 + $0x588] sm:$0xf]  ;;  %v6504_v32 = vld [vmem:[%s10242_s1 + $0x594] sm:$0xf0]  ;;  %v4448_v59 = vor.u32 %v6370_v49, %v4445_v50  ;;  %v4285_v5 = vld [vmem:[%s10242_s1 + $0x38] sm:$0xf0] }
  0x87   :  { %1449 = vmatpush.bf16.msra.mxu3 %v4396_v62  ;;  %v4827_v33 = vld [vmem:[%s10242_s1 + $0x468] sm:$0xf]  ;;  %v6468_v34 = vld [vmem:[%s10242_s1 + $0x474] sm:$0xf0]  ;;  %v4972_v39 = vor.u32 %v6504_v32, %v4971_v31  ;;  %v4413_v14 = vld [vmem:[%s10242_s1 + $0x138] sm:$0xf0] }
  0x88   :  { %1475 = vmatpush.bf16.msra.mxu2 %v4652_v56  ;;  %v4828_v42 = vor.u32 %v6468_v34, %v4827_v33  ;;  %v4955_v44 = vld [vmem:[%s10242_s1 + $0x568] sm:$0xf]  ;;  %v6500_v46 = vld [vmem:[%s10242_s1 + $0x574] sm:$0xf0]  ;;  %v4301_v56 = vld [vmem:[%s10242_s1 + $0x58] sm:$0xf0] }
  0x89   :  { %1482 = vmatpush.bf16.msra.mxu1 %v4876_v3  ;;  %1533 = vmatpush.bf16.msrb.mxu0 %v4512_v4  ;;  %v4811_v47 = vld [vmem:[%s10242_s1 + $0x448] sm:$0xf]  ;;  %v6464_v48 = vld [vmem:[%s10242_s1 + $0x454] sm:$0xf0]  ;;  %v4956_v53 = vor.u32 %v6500_v46, %v4955_v44  ;;  %v4304_v2 = vor.u32 %v6334_v54, %v4301_v56  ;;  %v6330_v4 = vld [vmem:[%s10242_s1 + $0x2c] sm:$0xf] }
  0x8a   :  { %1450 = vmatmul.bf16.vlgmr.msra.gmra.mxu3 %v7246_v7  ;;  %v4812_v58 = vor.u32 %v6464_v48, %v4811_v47  ;;  %v4939_v60 = vld [vmem:[%s10242_s1 + $0x548] sm:$0xf]  ;;  %v6496_v61 = vld [vmem:[%s10242_s1 + $0x554] sm:$0xf0]  ;;  %v4288_v15 = vor.u32 %v6330_v4, %v4285_v5  ;;  %v6326_v20 = vld [vmem:[%s10242_s1 + $0xc] sm:$0xf] }
  0x8b   :  { %1494 = vmatpush.bf16.msrb.mxu3 %v5020_v0  ;;  %1476 = vmatmul.bf16.vlgmr.msra.gmra.mxu2 %v7215_v57  ;;  %v4795_v62 = vld [vmem:[%s10242_s1 + $0x428] sm:$0xf]  ;;  %v6366_v0 = vld [vmem:[%s10242_s1 + $0x14c] sm:$0xf]  ;;  %v4940_v3 = vor.u32 %v6496_v61, %v4939_v60  ;;  %v6492_v10 = vld [vmem:[%s10242_s1 + $0x534] sm:$0xf0] }
  0x8c   :  { %1520 = vmatpush.bf16.msrb.mxu2 %v4384_v63  ;;  %v6460_v63 = vld [vmem:[%s10242_s1 + $0x434] sm:$0xf0]  ;;  %v4432_v8 = vor.u32 %v6366_v0, %v4429_v1  ;;  %v4923_v9 = vld [vmem:[%s10242_s1 + $0x528] sm:$0xf]  ;;  %v4269_v21 = vld [vmem:[%s10242_s1 + $0x18] sm:$0xf0] }
  0x8d   :  { %1483 = vmatpush.bf16.msra.mxu1 %v4860_v16  ;;  %1534 = vmatpush.bf16.msrb.mxu0 %v4496_v17  ;;  %v4796_v6 = vor.u32 %v6460_v63, %v4795_v62  ;;  %v4779_v11 = vld [vmem:[%s10242_s1 + $0x408] sm:$0xf]  ;;  %v6418_v16 = vld [vmem:[%s10242_s1 + $0x2ec] sm:$0xf]  ;;  %v4637_v17 = vld [vmem:[%s10242_s1 + $0x2f8] sm:$0xf0]  ;;  %v4924_v18 = vor.u32 %v6492_v10, %v4923_v9  ;;  %v4272_v32 = vor.u32 %v6326_v20, %v4269_v21 }
  0x8e   :  { %v4907_v19 = vld [vmem:[%s10242_s1 + $0x508] sm:$0xf]  ;;  %v4765_v26 = vld [vmem:[%s10242_s1 + $0x3f8] sm:$0xf0]  ;;  %v4640_v27 = vor.u32 %v6418_v16, %v4637_v17  ;;  %v6414_v31 = vld [vmem:[%s10242_s1 + $0x2cc] sm:$0xf] }
  0x8f   :  { %1495 = vmatpush.bf16.msrb.mxu3 %v5004_v13  ;;  %v6362_v13 = vld [vmem:[%s10242_s1 + $0x12c] sm:$0xf]  ;;  %v4621_v33 = vld [vmem:[%s10242_s1 + $0x2d8] sm:$0xf0] }
  0x90   :  { %1521 = vmatpush.bf16.msrb.mxu2 %v4368_v12  ;;  %v6456_v12 = vld [vmem:[%s10242_s1 + $0x414] sm:$0xf0]  ;;  %v4416_v23 = vor.u32 %v6362_v13, %v4413_v14  ;;  %v6358_v34 = vld [vmem:[%s10242_s1 + $0x10c] sm:$0xf]  ;;  %v4397_v36 = vld [vmem:[%s10242_s1 + $0x118] sm:$0xf0] }
  0x91   :  { %1484 = vmatpush.bf16.msra.mxu1 %v4844_v28  ;;  %1535 = vmatpush.bf16.msrb.mxu0 %v4480_v29  ;;  %v4780_v22 = vor.u32 %v6456_v12, %v4779_v11  ;;  %v6482_v28 = vld [vmem:[%s10242_s1 + $0x4ec] sm:$0xf]  ;;  %v4893_v29 = vld [vmem:[%s10242_s1 + $0x4f8] sm:$0xf0]  ;;  %v4400_v44 = vor.u32 %v6358_v34, %v4397_v36 }
  0x92   :  { %v4896_v41 = vor.u32 %v6482_v28, %v4893_v29  ;;  %v4749_v46 = vld [vmem:[%s10242_s1 + $0x3d8] sm:$0xf0]  ;;  %v6478_v47 = vld [vmem:[%s10242_s1 + $0x4cc] sm:$0xf] }
  0x93   :  { %1496 = vmatpush.bf16.msrb.mxu3 %v4988_v25  ;;  %v6450_v25 = vld [vmem:[%s10242_s1 + $0x3ec] sm:$0xf]  ;;  %v4877_v48 = vld [vmem:[%s10242_s1 + $0x4d8] sm:$0xf0] }
  0x94   :  { %1522 = vmatpush.bf16.msrb.mxu2 %v4352_v24  ;;  %5043 = vmatmul.msk.bf16.vlgmr.msra.gmra.mxu0 %vm1243_vm0, %v7325_v45  ;;  %v6488_v24 = vld [vmem:[%s10242_s1 + $0x514] sm:$0xf0]  ;;  %v4768_v40 = vor.u32 %v6450_v25, %v4765_v26  ;;  %v6410_v50 = vld [vmem:[%s10242_s1 + $0x2ac] sm:$0xf]  ;;  %v5005_v54 = vld [vmem:[%s10242_s1 + $0x5d8] sm:$0xf0] }
  0x95   :  { %1485 = vmatpush.bf16.msra.mxu1 %v4828_v42  ;;  %1536 = vmatpush.bf16.msrb.mxu0 %v4464_v43  ;;  %v4908_v37 = vor.u32 %v6488_v24, %v4907_v19  ;;  %v6446_v42 = vld [vmem:[%s10242_s1 + $0x3cc] sm:$0xf]  ;;  %v4624_v43 = vor.u32 %v6414_v31, %v4621_v33  ;;  %v4733_v61 = vld [vmem:[%s10242_s1 + $0x3b8] sm:$0xf0] }
  0x96   :  { %v4752_v56 = vor.u32 %v6446_v42, %v4749_v46  ;;  %v6474_v62 = vld [vmem:[%s10242_s1 + $0x4ac] sm:$0xf]  ;;  %v4861_v63 = vld [vmem:[%s10242_s1 + $0x4b8] sm:$0xf0] }
  0x97   :  { %1497 = vmatpush.bf16.msrb.mxu3 %v4972_v39  ;;  %v5021_v39 = vld [vmem:[%s10242_s1 + $0x5f8] sm:$0xf0]  ;;  %v6406_v1 = vld [vmem:[%s10242_s1 + $0x28c] sm:$0xf] }
  0x98   :  { %1523 = vmatpush.bf16.msrb.mxu2 %v4336_v38  ;;  %v6514_v38 = vld [vmem:[%s10242_s1 + $0x5ec] sm:$0xf]  ;;  %v4989_v4 = vld [vmem:[%s10242_s1 + $0x5b8] sm:$0xf0] }
  0x99   :  { %1486 = vmatpush.bf16.msra.mxu1 %v4812_v58  ;;  %1537 = vmatpush.bf16.msrb.mxu0 %v4448_v59  ;;  %v5024_v49 = vor.u32 %v6514_v38, %v5021_v39  ;;  %v4880_v58 = vor.u32 %v6478_v47, %v4877_v48  ;;  %v6442_v59 = vld [vmem:[%s10242_s1 + $0x3ac] sm:$0xf]  ;;  %v4845_v11 = vld [vmem:[%s10242_s1 + $0x498] sm:$0xf0]  ;;  %v8162_v48 = vld [vmem:[%s10243_s2] sm:$0xf] }
  0x9a   :  { %v4736_v5 = vor.u32 %v6442_v59, %v4733_v61  ;;  %v6470_v10 = vld [vmem:[%s10242_s1 + $0x48c] sm:$0xf]  ;;  %v4573_v14 = vld [vmem:[%s10242_s1 + $0x278] sm:$0xf0] }
  0x9b   :  { %1498 = vmatpush.bf16.msrb.mxu3 %v4956_v53  ;;  %v6510_v53 = vld [vmem:[%s10242_s1 + $0x5cc] sm:$0xf]  ;;  %v4701_v21 = vld [vmem:[%s10242_s1 + $0x378] sm:$0xf0] }
  0x9c   :  { %1524 = vmatpush.bf16.msrb.mxu2 %v4320_v52  ;;  %v4605_v52 = vld [vmem:[%s10242_s1 + $0x2b8] sm:$0xf0]  ;;  %v5008_v0 = vor.u32 %v6510_v53, %v5005_v54  ;;  %v6402_v13 = vld [vmem:[%s10242_s1 + $0x26c] sm:$0xf] }
  0x9d   :  { %1487 = vmatpush.bf16.msra.mxu1 %v4796_v6  ;;  %1538 = vmatpush.bf16.msrb.mxu0 %v4432_v8  ;;  %v4608_v60 = vor.u32 %v6410_v50, %v4605_v52  ;;  %v4864_v6 = vor.u32 %v6474_v62, %v4861_v63  ;;  %v6438_v8 = vld [vmem:[%s10242_s1 + $0x38c] sm:$0xf]  ;;  %v4576_v20 = vor.u32 %v6402_v13, %v4573_v14  ;;  %v4957_v29 = vld [vmem:[%s10242_s1 + $0x578] sm:$0xf0]  ;;  %v5103_v14 = vld [vmem:[%s10244_s3 + $0x70] sm:$0xf] }
  0x9e   :  { %v6502_v16 = vld [vmem:[%s10242_s1 + $0x58c] sm:$0xf]  ;;  %v4685_v38 = vld [vmem:[%s10242_s1 + $0x358] sm:$0xf0] }
  0x9f   :  { %1499 = vmatpush.bf16.msrb.mxu3 %v4940_v3  ;;  %v6506_v3 = vld [vmem:[%s10242_s1 + $0x5ac] sm:$0xf]  ;;  %v4941_v47 = vld [vmem:[%s10242_s1 + $0x558] sm:$0xf0] }
  0xa0   :  { %1525 = vmatpush.bf16.msrb.mxu2 %v4304_v2  ;;  %v4589_v2 = vld [vmem:[%s10242_s1 + $0x298] sm:$0xf0]  ;;  %v4992_v12 = vor.u32 %v6506_v3, %v4989_v4  ;;  %v6434_v19 = vld [vmem:[%s10242_s1 + $0x36c] sm:$0xf]  ;;  %v255_v3 = vperm.slane %v8162_v48, 0 }
  0xa1   :  { %1488 = vmatpush.bf16.msra.mxu1 %v4780_v22  ;;  %1539 = vmatpush.bf16.msrb.mxu0 %v4416_v23  ;;  %v4592_v9 = vor.u32 %v6406_v1, %v4589_v2  ;;  %v6466_v22 = vld [vmem:[%s10242_s1 + $0x46c] sm:$0xf]  ;;  %v4829_v23 = vld [vmem:[%s10242_s1 + $0x478] sm:$0xf0]  ;;  %v8117_v25 = vpop.f32.mrf.mxu1 }
  0xa2   :  { %v6398_v26 = vld [vmem:[%s10242_s1 + $0x24c] sm:$0xf]  ;;  %v4832_v33 = vor.u32 %v6466_v22, %v4829_v23  ;;  %v4669_v54 = vld [vmem:[%s10242_s1 + $0x338] sm:$0xf0] }
  0xa3   :  { %1500 = vmatpush.bf16.msrb.mxu3 %v4924_v18  ;;  %v4848_v18 = vor.u32 %v6470_v10, %v4845_v11  ;;  %v6498_v28 = vld [vmem:[%s10242_s1 + $0x56c] sm:$0xf]  ;;  %v4525_v61 = vld [vmem:[%s10242_s1 + $0x218] sm:$0xf0] }
  0xa4   :  { %1526 = vmatpush.bf16.msrb.mxu2 %v4288_v15  ;;  %1489 = vmatmul.bf16.vlgmr.msra.gmra.mxu1 %v7416_v30  ;;  %v8097_v15 = vpop.f32.mrf.mxu0  ;;  %v6430_v34 = vld [vmem:[%s10242_s1 + $0x34c] sm:$0xf]  ;;  %v5037_v2 = vld [vmem:[%s10242_s1 + $0x618] sm:$0xf0] }
  0xa5   :  { %1546 = vmatpush.bf16.msrb.mxu1 %v4640_v27  ;;  %1540 = vmatpush.bf16.msrb.mxu0 %v4400_v44  ;;  %v4557_v27 = vld [vmem:[%s10242_s1 + $0x258] sm:$0xf0]  ;;  %v6462_v39 = vld [vmem:[%s10242_s1 + $0x44c] sm:$0xf] }
  0xa6   :  { %v4560_v36 = vor.u32 %v6398_v26, %v4557_v27  ;;  %v6394_v42 = vld [vmem:[%s10242_s1 + $0x22c] sm:$0xf]  ;;  %v4781_v11 = vld [vmem:[%s10242_s1 + $0x418] sm:$0xf0]  ;;  %v5095_v27 = vld [vmem:[%s10244_s3 + $0x60] sm:$0xf] }
  0xa7   :  { %1501 = vmatpush.bf16.msrb.mxu3 %v4908_v37  ;;  %v6494_v46 = vld [vmem:[%s10242_s1 + $0x54c] sm:$0xf] }
  0xa8   :  { %1527 = vmatpush.bf16.msrb.mxu2 %v4272_v32  ;;  %1541 = vmatmul.bf16.vlgmr.msrb.gmra.mxu0 %v7246_v7  ;;  %v4973_v7 = vld [vmem:[%s10242_s1 + $0x598] sm:$0xf0]  ;;  %v4704_v32 = vor.u32 %v6434_v19, %v4701_v21  ;;  %v6426_v52 = vld [vmem:[%s10242_s1 + $0x32c] sm:$0xf]  ;;  %v4944_v59 = vor.u32 %v6494_v46, %v4941_v47  ;;  %v5167_v19 = vld [vmem:[%s10244_s3 + $0xf0] sm:$0xf]  ;;  %v1257_v21 = vadd.f32 %v8097_v15, %v255_v3 }
  0xa9   :  { %1547 = vmatpush.bf16.msrb.mxu1 %v4624_v43  ;;  %1585 = vmatpush.bf16.msra.mxu0 %v5024_v49  ;;  %v4976_v24 = vor.u32 %v6502_v16, %v4973_v7  ;;  %v8131_v31 = vpop.f32.mrf.mxu2  ;;  %v8136_v37 = vpop.f32.mrf.mxu3  ;;  %v4541_v43 = vld [vmem:[%s10242_s1 + $0x238] sm:$0xf0]  ;;  %v4688_v49 = vor.u32 %v6430_v34, %v4685_v38  ;;  %v6490_v62 = vld [vmem:[%s10242_s1 + $0x52c] sm:$0xf]  ;;  %v6536_v16 = vld [vmem:[%s10244_s3 + $0x74] sm:$0xf0] }
  0xaa   :  { %1502 = vmatmul.bf16.vlgmr.msrb.gmra.mxu3 %v7427_v35  ;;  %v4544_v53 = vor.u32 %v6394_v42, %v4541_v43  ;;  %v1271_v63 = vpop.f32.mrf.mxu1  ;;  %v6518_v1 = vld [vmem:[%s10242_s1 + $0x60c] sm:$0xf]  ;;  %v5159_v15 = vld [vmem:[%s10244_s3 + $0xe0] sm:$0xf]  ;;  %v5087_v38 = vld [vmem:[%s10244_s3 + $0x50] sm:$0xf] }
  0xab   :  { %1559 = vmatpush.bf16.msra.mxu3 %v4768_v40  ;;  %1528 = vmatmul.bf16.vlgmr.msrb.gmra.mxu2 %v7213_v55  ;;  %v4717_v55 = vld [vmem:[%s10242_s1 + $0x398] sm:$0xf0]  ;;  %v6454_v10 = vld [vmem:[%s10242_s1 + $0x40c] sm:$0xf]  ;;  %v6530_v43 = vld [vmem:[%s10244_s3 + $0x44] sm:$0xf0] }
  0xac   :  { %1572 = vmatpush.bf16.msra.mxu2 %v4896_v41  ;;  %v4720_v17 = vor.u32 %v6438_v8, %v4717_v55  ;;  %v4813_v40 = vld [vmem:[%s10242_s1 + $0x458] sm:$0xf0]  ;;  %v4960_v41 = vor.u32 %v6498_v28, %v4957_v29  ;;  %v1258_v44 = vpop.f32.mrf.mxu0  ;;  %v6422_v8 = vld [vmem:[%s10242_s1 + $0x30c] sm:$0xf]  ;;  %v4784_v23 = vor.u32 %v6454_v10, %v4781_v11  ;;  %v6534_v28 = vld [vmem:[%s10244_s3 + $0x64] sm:$0xf0] }
  0xad   :  { %1548 = vmatpush.bf16.msrb.mxu1 %v4608_v60  ;;  %1586 = vmatpush.bf16.msra.mxu0 %v5008_v0  ;;  %v4816_v50 = vor.u32 %v6462_v39, %v4813_v40  ;;  %v6390_v60 = vld [vmem:[%s10242_s1 + $0x20c] sm:$0xf]  ;;  %v4925_v0 = vld [vmem:[%s10242_s1 + $0x538] sm:$0xf0]  ;;  %v6532_v39 = vld [vmem:[%s10244_s3 + $0x54] sm:$0xf0] }
  0xae   :  { %v4653_v55 = vld [vmem:[%s10242_s1 + $0x318] sm:$0xf0]  ;;  %v4928_v13 = vor.u32 %v6490_v62, %v4925_v0  ;;  %v6486_v7 = vld [vmem:[%s10242_s1 + $0x50c] sm:$0xf]  ;;  %v5088_v42 = vor.u32 %v6532_v39, %v5087_v38  ;;  %v6526_v62 = vld [vmem:[%s10244_s3 + $0x24] sm:$0xf0] }
  0xaf   :  { %1560 = vmatpush.bf16.msra.mxu3 %v4752_v56  ;;  %v6458_v56 = vld [vmem:[%s10242_s1 + $0x42c] sm:$0xf]  ;;  %v4656_v22 = vor.u32 %v6422_v8, %v4653_v55  ;;  %v6542_v3 = vld [vmem:[%s10244_s3 + $0xa4] sm:$0xf0]  ;;  %v6524_v55 = vld [vmem:[%s10244_s3 + $0x14] sm:$0xf0] }
  0xb0   :  { %1573 = vmatpush.bf16.msra.mxu2 %v4880_v58  ;;  %v4797_v58 = vld [vmem:[%s10242_s1 + $0x438] sm:$0xf0]  ;;  %v6540_v11 = vld [vmem:[%s10244_s3 + $0x94] sm:$0xf0] }
  0xb1   :  { %1549 = vmatpush.bf16.msrb.mxu1 %v4592_v9  ;;  %1587 = vmatpush.bf16.msra.mxu0 %v4992_v12  ;;  %v1284_v4 = vpop.f32.mrf.mxu2  ;;  %v4528_v9 = vor.u32 %v6390_v60, %v4525_v61  ;;  %v1297_v12 = vpop.f32.mrf.mxu3  ;;  %v5063_v61 = vld [vmem:[%s10244_s3 + $0x20] sm:$0xf] }
  0xb3   :  { %1561 = vmatpush.bf16.msra.mxu3 %v4736_v5  ;;  %v4672_v5 = vor.u32 %v6426_v52, %v4669_v54  ;;  %v6528_v54 = vld [vmem:[%s10244_s3 + $0x34] sm:$0xf0] }
  0xb4   :  { %1574 = vmatpush.bf16.msra.mxu2 %v4864_v6  ;;  %v4800_v6 = vor.u32 %v6458_v56, %v4797_v58  ;;  %v5135_v58 = vld [vmem:[%s10244_s3 + $0xb0] sm:$0xf] }
  0xb5   :  { %1550 = vmatpush.bf16.msrb.mxu1 %v4576_v20  ;;  %1588 = vmatpush.bf16.msra.mxu0 %v4976_v24  ;;  %v6552_v20 = vld [vmem:[%s10244_s3 + $0xf4] sm:$0xf0]  ;;  %v5104_v24 = vor.u32 %v6536_v16, %v5103_v14  ;;  %v6522_v16 = vld [vmem:[%s10244_s3 + $0x4] sm:$0xf0] }
  0xb6   :  { %v5168_v29 = vor.u32 %v6552_v20, %v5167_v19  ;;  %v5105_v19 = vld [vmem:[%s10244_s3 + $0x78] sm:$0xf0]  ;;  %v5111_v20 = vld [vmem:[%s10244_s3 + $0x80] sm:$0xf] }
  0xb7   :  { %1562 = vmatpush.bf16.msra.mxu3 %v4720_v17  ;;  %v5040_v17 = vor.u32 %v6518_v1, %v5037_v2  ;;  %v5127_v2 = vld [vmem:[%s10244_s3 + $0xa0] sm:$0xf] }
  0xb8   :  { %1575 = vmatpush.bf16.msra.mxu2 %v4848_v18  ;;  %v4909_v18 = vld [vmem:[%s10242_s1 + $0x518] sm:$0xf0]  ;;  %v5128_v10 = vor.u32 %v6542_v3, %v5127_v2  ;;  %v6525_v3 = vld [vmem:[%s10244_s3 + $0x24] sm:$0xf] }
  0xb9   :  { %1551 = vmatpush.bf16.msrb.mxu1 %v4560_v36  ;;  %1589 = vmatpush.bf16.msra.mxu0 %v4960_v41  ;;  %v4912_v26 = vor.u32 %v6486_v7, %v4909_v18  ;;  %v1334_v34 = vpop.f32.mrf.mxu2  ;;  %v5096_v36 = vor.u32 %v6534_v28, %v5095_v27  ;;  %v6535_v7 = vld [vmem:[%s10244_s3 + $0x74] sm:$0xf] }
  0xba   :  { %v5108_v28 = vor.u32 %v6535_v7, %v5105_v19  ;;  %v5057_v7 = vld [vmem:[%s10244_s3 + $0x18] sm:$0xf0]  ;;  %v6539_v19 = vld [vmem:[%s10244_s3 + $0x94] sm:$0xf] }
  0xbb   :  { %1563 = vmatpush.bf16.msra.mxu3 %v4704_v32  ;;  %v6550_v32 = vld [vmem:[%s10244_s3 + $0xe4] sm:$0xf0] }
  0xbc   :  { %1576 = vmatpush.bf16.msra.mxu2 %v4832_v33  ;;  %v1270_v33 = vadd.f32 %v8117_v25, %v1257_v21  ;;  %v5160_v40 = vor.u32 %v6550_v32, %v5159_v15  ;;  %v6548_v25 = vld [vmem:[%s10244_s3 + $0xd4] sm:$0xf0]  ;;  %v6538_v21 = vld [vmem:[%s10244_s3 + $0x84] sm:$0xf0]  ;;  %v6533_v15 = vld [vmem:[%s10244_s3 + $0x64] sm:$0xf] }
  0xbd   :  { %1552 = vmatpush.bf16.msrb.mxu1 %v4544_v53  ;;  %1590 = vmatpush.bf16.msra.mxu0 %v4944_v59  ;;  %v5071_v53 = vld [vmem:[%s10244_s3 + $0x30] sm:$0xf]  ;;  %v5097_v32 = vld [vmem:[%s10244_s3 + $0x68] sm:$0xf0] }
  0xbe   :  { %v1283_v41 = vadd.f32 %v8131_v31, %v1270_v33  ;;  %v5143_v31 = vld [vmem:[%s10244_s3 + $0xc0] sm:$0xf]  ;;  %v5072_v59 = vor.u32 %v6528_v54, %v5071_v53  ;;  %v5100_v39 = vor.u32 %v6533_v15, %v5097_v32  ;;  %v6527_v53 = vld [vmem:[%s10244_s3 + $0x34] sm:$0xf]  ;;  %v6537_v15 = vld [vmem:[%s10244_s3 + $0x84] sm:$0xf] }
  0xbf   :  { %1564 = vmatpush.bf16.msra.mxu3 %v4688_v49  ;;  %v5113_v32 = vld [vmem:[%s10244_s3 + $0x88] sm:$0xf0] }
  0xc0   :  { %1577 = vmatpush.bf16.msra.mxu2 %v4816_v50  ;;  %v1308_v46 = vpop.f32.mrf.mxu0 }
  0xc1   :  { %1553 = vmatpush.bf16.msrb.mxu1 %v4528_v9  ;;  %1591 = vmatpush.bf16.msra.mxu0 %v4928_v13  ;;  %v1336_v49 = vpop.f32.mrf.mxu2  ;;  %v5055_v9 = vld [vmem:[%s10244_s3 + $0x10] sm:$0xf]  ;;  %v5047_v13 = vld [vmem:[%s10244_s3] sm:$0xf] }
  0xc2   :  { %v5056_v12 = vor.u32 %v6524_v55, %v5055_v9  ;;  %v6568_v49 = vld [vmem:[%s10244_s3 + $0x174] sm:$0xf0]  ;;  %v6541_v9 = vld [vmem:[%s10244_s3 + $0xa4] sm:$0xf]  ;;  %v5129_v55 = vld [vmem:[%s10244_s3 + $0xa8] sm:$0xf0] }
  0xc3   :  { %1565 = vmatpush.bf16.msra.mxu3 %v4672_v5  ;;  %v1321_v47 = vpop.f32.mrf.mxu1  ;;  %v5064_v5 = vor.u32 %v6526_v62, %v5063_v61  ;;  %v6543_v61 = vld [vmem:[%s10244_s3 + $0xb4] sm:$0xf]  ;;  %v5137_v62 = vld [vmem:[%s10244_s3 + $0xb8] sm:$0xf0] }
  0xc4   :  { %1578 = vmatpush.bf16.msra.mxu2 %v4800_v6  ;;  %1554 = vmatmul.bf16.vlgmr.msrb.gmra.mxu1 %v7202_v51  ;;  %v5151_v51 = vld [vmem:[%s10244_s3 + $0xd0] sm:$0xf] }
  0xc5   :  { %1605 = vmatpush.bf16.msra.mxu1 %v5040_v17  ;;  %1592 = vmatpush.bf16.msra.mxu0 %v4912_v26  ;;  %v5152_v44 = vor.u32 %v6548_v25, %v5151_v51  ;;  %v5089_v51 = vld [vmem:[%s10244_s3 + $0x58] sm:$0xf0] }
  0xc7   :  { %1566 = vmatpush.bf16.msra.mxu3 %v4656_v22  ;;  %v6551_v22 = vld [vmem:[%s10244_s3 + $0xf4] sm:$0xf] }
  0xc8   :  { %1579 = vmatpush.bf16.msra.mxu2 %v4784_v23  ;;  %1593 = vmatmul.bf16.vlgmr.msra.gmra.mxu0 %v7427_v35  ;;  %v1296_v35 = vadd.f32 %v8136_v37, %v1283_v41  ;;  %v6544_v37 = vld [vmem:[%s10244_s3 + $0xb4] sm:$0xf0]  ;;  %v1310_v1 = vpop.f32.mrf.mxu0  ;;  %v5169_v23 = vld [vmem:[%s10244_s3 + $0xf8] sm:$0xf0]  ;;  %v6547_v41 = vld [vmem:[%s10244_s3 + $0xd4] sm:$0xf] }
  0xc9   :  { %2026 = vmatpush.bf16.msrb.mxu1 %v5168_v29  ;;  %v5136_v63 = vor.u32 %v6544_v37, %v5135_v58  ;;  %v8287_v0 = vpop.f32.mrf.mxu3  ;;  %v5112_v29 = vor.u32 %v6538_v21, %v5111_v20  ;;  %v5172_v33 = vor.u32 %v6551_v22, %v5169_v23  ;;  %v5073_v58 = vld [vmem:[%s10244_s3 + $0x38] sm:$0xf0]  ;;  %v5207_v21 = vld [vmem:[%s10244_s3 + $0x140] sm:$0xf]  ;;  %v6562_v22 = vld [vmem:[%s10244_s3 + $0x144] sm:$0xf0] }
  0xca   :  { %1567 = vmatmul.bf16.vlgmr.msra.gmra.mxu3 %v7215_v57  ;;  %v5079_v57 = vld [vmem:[%s10244_s3 + $0x40] sm:$0xf]  ;;  %v1309_v52 = vadd.f32 %v1308_v46, %v1296_v35  ;;  %v5076_v1 = vor.u32 %v6527_v53, %v5073_v58  ;;  %v5121_v20 = vld [vmem:[%s10244_s3 + $0x98] sm:$0xf0]  ;;  %v6567_v53 = vld [vmem:[%s10244_s3 + $0x174] sm:$0xf] }
  0xcb   :  { %2013 = vmatpush.bf16.msrb.mxu3 %v5104_v24  ;;  %1580 = vmatmul.bf16.vlgmr.msra.gmra.mxu2 %v7416_v30  ;;  %v6546_v30 = vld [vmem:[%s10244_s3 + $0xc4] sm:$0xf0]  ;;  %v5080_v50 = vor.u32 %v6530_v43, %v5079_v57  ;;  %v1323_v4 = vpop.f32.mrf.mxu1  ;;  %v5048_v24 = vor.u32 %v6522_v16, %v5047_v13  ;;  %v6529_v43 = vld [vmem:[%s10244_s3 + $0x44] sm:$0xf]  ;;  %v6523_v16 = vld [vmem:[%s10244_s3 + $0x14] sm:$0xf] }
  0xcc   :  { %v5144_v56 = vor.u32 %v6546_v30, %v5143_v31  ;;  %v1322_v60 = vadd.f32 %v1321_v47, %v1309_v52  ;;  %v6545_v31 = vld [vmem:[%s10244_s3 + $0xc4] sm:$0xf]  ;;  %v5145_v30 = vld [vmem:[%s10244_s3 + $0xc8] sm:$0xf0]  ;;  %v5231_v47 = vld [vmem:[%s10244_s3 + $0x170] sm:$0xf]  ;;  %v5060_v23 = vor.u32 %v6523_v16, %v5057_v7 }
  0xcd   :  { %2027 = vmatpush.bf16.msrb.mxu1 %v5160_v40  ;;  %v6531_v40 = vld [vmem:[%s10244_s3 + $0x54] sm:$0xf]  ;;  %v5232_v54 = vor.u32 %v6568_v49, %v5231_v47  ;;  %v5148_v37 = vor.u32 %v6545_v31, %v5145_v30  ;;  %v5065_v4 = vld [vmem:[%s10244_s3 + $0x28] sm:$0xf0]  ;;  %v5183_v30 = vld [vmem:[%s10244_s3 + $0x110] sm:$0xf] }
  0xce   :  { %v8297_v6 = vpop.f32.mrf.mxu2  ;;  %v1335_v8 = vadd.f32 %v1334_v34, %v1322_v60  ;;  %v6549_v34 = vld [vmem:[%s10244_s3 + $0xe4] sm:$0xf]  ;;  %v5092_v57 = vor.u32 %v6531_v40, %v5089_v51  ;;  %v6566_v60 = vld [vmem:[%s10244_s3 + $0x164] sm:$0xf0]  ;;  %v5209_v16 = vld [vmem:[%s10244_s3 + $0x148] sm:$0xf0] }
  0xcf   :  { %2014 = vmatpush.bf16.msrb.mxu3 %v5096_v36  ;;  %v5161_v36 = vld [vmem:[%s10244_s3 + $0xe8] sm:$0xf0]  ;;  %2039 = vmatpush.bf16.msrb.mxu2 %v5232_v54 }
  0xd0   :  { %v1611_v14 = vmul.f32 0.01, %v1335_v8  ;;  %v5164_v25 = vor.u32 %v6549_v34, %v5161_v36  ;;  %v5199_v34 = vld [vmem:[%s10244_s3 + $0x130] sm:$0xf]  ;;  %v6560_v36 = vld [vmem:[%s10244_s3 + $0x134] sm:$0xf0] }
  0xd1   :  { %2028 = vmatpush.bf16.msrb.mxu1 %v5152_v44  ;;  %v1349_v18 = vpop.f32.mrf.mxu3  ;;  %v5081_v44 = vld [vmem:[%s10244_s3 + $0x48] sm:$0xf0] }
  0xd2   :  { %v1615_v27 = vmax.f32 %v1335_v8, %v1611_v14  ;;  %v5084_v52 = vor.u32 %v6529_v43, %v5081_v44  ;;  %v5132_v18 = vor.u32 %v6541_v9, %v5129_v55 }
  0xd3   :  { %2015 = vmatpush.bf16.msrb.mxu3 %v5088_v42  ;;  %v5153_v42 = vld [vmem:[%s10244_s3 + $0xd8] sm:$0xf0] }
  0xd4   :  { %5044 = vmatmul.msk.bf16.vlgmr.msra.gmra.mxu1 %vm1243_vm0, %v7325_v45  ;;  %v5119_v45 = vld [vmem:[%s10244_s3 + $0x90] sm:$0xf]  ;;  %v8347_v38 = vpack.c.bf16 %v1615_v27, %v1615_v27  ;;  %v5156_v46 = vor.u32 %v6547_v41, %v5153_v42  ;;  %v5049_v27 = vld [vmem:[%s10244_s3 + $0x8] sm:$0xf0]  ;;  %v6558_v41 = vld [vmem:[%s10244_s3 + $0x124] sm:$0xf0] }
  0xd5   :  { %2029 = vmatpush.bf16.msrb.mxu1 %v5144_v56  ;;  %v5120_v17 = vor.u32 %v6540_v11, %v5119_v45  ;;  %v6564_v45 = vld [vmem:[%s10244_s3 + $0x154] sm:$0xf0] }
  0xd6   :  { %v1362_v26 = vpop.f32.mrf.mxu2 }
  0xd7   :  { %2016 = vmatpush.bf16.msrb.mxu3 %v5080_v50  ;;  %v256_v50 = vperm.slane %v8162_v48, 1  ;;  %v6521_v26 = vld [vmem:[%s10244_s3 + $0x4] sm:$0xf] }
  0xd8   :  { %v5052_v40 = vor.u32 %v6521_v26, %v5049_v27  ;;  %v6578_v26 = vld [vmem:[%s10244_s3 + $0x1c4] sm:$0xf0]  ;;  %v6557_v27 = vld [vmem:[%s10244_s3 + $0x124] sm:$0xf] }
  0xd9   :  { %2030 = vmatpush.bf16.msrb.mxu1 %v5136_v63  ;;  %v1348_v2 = vadd.f32 %v8287_v0, %v256_v50 }
  0xdb   :  { %2017 = vmatpush.bf16.msrb.mxu3 %v5072_v59  ;;  %v5223_v59 = vld [vmem:[%s10244_s3 + $0x160] sm:$0xf]  ;;  %v1361_v14 = vadd.f32 %v8297_v6, %v1348_v2  ;;  %v5295_v2 = vld [vmem:[%s10244_s3 + $0x1f0] sm:$0xf] }
  0xdc   :  { %v5224_v63 = vor.u32 %v6566_v60, %v5223_v59 }
  0xdd   :  { %2031 = vmatpush.bf16.msrb.mxu1 %v5128_v10  ;;  %v5215_v10 = vld [vmem:[%s10244_s3 + $0x150] sm:$0xf] }
  0xde   :  { %2040 = vmatpush.bf16.msrb.mxu2 %v5224_v63  ;;  %v5216_v13 = vor.u32 %v6564_v45, %v5215_v10  ;;  %v5225_v63 = vld [vmem:[%s10244_s3 + $0x168] sm:$0xf0]  ;;  %v5287_v10 = vld [vmem:[%s10244_s3 + $0x1e0] sm:$0xf]  ;;  %v6582_v45 = vld [vmem:[%s10244_s3 + $0x1e4] sm:$0xf0] }
  0xdf   :  { %2018 = vmatpush.bf16.msrb.mxu3 %v5064_v5  ;;  %v5140_v5 = vor.u32 %v6543_v61, %v5137_v62  ;;  %v6565_v62 = vld [vmem:[%s10244_s3 + $0x164] sm:$0xf] }
  0xe1   :  { %2032 = vmatpush.bf16.msrb.mxu1 %v5120_v17  ;;  %v1373_v35 = vpop.f32.mrf.mxu0 }
  0xe2   :  { %2041 = vmatpush.bf16.msrb.mxu2 %v5216_v13  ;;  %v1374_v6 = vadd.f32 %v1373_v35, %v1361_v14  ;;  %v6556_v35 = vld [vmem:[%s10244_s3 + $0x114] sm:$0xf0]  ;;  %v6561_v14 = vld [vmem:[%s10244_s3 + $0x144] sm:$0xf] }
  0xe3   :  { %2019 = vmatpush.bf16.msrb.mxu3 %v5056_v12  ;;  %v1386_v56 = vpop.f32.mrf.mxu1  ;;  %v5068_v12 = vor.u32 %v6525_v3, %v5065_v4  ;;  %v5184_v49 = vor.u32 %v6556_v35, %v5183_v30  ;;  %v6584_v3 = vld [vmem:[%s10244_s3 + $0x1f4] sm:$0xf0]  ;;  %v5212_v7 = vor.u32 %v6561_v14, %v5209_v16  ;;  %v5177_v30 = vld [vmem:[%s10244_s3 + $0x108] sm:$0xf0]  ;;  %v5247_v35 = vld [vmem:[%s10244_s3 + $0x190] sm:$0xf] }
  0xe4   :  { %v5296_v4 = vor.u32 %v6584_v3, %v5295_v2  ;;  %v6581_v2 = vld [vmem:[%s10244_s3 + $0x1e4] sm:$0xf]  ;;  %v5289_v3 = vld [vmem:[%s10244_s3 + $0x1e8] sm:$0xf0] }
  0xe5   :  { %2033 = vmatpush.bf16.msrb.mxu1 %v5112_v29  ;;  %v6577_v14 = vld [vmem:[%s10244_s3 + $0x1c4] sm:$0xf]  ;;  %v5273_v16 = vld [vmem:[%s10244_s3 + $0x1c8] sm:$0xf0] }
  0xe6   :  { %2052 = vmatpush.bf16.msrb.mxu0 %v5296_v4 }
  0xe7   :  { %2020 = vmatpush.bf16.msrb.mxu3 %v5048_v24  ;;  %v5208_v24 = vor.u32 %v6562_v22, %v5207_v21 }
  0xe9   :  { %2078 = vmatpush.bf16.msra.mxu1 %v5172_v33  ;;  %v1399_v8 = vpop.f32.mrf.mxu3  ;;  %v1375_v0 = vpop.f32.mrf.mxu0  ;;  %2042 = vmatpush.bf16.msrb.mxu2 %v5208_v24  ;;  %v1387_v33 = vadd.f32 %v1386_v56, %v1374_v6  ;;  %v5233_v56 = vld [vmem:[%s10244_s3 + $0x178] sm:$0xf0]  ;;  %v5271_v24 = vld [vmem:[%s10244_s3 + $0x1c0] sm:$0xf] }
  0xea   :  { %2021 = vmatmul.bf16.vlgmr.msrb.gmra.mxu3 %v8347_v38  ;;  %v5201_v6 = vld [vmem:[%s10244_s3 + $0x138] sm:$0xf0] }
  0xeb   :  { %2065 = vmatpush.bf16.msra.mxu3 %v5108_v28  ;;  %v1388_v17 = vpop.f32.mrf.mxu1  ;;  %v5124_v28 = vor.u32 %v6539_v19, %v5121_v20  ;;  %v1400_v42 = vadd.f32 %v1399_v8, %v1387_v33  ;;  %v5217_v8 = vld [vmem:[%s10244_s3 + $0x158] sm:$0xf0]  ;;  %v6559_v20 = vld [vmem:[%s10244_s3 + $0x134] sm:$0xf]  ;;  %v257_v33 = vperm.slane %v8162_v48, 2 }
  0xec   :  { %v5279_v17 = vld [vmem:[%s10244_s3 + $0x1d0] sm:$0xf] }
  0xed   :  { %2079 = vmatpush.bf16.msra.mxu1 %v5164_v25  ;;  %v5200_v25 = vor.u32 %v6560_v36, %v5199_v34 }
  0xee   :  { %v1412_v11 = vpop.f32.mrf.mxu2 }
  0xef   :  { %2066 = vmatpush.bf16.msra.mxu3 %v5100_v39  ;;  %v5191_v39 = vld [vmem:[%s10244_s3 + $0x120] sm:$0xf]  ;;  %2043 = vmatpush.bf16.msrb.mxu2 %v5200_v25  ;;  %v1413_v44 = vadd.f32 %v1412_v11, %v1400_v42  ;;  %v5288_v11 = vor.u32 %v6582_v45, %v5287_v10  ;;  %v5185_v25 = vld [vmem:[%s10244_s3 + $0x118] sm:$0xf0] }
  0xf0   :  { %v5192_v43 = vor.u32 %v6558_v41, %v5191_v39 }
  0xf1   :  { %2080 = vmatpush.bf16.msra.mxu1 %v5156_v46  ;;  %v1401_v29 = vpop.f32.mrf.mxu3  ;;  %2053 = vmatpush.bf16.msrb.mxu0 %v5288_v11 }
  0xf2   :  { %v5193_v29 = vld [vmem:[%s10244_s3 + $0x128] sm:$0xf0] }
  0xf3   :  { %2067 = vmatpush.bf16.msra.mxu3 %v5092_v57  ;;  %v5116_v57 = vor.u32 %v6537_v15, %v5113_v32  ;;  %2044 = vmatpush.bf16.msrb.mxu2 %v5192_v43  ;;  %v5263_v15 = vld [vmem:[%s10244_s3 + $0x1b0] sm:$0xf]  ;;  %v6576_v32 = vld [vmem:[%s10244_s3 + $0x1b4] sm:$0xf0]  ;;  %v5196_v36 = vor.u32 %v6557_v27, %v5193_v29  ;;  %v6574_v43 = vld [vmem:[%s10244_s3 + $0x1a4] sm:$0xf0] }
  0xf4   :  { %v5264_v39 = vor.u32 %v6576_v32, %v5263_v15  ;;  %v5249_v27 = vld [vmem:[%s10244_s3 + $0x198] sm:$0xf0] }
  0xf5   :  { %2081 = vmatpush.bf16.msra.mxu1 %v5148_v37  ;;  %v5236_v37 = vor.u32 %v6567_v53, %v5233_v56  ;;  %v5239_v53 = vld [vmem:[%s10244_s3 + $0x180] sm:$0xf] }
  0xf6   :  { %v1414_v51 = vpop.f32.mrf.mxu2 }
  0xf7   :  { %2068 = vmatpush.bf16.msra.mxu3 %v5084_v52  ;;  %2045 = vmatpush.bf16.msrb.mxu2 %v5184_v49  ;;  %v5175_v52 = vld [vmem:[%s10244_s3 + $0x100] sm:$0xf]  ;;  %v6555_v51 = vld [vmem:[%s10244_s3 + $0x114] sm:$0xf]  ;;  %v6572_v49 = vld [vmem:[%s10244_s3 + $0x194] sm:$0xf0] }
  0xf8   :  { %v5188_v42 = vor.u32 %v6555_v51, %v5185_v25 }
  0xf9   :  { %2082 = vmatpush.bf16.msra.mxu1 %v5140_v5  ;;  %v1425_v46 = vpop.f32.mrf.mxu3  ;;  %v6563_v5 = vld [vmem:[%s10244_s3 + $0x154] sm:$0xf] }
  0xfa   :  { %v1426_v31 = vadd.f32 %v1425_v46, %v1413_v44  ;;  %v5220_v0 = vor.u32 %v6563_v5, %v5217_v8  ;;  %v5292_v8 = vor.u32 %v6581_v2, %v5289_v3  ;;  %v5359_v3 = vld [vmem:[%s10246_s5 + $0x70] sm:$0xf] }
  0xfb   :  { %2069 = vmatpush.bf16.msra.mxu3 %v5076_v1  ;;  %v5228_v1 = vor.u32 %v6565_v62, %v5225_v63 }
  0xfc   :  { %v1612_v47 = vmul.f32 0.01, %v1426_v31 }
  0xfd   :  { %2083 = vmatpush.bf16.msra.mxu1 %v5132_v18  ;;  %v6580_v18 = vld [vmem:[%s10244_s3 + $0x1d4] sm:$0xf0] }
  0xfe   :  { %v1616_v50 = vmax.f32 %v1426_v31, %v1612_v47  ;;  %v5280_v19 = vor.u32 %v6580_v18, %v5279_v17  ;;  %v6553_v31 = vld [vmem:[%s10244_s3 + $0x104] sm:$0xf]  ;;  %v5276_v18 = vor.u32 %v6577_v14, %v5273_v16  ;;  %v5343_v14 = vld [vmem:[%s10246_s5 + $0x50] sm:$0xf]  ;;  %v6596_v16 = vld [vmem:[%s10246_s5 + $0x54] sm:$0xf0] }
  0xff   :  { %2070 = vmatpush.bf16.msra.mxu3 %v5068_v12  ;;  %v5180_v47 = vor.u32 %v6553_v31, %v5177_v30 }
 0x100   :  { %v1620_v58 = vpack.c.bf16 %v1616_v50, %v1616_v50  ;;  %2054 = vmatpush.bf16.msrb.mxu0 %v5280_v19  ;;  %v6575_v19 = vld [vmem:[%s10244_s3 + $0x1b4] sm:$0xf] }
 0x101   :  { %2084 = vmatpush.bf16.msra.mxu1 %v5124_v28  ;;  %v1427_v59 = vpop.f32.mrf.mxu3  ;;  %v8480_v60 = vpop.f32.mrf.mxu0  ;;  %v5272_v28 = vor.u32 %v6578_v26, %v5271_v24  ;;  %v258_v24 = vperm.slane %v8162_v48, 3  ;;  %v6571_v26 = vld [vmem:[%s10244_s3 + $0x194] sm:$0xf]  ;;  %v5241_v48 = vld [vmem:[%s10244_s3 + $0x188] sm:$0xf0] }
 0x102   :  { %2034 = vmatmul.bf16.vlgmr.msrb.gmra.mxu1 %v1620_v58 }
 0x103   :  { %2071 = vmatpush.bf16.msra.mxu3 %v5060_v23  ;;  %v1438_v61 = vpop.f32.mrf.mxu1  ;;  %v5204_v23 = vor.u32 %v6559_v20, %v5201_v6  ;;  %v5265_v20 = vld [vmem:[%s10244_s3 + $0x1b8] sm:$0xf0] }
 0x104   :  { %2055 = vmatpush.bf16.msrb.mxu0 %v5272_v28  ;;  %v5268_v6 = vor.u32 %v6575_v19, %v5265_v20  ;;  %v5252_v28 = vor.u32 %v6571_v26, %v5249_v27  ;;  %v5344_v19 = vor.u32 %v6596_v16, %v5343_v14  ;;  %v5327_v26 = vld [vmem:[%s10246_s5 + $0x30] sm:$0xf]  ;;  %v6592_v27 = vld [vmem:[%s10246_s5 + $0x34] sm:$0xf0] }
 0x105   :  { %2085 = vmatpush.bf16.msra.mxu1 %v5116_v57  ;;  %v5255_v57 = vld [vmem:[%s10244_s3 + $0x1a0] sm:$0xf]  ;;  %v5391_v14 = vld [vmem:[%s10246_s5 + $0xb0] sm:$0xf]  ;;  %v6608_v16 = vld [vmem:[%s10246_s5 + $0xb4] sm:$0xf0] }
 0x106   :  { %v5256_v44 = vor.u32 %v6574_v43, %v5255_v57 }
 0x107   :  { %2072 = vmatpush.bf16.msra.mxu3 %v5052_v40  ;;  %v1439_v40 = vadd.f32 %v1438_v61, %v257_v33  ;;  %v6569_v33 = vld [vmem:[%s10244_s3 + $0x184] sm:$0xf] }
 0x108   :  { %2056 = vmatpush.bf16.msrb.mxu0 %v5264_v39 }
 0x109   :  { %v1466_v55 = vpop.f32.mrf.mxu0 }
 0x10a   :  { %2073 = vmatmul.bf16.vlgmr.msra.gmra.mxu3 %v8347_v38  ;;  %v6554_v38 = vld [vmem:[%s10244_s3 + $0x104] sm:$0xf0]  ;;  %v6579_v55 = vld [vmem:[%s10244_s3 + $0x1d4] sm:$0xf] }
 0x10b   :  { %v5176_v54 = vor.u32 %v6554_v38, %v5175_v52  ;;  %v1440_v13 = vpop.f32.mrf.mxu1  ;;  %v5248_v52 = vor.u32 %v6572_v49, %v5247_v35 }
 0x10c   :  { %2057 = vmatpush.bf16.msrb.mxu0 %v5256_v44 }
 0x10d   :  { %2046 = vmatpush.bf16.msrb.mxu2 %v5176_v54  ;;  %v1451_v9 = vpop.f32.mrf.mxu3  ;;  %v6570_v54 = vld [vmem:[%s10244_s3 + $0x184] sm:$0xf0] }
 0x10e   :  { %v1477_v12 = vpop.f32.mrf.mxu2  ;;  %v1452_v46 = vadd.f32 %v1451_v9, %v1439_v40  ;;  %v5240_v56 = vor.u32 %v6570_v54, %v5239_v53  ;;  %v1687_v53 = vld [vmem:[%s10245_s4] sm:$0x3] }
 0x10f   :  { %v1689_v54 = vperm.slane %v1687_v53, 0 }
 0x110   :  { %v1465_v38 = vadd.f32 %v8480_v60, %v1452_v46  ;;  %2058 = vmatpush.bf16.msrb.mxu0 %v5248_v52 }
 0x111   :  { %2091 = vmatpush.bf16.msra.mxu2 %v5236_v37  ;;  %v1516_v22 = vpop.f32.mrf.mxu0  ;;  %v5297_v37 = vld [vmem:[%s10244_s3 + $0x1f8] sm:$0xf0] }
 0x112   :  { %2086 = vmatmul.bf16.vlgmr.msra.gmra.mxu1 %v1620_v58  ;;  %v6583_v58 = vld [vmem:[%s10244_s3 + $0x1f4] sm:$0xf]  ;;  %v1478_v59 = vadd.f32 %v1477_v12, %v1465_v38 }
 0x113   :  { %v5300_v61 = vor.u32 %v6583_v58, %v5297_v37 }
 0x114   :  { %2059 = vmatpush.bf16.msrb.mxu0 %v5240_v56 }
 0x115   :  { %2092 = vmatpush.bf16.msra.mxu2 %v5228_v1  ;;  %v1453_v21 = vpop.f32.mrf.mxu3 }
 0x116   :  { %v1479_v34 = vpop.f32.mrf.mxu2  ;;  %v6573_v21 = vld [vmem:[%s10244_s3 + $0x1a4] sm:$0xf] }
 0x118   :  { %2104 = vmatpush.bf16.msra.mxu0 %v5300_v61 }
 0x119   :  { %2093 = vmatpush.bf16.msra.mxu2 %v5220_v0  ;;  %v1518_v41 = vpop.f32.mrf.mxu0  ;;  %v5281_v0 = vld [vmem:[%s10244_s3 + $0x1d8] sm:$0xf0] }
 0x11a   :  { %v5284_v11 = vor.u32 %v6579_v55, %v5281_v0 }
 0x11c   :  { %2105 = vmatpush.bf16.msra.mxu0 %v5292_v8 }
 0x11d   :  { %2094 = vmatpush.bf16.msra.mxu2 %v5212_v7 }
 0x120   :  { %2106 = vmatpush.bf16.msra.mxu0 %v5284_v11  ;;  %v6597_v11 = vld [vmem:[%s10246_s5 + $0x64] sm:$0xf] }
 0x121   :  { %2095 = vmatpush.bf16.msra.mxu2 %v5204_v23  ;;  %v1490_v50 = vpop.f32.mrf.mxu1 }
 0x122   :  { %v1491_v62 = vadd.f32 %v1490_v50, %v1478_v59 }
 0x124   :  { %2107 = vmatpush.bf16.msra.mxu0 %v5276_v18  ;;  %v5345_v18 = vld [vmem:[%s10246_s5 + $0x58] sm:$0xf0] }
 0x125   :  { %2096 = vmatpush.bf16.msra.mxu2 %v5196_v36  ;;  %v1542_v60 = vpop.f32.mrf.mxu0  ;;  %v5244_v36 = vor.u32 %v6569_v33, %v5241_v48  ;;  %v5328_v33 = vor.u32 %v6592_v27, %v5327_v26  ;;  %v5375_v27 = vld [vmem:[%s10246_s5 + $0x90] sm:$0xf] }
 0x128   :  { %2108 = vmatpush.bf16.msra.mxu0 %v5268_v6  ;;  %v5335_v6 = vld [vmem:[%s10246_s5 + $0x40] sm:$0xf] }
 0x129   :  { %2097 = vmatpush.bf16.msra.mxu2 %v5188_v42  ;;  %v1492_v63 = vpop.f32.mrf.mxu1 }
 0x12d   :  { %2098 = vmatpush.bf16.msra.mxu2 %v5180_v47  ;;  %v1503_v1 = vpop.f32.mrf.mxu3  ;;  %v1544_v45 = vpop.f32.mrf.mxu0 }
 0x12e   :  { %v1504_v4 = vadd.f32 %v1503_v1, %v1491_v62  ;;  %v1529_v5 = vpop.f32.mrf.mxu2  ;;  %v1690_v62 = vperm.slane %v1687_v53, 1  ;;  %v6598_v45 = vld [vmem:[%s10246_s5 + $0x64] sm:$0xf0] }
 0x12f   :  { %v1530_v29 = vadd.f32 %v1529_v5, %v258_v24  ;;  %v6599_v5 = vld [vmem:[%s10246_s5 + $0x74] sm:$0xf]  ;;  %v5337_v24 = vld [vmem:[%s10246_s5 + $0x48] sm:$0xf0] }
 0x130   :  { %v1517_v9 = vadd.f32 %v1516_v22, %v1504_v4  ;;  %v5257_v22 = vld [vmem:[%s10244_s3 + $0x1a8] sm:$0xf0]  ;;  %v6600_v4 = vld [vmem:[%s10246_s5 + $0x74] sm:$0xf0] }
 0x131   :  { %v5260_v23 = vor.u32 %v6573_v21, %v5257_v22  ;;  %v1543_v32 = vadd.f32 %v1542_v60, %v1530_v29  ;;  %v5360_v8 = vor.u32 %v6600_v4, %v5359_v3  ;;  %v6594_v21 = vld [vmem:[%s10246_s5 + $0x44] sm:$0xf0]  ;;  %v6593_v22 = vld [vmem:[%s10246_s5 + $0x44] sm:$0xf]  ;;  %v5423_v29 = vld [vmem:[%s10246_s5 + $0xf0] sm:$0xf] }
 0x132   :  { %v1613_v10 = vmul.f32 0.01, %v1517_v9  ;;  %v5303_v3 = vld [vmem:[%s10246_s5] sm:$0xf]  ;;  %v6586_v4 = vld [vmem:[%s10246_s5 + $0x4] sm:$0xf0] }
 0x133   :  { %2109 = vmatpush.bf16.msra.mxu0 %v5260_v23  ;;  %2321 = vmatpush.bf16.msrb.mxu3 %v5360_v8  ;;  %v5336_v23 = vor.u32 %v6594_v21, %v5335_v6  ;;  %v5304_v8 = vor.u32 %v6586_v4, %v5303_v3  ;;  %v6605_v21 = vld [vmem:[%s10246_s5 + $0xa4] sm:$0xf]  ;;  %v5825_v3 = vld [vmem:[%s10248_s7 + $0x32c] sm:$0xf0]  ;;  %v5571_v4 = vld [vmem:[%s10248_s7 + $0x118] sm:$0xf] }
 0x134   :  { %v1617_v12 = vmax.f32 %v1517_v9, %v1613_v10  ;;  %v5361_v9 = vld [vmem:[%s10246_s5 + $0x78] sm:$0xf0]  ;;  %v5351_v10 = vld [vmem:[%s10246_s5 + $0x60] sm:$0xf] }
 0x135   :  { %v1505_v13 = vpop.f32.mrf.mxu3  ;;  %v5364_v0 = vor.u32 %v6599_v5, %v5361_v9  ;;  %v5399_v5 = vld [vmem:[%s10246_s5 + $0xc0] sm:$0xf]  ;;  %v6610_v9 = vld [vmem:[%s10246_s5 + $0xc4] sm:$0xf0] }
 0x136   :  { %v1621_v7 = vpack.c.bf16 %v1617_v12, %v1617_v12  ;;  %v1531_v17 = vpop.f32.mrf.mxu2  ;;  %v5352_v12 = vor.u32 %v6598_v45, %v5351_v10  ;;  %v5353_v13 = vld [vmem:[%s10246_s5 + $0x68] sm:$0xf0]  ;;  %v5400_v10 = vor.u32 %v6610_v9, %v5399_v5  ;;  %v6655_v5 = vld [vmem:[%s10248_s7 + $0x130] sm:$0xf0] }
 0x137   :  { %2110 = vmatpush.bf16.msra.mxu0 %v5252_v28  ;;  %v6595_v17 = vld [vmem:[%s10246_s5 + $0x54] sm:$0xf]  ;;  %v5340_v28 = vor.u32 %v6593_v22, %v5337_v24  ;;  %v5385_v22 = vld [vmem:[%s10246_s5 + $0xa8] sm:$0xf0] }
 0x138   :  { %2047 = vmatmul.bf16.vlgmr.msrb.gmra.mxu2 %v1621_v7  ;;  %2322 = vmatpush.bf16.msrb.mxu3 %v5352_v12  ;;  %v5348_v20 = vor.u32 %v6595_v17, %v5345_v18  ;;  %v5401_v12 = vld [vmem:[%s10246_s5 + $0xc8] sm:$0xf0]  ;;  %v5392_v17 = vor.u32 %v6608_v16, %v5391_v14  ;;  %v5393_v18 = vld [vmem:[%s10246_s5 + $0xb8] sm:$0xf0]  ;;  %v5388_v26 = vor.u32 %v6605_v21, %v5385_v22  ;;  %v6645_v21 = vld [vmem:[%s10248_s7 + $0xe4] sm:$0xf] }
 0x139   :  { %2347 = vmatpush.bf16.msrb.mxu2 %v5364_v0  ;;  %v5305_v0 = vld [vmem:[%s10246_s5 + $0x8] sm:$0xf0]  ;;  %v5545_v22 = vld [vmem:[%s10248_s7 + $0xfc] sm:$0xf0] }
 0x13b   :  { %2111 = vmatpush.bf16.msra.mxu0 %v5244_v36  ;;  %v6615_v36 = vld [vmem:[%s10246_s5 + $0xf4] sm:$0xf] }
 0x13c   :  { %2323 = vmatpush.bf16.msrb.mxu3 %v5344_v19  ;;  %v5383_v19 = vld [vmem:[%s10246_s5 + $0xa0] sm:$0xf] }
 0x140   :  { %2324 = vmatpush.bf16.msrb.mxu3 %v5336_v23 }
 0x141   :  { %v1555_v15 = vpop.f32.mrf.mxu1 }
 0x142   :  { %v1556_v39 = vadd.f32 %v1555_v15, %v1543_v32  ;;  %v6616_v15 = vld [vmem:[%s10246_s5 + $0xf4] sm:$0xf0]  ;;  %v6591_v32 = vld [vmem:[%s10246_s5 + $0x34] sm:$0xf] }
 0x143   :  { %v5424_v48 = vor.u32 %v6616_v15, %v5423_v29  ;;  %v6603_v29 = vld [vmem:[%s10246_s5 + $0x94] sm:$0xf] }
 0x144   :  { %2325 = vmatpush.bf16.msrb.mxu3 %v5328_v33 }
 0x145   :  { %v1594_v34 = vpop.f32.mrf.mxu0  ;;  %2334 = vmatpush.bf16.msrb.mxu1 %v5424_v48 }
 0x148   :  { %2099 = vmatmul.bf16.vlgmr.msra.gmra.mxu2 %v1621_v7  ;;  %v5356_v7 = vor.u32 %v6597_v11, %v5353_v13  ;;  %v6609_v11 = vld [vmem:[%s10246_s5 + $0xc4] sm:$0xf] }
 0x149   :  { %v1557_v40 = vpop.f32.mrf.mxu1  ;;  %v5404_v13 = vor.u32 %v6609_v11, %v5401_v12  ;;  %v5572_v11 = vor.u32 %v6655_v5, %v5571_v4  ;;  %v5797_v12 = vld [vmem:[%s10248_s7 + $0x2f4] sm:$0xf0] }
 0x14a   :  { %2348 = vmatpush.bf16.msrb.mxu2 %v5356_v7  ;;  %v6607_v7 = vld [vmem:[%s10246_s5 + $0xb4] sm:$0xf]  ;;  %v5461_v4 = vld [vmem:[%s10248_s7 + $0x54] sm:$0xf0] }
 0x14b   :  { %v5396_v6 = vor.u32 %v6607_v7, %v5393_v18  ;;  %v5543_v7 = vld [vmem:[%s10248_s7 + $0xe0] sm:$0xf] }
 0x14d   :  { %v1568_v51 = vpop.f32.mrf.mxu3  ;;  %v1596_v57 = vpop.f32.mrf.mxu0 }
 0x14e   :  { %v1569_v25 = vadd.f32 %v1568_v51, %v1556_v39  ;;  %v1581_v41 = vpop.f32.mrf.mxu2  ;;  %2349 = vmatpush.bf16.msrb.mxu2 %v5348_v20  ;;  %v5425_v39 = vld [vmem:[%s10246_s5 + $0xf8] sm:$0xf0]  ;;  %v6606_v20 = vld [vmem:[%s10246_s5 + $0xa4] sm:$0xf0] }
 0x14f   :  { %v5428_v51 = vor.u32 %v6615_v36, %v5425_v39  ;;  %v5384_v24 = vor.u32 %v6606_v20, %v5383_v19  ;;  %v6602_v36 = vld [vmem:[%s10246_s5 + $0x84] sm:$0xf0]  ;;  %v6601_v39 = vld [vmem:[%s10246_s5 + $0x84] sm:$0xf]  ;;  %v5767_v19 = vld [vmem:[%s10248_s7 + $0x2a0] sm:$0xf] }
 0x150   :  { %v1582_v42 = vadd.f32 %v1581_v41, %v1569_v25  ;;  %v5319_v25 = vld [vmem:[%s10246_s5 + $0x20] sm:$0xf]  ;;  %v6590_v41 = vld [vmem:[%s10246_s5 + $0x24] sm:$0xf0]  ;;  %v6704_v20 = vld [vmem:[%s10248_s7 + $0x2b8] sm:$0xf0] }
 0x151   :  { %v1607_v44 = vpop.f32.mrf.mxu1  ;;  %v5320_v57 = vor.u32 %v6590_v41, %v5319_v25  ;;  %v5627_v41 = vld [vmem:[%s10248_s7 + $0x188] sm:$0xf] }
 0x152   :  { %v1595_v43 = vadd.f32 %v1594_v34, %v1582_v42  ;;  %v5329_v34 = vld [vmem:[%s10246_s5 + $0x38] sm:$0xf0]  ;;  %2350 = vmatpush.bf16.msrb.mxu2 %v5340_v28  ;;  %v5415_v42 = vld [vmem:[%s10246_s5 + $0xe0] sm:$0xf]  ;;  %v6604_v28 = vld [vmem:[%s10246_s5 + $0x94] sm:$0xf0] }
 0x153   :  { %v5332_v40 = vor.u32 %v6591_v32, %v5329_v34  ;;  %2326 = vmatpush.bf16.msrb.mxu3 %v5320_v57  ;;  %v5376_v15 = vor.u32 %v6604_v28, %v5375_v27  ;;  %v5377_v32 = vld [vmem:[%s10246_s5 + $0x98] sm:$0xf0]  ;;  %v5367_v34 = vld [vmem:[%s10246_s5 + $0x80] sm:$0xf]  ;;  %v5851_v57 = vld [vmem:[%s10248_s7 + $0x348] sm:$0xf] }
 0x154   :  { %v1608_v46 = vadd.f32 %v1607_v44, %v1595_v43  ;;  %v6614_v43 = vld [vmem:[%s10246_s5 + $0xe4] sm:$0xf0]  ;;  %v6589_v44 = vld [vmem:[%s10246_s5 + $0x24] sm:$0xf]  ;;  %v5380_v33 = vor.u32 %v6603_v29, %v5377_v32  ;;  %v5548_v32 = vor.u32 %v6645_v21, %v5545_v22  ;;  %v6726_v21 = vld [vmem:[%s10248_s7 + $0x368] sm:$0xf0] }
 0x155   :  { %v1570_v31 = vpop.f32.mrf.mxu3  ;;  %v5515_v28 = vld [vmem:[%s10248_s7 + $0xa8] sm:$0xf]  ;;  %v6641_v29 = vld [vmem:[%s10248_s7 + $0xc0] sm:$0xf0]  ;;  %v6667_v22 = vld [vmem:[%s10248_s7 + $0x194] sm:$0xf] }
 0x156   :  { %v1583_v30 = vpop.f32.mrf.mxu2  ;;  %v1614_v35 = vmul.f32 0.01, %v1608_v46  ;;  %2351 = vmatpush.bf16.msrb.mxu2 %v5332_v40  ;;  %v5416_v31 = vor.u32 %v6614_v43, %v5415_v42  ;;  %v5368_v40 = vor.u32 %v6602_v36, %v5367_v34  ;;  %v6669_v42 = vld [vmem:[%s10248_s7 + $0x1a0] sm:$0xf0] }
 0x157   :  { %v5628_v43 = vor.u32 %v6669_v42, %v5627_v41  ;;  %v5516_v41 = vor.u32 %v6641_v29, %v5515_v28  ;;  %v6694_v42 = vld [vmem:[%s10248_s7 + $0x26c] sm:$0xf]  ;;  %v5861_v28 = vld [vmem:[%s10248_s7 + $0x36c] sm:$0xf0] }
 0x158   :  { %v1618_v47 = vmax.f32 %v1608_v46, %v1614_v35  ;;  %v5321_v46 = vld [vmem:[%s10246_s5 + $0x28] sm:$0xf0]  ;;  %v6613_v35 = vld [vmem:[%s10246_s5 + $0xe4] sm:$0xf]  ;;  %2335 = vmatpush.bf16.msrb.mxu1 %v5416_v31  ;;  %v5629_v31 = vld [vmem:[%s10248_s7 + $0x1a4] sm:$0xf0] }
 0x159   :  { %v1609_v50 = vpop.f32.mrf.mxu1  ;;  %v5324_v30 = vor.u32 %v6589_v44, %v5321_v46  ;;  %v6725_v44 = vld [vmem:[%s10248_s7 + $0x360] sm:$0xf0]  ;;  %v6666_v46 = vld [vmem:[%s10248_s7 + $0x18c] sm:$0xf] }
 0x15a   :  { %v1622_v49 = vpack.c.bf16 %v1618_v47, %v1618_v47  ;;  %v5417_v47 = vld [vmem:[%s10246_s5 + $0xe8] sm:$0xf0]  ;;  %v5311_v50 = vld [vmem:[%s10246_s5 + $0x10] sm:$0xf] }
 0x15b   :  { %2352 = vmatpush.bf16.msrb.mxu2 %v5324_v30  ;;  %v5852_v30 = vor.u32 %v6725_v44, %v5851_v57  ;;  %v5741_v57 = vld [vmem:[%s10248_s7 + $0x284] sm:$0xf0]  ;;  %v6634_v44 = vld [vmem:[%s10248_s7 + $0x88] sm:$0xf0] }
 0x15c   :  { %2060 = vmatmul.bf16.vlgmr.msrb.gmra.mxu0 %v1622_v49 }
 0x15d   :  { %2360 = vmatpush.bf16.msrb.mxu0 %v5428_v51  ;;  %v5369_v51 = vld [vmem:[%s10246_s5 + $0x88] sm:$0xf0] }
 0x15e   :  { %v5372_v25 = vor.u32 %v6601_v39, %v5369_v51  ;;  %v6697_v39 = vld [vmem:[%s10248_s7 + $0x280] sm:$0xf0]  ;;  %v5517_v51 = vld [vmem:[%s10248_s7 + $0xc4] sm:$0xf0] }
 0x16c   :  { %2112 = vmatmul.bf16.vlgmr.msra.gmra.mxu0 %v1622_v49  ;;  %v5420_v49 = vor.u32 %v6613_v35, %v5417_v47  ;;  %v5632_v35 = vor.u32 %v6666_v46, %v5629_v31  ;;  %v6722_v47 = vld [vmem:[%s10248_s7 + $0x34c] sm:$0xf] }
 0x16d   :  { %v2022_v52 = vpop.f32.mrf.mxu3 }
 0x16e   :  { %v2023_v58 = vadd.f32 %v2022_v52, %v1689_v54  ;;  %v6588_v52 = vld [vmem:[%s10246_s5 + $0x14] sm:$0xf0]  ;;  %2361 = vmatpush.bf16.msrb.mxu0 %v5420_v49  ;;  %v5853_v49 = vld [vmem:[%s10248_s7 + $0x364] sm:$0xf0] }
 0x16f   :  { %v5312_v53 = vor.u32 %v6588_v52, %v5311_v50  ;;  %v6612_v54 = vld [vmem:[%s10246_s5 + $0xd4] sm:$0xf0]  ;;  %v5599_v50 = vld [vmem:[%s10248_s7 + $0x150] sm:$0xf] }
 0x171   :  { %2327 = vmatpush.bf16.msrb.mxu3 %v5312_v53  ;;  %v6662_v53 = vld [vmem:[%s10248_s7 + $0x168] sm:$0xf0] }
 0x175   :  { %v2024_v38 = vpop.f32.mrf.mxu3  ;;  %2328 = vmatpush.bf16.msrb.mxu3 %v5304_v8 }
 0x176   :  { %v5407_v38 = vld [vmem:[%s10246_s5 + $0xd0] sm:$0xf] }
 0x179   :  { %3099 = vmatpush.bf16.msra.mxu3 %v5628_v43  ;;  %v5487_v43 = vld [vmem:[%s10248_s7 + $0x70] sm:$0xf] }
 0x17f   :  { %v2035_v37 = vpop.f32.mrf.mxu1 }
 0x180   :  { %v8626_v59 = vadd.f32 %v2035_v37, %v2023_v58  ;;  %v5313_v58 = vld [vmem:[%s10246_s5 + $0x18] sm:$0xf0]  ;;  %v5408_v37 = vor.u32 %v6612_v54, %v5407_v38  ;;  %v5856_v38 = vor.u32 %v6722_v47, %v5853_v49  ;;  %v5823_v54 = vld [vmem:[%s10248_s7 + $0x310] sm:$0xf]  ;;  %v6690_v47 = vld [vmem:[%s10248_s7 + $0x248] sm:$0xf0] }
 0x181   :  { %v6631_v49 = vld [vmem:[%s10248_s7 + $0x74] sm:$0xf] }
 0x182   :  { %2336 = vmatpush.bf16.msrb.mxu1 %v5408_v37 }
 0x186   :  { %2337 = vmatpush.bf16.msrb.mxu1 %v5400_v10  ;;  %v6652_v10 = vld [vmem:[%s10248_s7 + $0x11c] sm:$0xf] }
 0x187   :  { %v2037_v61 = vpop.f32.mrf.mxu1 }
 0x188   :  { %v6611_v61 = vld [vmem:[%s10246_s5 + $0xd4] sm:$0xf] }
 0x18a   :  { %2338 = vmatpush.bf16.msrb.mxu1 %v5392_v17  ;;  %v6648_v17 = vld [vmem:[%s10248_s7 + $0xf8] sm:$0xf0] }
 0x18d   :  { %v2074_v56 = vpop.f32.mrf.mxu3 }
 0x18e   :  { %v2075_v63 = vadd.f32 %v2074_v56, %v1690_v62  ;;  %v6587_v56 = vld [vmem:[%s10246_s5 + $0x14] sm:$0xf]  ;;  %v5409_v62 = vld [vmem:[%s10246_s5 + $0xd8] sm:$0xf0]  ;;  %2339 = vmatpush.bf16.msrb.mxu1 %v5384_v24  ;;  %v6701_v24 = vld [vmem:[%s10248_s7 + $0x2a4] sm:$0xf] }
 0x18f   :  { %v2087_v1 = vpop.f32.mrf.mxu1 }
 0x190   :  { %v8628_v2 = vadd.f32 %v2087_v1, %v2075_v63  ;;  %v5412_v63 = vor.u32 %v6611_v61, %v5409_v62  ;;  %v5601_v61 = vld [vmem:[%s10248_s7 + $0x16c] sm:$0xf0]  ;;  %v6715_v62 = vld [vmem:[%s10248_s7 + $0x314] sm:$0xf] }
 0x191   :  { %v5828_v9 = vor.u32 %v6715_v62, %v5825_v3  ;;  %v6624_v3 = vld [vmem:[%s10248_s7 + $0x3c] sm:$0xf] }
 0x192   :  { %2362 = vmatpush.bf16.msrb.mxu0 %v5412_v63  ;;  %2340 = vmatpush.bf16.msrb.mxu1 %v5376_v15  ;;  %v5768_v15 = vor.u32 %v6704_v20, %v5767_v19  ;;  %v6670_v19 = vld [vmem:[%s10248_s7 + $0x1a8] sm:$0xf0]  ;;  %v5859_v20 = vld [vmem:[%s10248_s7 + $0x350] sm:$0xf] }
 0x195   :  { %v2076_v60 = vpop.f32.mrf.mxu3 }
 0x196   :  { %v5316_v60 = vor.u32 %v6587_v56, %v5313_v58  ;;  %2363 = vmatpush.bf16.msrb.mxu0 %v5404_v13  ;;  %2341 = vmatpush.bf16.msrb.mxu1 %v5368_v40  ;;  %v6718_v56 = vld [vmem:[%s10248_s7 + $0x328] sm:$0xf0]  ;;  %v5600_v58 = vor.u32 %v6662_v53, %v5599_v50  ;;  %v5489_v50 = vld [vmem:[%s10248_s7 + $0x8c] sm:$0xf0] }
 0x197   :  { %v2089_v55 = vpop.f32.mrf.mxu1  ;;  %v5824_v37 = vor.u32 %v6718_v56, %v5823_v54  ;;  %v6638_v40 = vld [vmem:[%s10248_s7 + $0xac] sm:$0xf]  ;;  %v5713_v53 = vld [vmem:[%s10248_s7 + $0x24c] sm:$0xf0]  ;;  %v5459_v54 = vld [vmem:[%s10248_s7 + $0x38] sm:$0xf] }
 0x198   :  { %2353 = vmatpush.bf16.msrb.mxu2 %v5316_v60  ;;  %v6585_v55 = vld [vmem:[%s10246_s5 + $0x4] sm:$0xf]  ;;  %v6659_v60 = vld [vmem:[%s10248_s7 + $0x154] sm:$0xf]  ;;  %3100 = vmatpush.bf16.msra.mxu3 %v5600_v58  ;;  %v5520_v31 = vor.u32 %v6638_v40, %v5517_v51  ;;  %v5831_v51 = vld [vmem:[%s10248_s7 + $0x318] sm:$0xf] }
 0x199   :  { %v5308_v45 = vor.u32 %v6585_v55, %v5305_v0  ;;  %v5604_v63 = vor.u32 %v6659_v60, %v5601_v61  ;;  %v5795_v55 = vld [vmem:[%s10248_s7 + $0x2d8] sm:$0xf]  ;;  %v6711_v0 = vld [vmem:[%s10248_s7 + $0x2f0] sm:$0xf0] }
 0x19a   :  { %2364 = vmatpush.bf16.msrb.mxu0 %v5396_v6  ;;  %3112 = vmatpush.bf16.msra.mxu1 %v5852_v30  ;;  %v5796_v14 = vor.u32 %v6711_v0, %v5795_v55  ;;  %v5711_v30 = vld [vmem:[%s10248_s7 + $0x230] sm:$0xf]  ;;  %v6627_v56 = vld [vmem:[%s10248_s7 + $0x50] sm:$0xf0]  ;;  %v5683_v60 = vld [vmem:[%s10248_s7 + $0x1f8] sm:$0xf] }
 0x19b   :  { %v5712_v58 = vor.u32 %v6690_v47, %v5711_v30  ;;  %v5431_v55 = vld [vmem:[%s10248_s7] sm:$0xf]  ;;  %v6620_v0 = vld [vmem:[%s10248_s7 + $0x18] sm:$0xf0]  ;;  %v6663_v40 = vld [vmem:[%s10248_s7 + $0x170] sm:$0xf0] }
 0x19c   :  { %2354 = vmatpush.bf16.msrb.mxu2 %v5308_v45  ;;  %3101 = vmatpush.bf16.msra.mxu3 %v5572_v11  ;;  %v5464_v11 = vor.u32 %v6624_v3, %v5461_v4  ;;  %v6656_v47 = vld [vmem:[%s10248_s7 + $0x138] sm:$0xf0]  ;;  %v5775_v4 = vld [vmem:[%s10248_s7 + $0x2a8] sm:$0xf] }
 0x19e   :  { %2365 = vmatpush.bf16.msrb.mxu0 %v5388_v26  ;;  %3113 = vmatpush.bf16.msra.mxu1 %v5824_v37  ;;  %v5769_v26 = vld [vmem:[%s10248_s7 + $0x2bc] sm:$0xf0]  ;;  %v5492_v37 = vor.u32 %v6631_v49, %v5489_v50 }
 0x19f   :  { %v5772_v36 = vor.u32 %v6701_v24, %v5769_v26  ;;  %v5803_v49 = vld [vmem:[%s10248_s7 + $0x2e0] sm:$0xf] }
 0x1a0   :  { %3125 = vmatpush.bf16.msra.mxu2 %v5632_v35  ;;  %v5744_v35 = vor.u32 %v6694_v42, %v5741_v57  ;;  %v6660_v42 = vld [vmem:[%s10248_s7 + $0x15c] sm:$0xf]  ;;  %v5609_v57 = vld [vmem:[%s10248_s7 + $0x174] sm:$0xf0] }
 0x1a1   :  { %v5612_v30 = vor.u32 %v6660_v42, %v5609_v57  ;;  %v6681_v57 = vld [vmem:[%s10248_s7 + $0x204] sm:$0xf] }
 0x1a2   :  { %2366 = vmatpush.bf16.msrb.mxu0 %v5380_v33  ;;  %3114 = vmatpush.bf16.msra.mxu1 %v5796_v14  ;;  %v5739_v33 = vld [vmem:[%s10248_s7 + $0x268] sm:$0xf] }
 0x1a3   :  { %v5740_v46 = vor.u32 %v6697_v39, %v5739_v33  ;;  %v5607_v39 = vld [vmem:[%s10248_s7 + $0x158] sm:$0xf] }
 0x1a4   :  { %3126 = vmatpush.bf16.msra.mxu2 %v5604_v63  ;;  %v6683_v63 = vld [vmem:[%s10248_s7 + $0x210] sm:$0xf0] }
 0x1a6   :  { %2367 = vmatpush.bf16.msrb.mxu0 %v5372_v25  ;;  %3115 = vmatpush.bf16.msra.mxu1 %v5768_v15 }
 0x1aa   :  { %3138 = vmatpush.bf16.msra.mxu0 %v5856_v38  ;;  %v6687_v38 = vld [vmem:[%s10248_s7 + $0x234] sm:$0xf]  ;;  %3116 = vmatpush.bf16.msra.mxu1 %v5740_v46  ;;  %v5608_v46 = vor.u32 %v6663_v40, %v5607_v39  ;;  %v6684_v40 = vld [vmem:[%s10248_s7 + $0x218] sm:$0xf0] }
 0x1ab   :  { %v5716_v62 = vor.u32 %v6687_v38, %v5713_v53  ;;  %v6653_v38 = vld [vmem:[%s10248_s7 + $0x124] sm:$0xf]  ;;  %v5581_v53 = vld [vmem:[%s10248_s7 + $0x13c] sm:$0xf0] }
 0x1ae   :  { %3139 = vmatpush.bf16.msra.mxu0 %v5828_v9  ;;  %3117 = vmatpush.bf16.msra.mxu1 %v5712_v58 }
 0x1bb   :  { %v8750_v1 = vpop.f32.mrf.mxu2 }
 0x1bc   :  { %v2049_v8 = vadd.f32 %v8750_v1, %v8626_v59  ;;  %v5573_v59 = vld [vmem:[%s10248_s7 + $0x134] sm:$0xf0]  ;;  %v6708_v1 = vld [vmem:[%s10248_s7 + $0x2dc] sm:$0xf] }
 0x1bd   :  { %v5576_v16 = vor.u32 %v6652_v10, %v5573_v59  ;;  %v5800_v18 = vor.u32 %v6708_v1, %v5797_v12  ;;  %v5655_v10 = vld [vmem:[%s10248_s7 + $0x1c0] sm:$0xf]  ;;  %v6676_v59 = vld [vmem:[%s10248_s7 + $0x1d8] sm:$0xf0]  ;;  %v6617_v1 = vld [vmem:[%s10248_s7 + $0x4] sm:$0xf] }
 0x1be   :  { %v5433_v12 = vld [vmem:[%s10248_s7 + $0x1c] sm:$0xf0]  ;;  %v5656_v24 = vor.u32 %v6676_v59, %v5655_v10  ;;  %v5747_v59 = vld [vmem:[%s10248_s7 + $0x270] sm:$0xf] }
 0x1bf   :  { %3127 = vmatpush.bf16.msra.mxu2 %v5576_v16  ;;  %3140 = vmatpush.bf16.msra.mxu0 %v5800_v18  ;;  %v6673_v16 = vld [vmem:[%s10248_s7 + $0x1c4] sm:$0xf]  ;;  %v5635_v18 = vld [vmem:[%s10248_s7 + $0x190] sm:$0xf]  ;;  %v5436_v26 = vor.u32 %v6617_v1, %v5433_v12  ;;  %v6698_v12 = vld [vmem:[%s10248_s7 + $0x288] sm:$0xf0] }
 0x1c3   :  { %v2050_v23 = vpop.f32.mrf.mxu2  ;;  %3128 = vmatpush.bf16.msra.mxu2 %v5548_v32  ;;  %3141 = vmatpush.bf16.msra.mxu0 %v5772_v36  ;;  %v5636_v32 = vor.u32 %v6670_v19, %v5635_v18  ;;  %v5749_v18 = vld [vmem:[%s10248_s7 + $0x28c] sm:$0xf0] }
 0x1c4   :  { %v5544_v23 = vor.u32 %v6648_v17, %v5543_v7  ;;  %v5657_v7 = vld [vmem:[%s10248_s7 + $0x1dc] sm:$0xf0]  ;;  %v5432_v17 = vor.u32 %v6620_v0, %v5431_v55  ;;  %v5777_v55 = vld [vmem:[%s10248_s7 + $0x2c4] sm:$0xf0] }
 0x1c5   :  { %v5660_v15 = vor.u32 %v6673_v16, %v5657_v7  ;;  %v5748_v16 = vor.u32 %v6698_v12, %v5747_v59  ;;  %v6727_v59 = vld [vmem:[%s10248_s7 + $0x370] sm:$0xf0] }
 0x1c6   :  { %3102 = vmatpush.bf16.msra.mxu3 %v5544_v23  ;;  %v5637_v23 = vld [vmem:[%s10248_s7 + $0x1ac] sm:$0xf0] }
 0x1c7   :  { %3129 = vmatpush.bf16.msra.mxu2 %v5520_v31  ;;  %3142 = vmatpush.bf16.msra.mxu0 %v5744_v35  ;;  %v5640_v36 = vor.u32 %v6667_v22, %v5637_v23  ;;  %v5579_v35 = vld [vmem:[%s10248_s7 + $0x120] sm:$0xf]  ;;  %v6691_v23 = vld [vmem:[%s10248_s7 + $0x250] sm:$0xf0] }
 0x1c8   :  { %v5580_v58 = vor.u32 %v6656_v47, %v5579_v35  ;;  %v6677_v47 = vld [vmem:[%s10248_s7 + $0x1e0] sm:$0xf0] }
 0x1ca   :  { %3103 = vmatpush.bf16.msra.mxu3 %v5516_v41  ;;  %v6719_v41 = vld [vmem:[%s10248_s7 + $0x330] sm:$0xf0] }
 0x1cb   :  { %v8812_v48 = vpop.f32.mrf.mxu2  ;;  %3130 = vmatpush.bf16.msra.mxu2 %v5492_v37  ;;  %3143 = vmatpush.bf16.msra.mxu0 %v5716_v62  ;;  %v5832_v31 = vor.u32 %v6719_v41, %v5831_v51  ;;  %v5551_v62 = vld [vmem:[%s10248_s7 + $0xe8] sm:$0xf]  ;;  %v6625_v51 = vld [vmem:[%s10248_s7 + $0x44] sm:$0xf] }
 0x1cc   :  { %v2101_v61 = vadd.f32 %v8812_v48, %v8628_v2  ;;  %v6680_v2 = vld [vmem:[%s10248_s7 + $0x1fc] sm:$0xf]  ;;  %v5685_v48 = vld [vmem:[%s10248_s7 + $0x214] sm:$0xf0] }
 0x1cd   :  { %v5688_v14 = vor.u32 %v6680_v2, %v5685_v48  ;;  %v5553_v48 = vld [vmem:[%s10248_s7 + $0x104] sm:$0xf0] }
 0x1cf   :  { %3131 = vmatpush.bf16.msra.mxu2 %v5464_v11  ;;  %3144 = vmatpush.bf16.msra.mxu0 %v5688_v14  ;;  %v6642_v11 = vld [vmem:[%s10248_s7 + $0xc8] sm:$0xf0]  ;;  %v5525_v14 = vld [vmem:[%s10248_s7 + $0xcc] sm:$0xf0] }
 0x1d3   :  { %v2102_v52 = vpop.f32.mrf.mxu2  ;;  %3132 = vmatpush.bf16.msra.mxu2 %v5436_v26  ;;  %3145 = vmatpush.bf16.msra.mxu0 %v5660_v15  ;;  %v5497_v26 = vld [vmem:[%s10248_s7 + $0x94] sm:$0xf0] }
 0x1d4   :  { %v5488_v52 = vor.u32 %v6634_v44, %v5487_v43  ;;  %v6716_v43 = vld [vmem:[%s10248_s7 + $0x31c] sm:$0xf]  ;;  %v5833_v44 = vld [vmem:[%s10248_s7 + $0x334] sm:$0xf0] }
 0x1d5   :  { %v5836_v50 = vor.u32 %v6716_v43, %v5833_v44  ;;  %v5721_v15 = vld [vmem:[%s10248_s7 + $0x254] sm:$0xf0]  ;;  %v5693_v43 = vld [vmem:[%s10248_s7 + $0x21c] sm:$0xf0] }
 0x1d6   :  { %3104 = vmatpush.bf16.msra.mxu3 %v5488_v52  ;;  %v6712_v52 = vld [vmem:[%s10248_s7 + $0x2f8] sm:$0xf0]  ;;  %v5696_v44 = vor.u32 %v6681_v57, %v5693_v43  ;;  %v6654_v57 = vld [vmem:[%s10248_s7 + $0x12c] sm:$0xf]  ;;  %v5589_v43 = vld [vmem:[%s10248_s7 + $0x144] sm:$0xf0] }
 0x1d7   :  { %v5804_v37 = vor.u32 %v6712_v52, %v5803_v49  ;;  %v6618_v49 = vld [vmem:[%s10248_s7 + $0xc] sm:$0xf] }
 0x1d9   :  { %v2061_v45 = vpop.f32.mrf.mxu0 }
 0x1da   :  { %v2062_v13 = vadd.f32 %v2061_v45, %v2049_v8  ;;  %v5460_v8 = vor.u32 %v6627_v56, %v5459_v54  ;;  %v5684_v45 = vor.u32 %v6683_v63, %v5683_v60  ;;  %v6709_v54 = vld [vmem:[%s10248_s7 + $0x2e4] sm:$0xf]  ;;  %v5805_v56 = vld [vmem:[%s10248_s7 + $0x2fc] sm:$0xf0]  ;;  %v5584_v60 = vor.u32 %v6653_v38, %v5581_v53  ;;  %v6674_v53 = vld [vmem:[%s10248_s7 + $0x1cc] sm:$0xf] }
 0x1db   :  { %v6649_v63 = vld [vmem:[%s10248_s7 + $0x100] sm:$0xf0] }
 0x1dc   :  { %v2117_v6 = vmul.f32 0.01, %v2062_v13  ;;  %3105 = vmatpush.bf16.msra.mxu3 %v5460_v8  ;;  %3118 = vmatpush.bf16.msra.mxu1 %v5684_v45  ;;  %v5552_v3 = vor.u32 %v6649_v63, %v5551_v62  ;;  %v6646_v8 = vld [vmem:[%s10248_s7 + $0xec] sm:$0xf]  ;;  %v5523_v45 = vld [vmem:[%s10248_s7 + $0xb0] sm:$0xf] }
 0x1dd   :  { %v5556_v0 = vor.u32 %v6646_v8, %v5553_v48  ;;  %v5524_v1 = vor.u32 %v6642_v11, %v5523_v45  ;;  %v6671_v45 = vld [vmem:[%s10248_s7 + $0x1b0] sm:$0xf0]  ;;  %v5867_v11 = vld [vmem:[%s10248_s7 + $0x358] sm:$0xf] }
 0x1de   :  { %v2119_v27 = vmax.f32 %v2062_v13, %v2117_v6 }
 0x1e0   :  { %v2121_v34 = vpack.c.bf16 %v2119_v27, %v2119_v27  ;;  %v6723_v27 = vld [vmem:[%s10248_s7 + $0x354] sm:$0xf]  ;;  %3106 = vmatpush.bf16.msra.mxu3 %v5432_v17  ;;  %3119 = vmatpush.bf16.msra.mxu1 %v5656_v24  ;;  %v6632_v24 = vld [vmem:[%s10248_s7 + $0x7c] sm:$0xf] }
 0x1e1   :  { %v2063_v25 = vpop.f32.mrf.mxu0  ;;  %v6695_v17 = vld [vmem:[%s10248_s7 + $0x274] sm:$0xf] }
 0x1e2   :  { %2329 = vmatmul.bf16.vlgmr.msrb.gmra.mxu3 %v2121_v34  ;;  %2355 = vmatmul.bf16.vlgmr.msrb.gmra.mxu2 %v2121_v34  ;;  %v5860_v34 = vor.u32 %v6726_v21, %v5859_v20  ;;  %v5864_v25 = vor.u32 %v6723_v27, %v5861_v28  ;;  %v5752_v19 = vor.u32 %v6695_v17, %v5749_v18  ;;  %v5495_v20 = vld [vmem:[%s10248_s7 + $0x78] sm:$0xf] }
 0x1e3   :  { %3177 = vmatpush.bf16.msrb.mxu2 %v5640_v36  ;;  %v5719_v21 = vld [vmem:[%s10248_s7 + $0x238] sm:$0xf]  ;;  %v5500_v28 = vor.u32 %v6632_v24, %v5497_v26  ;;  %v5691_v36 = vld [vmem:[%s10248_s7 + $0x200] sm:$0xf] }
 0x1e4   :  { %3151 = vmatpush.bf16.msrb.mxu3 %v5636_v32  ;;  %v5720_v27 = vor.u32 %v6691_v23, %v5719_v21  ;;  %v5692_v41 = vor.u32 %v6684_v40, %v5691_v36  ;;  %v6664_v21 = vld [vmem:[%s10248_s7 + $0x178] sm:$0xf0]  ;;  %v6657_v40 = vld [vmem:[%s10248_s7 + $0x140] sm:$0xf0] }
 0x1e7   :  { %3178 = vmatpush.bf16.msrb.mxu2 %v5612_v30  ;;  %v5663_v30 = vld [vmem:[%s10248_s7 + $0x1c8] sm:$0xf] }
 0x1e8   :  { %3152 = vmatpush.bf16.msrb.mxu3 %v5608_v46  ;;  %v5439_v46 = vld [vmem:[%s10248_s7 + $0x8] sm:$0xf]  ;;  %v5664_v52 = vor.u32 %v6677_v47, %v5663_v30  ;;  %v6650_v47 = vld [vmem:[%s10248_s7 + $0x108] sm:$0xf0] }
 0x1e9   :  { %v2113_v5 = vpop.f32.mrf.mxu0 }
 0x1ea   :  { %v2114_v9 = vadd.f32 %v2113_v5, %v2101_v61  ;;  %v5808_v61 = vor.u32 %v6709_v54, %v5805_v56  ;;  %v6705_v5 = vld [vmem:[%s10248_s7 + $0x2c0] sm:$0xf0]  ;;  %v5665_v54 = vld [vmem:[%s10248_s7 + $0x1e4] sm:$0xf0] }
 0x1eb   :  { %3179 = vmatpush.bf16.msrb.mxu2 %v5584_v60  ;;  %v5776_v2 = vor.u32 %v6705_v5, %v5775_v4  ;;  %v5668_v56 = vor.u32 %v6674_v53, %v5665_v54  ;;  %v2155_v60 = vld [vmem:[%s10247_s6] sm:$0x3]  ;;  %v6647_v53 = vld [vmem:[%s10248_s7 + $0xf4] sm:$0xf]  ;;  %v5561_v54 = vld [vmem:[%s10248_s7 + $0x10c] sm:$0xf0] }
 0x1ec   :  { %v2118_v13 = vmul.f32 0.01, %v2114_v9  ;;  %3153 = vmatpush.bf16.msrb.mxu3 %v5580_v58  ;;  %v2158_v62 = vperm.slane %v2155_v60, 1  ;;  %s4232_s6 = sshll.u32 %s10252_s11, 4  ;;  %s4233_s6 = int_to_ptr.hbm [resolvable:$true] %s4232_s6 }
 0x1ee   :  { %v2120_v6 = vmax.f32 %v2114_v9, %v2118_v13  ;;  %v6702_v9 = vld [vmem:[%s10248_s7 + $0x2ac] sm:$0xf]  ;;  %v6639_v13 = vld [vmem:[%s10248_s7 + $0xb4] sm:$0xf] }
 0x1ef   :  { %v5780_v10 = vor.u32 %v6702_v9, %v5777_v55  ;;  %3180 = vmatpush.bf16.msrb.mxu2 %v5556_v0  ;;  %v5528_v7 = vor.u32 %v6639_v13, %v5525_v14  ;;  %v5643_v55 = vld [vmem:[%s10248_s7 + $0x198] sm:$0xf] }
 0x1f0   :  { %v2122_v29 = vpack.c.bf16 %v2120_v6, %v2120_v6  ;;  %3154 = vmatpush.bf16.msrb.mxu3 %v5552_v3  ;;  %v6635_v6 = vld [vmem:[%s10248_s7 + $0x90] sm:$0xf0]  ;;  %v5645_v14 = vld [vmem:[%s10248_s7 + $0x1b4] sm:$0xf0] }
 0x1f1   :  { %v2115_v33 = vpop.f32.mrf.mxu0  ;;  %v5496_v22 = vor.u32 %v6635_v6, %v5495_v20  ;;  %v5868_v20 = vor.u32 %v6727_v59, %v5867_v11  ;;  %v5615_v6 = vld [vmem:[%s10248_s7 + $0x160] sm:$0xf] }
 0x1f2   :  { %2342 = vmatmul.bf16.vlgmr.msrb.gmra.mxu1 %v2122_v29  ;;  %2368 = vmatmul.bf16.vlgmr.msrb.gmra.mxu0 %v2122_v29  ;;  %v6688_v29 = vld [vmem:[%s10248_s7 + $0x23c] sm:$0xf]  ;;  %v5467_v33 = vld [vmem:[%s10248_s7 + $0x40] sm:$0xf] }
 0x1f3   :  { %3164 = vmatpush.bf16.msrb.mxu1 %v5860_v34  ;;  %3190 = vmatpush.bf16.msrb.mxu0 %v5864_v25  ;;  %v5724_v32 = vor.u32 %v6688_v29, %v5721_v15  ;;  %v6628_v34 = vld [vmem:[%s10248_s7 + $0x58] sm:$0xf0]  ;;  %v5469_v25 = vld [vmem:[%s10248_s7 + $0x5c] sm:$0xf0]  ;;  %v6661_v29 = vld [vmem:[%s10248_s7 + $0x164] sm:$0xf] }
 0x1f4   :  { %3155 = vmatpush.bf16.msrb.mxu3 %v5524_v1  ;;  %3181 = vmatpush.bf16.msrb.mxu2 %v5528_v7  ;;  %v5468_v39 = vor.u32 %v6628_v34, %v5467_v33  ;;  %v5472_v42 = vor.u32 %v6625_v51, %v5469_v25  ;;  %v6668_v1 = vld [vmem:[%s10248_s7 + $0x19c] sm:$0xf]  ;;  %v5869_v7 = vld [vmem:[%s10248_s7 + $0x374] sm:$0xf0]  ;;  %v5617_v15 = vld [vmem:[%s10248_s7 + $0x17c] sm:$0xf0]  ;;  %v5616_v34 = vor.u32 %v6664_v21, %v5615_v6 }
 0x1f5   :  { %v5648_v24 = vor.u32 %v6668_v1, %v5645_v14  ;;  %v5841_v33 = vld [vmem:[%s10248_s7 + $0x33c] sm:$0xf0]  ;;  %v5620_v51 = vor.u32 %v6661_v29, %v5617_v15  ;;  %v5475_v6 = vld [vmem:[%s10248_s7 + $0x48] sm:$0xf]  ;;  %v6629_v21 = vld [vmem:[%s10248_s7 + $0x60] sm:$0xf0] }
 0x1f6   :  { %v5727_v1 = vld [vmem:[%s10248_s7 + $0x240] sm:$0xf]  ;;  %v6682_v29 = vld [vmem:[%s10248_s7 + $0x20c] sm:$0xf]  ;;  %v5701_v15 = vld [vmem:[%s10248_s7 + $0x224] sm:$0xf0] }
 0x1f7   :  { %3165 = vmatpush.bf16.msrb.mxu1 %v5832_v31  ;;  %3191 = vmatpush.bf16.msrb.mxu0 %v5836_v50  ;;  %v6621_v31 = vld [vmem:[%s10248_s7 + $0x20] sm:$0xf0]  ;;  %v5441_v50 = vld [vmem:[%s10248_s7 + $0x24] sm:$0xf0]  ;;  %v5505_v14 = vld [vmem:[%s10248_s7 + $0x9c] sm:$0xf0] }
 0x1f8   :  { %3156 = vmatpush.bf16.msrb.mxu3 %v5496_v22  ;;  %3182 = vmatpush.bf16.msrb.mxu2 %v5500_v28  ;;  %v5440_v35 = vor.u32 %v6621_v31, %v5439_v46  ;;  %v5444_v38 = vor.u32 %v6618_v49, %v5441_v50  ;;  %v6720_v28 = vld [vmem:[%s10248_s7 + $0x338] sm:$0xf0]  ;;  %v5813_v46 = vld [vmem:[%s10248_s7 + $0x304] sm:$0xf0]  ;;  %v5592_v49 = vor.u32 %v6654_v57, %v5589_v43  ;;  %v6675_v57 = vld [vmem:[%s10248_s7 + $0x1d4] sm:$0xf] }
 0x1f9   :  { %v5673_v43 = vld [vmem:[%s10248_s7 + $0x1ec] sm:$0xf0] }
 0x1fb   :  { %3166 = vmatpush.bf16.msrb.mxu1 %v5804_v37  ;;  %3192 = vmatpush.bf16.msrb.mxu0 %v5808_v61  ;;  %v2157_v61 = vperm.slane %v2155_v60, 0 }
 0x1fc   :  { %3157 = vmatpush.bf16.msrb.mxu3 %v5468_v39  ;;  %3183 = vmatpush.bf16.msrb.mxu2 %v5472_v42  ;;  %v5587_v39 = vld [vmem:[%s10248_s7 + $0x128] sm:$0xf]  ;;  %v6713_v42 = vld [vmem:[%s10248_s7 + $0x300] sm:$0xf0] }
 0x1fd   :  { %v5588_v31 = vor.u32 %v6657_v40, %v5587_v39  ;;  %v5671_v39 = vld [vmem:[%s10248_s7 + $0x1d0] sm:$0xf]  ;;  %v6678_v40 = vld [vmem:[%s10248_s7 + $0x1e8] sm:$0xf0] }
 0x1ff   :  { %3167 = vmatpush.bf16.msrb.mxu1 %v5776_v2  ;;  %3193 = vmatpush.bf16.msrb.mxu0 %v5780_v10 }
 0x200   :  { %3158 = vmatpush.bf16.msrb.mxu3 %v5440_v35  ;;  %3184 = vmatpush.bf16.msrb.mxu2 %v5444_v38  ;;  %v5559_v35 = vld [vmem:[%s10248_s7 + $0xf0] sm:$0xf]  ;;  %v6706_v38 = vld [vmem:[%s10248_s7 + $0x2c8] sm:$0xf0] }
 0x203   :  { %3168 = vmatpush.bf16.msrb.mxu1 %v5748_v16  ;;  %3194 = vmatpush.bf16.msrb.mxu0 %v5752_v19  ;;  %v6724_v16 = vld [vmem:[%s10248_s7 + $0x35c] sm:$0xf]  ;;  %v5644_v19 = vor.u32 %v6671_v45, %v5643_v55 }
 0x204   :  { %v5872_v26 = vor.u32 %v6724_v16, %v5869_v7  ;;  %v6636_v45 = vld [vmem:[%s10248_s7 + $0x98] sm:$0xf0]  ;;  %v6689_v16 = vld [vmem:[%s10248_s7 + $0x244] sm:$0xf]  ;;  %v5729_v7 = vld [vmem:[%s10248_s7 + $0x25c] sm:$0xf0] }
 0x207   :  { %3169 = vmatpush.bf16.msrb.mxu1 %v5720_v27  ;;  %3195 = vmatpush.bf16.msrb.mxu0 %v5724_v32  ;;  %v5839_v27 = vld [vmem:[%s10248_s7 + $0x320] sm:$0xf]  ;;  %v6717_v32 = vld [vmem:[%s10248_s7 + $0x324] sm:$0xf] }
 0x208   :  { %v5840_v36 = vor.u32 %v6720_v28, %v5839_v27  ;;  %v5844_v25 = vor.u32 %v6717_v32, %v5841_v33  ;;  %v6626_v27 = vld [vmem:[%s10248_s7 + $0x4c] sm:$0xf]  ;;  %v5477_v28 = vld [vmem:[%s10248_s7 + $0x64] sm:$0xf0]  ;;  %v5447_v32 = vld [vmem:[%s10248_s7 + $0x10] sm:$0xf]  ;;  %v5476_v33 = vor.u32 %v6629_v21, %v5475_v6 }
 0x20b   :  { %3170 = vmatpush.bf16.msrb.mxu1 %v5692_v41  ;;  %3196 = vmatpush.bf16.msrb.mxu0 %v5696_v44  ;;  %v5811_v41 = vld [vmem:[%s10248_s7 + $0x2e8] sm:$0xf]  ;;  %v6710_v44 = vld [vmem:[%s10248_s7 + $0x2ec] sm:$0xf] }
 0x20c   :  { %v5812_v30 = vor.u32 %v6713_v42, %v5811_v41  ;;  %v5816_v50 = vor.u32 %v6710_v44, %v5813_v46  ;;  %v6619_v41 = vld [vmem:[%s10248_s7 + $0x14] sm:$0xf]  ;;  %v5449_v42 = vld [vmem:[%s10248_s7 + $0x2c] sm:$0xf0]  ;;  %v5651_v44 = vld [vmem:[%s10248_s7 + $0x1a0] sm:$0xf] }
 0x20d   :  { %v6672_v46 = vld [vmem:[%s10248_s7 + $0x1b8] sm:$0xf0] }
 0x20f   :  { %3171 = vmatpush.bf16.msrb.mxu1 %v5664_v52  ;;  %3197 = vmatpush.bf16.msrb.mxu0 %v5668_v56  ;;  %v5783_v52 = vld [vmem:[%s10248_s7 + $0x2b0] sm:$0xf]  ;;  %v6703_v56 = vld [vmem:[%s10248_s7 + $0x2b4] sm:$0xf] }
 0x210   :  { %v5784_v60 = vor.u32 %v6706_v38, %v5783_v52  ;;  %v6299_v52 = vld [vmem:[%s10250_s9 + $0x348] sm:$0xf]  ;;  %v6837_v38 = vld [vmem:[%s10250_s9 + $0x360] sm:$0xf0] }
 0x265   :  { %v2330_v58 = vpop.f32.mrf.mxu3  ;;  %v2356_v37 = vpop.f32.mrf.mxu2 }
 0x266   :  { %v2331_v4 = vadd.f32 %v2330_v58, %v2157_v61  ;;  %v2357_v5 = vadd.f32 %v2356_v37, %v2158_v62  ;;  %v5785_v58 = vld [vmem:[%s10248_s7 + $0x2cc] sm:$0xf0]  ;;  %v5560_v37 = vor.u32 %v6650_v47, %v5559_v35  ;;  %v5531_v61 = vld [vmem:[%s10248_s7 + $0xb8] sm:$0xf]  ;;  %v6643_v62 = vld [vmem:[%s10248_s7 + $0xd0] sm:$0xf0] }
 0x267   :  { %v5532_v55 = vor.u32 %v6643_v62, %v5531_v61  ;;  %v6075_v35 = vld [vmem:[%s10250_s9 + $0x188] sm:$0xf]  ;;  %v6300_v62 = vor.u32 %v6837_v38, %v6299_v52  ;;  %v6159_v52 = vld [vmem:[%s10250_s9 + $0x230] sm:$0xf]  ;;  %v6802_v38 = vld [vmem:[%s10250_s9 + $0x248] sm:$0xf0] }
 0x26d   :  { %v2332_v63 = vpop.f32.mrf.mxu3  ;;  %v2358_v3 = vpop.f32.mrf.mxu2 }
 0x26e   :  { %v5564_v63 = vor.u32 %v6647_v53, %v5561_v54  ;;  %v5788_v3 = vor.u32 %v6703_v56, %v5785_v58  ;;  %v5452_v53 = vor.u32 %v6619_v41, %v5449_v42  ;;  %v5676_v54 = vor.u32 %v6675_v57, %v5673_v43  ;;  %v6187_v41 = vld [vmem:[%s10250_s9 + $0x268] sm:$0xf]  ;;  %v6809_v42 = vld [vmem:[%s10250_s9 + $0x280] sm:$0xf0] }
 0x26f   :  { %v2343_v8 = vpop.f32.mrf.mxu1  ;;  %v2369_v2 = vpop.f32.mrf.mxu0  ;;  %v5652_v56 = vor.u32 %v6672_v46, %v5651_v44  ;;  %v5511_v44 = vld [vmem:[%s10248_s7 + $0x88] sm:$0xf]  ;;  %v6637_v46 = vld [vmem:[%s10248_s7 + $0xa0] sm:$0xf0] }
 0x270   :  { %v2344_v48 = vadd.f32 %v2343_v8, %v2331_v4  ;;  %v2370_v9 = vadd.f32 %v2369_v2, %v2357_v5  ;;  %v5755_v4 = vld [vmem:[%s10248_s7 + $0x278] sm:$0xf]  ;;  %v6699_v5 = vld [vmem:[%s10248_s7 + $0x290] sm:$0xf0]  ;;  %v6640_v8 = vld [vmem:[%s10248_s7 + $0xbc] sm:$0xf] }
 0x271   :  { %v5533_v2 = vld [vmem:[%s10248_s7 + $0xd4] sm:$0xf0] }
 0x272   :  { %v2373_v0 = vmul.f32 0.01, %v2344_v48  ;;  %v2374_v10 = vmul.f32 0.01, %v2370_v9  ;;  %v5536_v11 = vor.u32 %v6640_v8, %v5533_v2  ;;  %v6271_v8 = vld [vmem:[%s10250_s9 + $0x310] sm:$0xf] }
 0x273   :  { %v6830_v2 = vld [vmem:[%s10250_s9 + $0x328] sm:$0xf0] }
 0x274   :  { %v2375_v12 = vmax.f32 %v2344_v48, %v2373_v0  ;;  %v2376_v13 = vmax.f32 %v2370_v9, %v2374_v10  ;;  %v6696_v48 = vld [vmem:[%s10248_s7 + $0x27c] sm:$0xf]  ;;  %v5757_v9 = vld [vmem:[%s10248_s7 + $0x294] sm:$0xf0]  ;;  %v5756_v0 = vor.u32 %v6699_v5, %v5755_v4  ;;  %v5503_v10 = vld [vmem:[%s10248_s7 + $0x80] sm:$0xf] }
 0x275   :  { %v5760_v59 = vor.u32 %v6696_v48, %v5757_v9  ;;  %v6047_v4 = vld [vmem:[%s10250_s9 + $0x150] sm:$0xf]  ;;  %v6774_v5 = vld [vmem:[%s10250_s9 + $0x168] sm:$0xf0] }
 0x276   :  { %v9241_v17 = vpack.c.bf16 %v2375_v12, %v2375_v12  ;;  %v9243_v18 = vpack.c.bf16 %v2376_v13, %v2376_v13  ;;  %v6692_v12 = vld [vmem:[%s10248_s7 + $0x258] sm:$0xf0]  ;;  %v6633_v13 = vld [vmem:[%s10248_s7 + $0x84] sm:$0xf] }
 0x277   :  { %v2345_v22 = vpop.f32.mrf.mxu1  ;;  %v2371_v23 = vpop.f32.mrf.mxu0 }
 0x278   :  { %3107 = vmatmul.bf16.vlgmr.msra.gmra.mxu3 %v9241_v17  ;;  %3120 = vmatmul.bf16.vlgmr.msra.gmra.mxu1 %v9243_v18  ;;  %v5508_v22 = vor.u32 %v6633_v13, %v5505_v14  ;;  %v5732_v23 = vor.u32 %v6689_v16, %v5729_v7  ;;  %v6243_v13 = vld [vmem:[%s10250_s9 + $0x2d8] sm:$0xf]  ;;  %v6823_v14 = vld [vmem:[%s10250_s9 + $0x2f0] sm:$0xf0] }
 0x279   :  { %3133 = vmatmul.bf16.vlgmr.msra.gmra.mxu2 %v9241_v17  ;;  %3146 = vmatmul.bf16.vlgmr.msra.gmra.mxu0 %v9243_v18  ;;  %v6244_v21 = vor.u32 %v6823_v14, %v6243_v13  ;;  %v6778_v13 = vld [vmem:[%s10250_s9 + $0x18c] sm:$0xf]  ;;  %v6077_v14 = vld [vmem:[%s10250_s9 + $0x1a4] sm:$0xf0] }
 0x27a   :  { %3203 = vmatpush.bf16.msra.mxu3 %v5644_v19  ;;  %3216 = vmatpush.bf16.msra.mxu1 %v5868_v20  ;;  %v5504_v19 = vor.u32 %v6636_v45, %v5503_v10  ;;  %v5728_v20 = vor.u32 %v6692_v12, %v5727_v1  ;;  %v6048_v10 = vor.u32 %v6774_v5, %v6047_v4  ;;  %v6019_v1 = vld [vmem:[%s10250_s9 + $0x118] sm:$0xf]  ;;  %v6767_v12 = vld [vmem:[%s10250_s9 + $0x130] sm:$0xf0] }
 0x27b   :  { %3229 = vmatpush.bf16.msra.mxu2 %v5648_v24  ;;  %3242 = vmatpush.bf16.msra.mxu0 %v5872_v26  ;;  %v5699_v24 = vld [vmem:[%s10248_s7 + $0x208] sm:$0xf]  ;;  %v6685_v26 = vld [vmem:[%s10248_s7 + $0x220] sm:$0xf0]  ;;  %v6272_v45 = vor.u32 %v6830_v2, %v6271_v8  ;;  %v6020_v6 = vor.u32 %v6767_v12, %v6019_v1  ;;  %v6131_v4 = vld [vmem:[%s10250_s9 + $0x1f8] sm:$0xf] }
 0x27c   :  { %v6795_v5 = vld [vmem:[%s10250_s9 + $0x210] sm:$0xf0]  ;;  %v5455_v8 = vld [vmem:[%s10248_s7 + $0x18] sm:$0xf]  ;;  %v6103_v1 = vld [vmem:[%s10250_s9 + $0x1c0] sm:$0xf] }
 0x27d   :  { %v6788_v12 = vld [vmem:[%s10250_s9 + $0x1d8] sm:$0xf0] }
 0x27e   :  { %3204 = vmatpush.bf16.msra.mxu3 %v5616_v34  ;;  %3217 = vmatpush.bf16.msra.mxu1 %v5840_v36  ;;  %v5700_v34 = vor.u32 %v6685_v26, %v5699_v24  ;;  %v6622_v36 = vld [vmem:[%s10248_s7 + $0x28] sm:$0xf0]  ;;  %v5991_v24 = vld [vmem:[%s10250_s9 + $0xe0] sm:$0xf]  ;;  %v6760_v26 = vld [vmem:[%s10250_s9 + $0xf8] sm:$0xf0] }
 0x27f   :  { %3230 = vmatpush.bf16.msra.mxu2 %v5620_v51  ;;  %3243 = vmatpush.bf16.msra.mxu0 %v5844_v25  ;;  %v5480_v51 = vor.u32 %v6626_v27, %v5477_v28  ;;  %v5704_v25 = vor.u32 %v6682_v29, %v5701_v15  ;;  %v5448_v47 = vor.u32 %v6622_v36, %v5447_v32  ;;  %v6215_v27 = vld [vmem:[%s10250_s9 + $0x2a0] sm:$0xf]  ;;  %v6816_v28 = vld [vmem:[%s10250_s9 + $0x2b8] sm:$0xf0] }
 0x280   :  { %v5539_v32 = vld [vmem:[%s10248_s7 + $0xc0] sm:$0xf]  ;;  %v6216_v36 = vor.u32 %v6816_v28, %v6215_v27  ;;  %v6080_v27 = vor.u32 %v6778_v13, %v6077_v14  ;;  %v6743_v13 = vld [vmem:[%s10250_s9 + $0x74] sm:$0xf]  ;;  %v5937_v14 = vld [vmem:[%s10250_s9 + $0x8c] sm:$0xf0] }
 0x282   :  { %3205 = vmatpush.bf16.msra.mxu3 %v5588_v31  ;;  %3218 = vmatpush.bf16.msra.mxu1 %v5812_v30  ;;  %v5875_v31 = vld [vmem:[%s10248_s7 + $0x360] sm:$0xf]  ;;  %v6728_v30 = vld [vmem:[%s10248_s7 + $0x378] sm:$0xf0] }
 0x283   :  { %3231 = vmatpush.bf16.msra.mxu2 %v5592_v49  ;;  %3244 = vmatpush.bf16.msra.mxu0 %v5816_v50  ;;  %v5672_v49 = vor.u32 %v6678_v40, %v5671_v39  ;;  %v6781_v50 = vld [vmem:[%s10250_s9 + $0x1a0] sm:$0xf0]  ;;  %v5876_v58 = vor.u32 %v6728_v30, %v5875_v31  ;;  %v5763_v39 = vld [vmem:[%s10248_s7 + $0x280] sm:$0xf]  ;;  %v6700_v40 = vld [vmem:[%s10248_s7 + $0x298] sm:$0xf0]  ;;  %v6188_v30 = vor.u32 %v6809_v42, %v6187_v41 }
 0x284   :  { %v6076_v61 = vor.u32 %v6781_v50, %v6075_v35  ;;  %v5764_v43 = vor.u32 %v6700_v40, %v5763_v39  ;;  %v5735_v35 = vld [vmem:[%s10248_s7 + $0x248] sm:$0xf]  ;;  %v6746_v50 = vld [vmem:[%s10250_s9 + $0x88] sm:$0xf0]  ;;  %v6055_v39 = vld [vmem:[%s10250_s9 + $0x158] sm:$0xf] }
 0x285   :  { %v6775_v40 = vld [vmem:[%s10250_s9 + $0x170] sm:$0xf0] }
 0x286   :  { %3206 = vmatpush.bf16.msra.mxu3 %v5560_v37  ;;  %3219 = vmatpush.bf16.msra.mxu1 %v5784_v60  ;;  %v5623_v37 = vld [vmem:[%s10248_s7 + $0x168] sm:$0xf]  ;;  %v6665_v60 = vld [vmem:[%s10248_s7 + $0x180] sm:$0xf0] }
 0x287   :  { %3232 = vmatpush.bf16.msra.mxu2 %v5564_v63  ;;  %3245 = vmatpush.bf16.msra.mxu0 %v5788_v3  ;;  %v5847_v63 = vld [vmem:[%s10248_s7 + $0x328] sm:$0xf]  ;;  %v6721_v3 = vld [vmem:[%s10248_s7 + $0x340] sm:$0xf0]  ;;  %v5624_v48 = vor.u32 %v6665_v60, %v5623_v37  ;;  %v6160_v60 = vor.u32 %v6802_v38, %v6159_v52 }
 0x288   :  { %3159 = vmatmul.bf16.vlgmr.msrb.gmra.mxu3 %v9241_v17  ;;  %3172 = vmatmul.bf16.vlgmr.msrb.gmra.mxu1 %v9243_v18  ;;  %v5848_v9 = vor.u32 %v6721_v3, %v5847_v63  ;;  %v5907_v63 = vld [vmem:[%s10250_s9 + $0x38] sm:$0xf]  ;;  %v6739_v3 = vld [vmem:[%s10250_s9 + $0x50] sm:$0xf0] }
 0x289   :  { %3185 = vmatmul.bf16.vlgmr.msrb.gmra.mxu2 %v9241_v17  ;;  %3198 = vmatmul.bf16.vlgmr.msrb.gmra.mxu0 %v9243_v18 }
 0x28a   :  { %3207 = vmatpush.bf16.msra.mxu3 %v5532_v55  ;;  %3220 = vmatpush.bf16.msra.mxu1 %v5756_v0  ;;  %v5595_v55 = vld [vmem:[%s10248_s7 + $0x130] sm:$0xf]  ;;  %v6658_v0 = vld [vmem:[%s10248_s7 + $0x148] sm:$0xf0] }
 0x28b   :  { %3233 = vmatpush.bf16.msra.mxu2 %v5536_v11  ;;  %3246 = vmatpush.bf16.msra.mxu0 %v5760_v59  ;;  %v5819_v11 = vld [vmem:[%s10248_s7 + $0x2f0] sm:$0xf]  ;;  %v6714_v59 = vld [vmem:[%s10248_s7 + $0x308] sm:$0xf0]  ;;  %v5596_v16 = vor.u32 %v6658_v0, %v5595_v55  ;;  %v5679_v55 = vld [vmem:[%s10248_s7 + $0x1d8] sm:$0xf] }
 0x28c   :  { %v5820_v7 = vor.u32 %v6714_v59, %v5819_v11  ;;  %v6679_v0 = vld [vmem:[%s10248_s7 + $0x1f0] sm:$0xf0]  ;;  %v5879_v11 = vld [vmem:[%s10250_s9] sm:$0xf]  ;;  %v6732_v59 = vld [vmem:[%s10250_s9 + $0x18] sm:$0xf0] }
 0x28e   :  { %3208 = vmatpush.bf16.msra.mxu3 %v5504_v19  ;;  %3221 = vmatpush.bf16.msra.mxu1 %v5728_v20  ;;  %v5567_v19 = vld [vmem:[%s10248_s7 + $0xf8] sm:$0xf]  ;;  %v6651_v20 = vld [vmem:[%s10248_s7 + $0x110] sm:$0xf0] }
 0x28f   :  { %3234 = vmatpush.bf16.msra.mxu2 %v5508_v22  ;;  %3247 = vmatpush.bf16.msra.mxu0 %v5732_v23  ;;  %v5791_v22 = vld [vmem:[%s10248_s7 + $0x2b8] sm:$0xf]  ;;  %v6707_v23 = vld [vmem:[%s10248_s7 + $0x2d0] sm:$0xf0]  ;;  %v5568_v29 = vor.u32 %v6651_v20, %v5567_v19  ;;  %v6083_v19 = vld [vmem:[%s10250_s9 + $0x190] sm:$0xf] }
 0x290   :  { %v5792_v15 = vor.u32 %v6707_v23, %v5791_v22  ;;  %v6307_v22 = vld [vmem:[%s10250_s9 + $0x350] sm:$0xf]  ;;  %v6838_v23 = vld [vmem:[%s10250_s9 + $0x368] sm:$0xf0] }
 0x292   :  { %3209 = vmatpush.bf16.msra.mxu3 %v5476_v33  ;;  %3222 = vmatpush.bf16.msra.mxu1 %v5700_v34  ;;  %v6644_v33 = vld [vmem:[%s10248_s7 + $0xd8] sm:$0xf0]  ;;  %v5992_v34 = vor.u32 %v6760_v26, %v5991_v24  ;;  %v5880_v24 = vor.u32 %v6732_v59, %v5879_v11  ;;  %v6104_v26 = vor.u32 %v6788_v12, %v6103_v1  ;;  %v6195_v11 = vld [vmem:[%s10250_s9 + $0x270] sm:$0xf]  ;;  %v6810_v59 = vld [vmem:[%s10250_s9 + $0x288] sm:$0xf0] }
 0x293   :  { %3235 = vmatpush.bf16.msra.mxu2 %v5480_v51  ;;  %3248 = vmatpush.bf16.msra.mxu0 %v5704_v25  ;;  %v5963_v51 = vld [vmem:[%s10250_s9 + $0xa8] sm:$0xf]  ;;  %v6753_v25 = vld [vmem:[%s10250_s9 + $0xc0] sm:$0xf0]  ;;  %v5540_v57 = vor.u32 %v6644_v33, %v5539_v32  ;;  %v6308_v33 = vor.u32 %v6838_v23, %v6307_v22  ;;  %v6167_v22 = vld [vmem:[%s10250_s9 + $0x238] sm:$0xf] }
 0x294   :  { %v5964_v31 = vor.u32 %v6753_v25, %v5963_v51  ;;  %v6279_v51 = vld [vmem:[%s10250_s9 + $0x318] sm:$0xf]  ;;  %v6831_v25 = vld [vmem:[%s10250_s9 + $0x330] sm:$0xf0] }
 0x295   :  { %v6803_v23 = vld [vmem:[%s10250_s9 + $0x250] sm:$0xf0] }
 0x296   :  { %3210 = vmatpush.bf16.msra.mxu3 %v5448_v47  ;;  %3223 = vmatpush.bf16.msra.mxu1 %v5672_v49  ;;  %v6693_v47 = vld [vmem:[%s10248_s7 + $0x260] sm:$0xf0]  ;;  %v5935_v49 = vld [vmem:[%s10250_s9 + $0x70] sm:$0xf] }
 0x297   :  { %3236 = vmatpush.bf16.msra.mxu2 %v5452_v53  ;;  %3249 = vmatpush.bf16.msra.mxu0 %v5676_v54  ;;  %v5512_v53 = vor.u32 %v6637_v46, %v5511_v44  ;;  %v5736_v54 = vor.u32 %v6693_v47, %v5735_v35  ;;  %v5936_v37 = vor.u32 %v6746_v50, %v5935_v49  ;;  %v6027_v35 = vld [vmem:[%s10250_s9 + $0x120] sm:$0xf]  ;;  %v6768_v47 = vld [vmem:[%s10250_s9 + $0x138] sm:$0xf0] }
 0x298   :  { %v6056_v44 = vor.u32 %v6775_v40, %v6055_v39  ;;  %v6280_v46 = vor.u32 %v6831_v25, %v6279_v51  ;;  %v6251_v49 = vld [vmem:[%s10250_s9 + $0x2e0] sm:$0xf]  ;;  %v6824_v50 = vld [vmem:[%s10250_s9 + $0x2f8] sm:$0xf0]  ;;  %v6729_v51 = vld [vmem:[%s10250_s9 + $0x4] sm:$0xf] }
 0x299   :  { %3211 = vmatmul.bf16.vlgmr.msra.gmra.mxu3 %v9241_v17  ;;  %3224 = vmatmul.bf16.vlgmr.msra.gmra.mxu1 %v9243_v18  ;;  %v6139_v39 = vld [vmem:[%s10250_s9 + $0x200] sm:$0xf]  ;;  %v6796_v40 = vld [vmem:[%s10250_s9 + $0x218] sm:$0xf0] }
 0x29a   :  { %3255 = vmatpush.bf16.msrb.mxu3 %v5652_v56  ;;  %3268 = vmatpush.bf16.msrb.mxu1 %v5876_v58  ;;  %v5483_v56 = vld [vmem:[%s10248_s7 + $0x50] sm:$0xf]  ;;  %v6630_v58 = vld [vmem:[%s10248_s7 + $0x68] sm:$0xf0] }
 0x29b   :  { %4001 = vmatpush.bf16.msrb.mxu2 %v6076_v61  ;;  %4014 = vmatpush.bf16.msrb.mxu0 %v6300_v62  ;;  %v5707_v61 = vld [vmem:[%s10248_s7 + $0x210] sm:$0xf]  ;;  %v6686_v62 = vld [vmem:[%s10248_s7 + $0x228] sm:$0xf0]  ;;  %v5484_v2 = vor.u32 %v6630_v58, %v5483_v56  ;;  %v6028_v56 = vor.u32 %v6768_v47, %v6027_v35  ;;  %v6252_v58 = vor.u32 %v6824_v50, %v6251_v49  ;;  %v6111_v35 = vld [vmem:[%s10250_s9 + $0x1c8] sm:$0xf] }
 0x29c   :  { %3237 = vmatmul.bf16.vlgmr.msra.gmra.mxu2 %v9241_v17  ;;  %3250 = vmatmul.bf16.vlgmr.msra.gmra.mxu0 %v9243_v18  ;;  %v6789_v47 = vld [vmem:[%s10250_s9 + $0x1e0] sm:$0xf0]  ;;  %v6779_v49 = vld [vmem:[%s10250_s9 + $0x194] sm:$0xf]  ;;  %v6085_v50 = vld [vmem:[%s10250_s9 + $0x1ac] sm:$0xf0] }
 0x29e   :  { %3256 = vmatpush.bf16.msrb.mxu3 %v5624_v48  ;;  %3269 = vmatpush.bf16.msrb.mxu1 %v5848_v9  ;;  %v5708_v48 = vor.u32 %v6686_v62, %v5707_v61  ;;  %v6623_v9 = vld [vmem:[%s10248_s7 + $0x30] sm:$0xf0]  ;;  %v5999_v61 = vld [vmem:[%s10250_s9 + $0xe8] sm:$0xf]  ;;  %v6761_v62 = vld [vmem:[%s10250_s9 + $0x100] sm:$0xf0] }
 0x29f   :  { %4002 = vmatpush.bf16.msrb.mxu2 %v6048_v10  ;;  %4015 = vmatpush.bf16.msrb.mxu0 %v6272_v45  ;;  %v5908_v10 = vor.u32 %v6739_v3, %v5907_v63  ;;  %v6132_v45 = vor.u32 %v6795_v5, %v6131_v4  ;;  %v5456_v20 = vor.u32 %v6623_v9, %v5455_v8  ;;  %v6223_v63 = vld [vmem:[%s10250_s9 + $0x2a8] sm:$0xf]  ;;  %v6817_v3 = vld [vmem:[%s10250_s9 + $0x2c0] sm:$0xf0]  ;;  %v6750_v8 = vld [vmem:[%s10250_s9 + $0xac] sm:$0xf] }
 0x2a0   :  { %v6224_v9 = vor.u32 %v6817_v3, %v6223_v63  ;;  %v6088_v63 = vor.u32 %v6779_v49, %v6085_v50  ;;  %v6744_v49 = vld [vmem:[%s10250_s9 + $0x7c] sm:$0xf]  ;;  %v5945_v50 = vld [vmem:[%s10250_s9 + $0x94] sm:$0xf0]  ;;  %s4243_s7 = sshll.u32 %s10253_s12, 4  ;;  %s4244_s7 = int_to_ptr.hbm [resolvable:$true] %s4243_s7 }
 0x2a2   :  { %3257 = vmatpush.bf16.msrb.mxu3 %v5596_v16  ;;  %3270 = vmatpush.bf16.msrb.mxu1 %v5820_v7  ;;  %v6834_v16 = vld [vmem:[%s10250_s9 + $0x34c] sm:$0xf]  ;;  %v6301_v7 = vld [vmem:[%s10250_s9 + $0x364] sm:$0xf0] }
 0x2a3   :  { %4003 = vmatpush.bf16.msrb.mxu2 %v6020_v6  ;;  %4016 = vmatpush.bf16.msrb.mxu0 %v6244_v21  ;;  %v5680_v6 = vor.u32 %v6679_v0, %v5679_v55  ;;  %v6782_v21 = vld [vmem:[%s10250_s9 + $0x1a8] sm:$0xf0]  ;;  %v6304_v28 = vor.u32 %v6834_v16, %v6301_v7  ;;  %v6189_v0 = vld [vmem:[%s10250_s9 + $0x284] sm:$0xf0]  ;;  %v6196_v7 = vor.u32 %v6810_v59, %v6195_v11 }
 0x2a4   :  { %v6084_v32 = vor.u32 %v6782_v21, %v6083_v19  ;;  %v6806_v55 = vld [vmem:[%s10250_s9 + $0x26c] sm:$0xf]  ;;  %v6799_v19 = vld [vmem:[%s10250_s9 + $0x234] sm:$0xf] }
 0x2a5   :  { %v6192_v12 = vor.u32 %v6806_v55, %v6189_v0  ;;  %v6747_v21 = vld [vmem:[%s10250_s9 + $0x90] sm:$0xf0]  ;;  %v6063_v55 = vld [vmem:[%s10250_s9 + $0x160] sm:$0xf]  ;;  %v6776_v0 = vld [vmem:[%s10250_s9 + $0x178] sm:$0xf0] }
 0x2a6   :  { %3258 = vmatpush.bf16.msrb.mxu3 %v5568_v29  ;;  %3271 = vmatpush.bf16.msrb.mxu1 %v5792_v15  ;;  %v6771_v29 = vld [vmem:[%s10250_s9 + $0x154] sm:$0xf]  ;;  %v6049_v15 = vld [vmem:[%s10250_s9 + $0x16c] sm:$0xf0] }
 0x2a7   :  { %4004 = vmatpush.bf16.msrb.mxu2 %v5992_v34  ;;  %4017 = vmatpush.bf16.msrb.mxu0 %v6216_v36  ;;  %v6827_v34 = vld [vmem:[%s10250_s9 + $0x314] sm:$0xf]  ;;  %v6273_v36 = vld [vmem:[%s10250_s9 + $0x32c] sm:$0xf0]  ;;  %v6052_v41 = vor.u32 %v6771_v29, %v6049_v15  ;;  %v6168_v15 = vor.u32 %v6803_v23, %v6167_v22 }
 0x2a8   :  { %v6276_v42 = vor.u32 %v6827_v34, %v6273_v36  ;;  %v5915_v34 = vld [vmem:[%s10250_s9 + $0x40] sm:$0xf]  ;;  %v6740_v36 = vld [vmem:[%s10250_s9 + $0x58] sm:$0xf0] }
 0x2aa   :  { %3259 = vmatpush.bf16.msrb.mxu3 %v5540_v57  ;;  %3272 = vmatpush.bf16.msrb.mxu1 %v5764_v43  ;;  %v6764_v57 = vld [vmem:[%s10250_s9 + $0x11c] sm:$0xf]  ;;  %v6021_v43 = vld [vmem:[%s10250_s9 + $0x134] sm:$0xf0] }
 0x2ab   :  { %4005 = vmatpush.bf16.msrb.mxu2 %v5964_v31  ;;  %4018 = vmatpush.bf16.msrb.mxu0 %v6188_v30  ;;  %v6820_v31 = vld [vmem:[%s10250_s9 + $0x2dc] sm:$0xf]  ;;  %v6245_v30 = vld [vmem:[%s10250_s9 + $0x2f4] sm:$0xf0]  ;;  %v6024_v52 = vor.u32 %v6764_v57, %v6021_v43  ;;  %v6785_v57 = vld [vmem:[%s10250_s9 + $0x1c4] sm:$0xf] }
 0x2ac   :  { %v6248_v38 = vor.u32 %v6820_v31, %v6245_v30  ;;  %v6105_v43 = vld [vmem:[%s10250_s9 + $0x1dc] sm:$0xf0]  ;;  %v5887_v31 = vld [vmem:[%s10250_s9 + $0x8] sm:$0xf]  ;;  %v6733_v30 = vld [vmem:[%s10250_s9 + $0x20] sm:$0xf0] }
 0x2ae   :  { %3260 = vmatpush.bf16.msrb.mxu3 %v5512_v53  ;;  %3273 = vmatpush.bf16.msrb.mxu1 %v5736_v54  ;;  %v6757_v53 = vld [vmem:[%s10250_s9 + $0xe4] sm:$0xf]  ;;  %v5993_v54 = vld [vmem:[%s10250_s9 + $0xfc] sm:$0xf0] }
 0x2af   :  { %4006 = vmatpush.bf16.msrb.mxu2 %v5936_v37  ;;  %4019 = vmatpush.bf16.msrb.mxu0 %v6160_v60  ;;  %v6813_v37 = vld [vmem:[%s10250_s9 + $0x2a4] sm:$0xf]  ;;  %v6217_v60 = vld [vmem:[%s10250_s9 + $0x2bc] sm:$0xf0]  ;;  %v5996_v4 = vor.u32 %v6757_v53, %v5993_v54  ;;  %v6091_v53 = vld [vmem:[%s10250_s9 + $0x198] sm:$0xf] }
 0x2b0   :  { %v6220_v5 = vor.u32 %v6813_v37, %v6217_v60  ;;  %v6315_v37 = vld [vmem:[%s10250_s9 + $0x358] sm:$0xf]  ;;  %v6839_v60 = vld [vmem:[%s10250_s9 + $0x370] sm:$0xf0] }
 0x2b2   :  { %3261 = vmatpush.bf16.msrb.mxu3 %v5484_v2  ;;  %3274 = vmatpush.bf16.msrb.mxu1 %v5708_v48  ;;  %v5965_v2 = vld [vmem:[%s10250_s9 + $0xc4] sm:$0xf0]  ;;  %v6000_v48 = vor.u32 %v6761_v62, %v5999_v61  ;;  %v5888_v61 = vor.u32 %v6733_v30, %v5887_v31  ;;  %v6112_v62 = vor.u32 %v6789_v47, %v6111_v35  ;;  %v6203_v31 = vld [vmem:[%s10250_s9 + $0x278] sm:$0xf]  ;;  %v6811_v30 = vld [vmem:[%s10250_s9 + $0x290] sm:$0xf0] }
 0x2b3   :  { %4007 = vmatpush.bf16.msrb.mxu2 %v5908_v10  ;;  %4020 = vmatpush.bf16.msrb.mxu0 %v6132_v45  ;;  %v5971_v10 = vld [vmem:[%s10250_s9 + $0xb0] sm:$0xf]  ;;  %v6754_v45 = vld [vmem:[%s10250_s9 + $0xc8] sm:$0xf0]  ;;  %v5968_v1 = vor.u32 %v6750_v8, %v5965_v2  ;;  %v6316_v2 = vor.u32 %v6839_v60, %v6315_v37  ;;  %v6175_v37 = vld [vmem:[%s10250_s9 + $0x240] sm:$0xf] }
 0x2b4   :  { %v5972_v16 = vor.u32 %v6754_v45, %v5971_v10  ;;  %v6287_v10 = vld [vmem:[%s10250_s9 + $0x320] sm:$0xf]  ;;  %v6832_v45 = vld [vmem:[%s10250_s9 + $0x338] sm:$0xf0] }
 0x2b5   :  { %v6804_v60 = vld [vmem:[%s10250_s9 + $0x258] sm:$0xf0] }
 0x2b6   :  { %3262 = vmatpush.bf16.msrb.mxu3 %v5456_v20  ;;  %3275 = vmatpush.bf16.msrb.mxu1 %v5680_v6  ;;  %v6161_v20 = vld [vmem:[%s10250_s9 + $0x24c] sm:$0xf0]  ;;  %v5943_v6 = vld [vmem:[%s10250_s9 + $0x78] sm:$0xf] }
 0x2b7   :  { %4008 = vmatpush.bf16.msrb.mxu2 %v5880_v24  ;;  %4021 = vmatpush.bf16.msrb.mxu0 %v6104_v26  ;;  %v5940_v24 = vor.u32 %v6743_v13, %v5937_v14  ;;  %v6164_v26 = vor.u32 %v6799_v19, %v6161_v20  ;;  %v5944_v29 = vor.u32 %v6747_v21, %v5943_v6  ;;  %v6035_v19 = vld [vmem:[%s10250_s9 + $0x128] sm:$0xf]  ;;  %v6769_v20 = vld [vmem:[%s10250_s9 + $0x140] sm:$0xf0] }
 0x2b8   :  { %v6064_v13 = vor.u32 %v6776_v0, %v6063_v55  ;;  %v6288_v14 = vor.u32 %v6832_v45, %v6287_v10  ;;  %v6259_v6 = vld [vmem:[%s10250_s9 + $0x2e8] sm:$0xf]  ;;  %v6825_v21 = vld [vmem:[%s10250_s9 + $0x300] sm:$0xf0]  ;;  %v6730_v10 = vld [vmem:[%s10250_s9 + $0xc] sm:$0xf] }
 0x2b9   :  { %3263 = vmatmul.bf16.vlgmr.msrb.gmra.mxu3 %v9241_v17  ;;  %3276 = vmatmul.bf16.vlgmr.msrb.gmra.mxu1 %v9243_v18  ;;  %v6147_v55 = vld [vmem:[%s10250_s9 + $0x208] sm:$0xf]  ;;  %v6797_v0 = vld [vmem:[%s10250_s9 + $0x220] sm:$0xf0] }
 0x2ba   :  { %4027 = vmatpush.bf16.msra.mxu3 %v6080_v27  ;;  %4040 = vmatpush.bf16.msra.mxu1 %v6304_v28  ;;  %v6736_v27 = vld [vmem:[%s10250_s9 + $0x3c] sm:$0xf]  ;;  %v5909_v28 = vld [vmem:[%s10250_s9 + $0x54] sm:$0xf0] }
 0x2bb   :  { %4053 = vmatpush.bf16.msra.mxu2 %v6084_v32  ;;  %4066 = vmatpush.bf16.msra.mxu0 %v6308_v33  ;;  %v6792_v32 = vld [vmem:[%s10250_s9 + $0x1fc] sm:$0xf]  ;;  %v6133_v33 = vld [vmem:[%s10250_s9 + $0x214] sm:$0xf0]  ;;  %v5912_v25 = vor.u32 %v6736_v27, %v5909_v28  ;;  %v6036_v27 = vor.u32 %v6769_v20, %v6035_v19  ;;  %v6260_v28 = vor.u32 %v6825_v21, %v6259_v6  ;;  %v6119_v19 = vld [vmem:[%s10250_s9 + $0x1d0] sm:$0xf] }
 0x2bc   :  { %4009 = vmatmul.bf16.vlgmr.msrb.gmra.mxu2 %v9241_v17  ;;  %4022 = vmatmul.bf16.vlgmr.msrb.gmra.mxu0 %v9243_v18  ;;  %v6790_v20 = vld [vmem:[%s10250_s9 + $0x1e8] sm:$0xf0]  ;;  %v6780_v6 = vld [vmem:[%s10250_s9 + $0x19c] sm:$0xf]  ;;  %v6093_v21 = vld [vmem:[%s10250_s9 + $0x1b4] sm:$0xf0] }
 0x2be   :  { %4028 = vmatpush.bf16.msra.mxu3 %v6052_v41  ;;  %4041 = vmatpush.bf16.msra.mxu1 %v6276_v42  ;;  %v6136_v41 = vor.u32 %v6792_v32, %v6133_v33  ;;  %v5881_v42 = vld [vmem:[%s10250_s9 + $0x1c] sm:$0xf0]  ;;  %v6007_v32 = vld [vmem:[%s10250_s9 + $0xf0] sm:$0xf]  ;;  %v6762_v33 = vld [vmem:[%s10250_s9 + $0x108] sm:$0xf0] }
 0x2bf   :  { %4054 = vmatpush.bf16.msra.mxu2 %v6056_v44  ;;  %4067 = vmatpush.bf16.msra.mxu0 %v6280_v46  ;;  %v5916_v44 = vor.u32 %v6740_v36, %v5915_v34  ;;  %v6140_v46 = vor.u32 %v6796_v40, %v6139_v39  ;;  %v5884_v54 = vor.u32 %v6729_v51, %v5881_v42  ;;  %v6231_v34 = vld [vmem:[%s10250_s9 + $0x2b0] sm:$0xf]  ;;  %v6818_v36 = vld [vmem:[%s10250_s9 + $0x2c8] sm:$0xf0]  ;;  %v6751_v51 = vld [vmem:[%s10250_s9 + $0xb4] sm:$0xf] }
 0x2c0   :  { %v6232_v42 = vor.u32 %v6818_v36, %v6231_v34  ;;  %v6096_v34 = vor.u32 %v6780_v6, %v6093_v21  ;;  %v5987_v6 = vld [vmem:[%s10250_s9 + $0xc0] sm:$0xf] }
 0x2c2   :  { %4029 = vmatpush.bf16.msra.mxu3 %v6024_v52  ;;  %4042 = vmatpush.bf16.msra.mxu1 %v6248_v38  ;;  %v6835_v52 = vld [vmem:[%s10250_s9 + $0x354] sm:$0xf]  ;;  %v6309_v38 = vld [vmem:[%s10250_s9 + $0x36c] sm:$0xf0] }
 0x2c3   :  { %4055 = vmatpush.bf16.msra.mxu2 %v6028_v56  ;;  %4068 = vmatpush.bf16.msra.mxu0 %v6252_v58  ;;  %v6108_v56 = vor.u32 %v6785_v57, %v6105_v43  ;;  %v6783_v58 = vld [vmem:[%s10250_s9 + $0x1b0] sm:$0xf0]  ;;  %v6312_v3 = vor.u32 %v6835_v52, %v6309_v38  ;;  %v6197_v43 = vld [vmem:[%s10250_s9 + $0x28c] sm:$0xf0]  ;;  %v6204_v38 = vor.u32 %v6811_v30, %v6203_v31 }
 0x2c4   :  { %v6092_v8 = vor.u32 %v6783_v58, %v6091_v53  ;;  %v6807_v57 = vld [vmem:[%s10250_s9 + $0x274] sm:$0xf]  ;;  %v6800_v53 = vld [vmem:[%s10250_s9 + $0x23c] sm:$0xf] }
 0x2c5   :  { %v6200_v47 = vor.u32 %v6807_v57, %v6197_v43  ;;  %v6748_v58 = vld [vmem:[%s10250_s9 + $0x98] sm:$0xf0]  ;;  %v6071_v57 = vld [vmem:[%s10250_s9 + $0x168] sm:$0xf]  ;;  %v6777_v43 = vld [vmem:[%s10250_s9 + $0x180] sm:$0xf0] }
 0x2c6   :  { %4030 = vmatpush.bf16.msra.mxu3 %v5996_v4  ;;  %4043 = vmatpush.bf16.msra.mxu1 %v6220_v5  ;;  %v6772_v4 = vld [vmem:[%s10250_s9 + $0x15c] sm:$0xf]  ;;  %v6057_v5 = vld [vmem:[%s10250_s9 + $0x174] sm:$0xf0] }
 0x2c7   :  { %4056 = vmatpush.bf16.msra.mxu2 %v6000_v48  ;;  %4069 = vmatpush.bf16.msra.mxu0 %v6224_v9  ;;  %v6828_v48 = vld [vmem:[%s10250_s9 + $0x31c] sm:$0xf]  ;;  %v6281_v9 = vld [vmem:[%s10250_s9 + $0x334] sm:$0xf0]  ;;  %v6060_v11 = vor.u32 %v6772_v4, %v6057_v5  ;;  %v6176_v5 = vor.u32 %v6804_v60, %v6175_v37  ;;  %v10088_v60 = vld [vmem:[%s10249_s8] sm:$0x7f] }
 0x2c8   :  { %v6284_v59 = vor.u32 %v6828_v48, %v6281_v9  ;;  %v5923_v48 = vld [vmem:[%s10250_s9 + $0x48] sm:$0xf]  ;;  %v6741_v9 = vld [vmem:[%s10250_s9 + $0x60] sm:$0xf0] }
 0x2ca   :  { %4031 = vmatpush.bf16.msra.mxu3 %v5968_v1  ;;  %4044 = vmatpush.bf16.msra.mxu1 %v6192_v12  ;;  %v6765_v1 = vld [vmem:[%s10250_s9 + $0x124] sm:$0xf]  ;;  %v6029_v12 = vld [vmem:[%s10250_s9 + $0x13c] sm:$0xf0] }
 0x2cb   :  { %4057 = vmatpush.bf16.msra.mxu2 %v5972_v16  ;;  %4070 = vmatpush.bf16.msra.mxu0 %v6196_v7  ;;  %v6821_v16 = vld [vmem:[%s10250_s9 + $0x2e4] sm:$0xf]  ;;  %v6253_v7 = vld [vmem:[%s10250_s9 + $0x2fc] sm:$0xf0]  ;;  %v6032_v22 = vor.u32 %v6765_v1, %v6029_v12  ;;  %v6786_v1 = vld [vmem:[%s10250_s9 + $0x1cc] sm:$0xf] }
 0x2cc   :  { %v6256_v23 = vor.u32 %v6821_v16, %v6253_v7  ;;  %v6113_v12 = vld [vmem:[%s10250_s9 + $0x1e4] sm:$0xf0]  ;;  %v5895_v16 = vld [vmem:[%s10250_s9 + $0x10] sm:$0xf]  ;;  %v6734_v7 = vld [vmem:[%s10250_s9 + $0x28] sm:$0xf0] }
 0x2ce   :  { %4032 = vmatpush.bf16.msra.mxu3 %v5940_v24  ;;  %4045 = vmatpush.bf16.msra.mxu1 %v6164_v26  ;;  %v6758_v24 = vld [vmem:[%s10250_s9 + $0xec] sm:$0xf]  ;;  %v6001_v26 = vld [vmem:[%s10250_s9 + $0x104] sm:$0xf0] }
 0x2cf   :  { %4058 = vmatpush.bf16.msra.mxu2 %v5944_v29  ;;  %4071 = vmatpush.bf16.msra.mxu0 %v6168_v15  ;;  %v6814_v29 = vld [vmem:[%s10250_s9 + $0x2ac] sm:$0xf]  ;;  %v6225_v15 = vld [vmem:[%s10250_s9 + $0x2c4] sm:$0xf0]  ;;  %v6004_v39 = vor.u32 %v6758_v24, %v6001_v26  ;;  %v6099_v24 = vld [vmem:[%s10250_s9 + $0x1a0] sm:$0xf] }
 0x2d0   :  { %v6228_v40 = vor.u32 %v6814_v29, %v6225_v15  ;;  %v6323_v29 = vld [vmem:[%s10250_s9 + $0x360] sm:$0xf]  ;;  %v6840_v15 = vld [vmem:[%s10250_s9 + $0x378] sm:$0xf0] }
 0x2d2   :  { %4033 = vmatpush.bf16.msra.mxu3 %v5912_v25  ;;  %4046 = vmatpush.bf16.msra.mxu1 %v6136_v41  ;;  %v5973_v25 = vld [vmem:[%s10250_s9 + $0xcc] sm:$0xf0]  ;;  %v6008_v41 = vor.u32 %v6762_v33, %v6007_v32  ;;  %v5896_v32 = vor.u32 %v6734_v7, %v5895_v16  ;;  %v6120_v33 = vor.u32 %v6790_v20, %v6119_v19  ;;  %v6808_v19 = vld [vmem:[%s10250_s9 + $0x27c] sm:$0xf]  ;;  %v6205_v20 = vld [vmem:[%s10250_s9 + $0x294] sm:$0xf0] }
 0x2d3   :  { %4059 = vmatpush.bf16.msra.mxu2 %v5916_v44  ;;  %4072 = vmatpush.bf16.msra.mxu0 %v6140_v46  ;;  %v5979_v44 = vld [vmem:[%s10250_s9 + $0xb8] sm:$0xf]  ;;  %v6755_v46 = vld [vmem:[%s10250_s9 + $0xd0] sm:$0xf0]  ;;  %v5976_v35 = vor.u32 %v6751_v51, %v5973_v25  ;;  %v6324_v25 = vor.u32 %v6840_v15, %v6323_v29 }
 0x2d4   :  { %v5980_v52 = vor.u32 %v6755_v46, %v5979_v44  ;;  %v6295_v44 = vld [vmem:[%s10250_s9 + $0x328] sm:$0xf]  ;;  %v6833_v46 = vld [vmem:[%s10250_s9 + $0x340] sm:$0xf0] }
 0x2d6   :  { %4034 = vmatpush.bf16.msra.mxu3 %v5884_v54  ;;  %4047 = vmatpush.bf16.msra.mxu1 %v6108_v56  ;;  %v6169_v54 = vld [vmem:[%s10250_s9 + $0x254] sm:$0xf0]  ;;  %v5951_v56 = vld [vmem:[%s10250_s9 + $0x80] sm:$0xf] }
 0x2d7   :  { %4060 = vmatpush.bf16.msra.mxu2 %v5888_v61  ;;  %4073 = vmatpush.bf16.msra.mxu0 %v6112_v62  ;;  %v5948_v61 = vor.u32 %v6744_v49, %v5945_v50  ;;  %v6172_v62 = vor.u32 %v6800_v53, %v6169_v54  ;;  %v5952_v4 = vor.u32 %v6748_v58, %v5951_v56  ;;  %v6043_v53 = vld [vmem:[%s10250_s9 + $0x130] sm:$0xf]  ;;  %v6770_v54 = vld [vmem:[%s10250_s9 + $0x148] sm:$0xf0] }
 0x2d8   :  { %v6072_v49 = vor.u32 %v6777_v43, %v6071_v57  ;;  %v6296_v50 = vor.u32 %v6833_v46, %v6295_v44  ;;  %v6267_v56 = vld [vmem:[%s10250_s9 + $0x2f0] sm:$0xf]  ;;  %v6826_v58 = vld [vmem:[%s10250_s9 + $0x308] sm:$0xf0]  ;;  %v6749_v57 = vld [vmem:[%s10250_s9 + $0xa0] sm:$0xf0] }
 0x2d9   :  { %4035 = vmatmul.bf16.vlgmr.msra.gmra.mxu3 %v9241_v17  ;;  %4048 = vmatmul.bf16.vlgmr.msra.gmra.mxu1 %v9243_v18  ;;  %v6183_v44 = vld [vmem:[%s10250_s9 + $0x248] sm:$0xf]  ;;  %v6805_v46 = vld [vmem:[%s10250_s9 + $0x260] sm:$0xf0] }
 0x2da   :  { %4079 = vmatpush.bf16.msrb.mxu3 %v6088_v63  ;;  %4092 = vmatpush.bf16.msrb.mxu1 %v6312_v3  ;;  %v6737_v63 = vld [vmem:[%s10250_s9 + $0x44] sm:$0xf]  ;;  %v5917_v3 = vld [vmem:[%s10250_s9 + $0x5c] sm:$0xf0] }
 0x2db   :  { %4105 = vmatpush.bf16.msrb.mxu2 %v6092_v8  ;;  %4118 = vmatpush.bf16.msrb.mxu0 %v6316_v2  ;;  %v6793_v8 = vld [vmem:[%s10250_s9 + $0x204] sm:$0xf]  ;;  %v6141_v2 = vld [vmem:[%s10250_s9 + $0x21c] sm:$0xf0]  ;;  %v5920_v45 = vor.u32 %v6737_v63, %v5917_v3  ;;  %v6759_v3 = vld [vmem:[%s10250_s9 + $0xf4] sm:$0xf] }
 0x2dc   :  { %4061 = vmatmul.bf16.vlgmr.msra.gmra.mxu2 %v9241_v17  ;;  %4074 = vmatmul.bf16.vlgmr.msra.gmra.mxu0 %v9243_v18 }
 0x2de   :  { %4080 = vmatpush.bf16.msrb.mxu3 %v6060_v11  ;;  %4093 = vmatpush.bf16.msrb.mxu1 %v6284_v59  ;;  %v6144_v11 = vor.u32 %v6793_v8, %v6141_v2  ;;  %v5889_v59 = vld [vmem:[%s10250_s9 + $0x24] sm:$0xf0]  ;;  %v6044_v8 = vor.u32 %v6770_v54, %v6043_v53  ;;  %v6268_v2 = vor.u32 %v6826_v58, %v6267_v56 }
 0x2df   :  { %4106 = vmatpush.bf16.msrb.mxu2 %v6064_v13  ;;  %4119 = vmatpush.bf16.msrb.mxu0 %v6288_v14  ;;  %v5924_v13 = vor.u32 %v6741_v9, %v5923_v48  ;;  %v6148_v14 = vor.u32 %v6797_v0, %v6147_v55  ;;  %v5892_v26 = vor.u32 %v6730_v10, %v5889_v59  ;;  %v6233_v48 = vld [vmem:[%s10250_s9 + $0x2cc] sm:$0xf0]  ;;  %v6015_v9 = vld [vmem:[%s10250_s9 + $0xf8] sm:$0xf]  ;;  %v6763_v55 = vld [vmem:[%s10250_s9 + $0x110] sm:$0xf0] }
 0x2e0   :  { %v6239_v0 = vld [vmem:[%s10250_s9 + $0x2b8] sm:$0xf]  ;;  %v6819_v10 = vld [vmem:[%s10250_s9 + $0x2d0] sm:$0xf0]  ;;  %v6184_v54 = vor.u32 %v6805_v46, %v6183_v44  ;;  %v6149_v58 = vld [vmem:[%s10250_s9 + $0x224] sm:$0xf0] }
 0x2e1   :  { %v6240_v16 = vor.u32 %v6819_v10, %v6239_v0 }
 0x2e2   :  { %4081 = vmatpush.bf16.msrb.mxu3 %v6032_v22  ;;  %4094 = vmatpush.bf16.msrb.mxu1 %v6256_v23  ;;  %v6836_v22 = vld [vmem:[%s10250_s9 + $0x35c] sm:$0xf]  ;;  %v6317_v23 = vld [vmem:[%s10250_s9 + $0x374] sm:$0xf0] }
 0x2e3   :  { %4107 = vmatpush.bf16.msrb.mxu2 %v6036_v27  ;;  %4120 = vmatpush.bf16.msrb.mxu0 %v6260_v28  ;;  %v6116_v27 = vor.u32 %v6786_v1, %v6113_v12  ;;  %v6784_v28 = vld [vmem:[%s10250_s9 + $0x1b8] sm:$0xf0]  ;;  %v6320_v36 = vor.u32 %v6836_v22, %v6317_v23 }
 0x2e4   :  { %v6100_v51 = vor.u32 %v6784_v28, %v6099_v24  ;;  %v6752_v12 = vld [vmem:[%s10250_s9 + $0xbc] sm:$0xf]  ;;  %v6211_v24 = vld [vmem:[%s10250_s9 + $0x280] sm:$0xf] }
 0x2e5   :  { %v6756_v23 = vld [vmem:[%s10250_s9 + $0xd8] sm:$0xf0] }
 0x2e6   :  { %4082 = vmatpush.bf16.msrb.mxu3 %v6004_v39  ;;  %4095 = vmatpush.bf16.msrb.mxu1 %v6228_v40  ;;  %v6773_v39 = vld [vmem:[%s10250_s9 + $0x164] sm:$0xf]  ;;  %v6065_v40 = vld [vmem:[%s10250_s9 + $0x17c] sm:$0xf0] }
 0x2e7   :  { %4108 = vmatpush.bf16.msrb.mxu2 %v6008_v41  ;;  %4121 = vmatpush.bf16.msrb.mxu0 %v6232_v42  ;;  %v6829_v41 = vld [vmem:[%s10250_s9 + $0x324] sm:$0xf]  ;;  %v6289_v42 = vld [vmem:[%s10250_s9 + $0x33c] sm:$0xf0]  ;;  %v6068_v31 = vor.u32 %v6773_v39, %v6065_v40 }
 0x2e8   :  { %v6292_v30 = vor.u32 %v6829_v41, %v6289_v42  ;;  %v6801_v39 = vld [vmem:[%s10250_s9 + $0x244] sm:$0xf]  ;;  %v6177_v41 = vld [vmem:[%s10250_s9 + $0x25c] sm:$0xf0]  ;;  %v5959_v42 = vld [vmem:[%s10250_s9 + $0x88] sm:$0xf] }
 0x2e9   :  { %v5960_v53 = vor.u32 %v6749_v57, %v5959_v42 }
 0x2ea   :  { %4083 = vmatpush.bf16.msrb.mxu3 %v5976_v35  ;;  %4096 = vmatpush.bf16.msrb.mxu1 %v6200_v47  ;;  %v6766_v35 = vld [vmem:[%s10250_s9 + $0x12c] sm:$0xf]  ;;  %v6037_v47 = vld [vmem:[%s10250_s9 + $0x144] sm:$0xf0] }
 0x2eb   :  { %4109 = vmatpush.bf16.msrb.mxu2 %v5980_v52  ;;  %4122 = vmatpush.bf16.msrb.mxu0 %v6204_v38  ;;  %v6822_v52 = vld [vmem:[%s10250_s9 + $0x2ec] sm:$0xf]  ;;  %v6261_v38 = vld [vmem:[%s10250_s9 + $0x304] sm:$0xf0] }
 0x2ee   :  { %4084 = vmatpush.bf16.msrb.mxu3 %v5948_v61  ;;  %4097 = vmatpush.bf16.msrb.mxu1 %v6172_v62  ;;  %v6040_v61 = vor.u32 %v6766_v35, %v6037_v47  ;;  %v6264_v62 = vor.u32 %v6822_v52, %v6261_v38  ;;  %v6180_v47 = vor.u32 %v6801_v39, %v6177_v41  ;;  %v6794_v52 = vld [vmem:[%s10250_s9 + $0x20c] sm:$0xf] }
 0x2ef   :  { %4110 = vmatpush.bf16.msrb.mxu2 %v5952_v4  ;;  %4123 = vmatpush.bf16.msrb.mxu0 %v6176_v5  ;;  %v6009_v4 = vld [vmem:[%s10250_s9 + $0x10c] sm:$0xf0]  ;;  %v6815_v5 = vld [vmem:[%s10250_s9 + $0x2b4] sm:$0xf] }
 0x2f0   :  { %v6012_v59 = vor.u32 %v6759_v3, %v6009_v4  ;;  %v6236_v1 = vor.u32 %v6815_v5, %v6233_v48  ;;  %v6798_v3 = vld [vmem:[%s10250_s9 + $0x228] sm:$0xf0]  ;;  %v6731_v48 = vld [vmem:[%s10250_s9 + $0x14] sm:$0xf] }
 0x2f2   :  { %4085 = vmatpush.bf16.msrb.mxu3 %v5920_v45  ;;  %4098 = vmatpush.bf16.msrb.mxu1 %v6144_v11  ;;  %v2509_v45 = vperm.slane %v10088_v60, 0  ;;  %v2510_v11 = vperm.slane %v10088_v60, 1 }
 0x2f3   :  { %4111 = vmatpush.bf16.msrb.mxu2 %v5924_v13  ;;  %4124 = vmatpush.bf16.msrb.mxu0 %v6148_v14  ;;  %v5981_v13 = vld [vmem:[%s10250_s9 + $0xd4] sm:$0xf0]  ;;  %v6016_v14 = vor.u32 %v6763_v55, %v6015_v9  ;;  %v5897_v9 = vld [vmem:[%s10250_s9 + $0x2c] sm:$0xf0]  ;;  %v6787_v55 = vld [vmem:[%s10250_s9 + $0x1d4] sm:$0xf] }
 0x2f4   :  { %v5984_v15 = vor.u32 %v6752_v12, %v5981_v13  ;;  %v6791_v12 = vld [vmem:[%s10250_s9 + $0x1f0] sm:$0xf0]  ;;  %v2511_v13 = vperm.slane %v10088_v60, 2 }
 0x2f5   :  { %v3121_v37 = vpop.f32.mrf.mxu1 }
 0x2f6   :  { %4086 = vmatpush.bf16.msrb.mxu3 %v5892_v26  ;;  %4099 = vmatpush.bf16.msrb.mxu1 %v6116_v27  ;;  %v3147_v63 = vpop.f32.mrf.mxu0  ;;  %v6812_v26 = vld [vmem:[%s10250_s9 + $0x298] sm:$0xf0] }
 0x2f7   :  { %4112 = vmatpush.bf16.msrb.mxu2 %v5896_v32  ;;  %4125 = vmatpush.bf16.msrb.mxu0 %v6120_v33  ;;  %v6208_v32 = vor.u32 %v6808_v19, %v6205_v20 }
 0x2f9   :  { %4087 = vmatmul.bf16.vlgmr.msrb.gmra.mxu3 %v9241_v17  ;;  %4100 = vmatmul.bf16.vlgmr.msrb.gmra.mxu1 %v9243_v18 }
 0x2fa   :  { %4131 = vmatpush.bf16.msra.mxu3 %v6096_v34  ;;  %4144 = vmatpush.bf16.msra.mxu1 %v6320_v36  ;;  %v6745_v34 = vld [vmem:[%s10250_s9 + $0x84] sm:$0xf]  ;;  %v5953_v36 = vld [vmem:[%s10250_s9 + $0x9c] sm:$0xf0] }
 0x2fb   :  { %4157 = vmatpush.bf16.msra.mxu2 %v6100_v51  ;;  %4170 = vmatpush.bf16.msra.mxu0 %v6324_v25  ;;  %v3108_v7 = vpop.f32.mrf.mxu3  ;;  %v5988_v51 = vor.u32 %v6756_v23, %v5987_v6  ;;  %v6212_v25 = vor.u32 %v6812_v26, %v6211_v24  ;;  %v5956_v35 = vor.u32 %v6745_v34, %v5953_v36 }
 0x2fc   :  { %4113 = vmatmul.bf16.vlgmr.msrb.gmra.mxu2 %v9241_v17  ;;  %4126 = vmatmul.bf16.vlgmr.msrb.gmra.mxu0 %v9243_v18  ;;  %v3109_v21 = vadd.f32 %v3108_v7, %v2509_v45  ;;  %v3134_v22 = vpop.f32.mrf.mxu2  ;;  %v6121_v45 = vld [vmem:[%s10250_s9 + $0x1ec] sm:$0xf0] }
 0x2fd   :  { %v3135_v27 = vadd.f32 %v3134_v22, %v2510_v11  ;;  %v3123_v28 = vpop.f32.mrf.mxu1  ;;  %v5903_v11 = vld [vmem:[%s10250_s9 + $0x18] sm:$0xf]  ;;  %v6124_v7 = vor.u32 %v6787_v55, %v6121_v45 }
 0x2fe   :  { %4132 = vmatpush.bf16.msra.mxu3 %v6068_v31  ;;  %4145 = vmatpush.bf16.msra.mxu1 %v6292_v30  ;;  %v3122_v29 = vadd.f32 %v3121_v37, %v3109_v21  ;;  %v3149_v33 = vpop.f32.mrf.mxu0  ;;  %v5931_v37 = vld [vmem:[%s10250_s9 + $0x50] sm:$0xf] }
 0x2ff   :  { %4158 = vmatpush.bf16.msra.mxu2 %v6072_v49  ;;  %4171 = vmatpush.bf16.msra.mxu0 %v6296_v50  ;;  %v3148_v40 = vadd.f32 %v3147_v63, %v3135_v27  ;;  %v6738_v49 = vld [vmem:[%s10250_s9 + $0x4c] sm:$0xf]  ;;  %v5925_v50 = vld [vmem:[%s10250_s9 + $0x64] sm:$0xf0]  ;;  %v6155_v63 = vld [vmem:[%s10250_s9 + $0x210] sm:$0xf] }
 0x300   :  { %v4183_v43 = vmul.f32 0.01, %v3122_v29  ;;  %v5928_v5 = vor.u32 %v6738_v49, %v5925_v50  ;;  %v6156_v10 = vor.u32 %v6798_v3, %v6155_v63 }
 0x301   :  { %v4184_v31 = vmul.f32 0.01, %v3148_v40 }
 0x302   :  { %4133 = vmatpush.bf16.msra.mxu3 %v6040_v61  ;;  %4146 = vmatpush.bf16.msra.mxu1 %v6264_v62  ;;  %v4190_v30 = vmax.f32 %v3122_v29, %v4183_v43  ;;  %v6742_v61 = vld [vmem:[%s10250_s9 + $0x68] sm:$0xf0] }
 0x303   :  { %4159 = vmatpush.bf16.msra.mxu2 %v6044_v8  ;;  %4172 = vmatpush.bf16.msra.mxu0 %v6268_v2  ;;  %v4191_v38 = vmax.f32 %v3148_v40, %v4184_v31  ;;  %v3110_v56 = vpop.f32.mrf.mxu3  ;;  %v6152_v8 = vor.u32 %v6794_v52, %v6149_v58  ;;  %v5932_v0 = vor.u32 %v6742_v61, %v5931_v37 }
 0x304   :  { %4197 = vst [vmem:[#allocation2] sm:$0xff] %v4190_v30  ;;  %v3136_v62 = vpop.f32.mrf.mxu2 }
 0x305   :  { %4198 = vst [vmem:[#allocation2 + $0x8] sm:$0xff] %v4191_v38  ;;  %v3173_v4 = vpop.f32.mrf.mxu1 }
 0x306   :  { %4134 = vmatpush.bf16.msra.mxu3 %v6012_v59  ;;  %4147 = vmatpush.bf16.msra.mxu1 %v6236_v1  ;;  %v3199_v2 = vpop.f32.mrf.mxu0  ;;  %v6735_v59 = vld [vmem:[%s10250_s9 + $0x30] sm:$0xf0]  ;;  %v6127_v1 = vld [vmem:[%s10250_s9 + $0x1d8] sm:$0xf] }
 0x307   :  { %4160 = vmatpush.bf16.msra.mxu2 %v6016_v14  ;;  %4173 = vmatpush.bf16.msra.mxu0 %v6240_v16  ;;  %v2512_v14 = vperm.slane %v10088_v60, 3  ;;  %v5900_v16 = vor.u32 %v6731_v48, %v5897_v9  ;;  %v5904_v19 = vor.u32 %v6735_v59, %v5903_v11  ;;  %v6128_v20 = vor.u32 %v6791_v12, %v6127_v1 }
 0x30a   :  { %4135 = vmatpush.bf16.msra.mxu3 %v5984_v15  ;;  %4148 = vmatpush.bf16.msra.mxu1 %v6208_v32 }
 0x30b   :  { %4161 = vmatpush.bf16.msra.mxu2 %v5988_v51  ;;  %4174 = vmatpush.bf16.msra.mxu0 %v6212_v25  ;;  %v3160_v6 = vpop.f32.mrf.mxu3  ;;  %v2513_v51 = vperm.slane %v10088_v60, 4  ;;  %v2514_v25 = vperm.slane %v10088_v60, 5 }
 0x30c   :  { %v3161_v21 = vadd.f32 %v3160_v6, %v2511_v13  ;;  %v3186_v22 = vpop.f32.mrf.mxu2 }
 0x30d   :  { %v3187_v23 = vadd.f32 %v3186_v22, %v2512_v14  ;;  %v3175_v24 = vpop.f32.mrf.mxu1 }
 0x30e   :  { %4136 = vmatpush.bf16.msra.mxu3 %v5956_v35  ;;  %4149 = vmatpush.bf16.msra.mxu1 %v6180_v47  ;;  %v3174_v26 = vadd.f32 %v3173_v4, %v3161_v21  ;;  %v3201_v27 = vpop.f32.mrf.mxu0 }
 0x30f   :  { %4162 = vmatpush.bf16.msra.mxu2 %v5960_v53  ;;  %4175 = vmatpush.bf16.msra.mxu0 %v6184_v54  ;;  %v3200_v28 = vadd.f32 %v3199_v2, %v3187_v23  ;;  %v10223_v53 = vld [vmem:[%s10251_s10] sm:$0x7f]  ;;  %v2515_v54 = vperm.slane %v10088_v60, 6  ;;  %s6896_s10 = smov [#allocation4]  }
 0x310   :  { %v4185_v29 = vmul.f32 0.01, %v3174_v26  ;;  %v3411_v56 = vperm.slane %v10223_v53, 0  ;;  %v3412_v45 = vperm.slane %v10223_v53, 1  ;;  %v3413_v11 = vperm.slane %v10223_v53, 2  ;;  %s4241_s11 = sshll.u32 %s6896_s10, 4  ;;  %s4242_s11 = int_to_ptr.vmem [resolvable:$true] %s4241_s11 }
 0x311   :  { %v4186_v15 = vmul.f32 0.01, %v3200_v28 }
 0x312   :  { %4137 = vmatpush.bf16.msra.mxu3 %v5928_v5  ;;  %4150 = vmatpush.bf16.msra.mxu1 %v6152_v8  ;;  %v4192_v32 = vmax.f32 %v3174_v26, %v4185_v29  ;;  %v3415_v29 = vperm.slane %v10223_v53, 4 }
 0x313   :  { %4163 = vmatpush.bf16.msra.mxu2 %v5932_v0  ;;  %4176 = vmatpush.bf16.msra.mxu0 %v6156_v10  ;;  %v4193_v33 = vmax.f32 %v3200_v28, %v4186_v15  ;;  %v3162_v34 = vpop.f32.mrf.mxu3  ;;  %v3414_v28 = vperm.slane %v10223_v53, 3 }
 0x314   :  { %4199 = vst [vmem:[#allocation2 + $0x10] sm:$0xff] %v4192_v32  ;;  %v3188_v36 = vpop.f32.mrf.mxu2 }
 0x315   :  { %4200 = vst [vmem:[#allocation2 + $0x18] sm:$0xff] %v4193_v33 }
 0x316   :  { %4138 = vmatpush.bf16.msra.mxu3 %v5900_v16  ;;  %4151 = vmatpush.bf16.msra.mxu1 %v6124_v7  ;;  %v3225_v39 = vpop.f32.mrf.mxu1 }
 0x317   :  { %4164 = vmatpush.bf16.msra.mxu2 %v5904_v19  ;;  %4177 = vmatpush.bf16.msra.mxu0 %v6128_v20 }
 0x319   :  { %4139 = vmatmul.bf16.vlgmr.msra.gmra.mxu3 %v9241_v17  ;;  %4152 = vmatmul.bf16.vlgmr.msra.gmra.mxu1 %v9243_v18  ;;  %v3251_v40 = vpop.f32.mrf.mxu0 }
 0x31a   :  { %4165 = vmatmul.bf16.vlgmr.msra.gmra.mxu2 %v9241_v17  ;;  %4178 = vmatmul.bf16.vlgmr.msra.gmra.mxu0 %v9243_v18 }
 0x31c   :  { %v3212_v41 = vpop.f32.mrf.mxu3 }
 0x31d   :  { %v3213_v42 = vadd.f32 %v3212_v41, %v2513_v51 }
 0x31e   :  { %v3227_v44 = vpop.f32.mrf.mxu1 }
 0x31f   :  { %v3238_v57 = vpop.f32.mrf.mxu2  ;;  %v3226_v46 = vadd.f32 %v3225_v39, %v3213_v42 }
 0x320   :  { %v3239_v43 = vadd.f32 %v3238_v57, %v2514_v25 }
 0x321   :  { %v3253_v17 = vpop.f32.mrf.mxu0  ;;  %v4187_v18 = vmul.f32 0.01, %v3226_v46 }
 0x322   :  { %v3252_v31 = vadd.f32 %v3251_v40, %v3239_v43 }
 0x323   :  { %v4194_v35 = vmax.f32 %v3226_v46, %v4187_v18  ;;  %v3417_v18 = vperm.slane %v10223_v53, 6 }
 0x324   :  { %v4188_v30 = vmul.f32 0.01, %v3252_v31  ;;  %v3214_v49 = vpop.f32.mrf.mxu3 }
 0x325   :  { %4201 = vst [vmem:[#allocation2 + $0x20] sm:$0xff] %v4194_v35 }
 0x326   :  { %v4195_v47 = vmax.f32 %v3252_v31, %v4188_v30  ;;  %v3416_v31 = vperm.slane %v10223_v53, 5 }
 0x327   :  { %v3240_v50 = vpop.f32.mrf.mxu2 }
 0x328   :  { %4202 = vst [vmem:[#allocation2 + $0x28] sm:$0xff] %v4195_v47 }
 0x336   :  { %v3277_v52 = vpop.f32.mrf.mxu1 }
 0x339   :  { %v4023_v38 = vpop.f32.mrf.mxu0 }
 0x33c   :  { %v3264_v58 = vpop.f32.mrf.mxu3 }
 0x33d   :  { %v3265_v37 = vadd.f32 %v3264_v58, %v2515_v54 }
 0x33e   :  { %v3279_v63 = vpop.f32.mrf.mxu1 }
 0x33f   :  { %v4010_v61 = vpop.f32.mrf.mxu2  ;;  %v3278_v3 = vadd.f32 %v3277_v52, %v3265_v37 }
 0x340   :  { %v4011_v62 = vadd.f32 %v4010_v61, %v3411_v56 }
 0x341   :  { %v4025_v4 = vpop.f32.mrf.mxu0  ;;  %v4189_v8 = vmul.f32 0.01, %v3278_v3 }
 0x342   :  { %v4024_v5 = vadd.f32 %v4023_v38, %v4011_v62 }
 0x343   :  { %v4196_v48 = vmax.f32 %v3278_v3, %v4189_v8 }
 0x344   :  { %v4204_v2 = vmul.f32 0.01, %v4024_v5  ;;  %v3266_v9 = vpop.f32.mrf.mxu3 }
 0x345   :  { %4203 = vst.msk [vmem:[#allocation2 + $0x30] sm:$0xff] %vm1243_vm0, %v4196_v48 }
 0x346   :  { %v4211_v60 = vmax.f32 %v4024_v5, %v4204_v2  ;;  %4235 = dma.vmem_to_hbm [thread:$0]  %s4231_s28, 896, %s4233_s6, [#allocation3]  }
 0x347   :  { %v4012_v55 = vpop.f32.mrf.mxu2 }
 0x348   :  { %4218 = vst [vmem:[#allocation4] sm:$0xff] %v4211_v60 }
 0x356   :  { %v4049_v0 = vpop.f32.mrf.mxu1 }
 0x359   :  { %v4075_v10 = vpop.f32.mrf.mxu0 }
 0x35c   :  { %v4036_v59 = vpop.f32.mrf.mxu3 }
 0x35d   :  { %v4037_v1 = vadd.f32 %v4036_v59, %v3412_v45 }
 0x35e   :  { %v4051_v14 = vpop.f32.mrf.mxu1 }
 0x35f   :  { %v4062_v12 = vpop.f32.mrf.mxu2  ;;  %v4050_v16 = vadd.f32 %v4049_v0, %v4037_v1 }
 0x360   :  { %v4063_v13 = vadd.f32 %v4062_v12, %v3413_v11 }
 0x361   :  { %v4077_v7 = vpop.f32.mrf.mxu0  ;;  %v4205_v20 = vmul.f32 0.01, %v4050_v16 }
 0x362   :  { %v4076_v19 = vadd.f32 %v4075_v10, %v4063_v13 }
 0x363   :  { %v4212_v21 = vmax.f32 %v4050_v16, %v4205_v20 }
 0x364   :  { %v4206_v6 = vmul.f32 0.01, %v4076_v19  ;;  %v4038_v23 = vpop.f32.mrf.mxu3 }
 0x365   :  { %4219 = vst [vmem:[#allocation4 + $0x8] sm:$0xff] %v4212_v21 }
 0x366   :  { %v4213_v22 = vmax.f32 %v4076_v19, %v4206_v6 }
 0x367   :  { %v4064_v24 = vpop.f32.mrf.mxu2 }
 0x368   :  { %4220 = vst [vmem:[#allocation4 + $0x10] sm:$0xff] %v4213_v22 }
 0x376   :  { %v4101_v26 = vpop.f32.mrf.mxu1 }
 0x379   :  { %v4127_v27 = vpop.f32.mrf.mxu0 }
 0x37c   :  { %v4088_v15 = vpop.f32.mrf.mxu3 }
 0x37d   :  { %v4089_v32 = vadd.f32 %v4088_v15, %v3414_v28 }
 0x37e   :  { %v4103_v36 = vpop.f32.mrf.mxu1 }
 0x37f   :  { %v4114_v33 = vpop.f32.mrf.mxu2  ;;  %v4102_v39 = vadd.f32 %v4101_v26, %v4089_v32 }
 0x380   :  { %v4115_v34 = vadd.f32 %v4114_v33, %v3415_v29 }
 0x381   :  { %v4129_v40 = vpop.f32.mrf.mxu0  ;;  %v4207_v25 = vmul.f32 0.01, %v4102_v39 }
 0x382   :  { %v4128_v51 = vadd.f32 %v4127_v27, %v4115_v34 }
 0x383   :  { %v4214_v42 = vmax.f32 %v4102_v39, %v4207_v25 }
 0x384   :  { %v4208_v41 = vmul.f32 0.01, %v4128_v51  ;;  %v4090_v43 = vpop.f32.mrf.mxu3 }
 0x385   :  { %4221 = vst [vmem:[#allocation4 + $0x18] sm:$0xff] %v4214_v42 }
 0x386   :  { %v4215_v57 = vmax.f32 %v4128_v51, %v4208_v41 }
 0x387   :  { %v4116_v44 = vpop.f32.mrf.mxu2 }
 0x388   :  { %4222 = vst [vmem:[#allocation4 + $0x20] sm:$0xff] %v4215_v57 }
 0x396   :  { %v4153_v46 = vpop.f32.mrf.mxu1 }
 0x397   :  { %v4179_v17 = vpop.f32.mrf.mxu0 }
 0x39c   :  { %v4140_v30 = vpop.f32.mrf.mxu3 }
 0x39d   :  { %v4141_v35 = vadd.f32 %v4140_v30, %v3416_v31  ;;  %v4166_v47 = vpop.f32.mrf.mxu2 }
 0x39e   :  { %v4167_v49 = vadd.f32 %v4166_v47, %v3417_v18  ;;  %v4155_v50 = vpop.f32.mrf.mxu1 }
 0x39f   :  { %v4154_v52 = vadd.f32 %v4153_v46, %v4141_v35  ;;  %v4181_v38 = vpop.f32.mrf.mxu0 }
 0x3a0   :  { %v4180_v54 = vadd.f32 %v4179_v17, %v4167_v49 }
 0x3a1   :  { %v4209_v56 = vmul.f32 0.01, %v4154_v52 }
 0x3a2   :  { %v4210_v58 = vmul.f32 0.01, %v4180_v54 }
 0x3a3   :  { %v4216_v37 = vmax.f32 %v4154_v52, %v4209_v56 }
 0x3a4   :  { %v4217_v61 = vmax.f32 %v4180_v54, %v4210_v58  ;;  %v4142_v62 = vpop.f32.mrf.mxu3 }
 0x3a5   :  { %4223 = vst [vmem:[#allocation4 + $0x28] sm:$0xff] %v4216_v37  ;;  %v4168_v53 = vpop.f32.mrf.mxu2 }
 0x3a6   :  { %4224 = vst.msk [vmem:[#allocation4 + $0x30] sm:$0xff] %vm1243_vm0, %v4217_v61 }
 0x3a7   :  { %4246 = dma.vmem_to_hbm [thread:$0]  %s4242_s11, 896, %s4244_s7, [#allocation5]  }
 0x3a8   :  { %6891 = dma.done.wait [#allocation3], 896  }
 0x3a9   :  { %6892 = vsyncadd [#allocation3], 4294966400 }
 0x3aa   :  { %6893 = dma.done.wait [#allocation5], 896  }
 0x3ab   :  { %6894 = vsyncadd [#allocation5], 4294966400 }
 0x3ac   :  { %4255 = vsyncpa [#allocation3], 1 }
 0x3ad   :  { %4256 = vsyncpa [#allocation5], 1 }

</bundles_post_ra>
